<compile_context>
chip_gen: v5e
topology: v5e:2x2
jax: 0.10.0
libtpu: 0.0.40
codegen_flags: <defaults>
</compile_context>

<pallas_src>
import functools

import jax
import jax.numpy as jnp
from jax.experimental import pallas as pl
from jax.experimental.pallas import tpu as pltpu


def _round_up(n, m):
    return ((n + m - 1) // m) * m


def _mlp_kernel(x_ref, w1_ref, b_ref, w2_ref, w3_ref, w4_ref, o_ref, *,
                out_dims, compute_dtype):
    """One batch tile of the 4-layer MLP (weights resident across the grid)."""
    f32 = jnp.float32
    d1, d2, d3, d4 = out_dims
    o2, o3, o4 = d1, d1 + d2, d1 + d2 + d3

    # Bias slab is laid out [b1 | b2 | b3 | b4]; offsets are 128-aligned
    # (asserted in the wrapper), so these static slices are free lane-aligned
    # views.
    b1 = b_ref[:, 0:d1]
    b2 = b_ref[:, o2:o2 + d2]
    b3 = b_ref[:, o3:o3 + d3]
    b4 = b_ref[:, o4:o4 + d4]

    x = x_ref[...].astype(f32)                       # (TB, S), S = state_space
    s = x.shape[1]

    # fc1: K = state_space is tiny (2 for MountainCar) -> VPU broadcast-MAC
    # instead of a K=2/256-fill padded MXU pass.  `s` is static -> unrolled.
    w1 = w1_ref[...].astype(f32)                     # (S, d1)
    h = x[:, 0:1] * w1[0:1, :]
    for k in range(1, s):
        h = h + x[:, k:k + 1] * w1[k:k + 1, :]
    # ReLU with the bf16 cast fused in: inter-layer activations stay bf16
    # (native MXU input, half the vreg/VMEM traffic).
    h = jnp.maximum(h + b1, 0.0).astype(compute_dtype)

    # fc2 / fc3 / out: bf16 MXU inputs, f32 accumulation.
    h = jnp.dot(h, w2_ref[...].astype(compute_dtype), preferred_element_type=f32) + b2
    h = jnp.maximum(h, 0.0).astype(compute_dtype)

    h = jnp.dot(h, w3_ref[...].astype(compute_dtype), preferred_element_type=f32) + b3
    h = jnp.maximum(h, 0.0).astype(compute_dtype)

    h = jnp.dot(h, w4_ref[...].astype(compute_dtype), preferred_element_type=f32) + b4
    o_ref[...] = h.astype(o_ref.dtype)


@functools.partial(jax.jit, static_argnames=("batch_tile_cap", "out_dtype"))
def target_net_forward(x, params, batch_tile_cap=1024, out_dtype=jnp.float32):
    """relu(fc1) -> relu(fc2) -> relu(fc3) -> out, as one pallas_call.

    params: dict with w1..w4 ((in, out) layout, bf16 or f32) and "bias_cat"
            ((1, d1+d2+d3+d4), f32) pre-concatenated at init time.
    """
    B, S = x.shape
    w1, w2, w3, w4 = params["w1"], params["w2"], params["w3"], params["w4"]
    bias_cat = params["bias_cat"]
    d1, d2, d3, d4 = w1.shape[1], w2.shape[1], w3.shape[1], w4.shape[1]
    out_dims = (d1, d2, d3, d4)

    # In-kernel bias-slab slices are only free lane-aligned views if every
    # offset is a multiple of 128 (true for 512/512/256/256).
    assert d1 % 128 == 0 and (d1 + d2) % 128 == 0 and (d1 + d2 + d3) % 128 == 0, \
        "bias_cat offsets must be 128-aligned"
    assert bias_cat.shape == (1, d1 + d2 + d3 + d4)

    # Batch tiling: a single grid step whenever the batch fits under the cap
    # (no per-step overhead, weights pushed to the MXU once).  Larger batches
    # split into independent tiles that v7x shards across both TCs; by then
    # the duplicated per-TC weight DMA is amortized by activation traffic.
    Bp = _round_up(B, 8)
    TB = min(Bp, _round_up(int(batch_tile_cap), 8))
    Bp = _round_up(Bp, TB)
    if Bp != B:
        x = jnp.pad(x, ((0, Bp - B), (0, 0)))
    grid = (Bp // TB,)

    # Constant index_map -> weights/biases DMA'd once and resident across the
    # grid; single-buffered since they are never refetched.
    def resident(a):
        return pl.BlockSpec(a.shape, lambda i: (0, 0),
                            pipeline_mode=pl.Buffered(1))

    flops = 2 * Bp * (S * d1 + d1 * d2 + d2 * d3 + d3 * d4)
    bytes_accessed = (
        x.size * x.dtype.itemsize
        + sum(int(w.size) * w.dtype.itemsize for w in (w1, w2, w3, w4))
        + int(bias_cat.size) * bias_cat.dtype.itemsize
        + Bp * d4 * jnp.dtype(out_dtype).itemsize)

    out = pl.pallas_call(
        functools.partial(_mlp_kernel, out_dims=out_dims,
                          compute_dtype=jnp.bfloat16),
        out_shape=jax.ShapeDtypeStruct((Bp, d4), out_dtype),
        grid=grid,
        in_specs=[
            pl.BlockSpec((TB, S), lambda i: (i, 0)),   # x: tiled over batch
            resident(w1),
            resident(bias_cat),
            resident(w2),
            resident(w3),
            resident(w4),
        ],
        out_specs=pl.BlockSpec((TB, d4), lambda i: (i, 0)),
        compiler_params=pltpu.CompilerParams(
            # Batch tiles (if >1) are independent -> shard across both TCs on
            # v7x; harmless on single-TC chips.  No vmem_limit override: the
            # whole problem fits the default scoped limit everywhere.
            dimension_semantics=("parallel",)),
        cost_estimate=pl.CostEstimate(
            flops=flops, transcendentals=0, bytes_accessed=bytes_accessed),
    )(x, w1, bias_cat, w2, w3, w4)

    return out[:B] if Bp != B else out


# ----------------------- deterministic parameter init -----------------------

def _orthogonal(key, out_f, in_f, std):
    """Mimics torch.nn.init.orthogonal_ on a (out_f, in_f) weight; returns the
    JAX-layout (in_f, out_f) weight (transpose), scaled by std."""
    a = jax.random.normal(key, (max(out_f, in_f), min(out_f, in_f)), jnp.float32)
    q, r = jnp.linalg.qr(a)
    q = q * jnp.sign(jnp.diagonal(r))          # make decomposition unique
    if out_f < in_f:
        q = q.T                                 # -> (out_f, in_f)
    w_torch = std * q                           # (out_f, in_f) like nn.Linear
    return w_torch.T.astype(jnp.float32)        # (in_f, out_f) for x @ W


def init_target_net_params(key, state_space, weight_dtype=jnp.bfloat16):
    """bf16 weights by default (native MXU input, half the weight traffic);
    biases are pre-concatenated into a single (1, 1536) f32 slab so the
    forward wrapper contains no extra XLA ops."""
    std = float(jnp.sqrt(2.0))
    dims = [(state_space, 512), (512, 512), (512, 256), (256, 256)]
    keys = jax.random.split(key, len(dims))
    params = {}
    for i, ((d_in, d_out), k) in enumerate(zip(dims, keys), start=1):
        params[f"w{i}"] = _orthogonal(k, d_out, d_in, std).astype(weight_dtype)
    total_out = sum(d_out for _, d_out in dims)
    params["bias_cat"] = jnp.zeros((1, total_out), jnp.float32)  # bias_const=0.0
    return params


# ---------------------------------- main ------------------------------------

if __name__ == "__main__":
    key = jax.random.PRNGKey(0)
    k_params, k_x = jax.random.split(key)

    state_space = 2          # MountainCar observation dim
    batch = 256              # multiple of 8 -> single tile, no pad/slice ops

    params = init_target_net_params(k_params, state_space)          # bf16 weights
    x = jax.random.normal(k_x, (batch, state_space), jnp.float32)

    y = target_net_forward(x, params)
    jax.block_until_ready(y)
    assert y.shape == (batch, 256), y.shape
    assert y.dtype == jnp.float32, y.dtype

    # Pure-JAX f32 reference of the same math (weights upcast to f32).
    def reference(xx, pp):
        dims = [pp[f"w{i}"].shape[1] for i in range(1, 5)]
        offs = [0]
        for d in dims:
            offs.append(offs[-1] + d)
        r = xx
        for i in range(1, 5):
            w = pp[f"w{i}"].astype(jnp.float32)
            b = pp["bias_cat"][:, offs[i - 1]:offs[i]]
            r = r @ w + b
            if i < 4:
                r = jnp.maximum(r, 0.0)
        return r

    ref = reference(x, params)
    rel = jnp.max(jnp.abs(y - ref)) / (jnp.max(jnp.abs(ref)) + 1e-6)
    assert rel < 5e-2, rel            # bf16 matmul inputs, f32 accumulation

    # f32-weight path: kernel still feeds the MXU bf16 inputs internally.
    params_f32 = init_target_net_params(k_params, state_space,
                                        weight_dtype=jnp.float32)
    y_f32w = target_net_forward(x, params_f32)
    jax.block_until_ready(y_f32w)
    ref_f32w = reference(x, params_f32)
    rel_f32w = jnp.max(jnp.abs(y_f32w - ref_f32w)) / (jnp.max(jnp.abs(ref_f32w)) + 1e-6)
    assert rel_f32w < 5e-2, rel_f32w

    # Ragged batch (exercises the pad / slice path, still a single tile).
    y_small = target_net_forward(x[:37], params)
    jax.block_until_ready(y_small)
    assert y_small.shape == (37, 256)
    rel_small = jnp.max(jnp.abs(y_small - ref[:37])) / (jnp.max(jnp.abs(ref)) + 1e-6)
    assert rel_small < 5e-2, rel_small

    print("KERNEL_OK")
</pallas_src>

<mosaic_0001>
module attributes {stable_mosaic.version = 11 : i64} {
  func.func @_mlp_kernel(%arg0: i32, %arg1: memref<256x2xf32, #tpu.memory_space<vmem>>, %arg2: memref<2x512xbf16, #tpu.memory_space<vmem>>, %arg3: memref<1x1536xf32, #tpu.memory_space<vmem>>, %arg4: memref<512x512xbf16, #tpu.memory_space<vmem>>, %arg5: memref<512x256xbf16, #tpu.memory_space<vmem>>, %arg6: memref<256x256xbf16, #tpu.memory_space<vmem>>, %arg7: memref<256x256xf32, #tpu.memory_space<vmem>>) attributes {dimension_semantics = [#tpu.dimension_semantics<parallel>], iteration_bounds = array<i64: 1>, scalar_prefetch = 0 : i64, scratch_operands = 0 : i64, tpu.core_type = #tpu.core_type<tc>, window_params = [{transform_indices = @transform_0, window_bounds = array<i64: 256, 2>}, {pipeline_mode = #tpu.pipeline_mode<synchronous>, transform_indices = @transform_1, window_bounds = array<i64: 2, 512>}, {pipeline_mode = #tpu.pipeline_mode<synchronous>, transform_indices = @transform_2, window_bounds = array<i64: 1, 1536>}, {pipeline_mode = #tpu.pipeline_mode<synchronous>, transform_indices = @transform_3, window_bounds = array<i64: 512, 512>}, {pipeline_mode = #tpu.pipeline_mode<synchronous>, transform_indices = @transform_4, window_bounds = array<i64: 512, 256>}, {pipeline_mode = #tpu.pipeline_mode<synchronous>, transform_indices = @transform_5, window_bounds = array<i64: 256, 256>}, {transform_indices = @transform_6, window_bounds = array<i64: 256, 256>}]} {
    %c0 = arith.constant 0 : index
    %c0_0 = arith.constant 0 : index
    %0 = vector.load %arg3[%c0, %c0_0] : memref<1x1536xf32, #tpu.memory_space<vmem>>, vector<1x512xf32>
    %c0_1 = arith.constant 0 : index
    %c512 = arith.constant 512 : index
    %1 = vector.load %arg3[%c0_1, %c512] : memref<1x1536xf32, #tpu.memory_space<vmem>>, vector<1x512xf32>
    %c0_2 = arith.constant 0 : index
    %c1024 = arith.constant 1024 : index
    %2 = vector.load %arg3[%c0_2, %c1024] : memref<1x1536xf32, #tpu.memory_space<vmem>>, vector<1x256xf32>
    %c0_3 = arith.constant 0 : index
    %c1280 = arith.constant 1280 : index
    %3 = vector.load %arg3[%c0_3, %c1280] : memref<1x1536xf32, #tpu.memory_space<vmem>>, vector<1x256xf32>
    %c0_4 = arith.constant 0 : index
    %c0_5 = arith.constant 0 : index
    %4 = vector.load %arg1[%c0_4, %c0_5] : memref<256x2xf32, #tpu.memory_space<vmem>>, vector<256x2xf32>
    %c0_6 = arith.constant 0 : index
    %c0_7 = arith.constant 0 : index
    %5 = vector.load %arg2[%c0_6, %c0_7] : memref<2x512xbf16, #tpu.memory_space<vmem>>, vector<2x512xbf16>
    %6 = arith.extf %5 : vector<2x512xbf16> to vector<2x512xf32>
    %7 = vector.extract_strided_slice %4 {offsets = [0, 0], sizes = [256, 1], strides = [1, 1]} : vector<256x2xf32> to vector<256x1xf32>
    %8 = vector.extract_strided_slice %6 {offsets = [0, 0], sizes = [1, 512], strides = [1, 1]} : vector<2x512xf32> to vector<1x512xf32>
    %9 = vector.broadcast %7 : vector<256x1xf32> to vector<256x512xf32>
    %10 = vector.broadcast %8 : vector<1x512xf32> to vector<256x512xf32>
    %11 = arith.mulf %9, %10 : vector<256x512xf32>
    %12 = vector.extract_strided_slice %4 {offsets = [0, 1], sizes = [256, 1], strides = [1, 1]} : vector<256x2xf32> to vector<256x1xf32>
    %13 = vector.extract_strided_slice %6 {offsets = [1, 0], sizes = [1, 512], strides = [1, 1]} : vector<2x512xf32> to vector<1x512xf32>
    %14 = vector.broadcast %12 : vector<256x1xf32> to vector<256x512xf32>
    %15 = vector.broadcast %13 : vector<1x512xf32> to vector<256x512xf32>
    %16 = arith.mulf %14, %15 : vector<256x512xf32>
    %17 = arith.addf %11, %16 : vector<256x512xf32>
    %18 = vector.broadcast %0 : vector<1x512xf32> to vector<256x512xf32>
    %19 = arith.addf %17, %18 : vector<256x512xf32>
    %cst = arith.constant 0.000000e+00 : f32
    %20 = vector.broadcast %cst : f32 to vector<256x512xf32>
    %21 = arith.maximumf %19, %20 : vector<256x512xf32>
    %22 = arith.truncf %21 : vector<256x512xf32> to vector<256x512xbf16>
    %c0_8 = arith.constant 0 : index
    %c0_9 = arith.constant 0 : index
    %23 = vector.load %arg4[%c0_8, %c0_9] : memref<512x512xbf16, #tpu.memory_space<vmem>>, vector<512x512xbf16>
    %cst_10 = arith.constant dense<0.000000e+00> : vector<256x512xf32>
    %24 = tpu.matmul %22, %23, %cst_10 {dimension_numbers = #tpu.dot_dimension_numbers<[1], [0], [0], [1], [0, 0, 1, 1], [], []>} : vector<256x512xbf16>, vector<512x512xbf16>, vector<256x512xf32> -> vector<256x512xf32>
    %25 = vector.broadcast %1 : vector<1x512xf32> to vector<256x512xf32>
    %26 = arith.addf %24, %25 : vector<256x512xf32>
    %cst_11 = arith.constant 0.000000e+00 : f32
    %27 = vector.broadcast %cst_11 : f32 to vector<256x512xf32>
    %28 = arith.maximumf %26, %27 : vector<256x512xf32>
    %29 = arith.truncf %28 : vector<256x512xf32> to vector<256x512xbf16>
    %c0_12 = arith.constant 0 : index
    %c0_13 = arith.constant 0 : index
    %30 = vector.load %arg5[%c0_12, %c0_13] : memref<512x256xbf16, #tpu.memory_space<vmem>>, vector<512x256xbf16>
    %cst_14 = arith.constant dense<0.000000e+00> : vector<256x256xf32>
    %31 = tpu.matmul %29, %30, %cst_14 {dimension_numbers = #tpu.dot_dimension_numbers<[1], [0], [0], [1], [0, 0, 1, 1], [], []>} : vector<256x512xbf16>, vector<512x256xbf16>, vector<256x256xf32> -> vector<256x256xf32>
    %32 = vector.broadcast %2 : vector<1x256xf32> to vector<256x256xf32>
    %33 = arith.addf %31, %32 : vector<256x256xf32>
    %cst_15 = arith.constant 0.000000e+00 : f32
    %34 = vector.broadcast %cst_15 : f32 to vector<256x256xf32>
    %35 = arith.maximumf %33, %34 : vector<256x256xf32>
    %36 = arith.truncf %35 : vector<256x256xf32> to vector<256x256xbf16>
    %c0_16 = arith.constant 0 : index
    %c0_17 = arith.constant 0 : index
    %37 = vector.load %arg6[%c0_16, %c0_17] : memref<256x256xbf16, #tpu.memory_space<vmem>>, vector<256x256xbf16>
    %cst_18 = arith.constant dense<0.000000e+00> : vector<256x256xf32>
    %38 = tpu.matmul %36, %37, %cst_18 {dimension_numbers = #tpu.dot_dimension_numbers<[1], [0], [0], [1], [0, 0, 1, 1], [], []>} : vector<256x256xbf16>, vector<256x256xbf16>, vector<256x256xf32> -> vector<256x256xf32>
    %39 = vector.broadcast %3 : vector<1x256xf32> to vector<256x256xf32>
    %40 = arith.addf %38, %39 : vector<256x256xf32>
    %c0_19 = arith.constant 0 : index
    %c0_20 = arith.constant 0 : index
    %41 = vector.load %arg7[%c0_19, %c0_20] : memref<256x256xf32, #tpu.memory_space<vmem>>, vector<256x256xf32>
    tpu.vector_store %arg7[%c0_19, %c0_20], %40 {strides = array<i32>} : memref<256x256xf32, #tpu.memory_space<vmem>>, vector<256x256xf32>,
    return
  }
  func.func @transform_0(%arg0: i32) -> (i32, i32) {
    %c0_i32 = arith.constant 0 : i32
    %c0_i32_0 = arith.constant 0 : i32
    return %arg0, %c0_i32 : i32, i32
  }
  func.func @transform_1(%arg0: i32) -> (i32, i32) {
    %c0_i32 = arith.constant 0 : i32
    %c0_i32_0 = arith.constant 0 : i32
    %c0_i32_1 = arith.constant 0 : i32
    return %c0_i32, %c0_i32_0 : i32, i32
  }
  func.func @transform_2(%arg0: i32) -> (i32, i32) {
    %c0_i32 = arith.constant 0 : i32
    %c0_i32_0 = arith.constant 0 : i32
    %c0_i32_1 = arith.constant 0 : i32
    return %c0_i32, %c0_i32_0 : i32, i32
  }
  func.func @transform_3(%arg0: i32) -> (i32, i32) {
    %c0_i32 = arith.constant 0 : i32
    %c0_i32_0 = arith.constant 0 : i32
    %c0_i32_1 = arith.constant 0 : i32
    return %c0_i32, %c0_i32_0 : i32, i32
  }
  func.func @transform_4(%arg0: i32) -> (i32, i32) {
    %c0_i32 = arith.constant 0 : i32
    %c0_i32_0 = arith.constant 0 : i32
    %c0_i32_1 = arith.constant 0 : i32
    return %c0_i32, %c0_i32_0 : i32, i32
  }
  func.func @transform_5(%arg0: i32) -> (i32, i32) {
    %c0_i32 = arith.constant 0 : i32
    %c0_i32_0 = arith.constant 0 : i32
    %c0_i32_1 = arith.constant 0 : i32
    return %c0_i32, %c0_i32_0 : i32, i32
  }
  func.func @transform_6(%arg0: i32) -> (i32, i32) {
    %c0_i32 = arith.constant 0 : i32
    %c0_i32_0 = arith.constant 0 : i32
    return %arg0, %c0_i32 : i32, i32
  }
}

</mosaic_0001>

<bundles_post_ra>
// kernel: target_net_forward.1
= control target key start
LH: loop header
LB: loop body
LE: loop exit
PB: predicated region body
PF: predicated region fallthrough
CT: control target
= control target key end

     0   :  { %11 = vsyncpa [#allocation3], 0  ;;  %s8584_s0 = inlined_call_operand.vmem [shape: f32[256,2], index: 0, kind: input, shape index: {}]   ;;  %s8585_s1 = inlined_call_operand.vmem [shape: bf16[2,512], index: 1, kind: input, shape index: {}]   ;;  %s8586_s2 = inlined_call_operand.hbm [shape: f32[1,1536], index: 2, kind: input, shape index: {}]   ;;  %s8587_s3 = inlined_call_operand.hbm [shape: bf16[512,512], index: 3, kind: input, shape index: {}]   ;;  %s8588_s4 = inlined_call_operand.hbm [shape: bf16[512,256], index: 4, kind: input, shape index: {}]   ;;  %s8589_s5 = inlined_call_operand.vmem [shape: bf16[256,256], index: 5, kind: input, shape index: {}]   ;;  %s8590_s6 = inlined_call_operand.hbm [shape: f32[256,256], index: 6, kind: output, shape index: {}]  }
   0x1   :  { %12 = vsyncpa [#allocation6], 0  ;;  %s33_s23 = sshll.u32 %s8587_s3, 4  ;;  %s34_s23 = int_to_ptr.hbm [resolvable:$true] %s33_s23 }
   0x2   :  { %13 = vsyncpa [#allocation4], 0  ;;  %s6632_s24 = smov [#allocation5]   ;;  %s23_s28 = sshll.u32 %s8586_s2, 4  ;;  %s24_s28 = int_to_ptr.hbm [resolvable:$true] %s23_s28 }
   0x3   :  { %s35_s25 = sshll.u32 %s6632_s24, 4  ;;  %s6633_s29 = smov 256   ;;  %s36_s25 = int_to_ptr.vmem [resolvable:$true] %s35_s25 }
   0x4   :  { %s6634_s30 = smov 16   ;;  %s6635_s7 = smov [#allocation2]  }
   0x5   :  { %41 = dma.hbm_to_vmem [thread:$0]  %s34_s23, 16384, %s36_s25, [#allocation6], %s6633_s29, %s6633_s29, %s6634_s30  }
   0x6   :  { %s25_s8 = sshll.u32 %s6635_s7, 4  ;;  %s46_s10 = sshll.u32 %s8588_s4, 4  ;;  %s26_s8 = int_to_ptr.vmem [resolvable:$true] %s25_s8  ;;  %s47_s10 = int_to_ptr.hbm [resolvable:$true] %s46_s10 }
   0x7   :  { %28 = dma.hbm_to_vmem [thread:$0]  %s24_s28, 192, %s26_s8, [#allocation3]  }
   0x8   :  { %s6636_s11 = smov [#allocation7]   ;;  %s6637_s2 = smov 128  }
   0x9   :  { %s48_s12 = sshll.u32 %s6636_s11, 4  ;;  %s6638_s13 = smov 8   ;;  %s49_s12 = int_to_ptr.vmem [resolvable:$true] %s48_s12 }
   0xa   :  { %54 = dma.hbm_to_vmem [thread:$0]  %s47_s10, 8192, %s49_s12, [#allocation6], %s6637_s2, %s6637_s2, %s6638_s13  }
   0xb   :  { %6626 = dma.done.wait [#allocation3], 192  }
   0xc   :  { %6627 = vsyncadd [#allocation3], 4294967104 }
   0xd   :  { %6628 = dma.done.wait [#allocation6], 24576  }
   0xe   :  { %6629 = vsyncadd [#allocation6], 4294942720  ;;  %v6639_v0 = vmov 1   ;;  %v8591_v1 = vmov 0   ;;  %v73_v2 = vld [vmem:[%s8584_s0] sm:$0xff]  ;;  %v75_v3 = vld [vmem:[%s8584_s0 + $0x10] sm:$0xff] }
   0xf   :  { %6491 = vset.pattern.permute.xlu1 %v6639_v0  ;;  %6490 = vset.pattern.permute.xlu0 %v8591_v1  ;;  %v74_v4 = vld [vmem:[%s8584_s0 + $0x8] sm:$0xff]  ;;  %v76_v5 = vld [vmem:[%s8584_s0 + $0x18] sm:$0xff]  ;;  %v77_v6 = vld [vmem:[%s8584_s0 + $0x20] sm:$0xff]  ;;  %s5346_s24 = sshll.u32 %s8590_s6, 4  ;;  %s5347_s24 = int_to_ptr.hbm [resolvable:$true] %s5346_s24 }
  0x10   :  { %6492 = vset.pattern.permute.xlu2 %v8591_v1  ;;  %409 = vperm.xlu1 %6491, %v73_v2   ;;  %v78_v7 = vld [vmem:[%s8584_s0 + $0x28] sm:$0xff]  ;;  %v79_v8 = vld [vmem:[%s8584_s0 + $0x30] sm:$0xff]  ;;  %v80_v9 = vld [vmem:[%s8584_s0 + $0x38] sm:$0xff] }
  0x11   :  { %109 = vperm.xlu0 %6490, %v73_v2   ;;  %119 = vperm.xlu2 %6492, %v75_v3   ;;  %v82_v10 = vld [vmem:[%s8584_s0 + $0x48] sm:$0xff]  ;;  %v81_v11 = vld [vmem:[%s8584_s0 + $0x40] sm:$0xff]  ;;  %v83_v12 = vld [vmem:[%s8584_s0 + $0x50] sm:$0xff] }
  0x12   :  { %v6737_v13 = vld [vmem:[%s8584_s0 + $0x68] sm:$0xff]  ;;  %v84_v14 = vld [vmem:[%s8584_s0 + $0x58] sm:$0xff]  ;;  %v6747_v21 = vld [vmem:[%s8584_s0 + $0x70] sm:$0xff] }
  0x13   :  { %v5474_v15 = vld [vmem:[#allocation5 + $0xe0] sm:$0xf]  ;;  %v6286_v16 = vld [vmem:[#allocation5 + $0xec] sm:$0xf0]  ;;  %v85_v26 = vld [vmem:[%s8584_s0 + $0x60] sm:$0xff] }
  0x14   :  { %v5475_v17 = vor.u32 %v6286_v16, %v5474_v15  ;;  %v5602_v18 = vld [vmem:[#allocation5 + $0x1e0] sm:$0xf]  ;;  %v6318_v19 = vld [vmem:[#allocation5 + $0x1ec] sm:$0xf0] }
  0x15   :  { %v5730_v20 = vld [vmem:[#allocation5 + $0x2e0] sm:$0xf]  ;;  %v5603_v22 = vor.u32 %v6318_v19, %v5602_v18  ;;  %v6350_v23 = vld [vmem:[#allocation5 + $0x2ec] sm:$0xf0] }
  0x16   :  { %v5858_v24 = vld [vmem:[#allocation5 + $0x3e0] sm:$0xf]  ;;  %v6382_v25 = vld [vmem:[#allocation5 + $0x3ec] sm:$0xf0]  ;;  %1910 = vmatpush.bf16.msra.mxu0 %v5475_v17  ;;  %v5731_v27 = vor.u32 %v6350_v23, %v5730_v20 }
  0x17   :  { %v5859_v28 = vor.u32 %v6382_v25, %v5858_v24  ;;  %v5458_v29 = vld [vmem:[#allocation5 + $0xc0] sm:$0xf]  ;;  %v6282_v30 = vld [vmem:[#allocation5 + $0xcc] sm:$0xf0]  ;;  %1999 = vmatpush.bf16.msra.mxu1 %v5603_v22 }
  0x18   :  { %413 = vperm.xlu1 %6491, %v74_v4   ;;  %v5459_v31 = vor.u32 %v6282_v30, %v5458_v29  ;;  %v5586_v32 = vld [vmem:[#allocation5 + $0x1c0] sm:$0xf]  ;;  %v6314_v33 = vld [vmem:[#allocation5 + $0x1cc] sm:$0xf0]  ;;  %2088 = vmatpush.bf16.msra.mxu2 %v5731_v27 }
  0x19   :  { %114 = vperm.xlu0 %6490, %v74_v4   ;;  %124 = vperm.xlu2 %6492, %v76_v5   ;;  %v5714_v34 = vld [vmem:[#allocation5 + $0x2c0] sm:$0xf]  ;;  %v5587_v35 = vor.u32 %v6314_v33, %v5586_v32  ;;  %v6346_v36 = vld [vmem:[#allocation5 + $0x2cc] sm:$0xf0] }
  0x1a   :  { %v5842_v37 = vld [vmem:[#allocation5 + $0x3c0] sm:$0xf]  ;;  %v6378_v38 = vld [vmem:[#allocation5 + $0x3cc] sm:$0xf0]  ;;  %2177 = vmatpush.bf16.msra.mxu3 %v5859_v28  ;;  %1911 = vmatpush.bf16.msra.mxu0 %v5459_v31  ;;  %v5715_v39 = vor.u32 %v6346_v36, %v5714_v34 }
  0x1b   :  { %v5843_v40 = vor.u32 %v6378_v38, %v5842_v37  ;;  %2000 = vmatpush.bf16.msra.mxu1 %v5587_v35  ;;  %v5442_v41 = vld [vmem:[#allocation5 + $0xa0] sm:$0xf]  ;;  %v6278_v42 = vld [vmem:[#allocation5 + $0xac] sm:$0xf0] }
  0x1c   :  { %v5570_v43 = vld [vmem:[#allocation5 + $0x1a0] sm:$0xf]  ;;  %v6310_v44 = vld [vmem:[#allocation5 + $0x1ac] sm:$0xf0]  ;;  %2089 = vmatpush.bf16.msra.mxu2 %v5715_v39  ;;  %v5443_v45 = vor.u32 %v6278_v42, %v5442_v41  ;;  %v91_v41 = vld [vmem:[%s8584_s0 + $0x90] sm:$0xff] }
  0x1d   :  { %v5571_v46 = vor.u32 %v6310_v44, %v5570_v43  ;;  %v5698_v47 = vld [vmem:[#allocation5 + $0x2a0] sm:$0xf]  ;;  %v6342_v48 = vld [vmem:[#allocation5 + $0x2ac] sm:$0xf0] }
  0x1e   :  { %v5826_v49 = vld [vmem:[#allocation5 + $0x3a0] sm:$0xf]  ;;  %2178 = vmatpush.bf16.msra.mxu3 %v5843_v40  ;;  %v5699_v50 = vor.u32 %v6342_v48, %v5698_v47  ;;  %v6374_v51 = vld [vmem:[#allocation5 + $0x3ac] sm:$0xf0]  ;;  %1912 = vmatpush.bf16.msra.mxu0 %v5443_v45  ;;  %v89_v40 = vld [vmem:[%s8584_s0 + $0x80] sm:$0xff] }
  0x1f   :  { %v5426_v52 = vld [vmem:[#allocation5 + $0x80] sm:$0xf]  ;;  %v6274_v53 = vld [vmem:[#allocation5 + $0x8c] sm:$0xf0]  ;;  %2001 = vmatpush.bf16.msra.mxu1 %v5571_v46  ;;  %v5827_v54 = vor.u32 %v6374_v51, %v5826_v49 }
  0x20   :  { %421 = vperm.xlu1 %6491, %v76_v5   ;;  %v5427_v55 = vor.u32 %v6274_v53, %v5426_v52  ;;  %v5554_v56 = vld [vmem:[#allocation5 + $0x180] sm:$0xf]  ;;  %v6306_v57 = vld [vmem:[#allocation5 + $0x18c] sm:$0xf0]  ;;  %2090 = vmatpush.bf16.msra.mxu2 %v5699_v50 }
  0x21   :  { %6493 = vset.pattern.permute.xlu0 %v6639_v0  ;;  %129 = vperm.xlu2 %6492, %v77_v6   ;;  %v5682_v58 = vld [vmem:[#allocation5 + $0x280] sm:$0xf]  ;;  %v5555_v59 = vor.u32 %v6306_v57, %v5554_v56  ;;  %v6338_v60 = vld [vmem:[#allocation5 + $0x28c] sm:$0xf0]  ;;  %v6348_v57 = vld [vmem:[#allocation5 + $0x2e4] sm:$0xf] }
  0x22   :  { %417 = vperm.xlu0 %6493, %v75_v3   ;;  %v5810_v61 = vld [vmem:[#allocation5 + $0x380] sm:$0xf]  ;;  %v6370_v62 = vld [vmem:[#allocation5 + $0x38c] sm:$0xf0]  ;;  %v5683_v63 = vor.u32 %v6338_v60, %v5682_v58  ;;  %2179 = vmatpush.bf16.msra.mxu3 %v5827_v54  ;;  %v5732_v58 = vld [vmem:[#allocation5 + $0x2f0] sm:$0xf0] }
  0x23   :  { %v5811_v2 = vor.u32 %v6370_v62, %v5810_v61  ;;  %1913 = vmatpush.bf16.msra.mxu0 %v5427_v55  ;;  %2002 = vmatpush.bf16.msra.mxu1 %v5555_v59  ;;  %v5410_v3 = vld [vmem:[#allocation5 + $0x60] sm:$0xf]  ;;  %v6270_v4 = vld [vmem:[#allocation5 + $0x6c] sm:$0xf0]  ;;  %v105_v55 = vld [vmem:[%s8585_s1] sm:$0xf]  ;;  %v5735_v60 = vor.u32 %v6348_v57, %v5732_v58 }
  0x24   :  { %2091 = vmatpush.bf16.msra.mxu2 %v5683_v63  ;;  %v5538_v5 = vld [vmem:[#allocation5 + $0x160] sm:$0xf]  ;;  %v6266_v18 = vld [vmem:[#allocation5 + $0x4c] sm:$0xf0]  ;;  %v106_v56 = vunpack.c.l.bf16 %v105_v55  ;;  %v6380_v59 = vld [vmem:[#allocation5 + $0x3e4] sm:$0xf] }
  0x25   :  { %v6766_v15 = vld [vmem:[%s8584_s0 + $0x88] sm:$0xff]  ;;  %v6330_v23 = vld [vmem:[#allocation5 + $0x24c] sm:$0xf0]  ;;  %v5860_v61 = vld [vmem:[#allocation5 + $0x3f0] sm:$0xf0] }
  0x26   :  { %2180 = vmatpush.bf16.msra.mxu3 %v5811_v2  ;;  %v5394_v17 = vld [vmem:[#allocation5 + $0x40] sm:$0xf]  ;;  %v6362_v27 = vld [vmem:[#allocation5 + $0x34c] sm:$0xf0]  ;;  %v6284_v63 = vld [vmem:[#allocation5 + $0xe4] sm:$0xf]  ;;  %v5863_v2 = vor.u32 %v6380_v59, %v5860_v61 }
  0x27   :  { %v5522_v19 = vld [vmem:[#allocation5 + $0x140] sm:$0xf]  ;;  %v5395_v20 = vor.u32 %v6266_v18, %v5394_v17  ;;  %v6262_v30 = vld [vmem:[#allocation5 + $0x2c] sm:$0xf0]  ;;  %v5604_v17 = vld [vmem:[#allocation5 + $0x1f0] sm:$0xf0] }
  0x28   :  { %6494 = vset.pattern.permute.xlu1 %v8591_v1  ;;  %v5650_v22 = vld [vmem:[#allocation5 + $0x240] sm:$0xf]  ;;  %v6294_v33 = vld [vmem:[#allocation5 + $0x12c] sm:$0xf0] }
  0x29   :  { %134 = vperm.xlu1 %6494, %v78_v7   ;;  %6495 = vset.pattern.permute.xlu2 %v6639_v0  ;;  %v5651_v25 = vor.u32 %v6330_v23, %v5650_v22  ;;  %v5378_v29 = vld [vmem:[#allocation5 + $0x20] sm:$0xf]  ;;  %v6326_v35 = vld [vmem:[#allocation5 + $0x22c] sm:$0xf0]  ;;  %v6804_v23 = vld [vmem:[%s8584_s0 + $0xb0] sm:$0xff] }
  0x2a   :  { %429 = vperm.xlu0 %6493, %v78_v7   ;;  %425 = vperm.xlu2 %6495, %v77_v6   ;;  %v5411_v6 = vor.u32 %v6270_v4, %v5410_v3  ;;  %v6302_v7 = vld [vmem:[#allocation5 + $0x16c] sm:$0xf0]  ;;  %v5506_v31 = vld [vmem:[#allocation5 + $0x120] sm:$0xf]  ;;  %v5379_v32 = vor.u32 %v6262_v30, %v5378_v29  ;;  %v5476_v3 = vld [vmem:[#allocation5 + $0xf0] sm:$0xf0] }
  0x2b   :  { %v5634_v34 = vld [vmem:[#allocation5 + $0x220] sm:$0xf]  ;;  %v5507_v36 = vor.u32 %v6294_v33, %v5506_v31  ;;  %v6358_v39 = vld [vmem:[#allocation5 + $0x32c] sm:$0xf0]  ;;  %v5479_v4 = vor.u32 %v6284_v63, %v5476_v3 }
  0x2c   :  { %1914 = vmatpush.bf16.msra.mxu0 %v5411_v6  ;;  %v5635_v37 = vor.u32 %v6326_v35, %v5634_v34  ;;  %v5762_v38 = vld [vmem:[#allocation5 + $0x320] sm:$0xf]  ;;  %v6258_v44 = vld [vmem:[#allocation5 + $0xc] sm:$0xf0]  ;;  %v269_v6 = vperm.slane %v106_v56, 2 }
  0x2d   :  { %v5763_v42 = vor.u32 %v6358_v39, %v5762_v38  ;;  %v5362_v43 = vld [vmem:[#allocation5] sm:$0xf]  ;;  %v6290_v47 = vld [vmem:[#allocation5 + $0x10c] sm:$0xf0]  ;;  %v69_v35 = vld [vmem:[#allocation2] sm:$0xf] }
  0x2e   :  { %v5490_v45 = vld [vmem:[#allocation5 + $0x100] sm:$0xf]  ;;  %v5363_v46 = vor.u32 %v6258_v44, %v5362_v43  ;;  %v6322_v49 = vld [vmem:[#allocation5 + $0x20c] sm:$0xf0]  ;;  %v6839_v58 = vperm.slane %v69_v35, 2  ;;  %v6841_v59 = vperm.slane %v69_v35, 3 }
  0x2f   :  { %v5618_v48 = vld [vmem:[#allocation5 + $0x200] sm:$0xf]  ;;  %v5491_v50 = vor.u32 %v6290_v47, %v5490_v45  ;;  %v6354_v53 = vld [vmem:[#allocation5 + $0x30c] sm:$0xf0] }
  0x30   :  { %1915 = vmatpush.bf16.msra.mxu0 %v5395_v20  ;;  %v5619_v51 = vor.u32 %v6322_v49, %v5618_v48  ;;  %v5746_v52 = vld [vmem:[#allocation5 + $0x300] sm:$0xf] }
  0x31   :  { %139 = vperm.xlu1 %6494, %v79_v8   ;;  %v5747_v54 = vor.u32 %v6354_v53, %v5746_v52  ;;  %v6785_v62 = vld [vmem:[%s8584_s0 + $0xa8] sm:$0xff] }
  0x32   :  { %433 = vperm.xlu0 %6493, %v79_v8   ;;  %6496 = vset.pattern.permute.xlu2 %v8591_v1  ;;  %v5666_v8 = vld [vmem:[#allocation5 + $0x260] sm:$0xf] }
  0x33   :  { %144 = vperm.xlu2 %6496, %v80_v9  }
  0x34   :  { %1916 = vmatpush.bf16.msra.mxu0 %v5379_v32 }
  0x38   :  { %1917 = vmatpush.bf16.msra.mxu0 %v5363_v46 }
  0x39   :  { %6497 = vset.pattern.permute.xlu1 %v6639_v0 }
  0x3a   :  { %6498 = vset.pattern.permute.xlu0 %v8591_v1  ;;  %437 = vperm.xlu1 %6497, %v80_v9   ;;  %v88_v9 = vld [vmem:[%s8584_s0 + $0x78] sm:$0xff] }
  0x3b   :  { %154 = vperm.xlu0 %6498, %v82_v10   ;;  %149 = vperm.xlu2 %6496, %v81_v11  }
  0x3c   :  { %2266 = vmatpush.bf16.msrb.mxu0 %v5479_v4  ;;  %v93_v4 = vld [vmem:[%s8584_s0 + $0xa0] sm:$0xff] }
  0x42   :  { %441 = vperm.xlu1 %6497, %v81_v11   ;;  %v5539_v11 = vor.u32 %v6302_v7, %v5538_v5  ;;  %v268_v5 = vperm.slane %v106_v56, 0  ;;  %v270_v7 = vperm.slane %v106_v56, 4 }
  0x43   :  { %6502 = vset.pattern.permute.xlu0 %v6639_v0  ;;  %6499 = vset.pattern.permute.xlu2 %v6639_v0 }
  0x44   :  { %449 = vperm.xlu0 %6502, %v83_v12   ;;  %445 = vperm.xlu2 %6499, %v82_v10   ;;  %v6334_v10 = vld [vmem:[#allocation5 + $0x26c] sm:$0xf0]  ;;  %v6793_v18 = vperm.slane %v268_v5, 0 }
  0x45   :  { %2003 = vmatpush.bf16.msra.mxu1 %v5539_v11  ;;  %v92_v11 = vld [vmem:[%s8584_s0 + $0x98] sm:$0xff] }
  0x4a   :  { %6500 = vset.pattern.permute.xlu1 %v8591_v1 }
  0x4b   :  { %159 = vperm.xlu1 %6500, %v83_v12   ;;  %v5667_v12 = vor.u32 %v6334_v10, %v5666_v8  ;;  %v271_v8 = vperm.slane %v106_v56, 6  ;;  %v537_v10 = vperm.slane %v106_v56, 3 }
  0x4c   :  { %461 = vperm.xlu0 %6502, %v6737_v13   ;;  %6501 = vset.pattern.permute.xlu2 %v8591_v1 }
  0x4d   :  { %164 = vperm.xlu2 %6501, %v84_v14   ;;  %2092 = vmatpush.bf16.msra.mxu2 %v5667_v12  ;;  %v538_v12 = vperm.slane %v106_v56, 5 }
  0x51   :  { %2093 = vmatpush.bf16.msra.mxu2 %v5651_v25  ;;  %v6808_v25 = vperm.slane %v271_v8, 0 }
  0x53   :  { %6503 = vset.pattern.permute.xlu1 %v6639_v0 }
  0x54   :  { %465 = vperm.xlu0 %6502, %v6747_v21   ;;  %453 = vperm.xlu1 %6503, %v84_v14   ;;  %v6366_v14 = vld [vmem:[#allocation5 + $0x36c] sm:$0xf0] }
  0x55   :  { %169 = vperm.xlu2 %6501, %v85_v26   ;;  %2094 = vmatpush.bf16.msra.mxu2 %v5635_v37 }
  0x59   :  { %2095 = vmatpush.bf16.msra.mxu2 %v5619_v51  ;;  %v6836_v51 = vperm.slane %v69_v35, 1 }
  0x5c   :  { %6508 = vset.pattern.permute.xlu0 %v8591_v1  ;;  %6504 = vset.pattern.permute.xlu1 %v8591_v1 }
  0x5d   :  { %174 = vperm.xlu1 %6504, %v6737_v13   ;;  %6505 = vset.pattern.permute.xlu2 %v6639_v0  ;;  %v5794_v13 = vld [vmem:[#allocation5 + $0x360] sm:$0xf] }
  0x5e   :  { %457 = vperm.xlu2 %6505, %v85_v26   ;;  %v5795_v16 = vor.u32 %v6366_v14, %v5794_v13  ;;  %194 = vperm.xlu0 %6508, %v6766_v15   ;;  %v5778_v26 = vld [vmem:[#allocation5 + $0x340] sm:$0xf]  ;;  %v539_v13 = vperm.slane %v106_v56, 7 }
  0x5f   :  { %v5779_v28 = vor.u32 %v6362_v27, %v5778_v26  ;;  %2444 = vmatpush.bf16.msrb.mxu2 %v5735_v60  ;;  %v6810_v26 = vperm.slane %v538_v12, 1 }
  0x60   :  { %2181 = vmatpush.bf16.msra.mxu3 %v5795_v16  ;;  %v6316_v16 = vld [vmem:[#allocation5 + $0x1e4] sm:$0xf]  ;;  %v6812_v27 = vperm.slane %v539_v13, 1 }
  0x61   :  { %v5607_v22 = vor.u32 %v6316_v16, %v5604_v17 }
  0x64   :  { %2182 = vmatpush.bf16.msra.mxu3 %v5779_v28 }
  0x65   :  { %179 = vperm.xlu1 %6504, %v6747_v21   ;;  %v6298_v21 = vld [vmem:[#allocation5 + $0x14c] sm:$0xf0] }
  0x66   :  { %6506 = vset.pattern.permute.xlu2 %v8591_v1  ;;  %v5523_v24 = vor.u32 %v6298_v21, %v5522_v19  ;;  %6512 = vset.pattern.permute.xlu0 %v6639_v0  ;;  %v6795_v19 = vperm.slane %v269_v6, 0  ;;  %v6799_v21 = vperm.slane %v537_v10, 1 }
  0x67   :  { %184 = vperm.xlu2 %6506, %v88_v9   ;;  %481 = vperm.xlu0 %6512, %v91_v41  }
  0x68   :  { %2004 = vmatpush.bf16.msra.mxu1 %v5523_v24  ;;  %2183 = vmatpush.bf16.msra.mxu3 %v5763_v42  ;;  %v6806_v24 = vperm.slane %v270_v7, 0 }
  0x6b   :  { %v6815_v28 = vpop.permute.xlu2 %119 }
  0x6c   :  { %2005 = vmatpush.bf16.msra.mxu1 %v5507_v36  ;;  %2184 = vmatpush.bf16.msra.mxu3 %v5747_v54 }
  0x6d   :  { %6507 = vset.pattern.permute.xlu1 %v6639_v0 }
  0x6e   :  { %469 = vperm.xlu1 %6507, %v88_v9   ;;  %v536_v9 = vperm.slane %v106_v56, 1 }
  0x6f   :  { %189 = vperm.xlu2 %6506, %v89_v40   ;;  %493 = vperm.xlu0 %6512, %v6785_v62  }
  0x70   :  { %2006 = vmatpush.bf16.msra.mxu1 %v5491_v50  ;;  %2533 = vmatpush.bf16.msrb.mxu3 %v5863_v2  ;;  %v6797_v20 = vperm.slane %v536_v9, 1  ;;  %v6834_v50 = vperm.slane %v69_v35, 0 }
  0x73   :  { %v125_v60 = vpop.permute.xlu2 %124 }
  0x74   :  { %2355 = vmatpush.bf16.msrb.mxu1 %v5607_v22  ;;  %v292_v9 = vmul.f32 %v6793_v18, %v125_v60  ;;  %v293_v10 = vmul.f32 %v6795_v19, %v125_v60  ;;  %v294_v16 = vmul.f32 %v6806_v24, %v125_v60  ;;  %v295_v17 = vmul.f32 %v6808_v25, %v125_v60  ;;  %v96_v60 = vld [vmem:[%s8584_s0 + $0xb8] sm:$0xff] }
  0x76   :  { %473 = vperm.xlu1 %6507, %v89_v40  }
  0x77   :  { %6509 = vset.pattern.permute.xlu2 %v6639_v0  ;;  %497 = vperm.xlu0 %6512, %v6804_v23  }
  0x78   :  { %477 = vperm.xlu2 %6509, %v6766_v15  }
  0x7e   :  { %6510 = vset.pattern.permute.xlu1 %v8591_v1 }
  0x7f   :  { %199 = vperm.xlu1 %6510, %v91_v41   ;;  %6518 = vset.pattern.permute.xlu0 %v8591_v1 }
  0x80   :  { %6511 = vset.pattern.permute.xlu2 %v8591_v1 }
  0x81   :  { %204 = vperm.xlu2 %6511, %v92_v11  }
  0x82   :  { %v410_v14 = vpop.permute.xlu1 %409 }
  0x83   :  { %v110_v15 = vpop.permute.xlu0 %109  ;;  %v548_v29 = vmul.f32 %v6797_v20, %v410_v14  ;;  %v549_v30 = vmul.f32 %v6799_v21, %v410_v14  ;;  %v550_v33 = vmul.f32 %v6810_v26, %v410_v14  ;;  %v551_v34 = vmul.f32 %v6812_v27, %v410_v14 }
  0x84   :  { %v280_v31 = vmul.f32 %v6793_v18, %v110_v15  ;;  %v281_v32 = vmul.f32 %v6795_v19, %v110_v15  ;;  %v282_v36 = vmul.f32 %v6806_v24, %v110_v15  ;;  %v283_v37 = vmul.f32 %v6808_v25, %v110_v15 }
  0x86   :  { %v676_v48 = vadd.f32 %v548_v29, %v280_v31  ;;  %v677_v49 = vadd.f32 %v549_v30, %v281_v32  ;;  %v678_v56 = vadd.f32 %v550_v33, %v282_v36  ;;  %v679_v57 = vadd.f32 %v551_v34, %v283_v37 }
  0x87   :  { %6513 = vset.pattern.permute.xlu1 %v6639_v0 }
  0x88   :  { %485 = vperm.xlu1 %6513, %v92_v11   ;;  %v813_v5 = vadd.f32 %v6834_v50, %v676_v48  ;;  %v814_v6 = vadd.f32 %v6836_v51, %v677_v49  ;;  %v815_v7 = vadd.f32 %v6839_v58, %v678_v56  ;;  %v816_v8 = vadd.f32 %v6841_v59, %v679_v57 }
  0x89   :  { %209 = vperm.xlu2 %6511, %v93_v4  }
  0x8a   :  { %v414_v38 = vpop.permute.xlu1 %413  ;;  %v941_v22 = vmax.f32 %v813_v5, 0.0  ;;  %v942_v29 = vmax.f32 %v814_v6, 0.0  ;;  %v943_v32 = vmax.f32 %v815_v7, 0.0  ;;  %v944_v33 = vmax.f32 %v816_v8, 0.0 }
  0x8b   :  { %v115_v39 = vpop.permute.xlu0 %114  ;;  %v552_v40 = vmul.f32 %v6797_v20, %v414_v38  ;;  %v553_v41 = vmul.f32 %v6799_v21, %v414_v38  ;;  %v554_v42 = vmul.f32 %v6810_v26, %v414_v38  ;;  %v555_v43 = vmul.f32 %v6812_v27, %v414_v38 }
  0x8c   :  { %v284_v44 = vmul.f32 %v6793_v18, %v115_v39  ;;  %v285_v45 = vmul.f32 %v6795_v19, %v115_v39  ;;  %v286_v46 = vmul.f32 %v6806_v24, %v115_v39  ;;  %v287_v47 = vmul.f32 %v6808_v25, %v115_v39 }
  0x8e   :  { %v680_v52 = vadd.f32 %v552_v40, %v284_v44  ;;  %v681_v53 = vadd.f32 %v553_v41, %v285_v45  ;;  %v682_v54 = vadd.f32 %v554_v42, %v286_v46  ;;  %v683_v55 = vadd.f32 %v555_v43, %v287_v47  ;;  %v6884_v47 = vpop.permute.xlu2 %129 }
  0x8f   :  { %v288_v42 = vmul.f32 %v6793_v18, %v6815_v28  ;;  %v289_v45 = vmul.f32 %v6795_v19, %v6815_v28  ;;  %v290_v46 = vmul.f32 %v6806_v24, %v6815_v28 }
  0x90   :  { %6514 = vset.pattern.permute.xlu1 %v8591_v1  ;;  %v817_v61 = vadd.f32 %v6834_v50, %v680_v52  ;;  %v818_v63 = vadd.f32 %v6836_v51, %v681_v53  ;;  %v819_v2 = vadd.f32 %v6839_v58, %v682_v54  ;;  %v820_v3 = vadd.f32 %v6841_v59, %v683_v55 }
  0x91   :  { %214 = vperm.xlu1 %6514, %v6785_v62   ;;  %6515 = vset.pattern.permute.xlu2 %v6639_v0 }
  0x92   :  { %v422_v11 = vpop.permute.xlu1 %421  ;;  %v945_v62 = vmax.f32 %v817_v61, 0.0  ;;  %v946_v13 = vmax.f32 %v818_v63, 0.0  ;;  %v947_v14 = vmax.f32 %v819_v2, 0.0  ;;  %v948_v15 = vmax.f32 %v820_v3, 0.0  ;;  %489 = vperm.xlu2 %6515, %v93_v4   ;;  %v6344_v61 = vld [vmem:[#allocation5 + $0x2c4] sm:$0xf] }
  0x93   :  { %v560_v30 = vmul.f32 %v6797_v20, %v422_v11  ;;  %v561_v31 = vmul.f32 %v6799_v21, %v422_v11  ;;  %v562_v34 = vmul.f32 %v6810_v26, %v422_v11  ;;  %v563_v35 = vmul.f32 %v6812_v27, %v422_v11  ;;  %v5716_v63 = vld [vmem:[#allocation5 + $0x2d0] sm:$0xf0] }
  0x94   :  { %v418_v12 = vpop.permute.xlu0 %417  ;;  %v6866_v38 = vpack.c.bf16 %v945_v62, %v941_v22  ;;  %v6868_v39 = vpack.c.bf16 %v946_v13, %v942_v29  ;;  %v6870_v40 = vpack.c.bf16 %v947_v14, %v943_v32  ;;  %v6872_v41 = vpack.c.bf16 %v948_v15, %v944_v33  ;;  %v5844_v2 = vld [vmem:[#allocation5 + $0x3d0] sm:$0xf0] }
  0x95   :  { %v556_v36 = vmul.f32 %v6797_v20, %v418_v12  ;;  %v557_v37 = vmul.f32 %v6799_v21, %v418_v12  ;;  %v558_v43 = vmul.f32 %v6810_v26, %v418_v12  ;;  %v559_v44 = vmul.f32 %v6812_v27, %v418_v12  ;;  %v5460_v32 = vld [vmem:[#allocation5 + $0xd0] sm:$0xf0] }
  0x96   :  { %1918 = vmatmul.bf16.vlgmr.msra.gmra.mxu0 %v6866_v38  ;;  %2007 = vmatmul.bf16.vlgmr.msra.gmra.mxu1 %v6868_v39  ;;  %v688_v48 = vadd.f32 %v560_v30, %v292_v9  ;;  %v689_v52 = vadd.f32 %v561_v31, %v293_v10  ;;  %v690_v53 = vadd.f32 %v562_v34, %v294_v16  ;;  %v6280_v31 = vld [vmem:[#allocation5 + $0xc4] sm:$0xf] }
  0x97   :  { %v684_v49 = vadd.f32 %v556_v36, %v288_v42  ;;  %2096 = vmatmul.bf16.vlgmr.msra.gmra.mxu2 %v6870_v40  ;;  %2185 = vmatmul.bf16.vlgmr.msra.gmra.mxu3 %v6872_v41  ;;  %v691_v54 = vadd.f32 %v563_v35, %v295_v17  ;;  %v685_v55 = vadd.f32 %v557_v37, %v289_v45  ;;  %v426_v17 = vpop.permute.xlu2 %425  ;;  %v97_v45 = vld [vmem:[%s8584_s0 + $0xc0] sm:$0xff] }
  0x98   :  { %v686_v56 = vadd.f32 %v558_v43, %v290_v46  ;;  %v825_v3 = vadd.f32 %v6834_v50, %v688_v48  ;;  %v826_v6 = vadd.f32 %v6836_v51, %v689_v52  ;;  %v827_v7 = vadd.f32 %v6839_v58, %v690_v53  ;;  %v6312_v46 = vld [vmem:[#allocation5 + $0x1c4] sm:$0xf] }
  0x99   :  { %219 = vperm.xlu1 %6514, %v6804_v23   ;;  %v291_v23 = vmul.f32 %v6808_v25, %v6815_v28  ;;  %v6376_v28 = vld [vmem:[#allocation5 + $0x3c4] sm:$0xf]  ;;  %v821_v5 = vadd.f32 %v6834_v50, %v684_v49  ;;  %v828_v4 = vadd.f32 %v6841_v59, %v691_v54  ;;  %v822_v8 = vadd.f32 %v6836_v51, %v685_v55 }
  0x9a   :  { %v823_v9 = vadd.f32 %v6839_v58, %v686_v56  ;;  %v5719_v12 = vor.u32 %v6344_v61, %v5716_v63  ;;  %v5847_v62 = vor.u32 %v6376_v28, %v5844_v2  ;;  %v953_v14 = vmax.f32 %v825_v3, 0.0  ;;  %6516 = vset.pattern.permute.xlu2 %v8591_v1 }
  0x9b   :  { %v687_v57 = vadd.f32 %v559_v44, %v291_v23  ;;  %v135_v11 = vpop.permute.xlu1 %134  ;;  %v949_v13 = vmax.f32 %v821_v5, 0.0  ;;  %v296_v15 = vmul.f32 %v6793_v18, %v6884_v47  ;;  %v297_v16 = vmul.f32 %v6795_v19, %v6884_v47  ;;  %v5588_v23 = vld [vmem:[#allocation5 + $0x1d0] sm:$0xf0]  ;;  %224 = vperm.xlu2 %6516, %v96_v60  }
  0x9c   :  { %2445 = vmatpush.bf16.msrb.mxu2 %v5719_v12  ;;  %v430_v22 = vpop.permute.xlu0 %429  ;;  %v950_v29 = vmax.f32 %v822_v8, 0.0  ;;  %v954_v30 = vmax.f32 %v826_v6, 0.0  ;;  %2534 = vmatpush.bf16.msrb.mxu3 %v5847_v62  ;;  %v951_v33 = vmax.f32 %v823_v9, 0.0  ;;  %v955_v34 = vmax.f32 %v827_v7, 0.0 }
  0x9d   :  { %v824_v10 = vadd.f32 %v6841_v59, %v687_v57  ;;  %v956_v36 = vmax.f32 %v828_v4, 0.0  ;;  %v298_v37 = vmul.f32 %v6806_v24, %v6884_v47  ;;  %v300_v42 = vmul.f32 %v6793_v18, %v135_v11  ;;  %v98_v4 = vld [vmem:[%s8584_s0 + $0xc8] sm:$0xff] }
  0x9e   :  { %v301_v43 = vmul.f32 %v6795_v19, %v135_v11  ;;  %v302_v44 = vmul.f32 %v6806_v24, %v135_v11  ;;  %v303_v48 = vmul.f32 %v6808_v25, %v135_v11  ;;  %v568_v49 = vmul.f32 %v6797_v20, %v430_v22  ;;  %234 = vperm.xlu0 %6518, %v98_v4  }
  0x9f   :  { %v952_v35 = vmax.f32 %v824_v10, 0.0  ;;  %v569_v52 = vmul.f32 %v6799_v21, %v430_v22  ;;  %v5463_v53 = vor.u32 %v6280_v31, %v5460_v32  ;;  %v570_v54 = vmul.f32 %v6810_v26, %v430_v22  ;;  %v145_v10 = vpop.permute.xlu2 %144 }
  0xa0   :  { %v571_v55 = vmul.f32 %v6812_v27, %v430_v22  ;;  %v6922_v56 = vpack.c.bf16 %v953_v14, %v949_v13  ;;  %v6924_v57 = vpack.c.bf16 %v954_v30, %v950_v29  ;;  %v6926_v61 = vpack.c.bf16 %v955_v34, %v951_v33 }
  0xa1   :  { %6517 = vset.pattern.permute.xlu1 %v6639_v0  ;;  %v6928_v63 = vpack.c.bf16 %v956_v36, %v952_v35  ;;  %2267 = vmatpush.bf16.msrb.mxu0 %v5463_v53  ;;  %v564_v28 = vmul.f32 %v6797_v20, %v426_v17  ;;  %v565_v2 = vmul.f32 %v6799_v21, %v426_v17 }
  0xa2   :  { %501 = vperm.xlu1 %6517, %v96_v60   ;;  %v5591_v60 = vor.u32 %v6312_v46, %v5588_v23  ;;  %v566_v3 = vmul.f32 %v6810_v26, %v426_v17  ;;  %v299_v5 = vmul.f32 %v6808_v25, %v6884_v47  ;;  %v567_v6 = vmul.f32 %v6812_v27, %v426_v17  ;;  %v99_v17 = vld [vmem:[%s8584_s0 + $0xd0] sm:$0xff] }
  0xa3   :  { %8733 = vst [vmem:[#allocation12_spill] sm:$0xff] %v6928_v63  ;;  %v6938_v7 = vpop.permute.xlu1 %139  ;;  %v696_v8 = vadd.f32 %v568_v49, %v300_v42  ;;  %v697_v9 = vadd.f32 %v569_v52, %v301_v43  ;;  %v698_v11 = vadd.f32 %v570_v54, %v302_v44  ;;  %v699_v12 = vadd.f32 %v571_v55, %v303_v48 }
  0xa4   :  { %2356 = vmatpush.bf16.msrb.mxu1 %v5591_v60  ;;  %v692_v47 = vadd.f32 %v564_v28, %v296_v15  ;;  %v693_v62 = vadd.f32 %v565_v2, %v297_v16  ;;  %v694_v13 = vadd.f32 %v566_v3, %v298_v37  ;;  %229 = vperm.xlu2 %6516, %v97_v45   ;;  %v434_v60 = vpop.permute.xlu0 %433 }
  0xa5   :  { %v695_v14 = vadd.f32 %v567_v6, %v299_v5  ;;  %v833_v22 = vadd.f32 %v6834_v50, %v696_v8  ;;  %v834_v29 = vadd.f32 %v6836_v51, %v697_v9  ;;  %v835_v30 = vadd.f32 %v6839_v58, %v698_v11 }
  0xa6   :  { %1923 = vmatmul.bf16.gmra.mxu0 %v6922_v56  ;;  %2012 = vmatmul.bf16.gmra.mxu1 %v6924_v57  ;;  %v836_v31 = vadd.f32 %v6841_v59, %v699_v12  ;;  %v829_v15 = vadd.f32 %v6834_v50, %v692_v47  ;;  %v830_v16 = vadd.f32 %v6836_v51, %v693_v62 }
  0xa7   :  { %2101 = vmatmul.bf16.gmra.mxu2 %v6926_v61  ;;  %2190 = vmatmul.bf16.gmra.mxu3 %v6928_v63  ;;  %v831_v32 = vadd.f32 %v6839_v58, %v694_v13  ;;  %v832_v33 = vadd.f32 %v6841_v59, %v695_v14  ;;  %v308_v34 = vmul.f32 %v6793_v18, %v145_v10  ;;  %v961_v35 = vmax.f32 %v833_v22, 0.0  ;;  %v6962_v23 = vpop.permute.xlu2 %149 }
  0xa8   :  { %v962_v36 = vmax.f32 %v834_v29, 0.0  ;;  %v309_v37 = vmul.f32 %v6795_v19, %v145_v10  ;;  %v310_v42 = vmul.f32 %v6806_v24, %v145_v10  ;;  %v963_v44 = vmax.f32 %v835_v30, 0.0  ;;  %6522 = vset.pattern.permute.xlu0 %v6639_v0  ;;  %v6340_v29 = vld [vmem:[#allocation5 + $0x2a4] sm:$0xf]  ;;  %v5700_v30 = vld [vmem:[#allocation5 + $0x2b0] sm:$0xf0] }
  0xa9   :  { %v311_v46 = vmul.f32 %v6808_v25, %v145_v10  ;;  %v957_v48 = vmax.f32 %v829_v15, 0.0  ;;  %v958_v49 = vmax.f32 %v830_v16, 0.0  ;;  %v959_v52 = vmax.f32 %v831_v32, 0.0  ;;  %513 = vperm.xlu0 %6522, %v99_v17   ;;  %v6372_v16 = vld [vmem:[#allocation5 + $0x3a4] sm:$0xf] }
  0xaa   :  { %505 = vperm.xlu1 %6517, %v97_v45   ;;  %v964_v45 = vmax.f32 %v836_v31, 0.0  ;;  %v304_v53 = vmul.f32 %v6793_v18, %v6938_v7  ;;  %v305_v54 = vmul.f32 %v6795_v19, %v6938_v7  ;;  %v306_v55 = vmul.f32 %v6806_v24, %v6938_v7  ;;  %v5828_v32 = vld [vmem:[#allocation5 + $0x3b0] sm:$0xf0] }
  0xab   :  { %v960_v28 = vmax.f32 %v832_v33, 0.0  ;;  %v6973_v5 = vpack.c.bf16 %v961_v35, %v957_v48  ;;  %v6975_v6 = vpack.c.bf16 %v962_v36, %v958_v49  ;;  %v6979_v10 = vpack.c.bf16 %v963_v44, %v959_v52  ;;  %v6276_v48 = vld [vmem:[#allocation5 + $0xa4] sm:$0xf]  ;;  %v5444_v49 = vld [vmem:[#allocation5 + $0xb0] sm:$0xf0] }
  0xac   :  { %v438_v43 = vpop.permute.xlu1 %437  ;;  %6519 = vset.pattern.permute.xlu2 %v6639_v0  ;;  %v572_v12 = vmul.f32 %v6797_v20, %v434_v60  ;;  %v573_v47 = vmul.f32 %v6799_v21, %v434_v60  ;;  %v574_v62 = vmul.f32 %v6810_v26, %v434_v60  ;;  %v307_v13 = vmul.f32 %v6808_v25, %v6938_v7  ;;  %v102_v7 = vld [vmem:[%s8584_s0 + $0xe8] sm:$0xff] }
  0xad   :  { %v576_v2 = vmul.f32 %v6797_v20, %v438_v43  ;;  %v577_v3 = vmul.f32 %v6799_v21, %v438_v43  ;;  %8734 = vst [vmem:[#allocation13_spill] sm:$0xff] %v6973_v5  ;;  %509 = vperm.xlu2 %6519, %v98_v4   ;;  %v578_v8 = vmul.f32 %v6810_v26, %v438_v43  ;;  %v100_v4 = vld [vmem:[%s8584_s0 + $0xd8] sm:$0xff] }
  0xae   :  { %8735 = vst [vmem:[#allocation14_spill] sm:$0xff] %v6975_v6  ;;  %v579_v9 = vmul.f32 %v6812_v27, %v438_v43  ;;  %v6981_v11 = vpack.c.bf16 %v964_v45, %v960_v28  ;;  %v575_v14 = vmul.f32 %v6812_v27, %v434_v60  ;;  %v700_v33 = vadd.f32 %v572_v12, %v304_v53  ;;  %v6308_v28 = vld [vmem:[#allocation5 + $0x1a4] sm:$0xf] }
  0xaf   :  { %8736 = vst [vmem:[#allocation15_spill] sm:$0xff] %v6979_v10  ;;  %v705_v22 = vadd.f32 %v577_v3, %v309_v37  ;;  %v706_v31 = vadd.f32 %v578_v8, %v310_v42  ;;  %v701_v35 = vadd.f32 %v573_v47, %v305_v54  ;;  %v702_v36 = vadd.f32 %v574_v62, %v306_v55  ;;  %v446_v44 = vpop.permute.xlu2 %445 }
  0xb0   :  { %8737 = vst [vmem:[#allocation16_spill] sm:$0xff] %v6981_v11  ;;  %v707_v15 = vadd.f32 %v579_v9, %v311_v46  ;;  %v703_v43 = vadd.f32 %v575_v14, %v307_v13  ;;  %v5703_v45 = vor.u32 %v6340_v29, %v5700_v30  ;;  %v5831_v46 = vor.u32 %v6372_v16, %v5828_v32  ;;  %v155_v13 = vpop.permute.xlu0 %154 }
  0xb1   :  { %525 = vperm.xlu0 %6522, %v102_v7   ;;  %v842_v42 = vadd.f32 %v6836_v51, %v705_v22  ;;  %v843_v52 = vadd.f32 %v6839_v58, %v706_v31  ;;  %v313_v54 = vmul.f32 %v6795_v19, %v6962_v23  ;;  %v314_v55 = vmul.f32 %v6806_v24, %v6962_v23 }
  0xb2   :  { %6520 = vset.pattern.permute.xlu1 %v8591_v1  ;;  %v844_v53 = vadd.f32 %v6841_v59, %v707_v15  ;;  %v837_v3 = vadd.f32 %v6834_v50, %v700_v33  ;;  %v838_v8 = vadd.f32 %v6836_v51, %v701_v35  ;;  %v839_v9 = vadd.f32 %v6839_v58, %v702_v36 }
  0xb3   :  { %239 = vperm.xlu1 %6520, %v99_v17   ;;  %v704_v17 = vadd.f32 %v576_v2, %v308_v34  ;;  %v312_v34 = vmul.f32 %v6793_v18, %v6962_v23  ;;  %v5572_v2 = vld [vmem:[#allocation5 + $0x1b0] sm:$0xf0]  ;;  %2446 = vmatpush.bf16.msrb.mxu2 %v5703_v45  ;;  %v840_v12 = vadd.f32 %v6841_v59, %v703_v43  ;;  %v970_v22 = vmax.f32 %v842_v42, 0.0 }
  0xb4   :  { %v442_v60 = vpop.permute.xlu1 %441  ;;  %2535 = vmatpush.bf16.msrb.mxu3 %v5831_v46  ;;  %v315_v47 = vmul.f32 %v6808_v25, %v6962_v23  ;;  %v584_v62 = vmul.f32 %v6797_v20, %v446_v44  ;;  %v5447_v14 = vor.u32 %v6276_v48, %v5444_v49  ;;  %v5575_v29 = vor.u32 %v6308_v28, %v5572_v2 }
  0xb5   :  { %v841_v37 = vadd.f32 %v6834_v50, %v704_v17  ;;  %6521 = vset.pattern.permute.xlu2 %v8591_v1  ;;  %v585_v17 = vmul.f32 %v6799_v21, %v446_v44  ;;  %v586_v30 = vmul.f32 %v6810_v26, %v446_v44  ;;  %v587_v31 = vmul.f32 %v6812_v27, %v446_v44 }
  0xb6   :  { %1928 = vmatmul.bf16.gmra.mxu0 %v6973_v5  ;;  %2017 = vmatmul.bf16.gmra.mxu1 %v6975_v6  ;;  %v971_v15 = vmax.f32 %v843_v52, 0.0  ;;  %v972_v16 = vmax.f32 %v844_v53, 0.0  ;;  %v316_v32 = vmul.f32 %v6793_v18, %v155_v13  ;;  %v965_v23 = vmax.f32 %v837_v3, 0.0 }
  0xb7   :  { %2106 = vmatmul.bf16.gmra.mxu2 %v6979_v10  ;;  %2195 = vmatmul.bf16.gmra.mxu3 %v6981_v11  ;;  %v966_v33 = vmax.f32 %v838_v8, 0.0  ;;  %v967_v35 = vmax.f32 %v839_v9, 0.0  ;;  %v580_v36 = vmul.f32 %v6797_v20, %v442_v60  ;;  %v581_v43 = vmul.f32 %v6799_v21, %v442_v60 }
  0xb8   :  { %244 = vperm.xlu2 %6521, %v100_v4   ;;  %v968_v42 = vmax.f32 %v840_v12, 0.0  ;;  %2268 = vmatpush.bf16.msrb.mxu0 %v5447_v14  ;;  %v318_v44 = vmul.f32 %v6806_v24, %v155_v13  ;;  %v319_v45 = vmul.f32 %v6808_v25, %v155_v13  ;;  %v582_v49 = vmul.f32 %v6810_v26, %v442_v60 }
  0xb9   :  { %v7030_v48 = vpack.c.bf16 %v970_v22, %v966_v33  ;;  %2357 = vmatpush.bf16.msrb.mxu1 %v5575_v29  ;;  %v583_v52 = vmul.f32 %v6812_v27, %v442_v60  ;;  %v7037_v53 = vpack.c.bf16 %v971_v15, %v967_v35  ;;  %v712_v2 = vadd.f32 %v584_v62, %v316_v32  ;;  %v101_v60 = vld [vmem:[%s8584_s0 + $0xe0] sm:$0xff]  ;;  %v165_v29 = vpop.permute.xlu2 %164 }
  0xba   :  { %v7039_v28 = vpack.c.bf16 %v972_v16, %v968_v42  ;;  %v708_v3 = vadd.f32 %v580_v36, %v312_v34  ;;  %v709_v8 = vadd.f32 %v581_v43, %v313_v54  ;;  %v714_v62 = vadd.f32 %v586_v30, %v318_v44  ;;  %v450_v44 = vpop.permute.xlu0 %449 }
  0xbb   :  { %6523 = vset.pattern.permute.xlu1 %v6639_v0  ;;  %8739 = vst [vmem:[#allocation18_spill] sm:$0xff] %v7030_v48  ;;  %v711_v14 = vadd.f32 %v583_v52, %v315_v47  ;;  %v849_v54 = vadd.f32 %v6834_v50, %v712_v2  ;;  %v324_v33 = vmul.f32 %v6793_v18, %v165_v29 }
  0xbc   :  { %517 = vperm.xlu1 %6523, %v100_v4   ;;  %v969_v4 = vmax.f32 %v841_v37, 0.0  ;;  %v317_v37 = vmul.f32 %v6795_v19, %v155_v13  ;;  %8740 = vst [vmem:[#allocation19_spill] sm:$0xff] %v7037_v53  ;;  %v710_v13 = vadd.f32 %v582_v49, %v314_v55  ;;  %v845_v22 = vadd.f32 %v6834_v50, %v708_v3 }
  0xbd   :  { %8741 = vst [vmem:[#allocation20_spill] sm:$0xff] %v7039_v28  ;;  %v160_v12 = vpop.permute.xlu1 %159  ;;  %v846_v34 = vadd.f32 %v6836_v51, %v709_v8  ;;  %v848_v16 = vadd.f32 %v6841_v59, %v711_v14  ;;  %v851_v32 = vadd.f32 %v6839_v58, %v714_v62  ;;  %v977_v30 = vmax.f32 %v849_v54, 0.0 }
  0xbe   :  { %v7028_v46 = vpack.c.bf16 %v969_v4, %v965_v23  ;;  %v713_v9 = vadd.f32 %v585_v17, %v317_v37  ;;  %v715_v4 = vadd.f32 %v587_v31, %v319_v45  ;;  %v847_v15 = vadd.f32 %v6839_v58, %v710_v13  ;;  %v104_v37 = vld [vmem:[%s8584_s0 + $0xf8] sm:$0xff] }
  0xbf   :  { %v973_v47 = vmax.f32 %v845_v22, 0.0  ;;  %v974_v31 = vmax.f32 %v846_v34, 0.0  ;;  %v325_v35 = vmul.f32 %v6795_v19, %v165_v29  ;;  %v326_v36 = vmul.f32 %v6806_v24, %v165_v29 }
  0xc0   :  { %8738 = vst [vmem:[#allocation17_spill] sm:$0xff] %v7028_v46  ;;  %249 = vperm.xlu2 %6521, %v101_v60   ;;  %v850_v17 = vadd.f32 %v6836_v51, %v713_v9  ;;  %v852_v55 = vadd.f32 %v6841_v59, %v715_v4  ;;  %v327_v43 = vmul.f32 %v6808_v25, %v165_v29  ;;  %v975_v45 = vmax.f32 %v847_v15, 0.0 }
  0xc1   :  { %v976_v49 = vmax.f32 %v848_v16, 0.0  ;;  %v588_v2 = vmul.f32 %v6797_v20, %v450_v44  ;;  %v589_v3 = vmul.f32 %v6799_v21, %v450_v44  ;;  %v590_v8 = vmul.f32 %v6810_v26, %v450_v44  ;;  %v170_v29 = vpop.permute.xlu2 %169 }
  0xc2   :  { %v978_v23 = vmax.f32 %v850_v17, 0.0  ;;  %v980_v52 = vmax.f32 %v852_v55, 0.0  ;;  %v591_v9 = vmul.f32 %v6812_v27, %v450_v44  ;;  %v320_v13 = vmul.f32 %v6793_v18, %v160_v12 }
  0xc3   :  { %v321_v14 = vmul.f32 %v6795_v19, %v160_v12  ;;  %v7071_v62 = vpack.c.bf16 %v977_v30, %v973_v47  ;;  %v323_v22 = vmul.f32 %v6808_v25, %v160_v12  ;;  %v5684_v47 = vld [vmem:[#allocation5 + $0x290] sm:$0xf0]  ;;  %v6368_v30 = vld [vmem:[#allocation5 + $0x384] sm:$0xf] }
  0xc4   :  { %6524 = vset.pattern.permute.xlu1 %v8591_v1  ;;  %v7073_v4 = vpack.c.bf16 %v978_v23, %v974_v31  ;;  %v7083_v16 = vpack.c.bf16 %v980_v52, %v976_v49  ;;  %v5428_v49 = vld [vmem:[#allocation5 + $0x90] sm:$0xf0] }
  0xc5   :  { %254 = vperm.xlu1 %6524, %v102_v7   ;;  %v103_v7 = vld [vmem:[%s8584_s0 + $0xf0] sm:$0xff]  ;;  %8742 = vst [vmem:[#allocation21_spill] sm:$0xff] %v7071_v62  ;;  %v717_v55 = vadd.f32 %v589_v3, %v321_v14  ;;  %v5556_v3 = vld [vmem:[#allocation5 + $0x190] sm:$0xf0] }
  0xc6   :  { %529 = vperm.xlu0 %6522, %v103_v7   ;;  %1933 = vmatmul.bf16.gmra.mxu0 %v7028_v46  ;;  %v454_v42 = vpop.permute.xlu1 %453  ;;  %8743 = vst [vmem:[#allocation22_spill] sm:$0xff] %v7073_v4 }
  0xc7   :  { %2022 = vmatmul.bf16.gmra.mxu1 %v7030_v48  ;;  %2111 = vmatmul.bf16.gmra.mxu2 %v7037_v53  ;;  %v592_v34 = vmul.f32 %v6797_v20, %v454_v42  ;;  %v593_v54 = vmul.f32 %v6799_v21, %v454_v42  ;;  %v594_v17 = vmul.f32 %v6810_v26, %v454_v42 }
  0xc8   :  { %2200 = vmatmul.bf16.gmra.mxu3 %v7039_v28  ;;  %6525 = vset.pattern.permute.xlu2 %v6639_v0  ;;  %8745 = vst [vmem:[#allocation24_spill] sm:$0xff] %v7083_v16 }
  0xc9   :  { %521 = vperm.xlu2 %6525, %v101_v60   ;;  %v322_v60 = vmul.f32 %v6806_v24, %v160_v12  ;;  %v6336_v12 = vld [vmem:[#allocation5 + $0x284] sm:$0xf]  ;;  %v720_v31 = vadd.f32 %v592_v34, %v324_v33  ;;  %v721_v23 = vadd.f32 %v593_v54, %v325_v35  ;;  %v722_v52 = vadd.f32 %v594_v17, %v326_v36  ;;  %v458_v17 = vpop.permute.xlu2 %457 }
  0xca   :  { %v5687_v44 = vor.u32 %v6336_v12, %v5684_v47  ;;  %v854_v36 = vadd.f32 %v6836_v51, %v717_v55  ;;  %v330_v34 = vmul.f32 %v6806_v24, %v170_v29  ;;  %v331_v54 = vmul.f32 %v6808_v25, %v170_v29  ;;  %v462_v47 = vpop.permute.xlu0 %461 }
  0xcb   :  { %v857_v33 = vadd.f32 %v6834_v50, %v720_v31  ;;  %v858_v35 = vadd.f32 %v6836_v51, %v721_v23 }
  0xcc   :  { %2447 = vmatpush.bf16.msrb.mxu2 %v5687_v44  ;;  %v982_v55 = vmax.f32 %v854_v36, 0.0  ;;  %v603_v44 = vmul.f32 %v6812_v27, %v462_v47 }
  0xcd   :  { %259 = vperm.xlu1 %6524, %v103_v7   ;;  %v979_v7 = vmax.f32 %v851_v32, 0.0  ;;  %v716_v32 = vadd.f32 %v588_v2, %v320_v13  ;;  %v6304_v2 = vld [vmem:[#allocation5 + $0x184] sm:$0xf]  ;;  %v8746_v13 = vmov 0   ;;  %v986_v12 = vmax.f32 %v858_v35, 0.0 }
  0xcf   :  { %v7081_v15 = vpack.c.bf16 %v979_v7, %v975_v45  ;;  %v5812_v45 = vld [vmem:[#allocation5 + $0x390] sm:$0xf0]  ;;  %v6272_v7 = vld [vmem:[#allocation5 + $0x84] sm:$0xf] }
  0xd0   :  { %v5431_v14 = vor.u32 %v6272_v7, %v5428_v49  ;;  %v598_v7 = vmul.f32 %v6810_v26, %v458_v17  ;;  %v599_v49 = vmul.f32 %v6812_v27, %v458_v17 }
  0xd1   :  { %8744 = vst [vmem:[#allocation23_spill] sm:$0xff] %v7081_v15  ;;  %6526 = vset.pattern.permute.xlu2 %v8746_v13  ;;  %v7114_v13 = vpack.c.bf16 %v986_v12, %v982_v55  ;;  %v185_v55 = vpop.permute.xlu2 %184 }
  0xd2   :  { %264 = vperm.xlu2 %6526, %v104_v37   ;;  %2269 = vmatpush.bf16.msrb.mxu0 %v5431_v14 }
  0xd3   :  { %8748 = vst [vmem:[#allocation26_spill] sm:$0xff] %v7114_v13 }
  0xd5   :  { %6527 = vset.pattern.permute.xlu1 %v6639_v0  ;;  %v595_v0 = vmul.f32 %v6812_v27, %v454_v42  ;;  %v718_v42 = vadd.f32 %v590_v8, %v322_v60  ;;  %v853_v8 = vadd.f32 %v6834_v50, %v716_v32  ;;  %v985_v32 = vmax.f32 %v857_v33, 0.0 }
  0xd6   :  { %533 = vperm.xlu1 %6527, %v104_v37   ;;  %1938 = vmatmul.bf16.gmra.mxu0 %v7071_v62  ;;  %v719_v62 = vadd.f32 %v591_v9, %v323_v22  ;;  %v328_v37 = vmul.f32 %v6793_v18, %v170_v29 }
  0xd7   :  { %2027 = vmatmul.bf16.gmra.mxu1 %v7073_v4  ;;  %2116 = vmatmul.bf16.gmra.mxu2 %v7081_v15  ;;  %v723_v1 = vadd.f32 %v595_v0, %v327_v43  ;;  %v5815_v4 = vor.u32 %v6368_v30, %v5812_v45  ;;  %v5559_v15 = vor.u32 %v6304_v2, %v5556_v3  ;;  %v981_v0 = vmax.f32 %v853_v8, 0.0 }
  0xd8   :  { %2205 = vmatmul.bf16.gmra.mxu3 %v7083_v16  ;;  %v175_v16 = vpop.permute.xlu1 %174  ;;  %v859_v43 = vadd.f32 %v6839_v58, %v722_v52  ;;  %v855_v60 = vadd.f32 %v6839_v58, %v718_v42  ;;  %v856_v22 = vadd.f32 %v6841_v59, %v719_v62  ;;  %v600_v62 = vmul.f32 %v6797_v20, %v462_v47 }
  0xd9   :  { %2536 = vmatpush.bf16.msrb.mxu3 %v5815_v4  ;;  %v860_v9 = vadd.f32 %v6841_v59, %v723_v1  ;;  %2358 = vmatpush.bf16.msrb.mxu1 %v5559_v15  ;;  %v329_v4 = vmul.f32 %v6795_v19, %v170_v29  ;;  %v601_v15 = vmul.f32 %v6799_v21, %v462_v47 }
  0xda   :  { %v983_v1 = vmax.f32 %v855_v60, 0.0  ;;  %v987_v30 = vmax.f32 %v859_v43, 0.0  ;;  %v984_v31 = vmax.f32 %v856_v22, 0.0  ;;  %v602_v42 = vmul.f32 %v6810_v26, %v462_v47 }
  0xdb   :  { %v988_v23 = vmax.f32 %v860_v9, 0.0  ;;  %v596_v29 = vmul.f32 %v6797_v20, %v458_v17  ;;  %v597_v45 = vmul.f32 %v6799_v21, %v458_v17  ;;  %v332_v52 = vmul.f32 %v6793_v18, %v175_v16 }
  0xdc   :  { %v333_v2 = vmul.f32 %v6795_v19, %v175_v16  ;;  %v7112_v3 = vpack.c.bf16 %v985_v32, %v981_v0  ;;  %v334_v14 = vmul.f32 %v6806_v24, %v175_v16  ;;  %v335_v33 = vmul.f32 %v6808_v25, %v175_v16 }
  0xdd   :  { %v7118_v8 = vpack.c.bf16 %v987_v30, %v983_v1  ;;  %v7120_v36 = vpack.c.bf16 %v988_v23, %v984_v31  ;;  %v728_v43 = vadd.f32 %v600_v62, %v332_v52  ;;  %v724_v60 = vadd.f32 %v596_v29, %v328_v37  ;;  %v466_v62 = vpop.permute.xlu0 %465  ;;  %v190_v29 = vpop.permute.xlu2 %189 }
  0xde   :  { %8747 = vst [vmem:[#allocation25_spill] sm:$0xff] %v7112_v3  ;;  %v729_v9 = vadd.f32 %v601_v15, %v333_v2  ;;  %v725_v22 = vadd.f32 %v597_v45, %v329_v4  ;;  %v730_v17 = vadd.f32 %v602_v42, %v334_v14  ;;  %v731_v0 = vadd.f32 %v603_v44, %v335_v33 }
  0xdf   :  { %8749 = vst [vmem:[#allocation27_spill] sm:$0xff] %v7118_v8  ;;  %v726_v16 = vadd.f32 %v598_v7, %v330_v34  ;;  %v727_v32 = vadd.f32 %v599_v49, %v331_v54  ;;  %v865_v12 = vadd.f32 %v6834_v50, %v728_v43  ;;  %v861_v1 = vadd.f32 %v6834_v50, %v724_v60 }
  0xe0   :  { %v180_v35 = vpop.permute.xlu1 %179  ;;  %8750 = vst [vmem:[#allocation28_spill] sm:$0xff] %v7120_v36  ;;  %v866_v47 = vadd.f32 %v6836_v51, %v729_v9  ;;  %v862_v30 = vadd.f32 %v6836_v51, %v725_v22  ;;  %v867_v31 = vadd.f32 %v6839_v58, %v730_v17  ;;  %v868_v23 = vadd.f32 %v6841_v59, %v731_v0 }
  0xe1   :  { %v863_v37 = vadd.f32 %v6839_v58, %v726_v16  ;;  %v864_v4 = vadd.f32 %v6841_v59, %v727_v32  ;;  %v989_v54 = vmax.f32 %v861_v1, 0.0  ;;  %v993_v15 = vmax.f32 %v865_v12, 0.0 }
  0xe2   :  { %v990_v42 = vmax.f32 %v862_v30, 0.0  ;;  %v994_v44 = vmax.f32 %v866_v47, 0.0  ;;  %v995_v7 = vmax.f32 %v867_v31, 0.0  ;;  %v996_v52 = vmax.f32 %v868_v23, 0.0 }
  0xe3   :  { %v991_v45 = vmax.f32 %v863_v37, 0.0  ;;  %v992_v49 = vmax.f32 %v864_v4, 0.0  ;;  %v604_v2 = vmul.f32 %v6797_v20, %v466_v62  ;;  %v605_v14 = vmul.f32 %v6799_v21, %v466_v62 }
  0xe4   :  { %v340_v33 = vmul.f32 %v6793_v18, %v185_v55  ;;  %v341_v43 = vmul.f32 %v6795_v19, %v185_v55  ;;  %v342_v9 = vmul.f32 %v6806_v24, %v185_v55  ;;  %v343_v60 = vmul.f32 %v6808_v25, %v185_v55 }
  0xe5   :  { %v7142_v0 = vpack.c.bf16 %v993_v15, %v989_v54  ;;  %v7144_v16 = vpack.c.bf16 %v994_v44, %v990_v42  ;;  %v7148_v47 = vpack.c.bf16 %v995_v7, %v991_v45  ;;  %v7150_v1 = vpack.c.bf16 %v996_v52, %v992_v49  ;;  %v6332_v54 = vld [vmem:[#allocation5 + $0x264] sm:$0xf]  ;;  %v5668_v15 = vld [vmem:[#allocation5 + $0x270] sm:$0xf0] }
  0xe6   :  { %1943 = vmatmul.bf16.gmra.mxu0 %v7112_v3  ;;  %v336_v30 = vmul.f32 %v6793_v18, %v180_v35  ;;  %v337_v55 = vmul.f32 %v6795_v19, %v180_v35  ;;  %v606_v31 = vmul.f32 %v6810_v26, %v466_v62  ;;  %v338_v23 = vmul.f32 %v6806_v24, %v180_v35  ;;  %v6364_v42 = vld [vmem:[#allocation5 + $0x364] sm:$0xf]  ;;  %v5796_v7 = vld [vmem:[#allocation5 + $0x370] sm:$0xf0] }
  0xe7   :  { %2032 = vmatmul.bf16.gmra.mxu1 %v7114_v13  ;;  %2121 = vmatmul.bf16.gmra.mxu2 %v7118_v8  ;;  %8751 = vst [vmem:[#allocation29_spill] sm:$0xff] %v7142_v0  ;;  %v339_v37 = vmul.f32 %v6808_v25, %v180_v35  ;;  %v607_v4 = vmul.f32 %v6812_v27, %v466_v62  ;;  %v478_v13 = vpop.permute.xlu2 %477 }
  0xe8   :  { %2210 = vmatmul.bf16.gmra.mxu3 %v7120_v36  ;;  %v470_v34 = vpop.permute.xlu1 %469  ;;  %8752 = vst [vmem:[#allocation30_spill] sm:$0xff] %v7144_v16  ;;  %v732_v36 = vadd.f32 %v604_v2, %v336_v30  ;;  %v733_v35 = vadd.f32 %v605_v14, %v337_v55  ;;  %v734_v8 = vadd.f32 %v606_v31, %v338_v23  ;;  %v6268_v30 = vld [vmem:[#allocation5 + $0x64] sm:$0xf]  ;;  %v5412_v55 = vld [vmem:[#allocation5 + $0x70] sm:$0xf0] }
  0xe9   :  { %v608_v22 = vmul.f32 %v6797_v20, %v470_v34  ;;  %v609_v17 = vmul.f32 %v6799_v21, %v470_v34  ;;  %v610_v32 = vmul.f32 %v6810_v26, %v470_v34  ;;  %v611_v12 = vmul.f32 %v6812_v27, %v470_v34  ;;  %8753 = vst [vmem:[#allocation31_spill] sm:$0xff] %v7148_v47  ;;  %v6300_v31 = vld [vmem:[#allocation5 + $0x164] sm:$0xf] }
  0xea   :  { %8754 = vst [vmem:[#allocation32_spill] sm:$0xff] %v7150_v1  ;;  %v735_v62 = vadd.f32 %v607_v4, %v339_v37  ;;  %v869_v2 = vadd.f32 %v6834_v50, %v732_v36  ;;  %v870_v14 = vadd.f32 %v6836_v51, %v733_v35  ;;  %v618_v36 = vmul.f32 %v6810_v26, %v478_v13 }
  0xeb   :  { %v736_v44 = vadd.f32 %v608_v22, %v340_v33  ;;  %v737_v45 = vadd.f32 %v609_v17, %v341_v43  ;;  %v738_v49 = vadd.f32 %v610_v32, %v342_v9  ;;  %v739_v52 = vadd.f32 %v611_v12, %v343_v60  ;;  %v195_v17 = vpop.permute.xlu0 %194 }
  0xec   :  { %v344_v43 = vmul.f32 %v6793_v18, %v190_v29  ;;  %v345_v9 = vmul.f32 %v6795_v19, %v190_v29  ;;  %v346_v60 = vmul.f32 %v6806_v24, %v190_v29  ;;  %v347_v22 = vmul.f32 %v6808_v25, %v190_v29 }
  0xed   :  { %v875_v3 = vadd.f32 %v6839_v58, %v738_v49  ;;  %v876_v33 = vadd.f32 %v6841_v59, %v739_v52  ;;  %v616_v32 = vmul.f32 %v6797_v20, %v478_v13  ;;  %v617_v12 = vmul.f32 %v6799_v21, %v478_v13 }
  0xee   :  { %v5415_v4 = vor.u32 %v6268_v30, %v5412_v55  ;;  %v619_v29 = vmul.f32 %v6812_v27, %v478_v13  ;;  %v998_v49 = vmax.f32 %v870_v14, 0.0  ;;  %v351_v30 = vmul.f32 %v6808_v25, %v195_v17 }
  0xef   :  { %v205_v55 = vpop.permute.xlu2 %204 }
  0xf0   :  { %v7160_v34 = vpop.permute.xlu1 %473  ;;  %2270 = vmatpush.bf16.msrb.mxu0 %v5415_v4 }
  0xf1   :  { %v613_v13 = vmul.f32 %v6799_v21, %v7160_v34  ;;  %v615_v14 = vmul.f32 %v6812_v27, %v7160_v34 }
  0xf6   :  { %1948 = vmatmul.bf16.gmra.mxu0 %v7142_v0  ;;  %v5799_v0 = vor.u32 %v6364_v42, %v5796_v7  ;;  %v1003_v42 = vmax.f32 %v875_v3, 0.0  ;;  %v997_v7 = vmax.f32 %v869_v2, 0.0  ;;  %v614_v2 = vmul.f32 %v6810_v26, %v7160_v34 }
  0xf7   :  { %2037 = vmatmul.bf16.gmra.mxu1 %v7144_v16  ;;  %2126 = vmatmul.bf16.gmra.mxu2 %v7148_v47  ;;  %v5671_v16 = vor.u32 %v6332_v54, %v5668_v15  ;;  %v873_v47 = vadd.f32 %v6834_v50, %v736_v44  ;;  %v5540_v54 = vld [vmem:[#allocation5 + $0x170] sm:$0xf0]  ;;  %v348_v15 = vmul.f32 %v6793_v18, %v195_v17  ;;  %v1004_v44 = vmax.f32 %v876_v33, 0.0 }
  0xf8   :  { %2215 = vmatmul.bf16.gmra.mxu3 %v7150_v1  ;;  %v874_v1 = vadd.f32 %v6836_v51, %v737_v45  ;;  %v349_v45 = vmul.f32 %v6795_v19, %v195_v17  ;;  %v5543_v52 = vor.u32 %v6300_v31, %v5540_v54  ;;  %v742_v54 = vadd.f32 %v614_v2, %v346_v60  ;;  %v70_v60 = vld [vmem:[#allocation2 + $0x4] sm:$0xf] }
  0xf9   :  { %2448 = vmatpush.bf16.msrb.mxu2 %v5671_v16  ;;  %2537 = vmatpush.bf16.msrb.mxu3 %v5799_v0  ;;  %v871_v0 = vadd.f32 %v6839_v58, %v734_v8  ;;  %v872_v16 = vadd.f32 %v6841_v59, %v735_v62  ;;  %v1001_v23 = vmax.f32 %v873_v47, 0.0  ;;  %v7181_v8 = vpop.permute.xlu1 %199  ;;  %v612_v47 = vmul.f32 %v6797_v20, %v7160_v34 }
  0xfa   :  { %v1002_v37 = vmax.f32 %v874_v1, 0.0  ;;  %v350_v1 = vmul.f32 %v6806_v24, %v195_v17  ;;  %2359 = vmatpush.bf16.msrb.mxu1 %v5543_v52  ;;  %v743_v34 = vadd.f32 %v615_v14, %v347_v22  ;;  %v356_v22 = vmul.f32 %v6793_v18, %v205_v55 }
  0xfb   :  { %v999_v35 = vmax.f32 %v871_v0, 0.0  ;;  %v1000_v62 = vmax.f32 %v872_v16, 0.0  ;;  %v7190_v3 = vpack.c.bf16 %v1001_v23, %v997_v7  ;;  %v740_v17 = vadd.f32 %v612_v47, %v344_v43  ;;  %v210_v47 = vpop.permute.xlu2 %209 }
  0xfc   :  { %v7192_v33 = vpack.c.bf16 %v1002_v37, %v998_v49  ;;  %v744_v16 = vadd.f32 %v616_v32, %v348_v15  ;;  %v741_v23 = vadd.f32 %v613_v13, %v345_v9  ;;  %v745_v37 = vadd.f32 %v617_v12, %v349_v45 }
  0xfd   :  { %8755 = vst [vmem:[#allocation33_spill] sm:$0xff] %v7190_v3  ;;  %v7198_v31 = vpack.c.bf16 %v1003_v42, %v999_v35  ;;  %v7200_v0 = vpack.c.bf16 %v1004_v44, %v1000_v62  ;;  %v746_v4 = vadd.f32 %v618_v36, %v350_v1  ;;  %v747_v7 = vadd.f32 %v619_v29, %v351_v30  ;;  %v482_v1 = vpop.permute.xlu0 %481 }
  0xfe   :  { %8756 = vst [vmem:[#allocation34_spill] sm:$0xff] %v7192_v33  ;;  %v877_v42 = vadd.f32 %v6834_v50, %v740_v17  ;;  %v881_v44 = vadd.f32 %v6834_v50, %v744_v16  ;;  %v878_v52 = vadd.f32 %v6836_v51, %v741_v23  ;;  %v882_v43 = vadd.f32 %v6836_v51, %v745_v37 }
  0xff   :  { %8757 = vst [vmem:[#allocation35_spill] sm:$0xff] %v7198_v31  ;;  %v883_v32 = vadd.f32 %v6839_v58, %v746_v4  ;;  %v879_v15 = vadd.f32 %v6839_v58, %v742_v54  ;;  %v880_v9 = vadd.f32 %v6841_v59, %v743_v34  ;;  %v884_v12 = vadd.f32 %v6841_v59, %v747_v7 }
 0x100   :  { %8758 = vst [vmem:[#allocation36_spill] sm:$0xff] %v7200_v0  ;;  %v357_v36 = vmul.f32 %v6795_v19, %v205_v55  ;;  %v358_v29 = vmul.f32 %v6806_v24, %v205_v55  ;;  %v359_v45 = vmul.f32 %v6808_v25, %v205_v55  ;;  %v1005_v35 = vmax.f32 %v877_v42, 0.0 }
 0x101   :  { %v486_v49 = vpop.permute.xlu1 %485  ;;  %v1009_v62 = vmax.f32 %v881_v44, 0.0  ;;  %v7218_v13 = vperm.slane %v70_v60, 0  ;;  %v1006_v30 = vmax.f32 %v878_v52, 0.0  ;;  %v1010_v2 = vmax.f32 %v882_v43, 0.0 }
 0x102   :  { %v1011_v14 = vmax.f32 %v883_v32, 0.0  ;;  %v620_v17 = vmul.f32 %v6797_v20, %v482_v1  ;;  %v1007_v16 = vmax.f32 %v879_v15, 0.0  ;;  %v1008_v23 = vmax.f32 %v880_v9, 0.0 }
 0x103   :  { %v1012_v37 = vmax.f32 %v884_v12, 0.0  ;;  %v352_v4 = vmul.f32 %v6793_v18, %v7181_v8  ;;  %v353_v55 = vmul.f32 %v6795_v19, %v7181_v8  ;;  %v621_v54 = vmul.f32 %v6799_v21, %v482_v1 }
 0x104   :  { %v622_v34 = vmul.f32 %v6810_v26, %v482_v1  ;;  %v354_v7 = vmul.f32 %v6806_v24, %v7181_v8  ;;  %v355_v42 = vmul.f32 %v6808_v25, %v7181_v8  ;;  %v623_v44 = vmul.f32 %v6812_v27, %v482_v1 }
 0x105   :  { %v7232_v32 = vpack.c.bf16 %v1009_v62, %v1005_v35  ;;  %v624_v15 = vmul.f32 %v6797_v20, %v486_v49  ;;  %v625_v9 = vmul.f32 %v6799_v21, %v486_v49  ;;  %v7237_v60 = vpack.c.bf16 %v1010_v2, %v1006_v30 }
 0x106   :  { %1953 = vmatmul.bf16.gmra.mxu0 %v7190_v3  ;;  %v7243_v8 = vpack.c.bf16 %v1011_v14, %v1007_v16  ;;  %v7245_v1 = vpack.c.bf16 %v1012_v37, %v1008_v23  ;;  %v748_v35 = vadd.f32 %v620_v17, %v352_v4  ;;  %v749_v62 = vadd.f32 %v621_v54, %v353_v55  ;;  %v5652_v14 = vld [vmem:[#allocation5 + $0x250] sm:$0xf0]  ;;  %v6360_v16 = vld [vmem:[#allocation5 + $0x344] sm:$0xf] }
 0x107   :  { %2042 = vmatmul.bf16.gmra.mxu1 %v7192_v33  ;;  %2131 = vmatmul.bf16.gmra.mxu2 %v7198_v31  ;;  %8759 = vst [vmem:[#allocation37_spill] sm:$0xff] %v7232_v32  ;;  %v627_v31 = vmul.f32 %v6812_v27, %v486_v49  ;;  %v360_v30 = vmul.f32 %v6793_v18, %v210_v47  ;;  %v5780_v55 = vld [vmem:[#allocation5 + $0x350] sm:$0xf0] }
 0x108   :  { %2220 = vmatmul.bf16.gmra.mxu3 %v7200_v0  ;;  %8760 = vst [vmem:[#allocation38_spill] sm:$0xff] %v7237_v60  ;;  %v626_v0 = vmul.f32 %v6810_v26, %v486_v49  ;;  %v750_v2 = vadd.f32 %v622_v34, %v354_v7  ;;  %v6328_v49 = vld [vmem:[#allocation5 + $0x244] sm:$0xf]  ;;  %v752_v23 = vadd.f32 %v624_v15, %v356_v22 }
 0x109   :  { %v7241_v33 = vpop.permute.xlu1 %214  ;;  %8761 = vst [vmem:[#allocation39_spill] sm:$0xff] %v7243_v8  ;;  %v753_v37 = vadd.f32 %v625_v9, %v357_v36  ;;  %v361_v17 = vmul.f32 %v6795_v19, %v210_v47  ;;  %v362_v4 = vmul.f32 %v6806_v24, %v210_v47  ;;  %v5655_v34 = vor.u32 %v6328_v49, %v5652_v14 }
 0x10a   :  { %8762 = vst [vmem:[#allocation40_spill] sm:$0xff] %v7245_v1  ;;  %v754_v54 = vadd.f32 %v626_v0, %v358_v29  ;;  %v5783_v7 = vor.u32 %v6360_v16, %v5780_v55  ;;  %v887_v9 = vadd.f32 %v6839_v58, %v750_v2  ;;  %v364_v46 = vmul.f32 %v6793_v18, %v7241_v33 }
 0x10b   :  { %2449 = vmatpush.bf16.msrb.mxu2 %v5655_v34 }
 0x10c   :  { %2538 = vmatpush.bf16.msrb.mxu3 %v5783_v7  ;;  %v891_v49 = vadd.f32 %v6839_v58, %v754_v54  ;;  %v1015_v54 = vmax.f32 %v887_v9, 0.0 }
 0x111   :  { %v7271_v34 = vpop.permute.xlu1 %219 }
 0x113   :  { %v1919_v52 = vpop.f32.mrf.mxu0  ;;  %v2008_v43 = vpop.f32.mrf.mxu1 }
 0x114   :  { %v1920_v12 = vadd.f32 %v1919_v52, %v7218_v13  ;;  %v751_v52 = vadd.f32 %v623_v44, %v355_v42  ;;  %v363_v42 = vmul.f32 %v6808_v25, %v210_v47  ;;  %v885_v44 = vadd.f32 %v6834_v50, %v748_v35 }
 0x115   :  { %v890_v47 = vadd.f32 %v6836_v51, %v753_v37 }
 0x116   :  { %v2009_v3 = vadd.f32 %v2008_v43, %v1920_v12  ;;  %1958 = vmatmul.bf16.gmra.mxu0 %v7232_v32  ;;  %v755_v43 = vadd.f32 %v627_v31, %v359_v45  ;;  %v490_v12 = vpop.permute.xlu2 %489  ;;  %v889_v45 = vadd.f32 %v6834_v50, %v752_v23  ;;  %v1013_v23 = vmax.f32 %v885_v44, 0.0  ;;  %v6296_v44 = vld [vmem:[#allocation5 + $0x144] sm:$0xf] }
 0x117   :  { %2047 = vmatmul.bf16.gmra.mxu1 %v7237_v60  ;;  %2136 = vmatmul.bf16.gmra.mxu2 %v7243_v8  ;;  %v494_v60 = vpop.permute.xlu0 %493  ;;  %v888_v8 = vadd.f32 %v6841_v59, %v751_v52  ;;  %v628_v35 = vmul.f32 %v6797_v20, %v490_v12  ;;  %v629_v2 = vmul.f32 %v6799_v21, %v490_v12  ;;  %v1018_v28 = vmax.f32 %v890_v47, 0.0 }
 0x118   :  { %2225 = vmatmul.bf16.gmra.mxu3 %v7245_v1  ;;  %v886_v1 = vadd.f32 %v6836_v51, %v749_v62  ;;  %v632_v22 = vmul.f32 %v6797_v20, %v494_v60  ;;  %v892_v14 = vadd.f32 %v6841_v59, %v755_v43  ;;  %v631_v16 = vmul.f32 %v6812_v27, %v490_v12  ;;  %v5396_v43 = vld [vmem:[#allocation5 + $0x50] sm:$0xf0] }
 0x119   :  { %v633_v37 = vmul.f32 %v6799_v21, %v494_v60  ;;  %v634_v7 = vmul.f32 %v6810_v26, %v494_v60  ;;  %v1017_v32 = vmax.f32 %v889_v45, 0.0  ;;  %v756_v53 = vadd.f32 %v628_v35, %v360_v30 }
 0x11a   :  { %v2097_v36 = vpop.f32.mrf.mxu2  ;;  %v2186_v15 = vpop.f32.mrf.mxu3  ;;  %v635_v48 = vmul.f32 %v6812_v27, %v494_v60  ;;  %v757_v11 = vadd.f32 %v629_v2, %v361_v17  ;;  %v366_v30 = vmul.f32 %v6806_v24, %v7241_v33  ;;  %v367_v60 = vmul.f32 %v6808_v25, %v7241_v33 }
 0x11b   :  { %v2098_v0 = vadd.f32 %v2097_v36, %v2009_v3  ;;  %v1921_v31 = vpop.f32.mrf.mxu0  ;;  %v2010_v29 = vpop.f32.mrf.mxu1  ;;  %v630_v3 = vmul.f32 %v6810_v26, %v490_v12  ;;  %v1014_v36 = vmax.f32 %v886_v1, 0.0  ;;  %v1019_v12 = vmax.f32 %v891_v49, 0.0 }
 0x11c   :  { %v1922_v62 = vadd.f32 %v1921_v31, %v7218_v13  ;;  %v6264_v31 = vld [vmem:[#allocation5 + $0x44] sm:$0xf]  ;;  %v759_v1 = vadd.f32 %v631_v16, %v363_v42  ;;  %v7285_v17 = vpack.c.bf16 %v1017_v32, %v1013_v23  ;;  %v7294_v16 = vadd.f32 %v6834_v50, %v756_v53 }
 0x11d   :  { %v7267_v52 = vadd.f32 %v2186_v15, %v2098_v0  ;;  %v1016_v15 = vmax.f32 %v888_v8, 0.0  ;;  %v5399_v0 = vor.u32 %v6264_v31, %v5396_v43  ;;  %v758_v10 = vadd.f32 %v630_v3, %v362_v4 }
 0x11e   :  { %v2011_v55 = vadd.f32 %v2010_v29, %v1922_v62  ;;  %v1020_v29 = vmax.f32 %v892_v14, 0.0  ;;  %v5524_v62 = vld [vmem:[#allocation5 + $0x150] sm:$0xf0]  ;;  %v365_v8 = vmul.f32 %v6795_v19, %v7241_v33  ;;  %8763 = vst [vmem:[#allocation41_spill] sm:$0xff] %v7285_v17  ;;  %v7287_v4 = vpack.c.bf16 %v1018_v28, %v1014_v36  ;;  %v225_v33 = vpop.permute.xlu2 %224 }
 0x11f   :  { %2271 = vmatpush.bf16.msrb.mxu0 %v5399_v0  ;;  %v5527_v42 = vor.u32 %v6296_v44, %v5524_v62  ;;  %v7289_v2 = vpack.c.bf16 %v1019_v12, %v1015_v54  ;;  %v760_v31 = vadd.f32 %v632_v22, %v364_v46  ;;  %v7299_v32 = vadd.f32 %v6836_v51, %v757_v11  ;;  %v498_v23 = vpop.permute.xlu0 %497 }
 0x120   :  { %8764 = vst [vmem:[#allocation42_spill] sm:$0xff] %v7287_v4  ;;  %v7291_v3 = vpack.c.bf16 %v1020_v29, %v1016_v15  ;;  %v761_v28 = vadd.f32 %v633_v37, %v365_v8  ;;  %v895_v46 = vadd.f32 %v6839_v58, %v758_v10  ;;  %v896_v53 = vadd.f32 %v6841_v59, %v759_v1 }
 0x121   :  { %8765 = vst [vmem:[#allocation43_spill] sm:$0xff] %v7289_v2  ;;  %v762_v22 = vadd.f32 %v634_v7, %v366_v30  ;;  %v763_v54 = vadd.f32 %v635_v48, %v367_v60  ;;  %2360 = vmatpush.bf16.msrb.mxu1 %v5527_v42  ;;  %v372_v43 = vmul.f32 %v6793_v18, %v225_v33  ;;  %v1021_v30 = vmax.f32 %v7294_v16, 0.0 }
 0x122   :  { %v2099_v9 = vpop.f32.mrf.mxu2  ;;  %v2188_v6 = vpop.f32.mrf.mxu3  ;;  %8766 = vst [vmem:[#allocation44_spill] sm:$0xff] %v7291_v3  ;;  %v373_v11 = vmul.f32 %v6795_v19, %v225_v33  ;;  %v374_v37 = vmul.f32 %v6806_v24, %v225_v33  ;;  %v897_v0 = vadd.f32 %v6834_v50, %v760_v31  ;;  %v636_v12 = vmul.f32 %v6797_v20, %v498_v23 }
 0x123   :  { %v2100_v45 = vadd.f32 %v2099_v9, %v2011_v55  ;;  %v1924_v47 = vpop.f32.mrf.mxu0  ;;  %v2013_v35 = vpop.f32.mrf.mxu1  ;;  %v637_v10 = vmul.f32 %v6799_v21, %v498_v23  ;;  %v638_v29 = vmul.f32 %v6810_v26, %v498_v23  ;;  %v898_v44 = vadd.f32 %v6836_v51, %v761_v28 }
 0x124   :  { %v1925_v49 = vadd.f32 %v1924_v47, %v7218_v13  ;;  %v639_v62 = vmul.f32 %v6812_v27, %v498_v23  ;;  %v368_v60 = vmul.f32 %v6793_v18, %v7271_v34  ;;  %v900_v47 = vadd.f32 %v6841_v59, %v763_v54 }
 0x125   :  { %v2189_v14 = vadd.f32 %v2188_v6, %v2100_v45  ;;  %v3334_v6 = vmax.f32 %v7267_v52, 0.0  ;;  %v502_v52 = vpop.permute.xlu1 %501  ;;  %v899_v45 = vadd.f32 %v6839_v58, %v762_v22  ;;  %v370_v42 = vmul.f32 %v6806_v24, %v7271_v34 }
 0x126   :  { %v2014_v55 = vadd.f32 %v2013_v35, %v1925_v49  ;;  %1963 = vmatmul.bf16.gmra.mxu0 %v7285_v17  ;;  %v369_v49 = vmul.f32 %v6795_v19, %v7271_v34  ;;  %v640_v16 = vmul.f32 %v6797_v20, %v502_v52  ;;  %v1025_v28 = vmax.f32 %v897_v0, 0.0 }
 0x127   :  { %2052 = vmatmul.bf16.gmra.mxu1 %v7287_v4  ;;  %v3338_v36 = vmax.f32 %v2189_v14, 0.0  ;;  %2141 = vmatmul.bf16.gmra.mxu2 %v7289_v2  ;;  %v371_v14 = vmul.f32 %v6808_v25, %v7271_v34  ;;  %v641_v23 = vmul.f32 %v6799_v21, %v502_v52  ;;  %v1026_v22 = vmax.f32 %v898_v44, 0.0 }
 0x128   :  { %2230 = vmatmul.bf16.gmra.mxu3 %v7291_v3  ;;  %v1023_v54 = vmax.f32 %v895_v46, 0.0  ;;  %v1028_v3 = vmax.f32 %v900_v47, 0.0  ;;  %v765_v2 = vadd.f32 %v637_v10, %v369_v49  ;;  %v766_v34 = vadd.f32 %v638_v29, %v370_v42 }
 0x129   :  { %v7309_v15 = vpack.c.bf16 %v3338_v36, %v3334_v6  ;;  %v1022_v6 = vmax.f32 %v7299_v32, 0.0  ;;  %v642_v36 = vmul.f32 %v6810_v26, %v502_v52  ;;  %v375_v4 = vmul.f32 %v6808_v25, %v225_v33 }
 0x12a   :  { %v2102_v7 = vpop.f32.mrf.mxu2  ;;  %v2191_v48 = vpop.f32.mrf.mxu3  ;;  %v643_v0 = vmul.f32 %v6812_v27, %v502_v52  ;;  %v7337_v17 = vpack.c.bf16 %v1025_v28, %v1021_v30  ;;  %v769_v5 = vadd.f32 %v641_v23, %v373_v11  ;;  %v7351_v52 = vadd.f32 %v6839_v58, %v766_v34 }
 0x12b   :  { %8767 = vst [vmem:[#allocation45_spill] sm:$0xff] %v7309_v15  ;;  %v2103_v1 = vadd.f32 %v2102_v7, %v2014_v55  ;;  %v1926_v9 = vpop.f32.mrf.mxu0  ;;  %v2015_v8 = vpop.f32.mrf.mxu1  ;;  %v764_v7 = vadd.f32 %v636_v12, %v368_v60  ;;  %v1024_v15 = vmax.f32 %v896_v53, 0.0  ;;  %v770_v44 = vadd.f32 %v642_v36, %v374_v37 }
 0x12c   :  { %v1927_v35 = vadd.f32 %v1926_v9, %v7218_v13  ;;  %v1027_v9 = vmax.f32 %v899_v45, 0.0  ;;  %8768 = vst [vmem:[#allocation46_spill] sm:$0xff] %v7337_v17  ;;  %v7339_v53 = vpack.c.bf16 %v1026_v22, %v1022_v6  ;;  %v771_v30 = vadd.f32 %v643_v0, %v375_v4 }
 0x12d   :  { %v7329_v31 = vadd.f32 %v2191_v48, %v2103_v1  ;;  %v767_v48 = vadd.f32 %v639_v62, %v371_v14  ;;  %v230_v1 = vpop.permute.xlu2 %229  ;;  %v901_v10 = vadd.f32 %v6834_v50, %v764_v7  ;;  %v7345_v33 = vpack.c.bf16 %v1028_v3, %v1024_v15  ;;  %v506_v15 = vpop.permute.xlu1 %505 }
 0x12e   :  { %v2016_v55 = vadd.f32 %v2015_v8, %v1927_v35  ;;  %v768_v8 = vadd.f32 %v640_v16, %v372_v43  ;;  %8769 = vst [vmem:[#allocation47_spill] sm:$0xff] %v7339_v53  ;;  %v7343_v62 = vpack.c.bf16 %v1027_v9, %v1023_v54  ;;  %v7348_v43 = vadd.f32 %v6836_v51, %v765_v2 }
 0x12f   :  { %8771 = vst [vmem:[#allocation49_spill] sm:$0xff] %v7345_v33  ;;  %v7354_v11 = vadd.f32 %v6841_v59, %v767_v48  ;;  %v906_v3 = vadd.f32 %v6836_v51, %v769_v5  ;;  %v907_v2 = vadd.f32 %v6839_v58, %v770_v44  ;;  %v1029_v49 = vmax.f32 %v901_v10, 0.0  ;;  %v5764_v10 = vld [vmem:[#allocation5 + $0x330] sm:$0xf0] }
 0x130   :  { %8770 = vst [vmem:[#allocation48_spill] sm:$0xff] %v7343_v62  ;;  %v905_v45 = vadd.f32 %v6834_v50, %v768_v8  ;;  %v1030_v42 = vmax.f32 %v7348_v43, 0.0  ;;  %v908_v4 = vadd.f32 %v6841_v59, %v771_v30  ;;  %v1031_v28 = vmax.f32 %v7351_v52, 0.0  ;;  %v235_v8 = vpop.permute.xlu0 %234 }
 0x131   :  { %v1032_v6 = vmax.f32 %v7354_v11, 0.0  ;;  %v376_v5 = vmul.f32 %v6793_v18, %v230_v1  ;;  %v1034_v54 = vmax.f32 %v906_v3, 0.0  ;;  %v1035_v7 = vmax.f32 %v907_v2, 0.0  ;;  %v6260_v2 = vld [vmem:[#allocation5 + $0x24] sm:$0xf] }
 0x132   :  { %v2104_v32 = vpop.f32.mrf.mxu2  ;;  %v2193_v35 = vpop.f32.mrf.mxu3  ;;  %v377_v9 = vmul.f32 %v6795_v19, %v230_v1  ;;  %v644_v34 = vmul.f32 %v6797_v20, %v506_v15  ;;  %v645_v48 = vmul.f32 %v6799_v21, %v506_v15  ;;  %v378_v44 = vmul.f32 %v6806_v24, %v230_v1 }
 0x133   :  { %v2105_v46 = vadd.f32 %v2104_v32, %v2016_v55  ;;  %v1929_v12 = vpop.f32.mrf.mxu0  ;;  %v2018_v60 = vpop.f32.mrf.mxu1  ;;  %v1033_v55 = vmax.f32 %v905_v45, 0.0  ;;  %v646_v43 = vmul.f32 %v6810_v26, %v506_v15  ;;  %v647_v52 = vmul.f32 %v6812_v27, %v506_v15 }
 0x134   :  { %v1930_v29 = vadd.f32 %v1929_v12, %v7218_v13  ;;  %v5636_v12 = vld [vmem:[#allocation5 + $0x230] sm:$0xf0]  ;;  %v380_v45 = vmul.f32 %v6793_v18, %v235_v8  ;;  %v1036_v3 = vmax.f32 %v908_v4, 0.0  ;;  %v7388_v4 = vpack.c.bf16 %v1034_v54, %v1030_v42 }
 0x135   :  { %v7356_v37 = vadd.f32 %v2193_v35, %v2105_v46  ;;  %v510_v0 = vpop.permute.xlu2 %509  ;;  %v6324_v35 = vld [vmem:[#allocation5 + $0x224] sm:$0xf]  ;;  %v383_v63 = vmul.f32 %v6808_v25, %v235_v8 }
 0x136   :  { %v2019_v47 = vadd.f32 %v2018_v60, %v1930_v29  ;;  %1968 = vmatmul.bf16.gmra.mxu0 %v7337_v17  ;;  %v6356_v60 = vld [vmem:[#allocation5 + $0x324] sm:$0xf]  ;;  %v379_v29 = vmul.f32 %v6808_v25, %v230_v1  ;;  %v648_v30 = vmul.f32 %v6797_v20, %v510_v0  ;;  %v5508_v1 = vld [vmem:[#allocation5 + $0x130] sm:$0xf0]  ;;  %v650_v15 = vmul.f32 %v6810_v26, %v510_v0 }
 0x137   :  { %2057 = vmatmul.bf16.gmra.mxu1 %v7339_v53  ;;  %2146 = vmatmul.bf16.gmra.mxu2 %v7343_v62  ;;  %v6292_v62 = vld [vmem:[#allocation5 + $0x124] sm:$0xf]  ;;  %v649_v53 = vmul.f32 %v6799_v21, %v510_v0  ;;  %v774_v17 = vadd.f32 %v646_v43, %v378_v44  ;;  %v7395_v43 = vpack.c.bf16 %v1036_v3, %v1032_v6 }
 0x138   :  { %2235 = vmatmul.bf16.gmra.mxu3 %v7345_v33  ;;  %v5380_v33 = vld [vmem:[#allocation5 + $0x30] sm:$0xf0] }
 0x139   :  { %8772 = vst [vmem:[#allocation50_spill] sm:$0xff] %v7395_v43 }
 0x13a   :  { %v2107_v14 = vpop.f32.mrf.mxu2  ;;  %v2196_v16 = vpop.f32.mrf.mxu3 }
 0x13b   :  { %v2108_v23 = vadd.f32 %v2107_v14, %v2019_v47  ;;  %v1931_v36 = vpop.f32.mrf.mxu0  ;;  %v2020_v22 = vpop.f32.mrf.mxu1  ;;  %v7382_v47 = vpack.c.bf16 %v1033_v55, %v1029_v49  ;;  %v772_v14 = vadd.f32 %v644_v34, %v376_v5  ;;  %v7390_v5 = vpack.c.bf16 %v1035_v7, %v1031_v28 }
 0x13c   :  { %v1932_v32 = vadd.f32 %v1931_v36, %v7218_v13  ;;  %v5767_v36 = vor.u32 %v6356_v60, %v5764_v10  ;;  %v5511_v60 = vor.u32 %v6292_v62, %v5508_v1  ;;  %v651_v10 = vmul.f32 %v6812_v27, %v510_v0 }
 0x13d   :  { %v7375_v46 = vadd.f32 %v2196_v16, %v2108_v23  ;;  %v773_v16 = vadd.f32 %v645_v48, %v377_v9  ;;  %v5639_v23 = vor.u32 %v6324_v35, %v5636_v12  ;;  %v776_v9 = vadd.f32 %v648_v30, %v380_v45 }
 0x13e   :  { %v2021_v11 = vadd.f32 %v2020_v22, %v1932_v32  ;;  %v381_v22 = vmul.f32 %v6795_v19, %v235_v8  ;;  %v382_v32 = vmul.f32 %v6806_v24, %v235_v8  ;;  %2539 = vmatpush.bf16.msrb.mxu3 %v5767_v36  ;;  %v5383_v12 = vor.u32 %v6260_v2, %v5380_v33  ;;  %v240_v8 = vpop.permute.xlu1 %239 }
 0x13f   :  { %2450 = vmatpush.bf16.msrb.mxu2 %v5639_v23  ;;  %2361 = vmatpush.bf16.msrb.mxu1 %v5511_v60  ;;  %v775_v62 = vadd.f32 %v647_v52, %v379_v29  ;;  %v909_v33 = vadd.f32 %v6834_v50, %v772_v14  ;;  %v913_v0 = vadd.f32 %v6834_v50, %v776_v9 }
 0x140   :  { %v777_v42 = vadd.f32 %v649_v53, %v381_v22  ;;  %v778_v54 = vadd.f32 %v650_v15, %v382_v32  ;;  %2272 = vmatpush.bf16.msrb.mxu0 %v5383_v12  ;;  %v910_v53 = vadd.f32 %v6836_v51, %v773_v16  ;;  %v779_v6 = vadd.f32 %v651_v10, %v383_v63  ;;  %v245_v22 = vpop.permute.xlu2 %244 }
 0x141   :  { %v912_v52 = vadd.f32 %v6841_v59, %v775_v62  ;;  %v1037_v36 = vmax.f32 %v909_v33, 0.0  ;;  %v1041_v1 = vmax.f32 %v913_v0, 0.0  ;;  %v384_v9 = vmul.f32 %v6793_v18, %v240_v8 }
 0x142   :  { %v2109_v49 = vpop.f32.mrf.mxu2  ;;  %v2198_v55 = vpop.f32.mrf.mxu3  ;;  %v914_v30 = vadd.f32 %v6836_v51, %v777_v42  ;;  %v915_v45 = vadd.f32 %v6839_v58, %v778_v54  ;;  %v916_v15 = vadd.f32 %v6841_v59, %v779_v6  ;;  %v1038_v63 = vmax.f32 %v910_v53, 0.0 }
 0x143   :  { %v2110_v34 = vadd.f32 %v2109_v49, %v2021_v11  ;;  %v1934_v48 = vpop.f32.mrf.mxu0  ;;  %v911_v11 = vadd.f32 %v6839_v58, %v774_v17  ;;  %v387_v12 = vmul.f32 %v6808_v25, %v240_v8  ;;  %v388_v60 = vmul.f32 %v6793_v18, %v245_v22  ;;  %v514_v53 = vpop.permute.xlu0 %513 }
 0x144   :  { %v2023_v35 = vpop.f32.mrf.mxu1  ;;  %v1935_v44 = vadd.f32 %v1934_v48, %v7218_v13  ;;  %v1042_v32 = vmax.f32 %v914_v30, 0.0  ;;  %v386_v48 = vmul.f32 %v6806_v24, %v240_v8  ;;  %v7419_v10 = vpack.c.bf16 %v1041_v1, %v1037_v36 }
 0x145   :  { %v7397_v28 = vadd.f32 %v2198_v55, %v2110_v34  ;;  %v1039_v49 = vmax.f32 %v911_v11, 0.0  ;;  %v1043_v55 = vmax.f32 %v915_v45, 0.0  ;;  %v385_v34 = vmul.f32 %v6795_v19, %v240_v8 }
 0x146   :  { %v2024_v7 = vadd.f32 %v2023_v35, %v1935_v44  ;;  %1973 = vmatmul.bf16.gmra.mxu0 %v7382_v47  ;;  %8773 = vst [vmem:[#allocation51_spill] sm:$0xff] %v7419_v10  ;;  %v1040_v44 = vmax.f32 %v912_v52, 0.0  ;;  %v3346_v42 = vmax.f32 %v7356_v37, 0.0  ;;  %v390_v62 = vmul.f32 %v6806_v24, %v245_v22  ;;  %v518_v0 = vpop.permute.xlu1 %517 }
 0x147   :  { %2062 = vmatmul.bf16.gmra.mxu1 %v7388_v4  ;;  %2151 = vmatmul.bf16.gmra.mxu2 %v7390_v5  ;;  %v3354_v54 = vmax.f32 %v7397_v28, 0.0  ;;  %v391_v33 = vmul.f32 %v6808_v25, %v245_v22  ;;  %v7426_v6 = vpack.c.bf16 %v1042_v32, %v1038_v63  ;;  %v7428_v8 = vpack.c.bf16 %v1043_v55, %v1039_v49 }
 0x148   :  { %2240 = vmatmul.bf16.gmra.mxu3 %v7395_v43  ;;  %v1044_v11 = vmax.f32 %v916_v15, 0.0  ;;  %v3342_v30 = vmax.f32 %v7329_v31, 0.0  ;;  %v3350_v45 = vmax.f32 %v7375_v46, 0.0  ;;  %v656_v37 = vmul.f32 %v6797_v20, %v518_v0 }
 0x149   :  { %8774 = vst [vmem:[#allocation52_spill] sm:$0xff] %v7426_v6  ;;  %v652_v28 = vmul.f32 %v6797_v20, %v514_v53  ;;  %v657_v52 = vmul.f32 %v6799_v21, %v518_v0  ;;  %v654_v15 = vmul.f32 %v6810_v26, %v514_v53  ;;  %v659_v63 = vmul.f32 %v6812_v27, %v518_v0 }
 0x14a   :  { %v2112_v3 = vpop.f32.mrf.mxu2  ;;  %8775 = vst [vmem:[#allocation53_spill] sm:$0xff] %v7428_v8  ;;  %v7439_v46 = vpack.c.bf16 %v3346_v42, %v3342_v30  ;;  %v7445_v49 = vpack.c.bf16 %v1044_v11, %v1040_v44  ;;  %v250_v42 = vpop.permute.xlu2 %249 }
 0x14b   :  { %v2201_v29 = vpop.f32.mrf.mxu3  ;;  %v2113_v2 = vadd.f32 %v2112_v3, %v2024_v7  ;;  %v1936_v14 = vpop.f32.mrf.mxu0  ;;  %v389_v7 = vmul.f32 %v6795_v19, %v245_v22  ;;  %v655_v22 = vmul.f32 %v6812_v27, %v514_v53  ;;  %v780_v55 = vadd.f32 %v652_v28, %v384_v9  ;;  %v6352_v28 = vld [vmem:[#allocation5 + $0x304] sm:$0xf] }
 0x14c   :  { %v2025_v23 = vpop.f32.mrf.mxu1  ;;  %v1937_v16 = vadd.f32 %v1936_v14, %v7218_v13  ;;  %v653_v14 = vmul.f32 %v6799_v21, %v514_v53  ;;  %8776 = vst [vmem:[#allocation54_spill] sm:$0xff] %v7439_v46  ;;  %v5620_v53 = vld [vmem:[#allocation5 + $0x210] sm:$0xf0]  ;;  %v782_v9 = vadd.f32 %v654_v15, %v386_v48 }
 0x14d   :  { %v7412_v17 = vadd.f32 %v2201_v29, %v2113_v2  ;;  %v658_v2 = vmul.f32 %v6810_v26, %v518_v0  ;;  %8778 = vst [vmem:[#allocation56_spill] sm:$0xff] %v7445_v49  ;;  %v6320_v0 = vld [vmem:[#allocation5 + $0x204] sm:$0xf]  ;;  %v785_v44 = vadd.f32 %v657_v52, %v389_v7 }
 0x14e   :  { %v2026_v35 = vadd.f32 %v2025_v23, %v1937_v16  ;;  %v7441_v16 = vpack.c.bf16 %v3354_v54, %v3350_v45  ;;  %v781_v30 = vadd.f32 %v653_v14, %v385_v34  ;;  %v5623_v45 = vor.u32 %v6320_v0, %v5620_v53 }
 0x14f   :  { %v786_v11 = vadd.f32 %v658_v2, %v390_v62  ;;  %v255_v2 = vpop.permute.xlu1 %254  ;;  %v919_v15 = vadd.f32 %v6839_v58, %v782_v9 }
 0x150   :  { %8777 = vst [vmem:[#allocation55_spill] sm:$0xff] %v7441_v16  ;;  %2451 = vmatpush.bf16.msrb.mxu2 %v5623_v45  ;;  %v918_v48 = vadd.f32 %v6836_v51, %v781_v30  ;;  %v396_v0 = vmul.f32 %v6793_v18, %v255_v2  ;;  %v397_v53 = vmul.f32 %v6795_v19, %v255_v2  ;;  %v6256_v45 = vld [vmem:[#allocation5 + $0x4] sm:$0xf] }
 0x152   :  { %v2114_v3 = vpop.f32.mrf.mxu2  ;;  %v1046_v9 = vmax.f32 %v918_v48, 0.0 }
 0x153   :  { %v2203_v29 = vpop.f32.mrf.mxu3  ;;  %v2115_v23 = vadd.f32 %v2114_v3, %v2026_v35  ;;  %v1939_v36 = vpop.f32.mrf.mxu0  ;;  %v784_v35 = vadd.f32 %v656_v37, %v388_v60  ;;  %v3358_v3 = vmax.f32 %v7412_v17, 0.0  ;;  %v917_v17 = vadd.f32 %v6834_v50, %v780_v55 }
 0x154   :  { %v2028_v1 = vpop.f32.mrf.mxu1  ;;  %v1940_v31 = vadd.f32 %v1939_v36, %v7218_v13  ;;  %v783_v36 = vadd.f32 %v655_v22, %v387_v12  ;;  %v922_v12 = vadd.f32 %v6836_v51, %v785_v44  ;;  %v923_v22 = vadd.f32 %v6839_v58, %v786_v11 }
 0x155   :  { %v2204_v32 = vadd.f32 %v2203_v29, %v2115_v23  ;;  %v5748_v29 = vld [vmem:[#allocation5 + $0x310] sm:$0xf0]  ;;  %v787_v23 = vadd.f32 %v659_v63, %v391_v33  ;;  %v393_v33 = vmul.f32 %v6795_v19, %v250_v42  ;;  %v398_v11 = vmul.f32 %v6806_v24, %v255_v2 }
 0x156   :  { %v2029_v43 = vadd.f32 %v2028_v1, %v1940_v31  ;;  %1978 = vmatmul.bf16.gmra.mxu0 %v7419_v10  ;;  %v5751_v60 = vor.u32 %v6352_v28, %v5748_v29  ;;  %v921_v1 = vadd.f32 %v6834_v50, %v784_v35  ;;  %v7457_v31 = vmul.f32 %v6793_v18, %v250_v42  ;;  %v5364_v28 = vld [vmem:[#allocation5 + $0x10] sm:$0xf0] }
 0x157   :  { %2067 = vmatmul.bf16.gmra.mxu1 %v7426_v6  ;;  %v3362_v54 = vmax.f32 %v2204_v32, 0.0  ;;  %2156 = vmatmul.bf16.gmra.mxu2 %v7428_v8  ;;  %v924_v32 = vadd.f32 %v6841_v59, %v787_v23  ;;  %v920_v55 = vadd.f32 %v6841_v59, %v783_v36  ;;  %v1050_v29 = vmax.f32 %v922_v12, 0.0  ;;  %v260_v6 = vpop.permute.xlu1 %259 }
 0x158   :  { %2245 = vmatmul.bf16.gmra.mxu3 %v7445_v49  ;;  %v1049_v44 = vmax.f32 %v921_v1, 0.0  ;;  %v1047_v23 = vmax.f32 %v919_v15, 0.0  ;;  %v5367_v36 = vor.u32 %v6256_v45, %v5364_v28 }
 0x159   :  { %v7452_v37 = vpack.c.bf16 %v3362_v54, %v3358_v3  ;;  %2540 = vmatpush.bf16.msrb.mxu3 %v5751_v60  ;;  %v395_v3 = vmul.f32 %v6808_v25, %v250_v42  ;;  %v1045_v54 = vmax.f32 %v917_v17, 0.0  ;;  %v6288_v60 = vld [vmem:[#allocation5 + $0x104] sm:$0xf]  ;;  %v1052_v17 = vmax.f32 %v924_v32, 0.0 }
 0x15a   :  { %v2117_v34 = vpop.f32.mrf.mxu2  ;;  %2273 = vmatpush.bf16.msrb.mxu0 %v5367_v36  ;;  %v7483_v46 = vpack.c.bf16 %v1050_v29, %v1046_v9 }
 0x15b   :  { %8779 = vst [vmem:[#allocation57_spill] sm:$0xff] %v7452_v37  ;;  %v2206_v14 = vpop.f32.mrf.mxu3  ;;  %v2118_v7 = vadd.f32 %v2117_v34, %v2029_v43  ;;  %v1941_v62 = vpop.f32.mrf.mxu0  ;;  %v394_v43 = vmul.f32 %v6806_v24, %v250_v42  ;;  %v5492_v34 = vld [vmem:[#allocation5 + $0x110] sm:$0xf0]  ;;  %v1051_v42 = vmax.f32 %v923_v22, 0.0 }
 0x15c   :  { %v2030_v52 = vpop.f32.mrf.mxu1  ;;  %v1942_v63 = vadd.f32 %v1941_v62, %v7218_v13  ;;  %v1048_v62 = vmax.f32 %v920_v55, 0.0 }
 0x15d   :  { %v2207_v35 = vadd.f32 %v2206_v14, %v2118_v7  ;;  %v522_v14 = vpop.permute.xlu2 %521  ;;  %v526_v7 = vpop.permute.xlu0 %525 }
 0x15e   :  { %v2031_v30 = vadd.f32 %v2030_v52, %v1942_v63  ;;  %v5495_v52 = vor.u32 %v6288_v60, %v5492_v34  ;;  %v399_v63 = vmul.f32 %v6808_v25, %v255_v2  ;;  %v660_v1 = vmul.f32 %v6797_v20, %v522_v14 }
 0x15f   :  { %v661_v48 = vmul.f32 %v6799_v21, %v522_v14  ;;  %v662_v37 = vmul.f32 %v6810_v26, %v522_v14  ;;  %v663_v15 = vmul.f32 %v6812_v27, %v522_v14  ;;  %v664_v45 = vmul.f32 %v6797_v20, %v526_v7 }
 0x160   :  { %v665_v22 = vmul.f32 %v6799_v21, %v526_v7  ;;  %2362 = vmatpush.bf16.msrb.mxu1 %v5495_v52  ;;  %v666_v2 = vmul.f32 %v6810_v26, %v526_v7  ;;  %v7481_v34 = vpack.c.bf16 %v1049_v44, %v1045_v54  ;;  %v667_v36 = vmul.f32 %v6812_v27, %v526_v7 }
 0x161   :  { %v7486_v14 = vpack.c.bf16 %v1051_v42, %v1047_v23  ;;  %v7488_v8 = vpack.c.bf16 %v1052_v17, %v1048_v62  ;;  %v789_v52 = vadd.f32 %v661_v48, %v393_v33  ;;  %v3366_v54 = vmax.f32 %v2207_v35, 0.0 }
 0x162   :  { %v2119_v16 = vpop.f32.mrf.mxu2  ;;  %v790_v9 = vadd.f32 %v662_v37, %v394_v43  ;;  %v792_v29 = vadd.f32 %v664_v45, %v396_v0  ;;  %v793_v23 = vadd.f32 %v665_v22, %v397_v53  ;;  %v791_v7 = vadd.f32 %v663_v15, %v395_v3 }
 0x163   :  { %v2208_v12 = vpop.f32.mrf.mxu3  ;;  %v2120_v55 = vadd.f32 %v2119_v16, %v2031_v30  ;;  %v1944_v32 = vpop.f32.mrf.mxu0  ;;  %v788_v30 = vadd.f32 %v660_v1, %v7457_v31  ;;  %v794_v42 = vadd.f32 %v666_v2, %v398_v11  ;;  %v795_v62 = vadd.f32 %v667_v36, %v399_v63 }
 0x164   :  { %v2033_v28 = vpop.f32.mrf.mxu1  ;;  %v1945_v60 = vadd.f32 %v1944_v32, %v7218_v13  ;;  %v926_v31 = vadd.f32 %v6836_v51, %v789_v52  ;;  %v927_v1 = vadd.f32 %v6839_v58, %v790_v9  ;;  %v929_v37 = vadd.f32 %v6834_v50, %v792_v29  ;;  %v534_v52 = vpop.permute.xlu1 %533 }
 0x165   :  { %v2209_v49 = vadd.f32 %v2208_v12, %v2120_v55  ;;  %v925_v32 = vadd.f32 %v6834_v50, %v788_v30  ;;  %v930_v43 = vadd.f32 %v6836_v51, %v793_v23  ;;  %v265_v3 = vpop.permute.xlu2 %264  ;;  %v928_v53 = vadd.f32 %v6841_v59, %v791_v7  ;;  %v530_v30 = vpop.permute.xlu0 %529 }
 0x166   :  { %v2034_v16 = vadd.f32 %v2033_v28, %v1945_v60  ;;  %1983 = vmatmul.bf16.gmra.mxu0 %v7481_v34  ;;  %v931_v11 = vadd.f32 %v6839_v58, %v794_v42  ;;  %v932_v63 = vadd.f32 %v6841_v59, %v795_v62  ;;  %v400_v15 = vmul.f32 %v6793_v18, %v260_v6 }
 0x167   :  { %2072 = vmatmul.bf16.gmra.mxu1 %v7483_v46  ;;  %v3370_v44 = vmax.f32 %v2209_v49, 0.0  ;;  %2161 = vmatmul.bf16.gmra.mxu2 %v7486_v14  ;;  %v401_v45 = vmul.f32 %v6795_v19, %v260_v6  ;;  %v402_v22 = vmul.f32 %v6806_v24, %v260_v6  ;;  %v403_v2 = vmul.f32 %v6808_v25, %v260_v6 }
 0x168   :  { %2250 = vmatmul.bf16.gmra.mxu3 %v7488_v8  ;;  %v404_v60 = vmul.f32 %v6793_v18, %v265_v3  ;;  %v405_v36 = vmul.f32 %v6795_v19, %v265_v3  ;;  %v1054_v9 = vmax.f32 %v926_v31, 0.0  ;;  %v1058_v29 = vmax.f32 %v930_v43, 0.0 }
 0x169   :  { %v7495_v17 = vpack.c.bf16 %v3370_v44, %v3366_v54  ;;  %v1053_v54 = vmax.f32 %v925_v32, 0.0  ;;  %v1057_v44 = vmax.f32 %v929_v37, 0.0  ;;  %v1055_v23 = vmax.f32 %v927_v1, 0.0 }
 0x16a   :  { %v2122_v12 = vpop.f32.mrf.mxu2  ;;  %v1059_v7 = vmax.f32 %v931_v11, 0.0  ;;  %v1056_v42 = vmax.f32 %v928_v53, 0.0  ;;  %v1060_v62 = vmax.f32 %v932_v63, 0.0  ;;  %v668_v6 = vmul.f32 %v6797_v20, %v530_v30 }
 0x16b   :  { %8780 = vst [vmem:[#allocation58_spill] sm:$0xff] %v7495_v17  ;;  %v2211_v55 = vpop.f32.mrf.mxu3  ;;  %v2123_v33 = vadd.f32 %v2122_v12, %v2034_v16  ;;  %v1946_v49 = vpop.f32.mrf.mxu0  ;;  %v406_v16 = vmul.f32 %v6806_v24, %v265_v3  ;;  %v407_v12 = vmul.f32 %v6808_v25, %v265_v3  ;;  %v669_v18 = vmul.f32 %v6799_v21, %v530_v30  ;;  %v5418_v17 = vld [vmem:[#allocation5 + $0x68] sm:$0xf] }
 0x16c   :  { %v2035_v35 = vpop.f32.mrf.mxu1  ;;  %v1947_v0 = vadd.f32 %v1946_v49, %v7218_v13  ;;  %v670_v19 = vmul.f32 %v6810_v26, %v530_v30  ;;  %v673_v32 = vmul.f32 %v6799_v21, %v534_v52  ;;  %v671_v31 = vmul.f32 %v6812_v27, %v530_v30 }
 0x16d   :  { %v2212_v48 = vadd.f32 %v2211_v55, %v2123_v33  ;;  %v672_v33 = vmul.f32 %v6797_v20, %v534_v52  ;;  %v674_v37 = vmul.f32 %v6810_v26, %v534_v52  ;;  %v7522_v43 = vpack.c.bf16 %v1057_v44, %v1053_v54 }
 0x16e   :  { %v2036_v28 = vadd.f32 %v2035_v35, %v1947_v0  ;;  %v7524_v3 = vpack.c.bf16 %v1058_v29, %v1054_v9  ;;  %v675_v0 = vmul.f32 %v6812_v27, %v534_v52  ;;  %v7527_v11 = vpack.c.bf16 %v1059_v7, %v1055_v23  ;;  %v5738_v27 = vld [vmem:[#allocation5 + $0x2e8] sm:$0xf]  ;;  %v6351_v52 = vld [vmem:[#allocation5 + $0x2f4] sm:$0xf0] }
 0x16f   :  { %v7529_v20 = vpack.c.bf16 %v1060_v62, %v1056_v42  ;;  %v796_v21 = vadd.f32 %v668_v6, %v400_v15  ;;  %v797_v26 = vadd.f32 %v669_v18, %v401_v45  ;;  %v3374_v30 = vmax.f32 %v2212_v48, 0.0  ;;  %v5866_v15 = vld [vmem:[#allocation5 + $0x3e8] sm:$0xf]  ;;  %v6383_v7 = vld [vmem:[#allocation5 + $0x3f4] sm:$0xf0] }
 0x170   :  { %v800_v44 = vadd.f32 %v672_v33, %v404_v60  ;;  %v801_v9 = vadd.f32 %v673_v32, %v405_v36  ;;  %v799_v29 = vadd.f32 %v671_v31, %v403_v2  ;;  %v5739_v23 = vor.u32 %v6351_v52, %v5738_v27 }
 0x171   :  { %v802_v42 = vadd.f32 %v674_v37, %v406_v16  ;;  %v803_v62 = vadd.f32 %v675_v0, %v407_v12  ;;  %v5867_v6 = vor.u32 %v6383_v7, %v5866_v15  ;;  %v933_v48 = vadd.f32 %v6834_v50, %v796_v21  ;;  %v5482_v0 = vld [vmem:[#allocation5 + $0xe8] sm:$0xf] }
 0x172   :  { %v2124_v55 = vpop.f32.mrf.mxu2  ;;  %2800 = vmatpush.bf16.msra.mxu2 %v5739_v23  ;;  %v934_v18 = vadd.f32 %v6836_v51, %v797_v26  ;;  %v938_v16 = vadd.f32 %v6836_v51, %v801_v9  ;;  %v936_v31 = vadd.f32 %v6841_v59, %v799_v29  ;;  %v5610_v26 = vld [vmem:[#allocation5 + $0x1e8] sm:$0xf]  ;;  %v6319_v51 = vld [vmem:[#allocation5 + $0x1f4] sm:$0xf0] }
 0x173   :  { %v2213_v24 = vpop.f32.mrf.mxu3  ;;  %v2125_v49 = vadd.f32 %v2124_v55, %v2036_v28  ;;  %v1949_v35 = vpop.f32.mrf.mxu0  ;;  %v798_v28 = vadd.f32 %v670_v19, %v402_v22  ;;  %2889 = vmatpush.bf16.msra.mxu3 %v5867_v6  ;;  %v939_v33 = vadd.f32 %v6839_v58, %v802_v42  ;;  %v940_v32 = vadd.f32 %v6841_v59, %v803_v62 }
 0x174   :  { %v2038_v1 = vpop.f32.mrf.mxu1  ;;  %v1950_v25 = vadd.f32 %v1949_v35, %v7218_v13  ;;  %v1061_v35 = vmax.f32 %v933_v48, 0.0  ;;  %v1062_v37 = vmax.f32 %v934_v18, 0.0 }
 0x175   :  { %v2214_v53 = vadd.f32 %v2213_v24, %v2125_v49  ;;  %v935_v19 = vadd.f32 %v6839_v58, %v798_v28  ;;  %v937_v24 = vadd.f32 %v6834_v50, %v800_v44  ;;  %v1067_v28 = vmax.f32 %v939_v33, 0.0 }
 0x176   :  { %v2039_v63 = vadd.f32 %v2038_v1, %v1950_v25  ;;  %1988 = vmatmul.bf16.gmra.mxu0 %v7522_v43  ;;  %v5611_v58 = vor.u32 %v6319_v51, %v5610_v26  ;;  %v5850_v26 = vld [vmem:[#allocation5 + $0x3c8] sm:$0xf]  ;;  %v6379_v51 = vld [vmem:[#allocation5 + $0x3d4] sm:$0xf0] }
 0x177   :  { %2077 = vmatmul.bf16.gmra.mxu1 %v7524_v3  ;;  %v3378_v54 = vmax.f32 %v2214_v53, 0.0  ;;  %2166 = vmatmul.bf16.gmra.mxu2 %v7527_v11  ;;  %v1063_v25 = vmax.f32 %v935_v19, 0.0  ;;  %v6287_v53 = vld [vmem:[#allocation5 + $0xf4] sm:$0xf0]  ;;  %v1065_v21 = vmax.f32 %v937_v24, 0.0 }
 0x178   :  { %2255 = vmatmul.bf16.gmra.mxu3 %v7529_v20  ;;  %v5483_v50 = vor.u32 %v6287_v53, %v5482_v0  ;;  %2711 = vmatpush.bf16.msra.mxu1 %v5611_v58 }
 0x179   :  { %v7535_v55 = vpack.c.bf16 %v3378_v54, %v3374_v30  ;;  %v1068_v30 = vmax.f32 %v940_v32, 0.0  ;;  %v1064_v54 = vmax.f32 %v936_v31, 0.0  ;;  %v7547_v23 = vpack.c.bf16 %v1065_v21, %v1061_v35  ;;  %v5722_v21 = vld [vmem:[#allocation5 + $0x2c8] sm:$0xf] }
 0x17a   :  { %v2127_v45 = vpop.f32.mrf.mxu2  ;;  %2622 = vmatpush.bf16.msra.mxu0 %v5483_v50  ;;  %v7551_v42 = vpack.c.bf16 %v1067_v28, %v1063_v25  ;;  %v5851_v28 = vor.u32 %v6379_v51, %v5850_v26 }
 0x17b   :  { %8781 = vst [vmem:[#allocation59_spill] sm:$0xff] %v7535_v55  ;;  %v2216_v22 = vpop.f32.mrf.mxu3  ;;  %v2128_v60 = vadd.f32 %v2127_v45, %v2039_v63  ;;  %v1951_v36 = vpop.f32.mrf.mxu0  ;;  %v1066_v63 = vmax.f32 %v938_v16, 0.0  ;;  %v7553_v62 = vpack.c.bf16 %v1068_v30, %v1064_v54 }
 0x17c   :  { %v2040_v2 = vpop.f32.mrf.mxu1  ;;  %v1952_v12 = vadd.f32 %v1951_v36, %v7218_v13  ;;  %2890 = vmatpush.bf16.msra.mxu3 %v5851_v28 }
 0x17d   :  { %v2217_v49 = vadd.f32 %v2216_v22, %v2128_v60  ;;  %v7549_v15 = vpack.c.bf16 %v1066_v63, %v1062_v37  ;;  %v6347_v63 = vld [vmem:[#allocation5 + $0x2d4] sm:$0xf0] }
 0x17e   :  { %v2041_v1 = vadd.f32 %v2040_v2, %v1952_v12  ;;  %v5723_v50 = vor.u32 %v6347_v63, %v5722_v21 }
 0x17f   :  { %v3382_v48 = vmax.f32 %v2217_v49, 0.0 }
 0x180   :  { %2801 = vmatpush.bf16.msra.mxu2 %v5723_v50 }
 0x182   :  { %v2129_v27 = vpop.f32.mrf.mxu2 }
 0x183   :  { %v2218_v52 = vpop.f32.mrf.mxu3  ;;  %v2130_v59 = vadd.f32 %v2129_v27, %v2041_v1  ;;  %v1954_v44 = vpop.f32.mrf.mxu0 }
 0x184   :  { %v2043_v9 = vpop.f32.mrf.mxu1  ;;  %v1955_v29 = vadd.f32 %v1954_v44, %v7218_v13 }
 0x185   :  { %v2219_v7 = vadd.f32 %v2218_v52, %v2130_v59 }
 0x186   :  { %v2044_v6 = vadd.f32 %v2043_v9, %v1955_v29  ;;  %1993 = vmatmul.bf16.gmra.mxu0 %v7547_v23 }
 0x187   :  { %2082 = vmatmul.bf16.gmra.mxu1 %v7549_v15  ;;  %v3386_v45 = vmax.f32 %v2219_v7, 0.0  ;;  %2171 = vmatmul.bf16.gmra.mxu2 %v7551_v42  ;;  %v5466_v7 = vld [vmem:[#allocation5 + $0xc8] sm:$0xf] }
 0x188   :  { %2260 = vmatmul.bf16.gmra.mxu3 %v7553_v62 }
 0x189   :  { %v7559_v22 = vpack.c.bf16 %v3386_v45, %v3382_v48  ;;  %v5594_v45 = vld [vmem:[#allocation5 + $0x1c8] sm:$0xf] }
 0x18a   :  { %v2132_v18 = vpop.f32.mrf.mxu2 }
 0x18b   :  { %8782 = vst [vmem:[#allocation60_spill] sm:$0xff] %v7559_v22  ;;  %v2221_v19 = vpop.f32.mrf.mxu3  ;;  %v2133_v60 = vadd.f32 %v2132_v18, %v2044_v6  ;;  %v1956_v36 = vpop.f32.mrf.mxu0  ;;  %v6283_v6 = vld [vmem:[#allocation5 + $0xd4] sm:$0xf0] }
 0x18c   :  { %v2045_v2 = vpop.f32.mrf.mxu1  ;;  %v1957_v24 = vadd.f32 %v1956_v36, %v7218_v13  ;;  %v5467_v48 = vor.u32 %v6283_v6, %v5466_v7  ;;  %v6315_v18 = vld [vmem:[#allocation5 + $0x1d4] sm:$0xf0] }
 0x18d   :  { %v2222_v16 = vadd.f32 %v2221_v19, %v2133_v60  ;;  %v5595_v19 = vor.u32 %v6315_v18, %v5594_v45  ;;  %v8789_v45 = vld [vmem:[#allocation16_spill] sm:$0xff]  ;;  %v5706_v18 = vld [vmem:[#allocation5 + $0x2a8] sm:$0xf] }
 0x18e   :  { %v2046_v12 = vadd.f32 %v2045_v2, %v1957_v24  ;;  %2623 = vmatpush.bf16.msra.mxu0 %v5467_v48  ;;  %v8788_v48 = vld [vmem:[#allocation15_spill] sm:$0xff] }
 0x18f   :  { %v3390_v0 = vmax.f32 %v2222_v16, 0.0  ;;  %2712 = vmatpush.bf16.msra.mxu1 %v5595_v19  ;;  %v6343_v19 = vld [vmem:[#allocation5 + $0x2b4] sm:$0xf0] }
 0x192   :  { %v2134_v33 = vpop.f32.mrf.mxu2 }
 0x193   :  { %v2223_v32 = vpop.f32.mrf.mxu3  ;;  %v2135_v31 = vadd.f32 %v2134_v33, %v2046_v12  ;;  %v1959_v49 = vpop.f32.mrf.mxu0 }
 0x194   :  { %v2048_v35 = vpop.f32.mrf.mxu1  ;;  %v1960_v1 = vadd.f32 %v1959_v49, %v7218_v13 }
 0x195   :  { %v2224_v37 = vadd.f32 %v2223_v32, %v2135_v31 }
 0x196   :  { %v2049_v25 = vadd.f32 %v2048_v35, %v1960_v1  ;;  %2274 = vmatmul.bf16.vlgmr.msrb.gmra.mxu0 %v6866_v38  ;;  %v8784_v35 = vld [vmem:[#allocation12_spill] sm:$0xff] }
 0x197   :  { %2363 = vmatmul.bf16.vlgmr.msrb.gmra.mxu1 %v6868_v39  ;;  %v3394_v53 = vmax.f32 %v2224_v37, 0.0  ;;  %2452 = vmatmul.bf16.vlgmr.msrb.gmra.mxu2 %v6870_v40 }
 0x198   :  { %2541 = vmatmul.bf16.vlgmr.msrb.gmra.mxu3 %v6872_v41 }
 0x199   :  { %v7567_v30 = vpack.c.bf16 %v3394_v53, %v3390_v0 }
 0x19a   :  { %v2137_v54 = vpop.f32.mrf.mxu2 }
 0x19b   :  { %8783 = vst [vmem:[#allocation61_spill] sm:$0xff] %v7567_v30  ;;  %v2226_v58 = vpop.f32.mrf.mxu3  ;;  %v2138_v27 = vadd.f32 %v2137_v54, %v2049_v25  ;;  %v1961_v52 = vpop.f32.mrf.mxu0 }
 0x19c   :  { %v2050_v59 = vpop.f32.mrf.mxu1  ;;  %v1962_v44 = vadd.f32 %v1961_v52, %v7218_v13 }
 0x19d   :  { %v2227_v9 = vadd.f32 %v2226_v58, %v2138_v27 }
 0x19e   :  { %v2051_v29 = vadd.f32 %v2050_v59, %v1962_v44 }
 0x19f   :  { %v3398_v31 = vmax.f32 %v2227_v9, 0.0  ;;  %v8786_v9 = vld [vmem:[#allocation13_spill] sm:$0xff] }
 0x1a2   :  { %v2139_v60 = vpop.f32.mrf.mxu2 }
 0x1a3   :  { %v2228_v36 = vpop.f32.mrf.mxu3  ;;  %v2140_v2 = vadd.f32 %v2139_v60, %v2051_v29  ;;  %v1964_v24 = vpop.f32.mrf.mxu0  ;;  %v8787_v29 = vld [vmem:[#allocation14_spill] sm:$0xff]  ;;  %v5707_v60 = vor.u32 %v6343_v19, %v5706_v18 }
 0x1a4   :  { %v2053_v16 = vpop.f32.mrf.mxu1  ;;  %v1965_v12 = vadd.f32 %v1964_v24, %v7218_v13  ;;  %v8792_v18 = vld [vmem:[#allocation18_spill] sm:$0xff] }
 0x1a5   :  { %v2229_v33 = vadd.f32 %v2228_v36, %v2140_v2  ;;  %v5834_v36 = vld [vmem:[#allocation5 + $0x3a8] sm:$0xf]  ;;  %v6375_v2 = vld [vmem:[#allocation5 + $0x3b4] sm:$0xf0]  ;;  %2802 = vmatpush.bf16.msra.mxu2 %v5707_v60 }
 0x1a6   :  { %v2054_v32 = vadd.f32 %v2053_v16, %v1965_v12  ;;  %2279 = vmatmul.bf16.gmra.mxu0 %v6922_v56  ;;  %v5835_v24 = vor.u32 %v6375_v2, %v5834_v36  ;;  %v8793_v36 = vld [vmem:[#allocation19_spill] sm:$0xff]  ;;  %v8794_v2 = vld [vmem:[#allocation20_spill] sm:$0xff] }
 0x1a7   :  { %2368 = vmatmul.bf16.gmra.mxu1 %v6924_v57  ;;  %v3402_v49 = vmax.f32 %v2229_v33, 0.0  ;;  %2457 = vmatmul.bf16.gmra.mxu2 %v6926_v61 }
 0x1a8   :  { %2546 = vmatmul.bf16.gmra.mxu3 %v8784_v35 }
 0x1a9   :  { %v7575_v1 = vpack.c.bf16 %v3402_v49, %v3398_v31  ;;  %2891 = vmatpush.bf16.msra.mxu3 %v5835_v24 }
 0x1aa   :  { %v2142_v37 = vpop.f32.mrf.mxu2 }
 0x1ab   :  { %8785 = vst [vmem:[#allocation12_spill] sm:$0xff] %v7575_v1  ;;  %v2231_v25 = vpop.f32.mrf.mxu3  ;;  %v2143_v0 = vadd.f32 %v2142_v37, %v2054_v32  ;;  %v1966_v53 = vpop.f32.mrf.mxu0 }
 0x1ac   :  { %v2055_v21 = vpop.f32.mrf.mxu1  ;;  %v1967_v63 = vadd.f32 %v1966_v53, %v7218_v13  ;;  %v5450_v53 = vld [vmem:[#allocation5 + $0xa8] sm:$0xf] }
 0x1ad   :  { %v2232_v50 = vadd.f32 %v2231_v25, %v2143_v0 }
 0x1ae   :  { %v2056_v26 = vadd.f32 %v2055_v21, %v1967_v63  ;;  %v6279_v21 = vld [vmem:[#allocation5 + $0xb4] sm:$0xf0] }
 0x1af   :  { %v3406_v7 = vmax.f32 %v2232_v50, 0.0  ;;  %v5451_v63 = vor.u32 %v6279_v21, %v5450_v53  ;;  %v5578_v50 = vld [vmem:[#allocation5 + $0x1a8] sm:$0xf] }
 0x1b1   :  { %2624 = vmatpush.bf16.msra.mxu0 %v5451_v63 }
 0x1b2   :  { %v2144_v51 = vpop.f32.mrf.mxu2 }
 0x1b3   :  { %v2233_v28 = vpop.f32.mrf.mxu3  ;;  %v2145_v54 = vadd.f32 %v2144_v51, %v2056_v26  ;;  %v1969_v58 = vpop.f32.mrf.mxu0  ;;  %v6311_v26 = vld [vmem:[#allocation5 + $0x1b4] sm:$0xf0] }
 0x1b4   :  { %v2058_v27 = vpop.f32.mrf.mxu1  ;;  %v1970_v52 = vadd.f32 %v1969_v58, %v7218_v13  ;;  %v5579_v51 = vor.u32 %v6311_v26, %v5578_v50 }
 0x1b5   :  { %v2234_v59 = vadd.f32 %v2233_v28, %v2145_v54 }
 0x1b6   :  { %v2059_v44 = vadd.f32 %v2058_v27, %v1970_v52  ;;  %2284 = vmatmul.bf16.gmra.mxu0 %v8786_v9  ;;  %2713 = vmatpush.bf16.msra.mxu1 %v5579_v51 }
 0x1b7   :  { %2373 = vmatmul.bf16.gmra.mxu1 %v8787_v29  ;;  %v3410_v6 = vmax.f32 %v2234_v59, 0.0  ;;  %2462 = vmatmul.bf16.gmra.mxu2 %v8788_v48 }
 0x1b8   :  { %2551 = vmatmul.bf16.gmra.mxu3 %v8789_v45 }
 0x1b9   :  { %v7583_v16 = vpack.c.bf16 %v3410_v6, %v3406_v7  ;;  %v8791_v6 = vld [vmem:[#allocation17_spill] sm:$0xff] }
 0x1ba   :  { %v2147_v12 = vpop.f32.mrf.mxu2 }
 0x1bb   :  { %8790 = vst [vmem:[#allocation13_spill] sm:$0xff] %v7583_v16  ;;  %v2236_v33 = vpop.f32.mrf.mxu3  ;;  %v2148_v32 = vadd.f32 %v2147_v12, %v2059_v44  ;;  %v1971_v31 = vpop.f32.mrf.mxu0 }
 0x1bc   :  { %v2060_v49 = vpop.f32.mrf.mxu1  ;;  %v1972_v37 = vadd.f32 %v1971_v31, %v7218_v13 }
 0x1bd   :  { %v2237_v25 = vadd.f32 %v2236_v33, %v2148_v32 }
 0x1be   :  { %v2061_v0 = vadd.f32 %v2060_v49, %v1972_v37 }
 0x1bf   :  { %v3414_v19 = vmax.f32 %v2237_v25, 0.0 }
 0x1c2   :  { %v2149_v28 = vpop.f32.mrf.mxu2 }
 0x1c3   :  { %v2238_v54 = vpop.f32.mrf.mxu3  ;;  %v2150_v58 = vadd.f32 %v2149_v28, %v2061_v0  ;;  %v1974_v27 = vpop.f32.mrf.mxu0 }
 0x1c4   :  { %v2063_v52 = vpop.f32.mrf.mxu1  ;;  %v1975_v59 = vadd.f32 %v1974_v27, %v7218_v13  ;;  %v8797_v27 = vld [vmem:[#allocation22_spill] sm:$0xff] }
 0x1c5   :  { %v2239_v44 = vadd.f32 %v2238_v54, %v2150_v58  ;;  %v8796_v58 = vld [vmem:[#allocation21_spill] sm:$0xff] }
 0x1c6   :  { %v2064_v7 = vadd.f32 %v2063_v52, %v1975_v59  ;;  %2289 = vmatmul.bf16.gmra.mxu0 %v8791_v6 }
 0x1c7   :  { %2378 = vmatmul.bf16.gmra.mxu1 %v8792_v18  ;;  %v3418_v60 = vmax.f32 %v2239_v44, 0.0  ;;  %2467 = vmatmul.bf16.gmra.mxu2 %v8793_v36  ;;  %v8798_v44 = vld [vmem:[#allocation23_spill] sm:$0xff] }
 0x1c8   :  { %2556 = vmatmul.bf16.gmra.mxu3 %v8794_v2 }
 0x1c9   :  { %v7591_v24 = vpack.c.bf16 %v3418_v60, %v3414_v19  ;;  %v5690_v19 = vld [vmem:[#allocation5 + $0x288] sm:$0xf]  ;;  %v6339_v60 = vld [vmem:[#allocation5 + $0x294] sm:$0xf0] }
 0x1ca   :  { %v2152_v12 = vpop.f32.mrf.mxu2 }
 0x1cb   :  { %8795 = vst [vmem:[#allocation14_spill] sm:$0xff] %v7591_v24  ;;  %v2241_v33 = vpop.f32.mrf.mxu3  ;;  %v2153_v32 = vadd.f32 %v2152_v12, %v2064_v7  ;;  %v1976_v31 = vpop.f32.mrf.mxu0  ;;  %v8799_v7 = vld [vmem:[#allocation24_spill] sm:$0xff]  ;;  %v5691_v12 = vor.u32 %v6339_v60, %v5690_v19  ;;  %v5562_v19 = vld [vmem:[#allocation5 + $0x188] sm:$0xf]  ;;  %v6307_v60 = vld [vmem:[#allocation5 + $0x194] sm:$0xf0] }
 0x1cc   :  { %v2065_v49 = vpop.f32.mrf.mxu1  ;;  %v1977_v37 = vadd.f32 %v1976_v31, %v7218_v13  ;;  %v5563_v16 = vor.u32 %v6307_v60, %v5562_v19 }
 0x1cd   :  { %v2242_v0 = vadd.f32 %v2241_v33, %v2153_v32  ;;  %v5818_v33 = vld [vmem:[#allocation5 + $0x388] sm:$0xf]  ;;  %v6371_v32 = vld [vmem:[#allocation5 + $0x394] sm:$0xf0]  ;;  %2803 = vmatpush.bf16.msra.mxu2 %v5691_v12 }
 0x1ce   :  { %v2066_v53 = vadd.f32 %v2065_v49, %v1977_v37  ;;  %v5819_v31 = vor.u32 %v6371_v32, %v5818_v33  ;;  %2714 = vmatpush.bf16.msra.mxu1 %v5563_v16 }
 0x1cf   :  { %v3422_v52 = vmax.f32 %v2242_v0, 0.0 }
 0x1d0   :  { %2892 = vmatpush.bf16.msra.mxu3 %v5819_v31 }
 0x1d2   :  { %v2154_v21 = vpop.f32.mrf.mxu2 }
 0x1d3   :  { %v2243_v63 = vpop.f32.mrf.mxu3  ;;  %v2155_v50 = vadd.f32 %v2154_v21, %v2066_v53  ;;  %v1979_v25 = vpop.f32.mrf.mxu0 }
 0x1d4   :  { %v2068_v26 = vpop.f32.mrf.mxu1  ;;  %v1980_v51 = vadd.f32 %v1979_v25, %v7218_v13 }
 0x1d5   :  { %v2244_v28 = vadd.f32 %v2243_v63, %v2155_v50 }
 0x1d6   :  { %v2069_v54 = vadd.f32 %v2068_v26, %v1980_v51  ;;  %2294 = vmatmul.bf16.gmra.mxu0 %v8796_v58  ;;  %v5434_v51 = vld [vmem:[#allocation5 + $0x88] sm:$0xf] }
 0x1d7   :  { %2383 = vmatmul.bf16.gmra.mxu1 %v8797_v27  ;;  %v3426_v59 = vmax.f32 %v2244_v28, 0.0  ;;  %2472 = vmatmul.bf16.gmra.mxu2 %v8798_v44  ;;  %v6275_v28 = vld [vmem:[#allocation5 + $0x94] sm:$0xf0] }
 0x1d8   :  { %2561 = vmatmul.bf16.gmra.mxu3 %v8799_v7  ;;  %v5435_v24 = vor.u32 %v6275_v28, %v5434_v51  ;;  %v8804_v51 = vld [vmem:[#allocation28_spill] sm:$0xff] }
 0x1d9   :  { %v7599_v49 = vpack.c.bf16 %v3426_v59, %v3422_v52 }
 0x1da   :  { %v2157_v37 = vpop.f32.mrf.mxu2  ;;  %2625 = vmatpush.bf16.msra.mxu0 %v5435_v24 }
 0x1db   :  { %8800 = vst [vmem:[#allocation15_spill] sm:$0xff] %v7599_v49  ;;  %v2246_v53 = vpop.f32.mrf.mxu3  ;;  %v2158_v21 = vadd.f32 %v2157_v37, %v2069_v54  ;;  %v1981_v63 = vpop.f32.mrf.mxu0 }
 0x1dc   :  { %v2070_v50 = vpop.f32.mrf.mxu1  ;;  %v1982_v0 = vadd.f32 %v1981_v63, %v7218_v13  ;;  %v8801_v63 = vld [vmem:[#allocation25_spill] sm:$0xff] }
 0x1dd   :  { %v2247_v25 = vadd.f32 %v2246_v53, %v2158_v21  ;;  %v8802_v53 = vld [vmem:[#allocation26_spill] sm:$0xff] }
 0x1de   :  { %v2071_v26 = vadd.f32 %v2070_v50, %v1982_v0  ;;  %v8803_v0 = vld [vmem:[#allocation27_spill] sm:$0xff] }
 0x1df   :  { %v3430_v21 = vmax.f32 %v2247_v25, 0.0 }
 0x1e2   :  { %v2159_v33 = vpop.f32.mrf.mxu2 }
 0x1e3   :  { %v2248_v52 = vpop.f32.mrf.mxu3  ;;  %v2160_v59 = vadd.f32 %v2159_v33, %v2071_v26  ;;  %v1984_v32 = vpop.f32.mrf.mxu0 }
 0x1e4   :  { %v2073_v12 = vpop.f32.mrf.mxu1  ;;  %v1985_v54 = vadd.f32 %v1984_v32, %v7218_v13 }
 0x1e5   :  { %v2249_v31 = vadd.f32 %v2248_v52, %v2160_v59 }
 0x1e6   :  { %v2074_v37 = vadd.f32 %v2073_v12, %v1985_v54  ;;  %2299 = vmatmul.bf16.gmra.mxu0 %v8801_v63 }
 0x1e7   :  { %2388 = vmatmul.bf16.gmra.mxu1 %v8802_v53  ;;  %v3434_v50 = vmax.f32 %v2249_v31, 0.0  ;;  %2477 = vmatmul.bf16.gmra.mxu2 %v8803_v0 }
 0x1e8   :  { %2566 = vmatmul.bf16.gmra.mxu3 %v8804_v51 }
 0x1e9   :  { %v7607_v28 = vpack.c.bf16 %v3434_v50, %v3430_v21  ;;  %v8806_v21 = vld [vmem:[#allocation29_spill] sm:$0xff]  ;;  %v8807_v50 = vld [vmem:[#allocation30_spill] sm:$0xff] }
 0x1ea   :  { %v2162_v24 = vpop.f32.mrf.mxu2 }
 0x1eb   :  { %8805 = vst [vmem:[#allocation16_spill] sm:$0xff] %v7607_v28  ;;  %v2251_v26 = vpop.f32.mrf.mxu3  ;;  %v2163_v19 = vadd.f32 %v2162_v24, %v2074_v37  ;;  %v1986_v16 = vpop.f32.mrf.mxu0  ;;  %v8808_v28 = vld [vmem:[#allocation31_spill] sm:$0xff] }
 0x1ec   :  { %v2075_v60 = vpop.f32.mrf.mxu1  ;;  %v1987_v33 = vadd.f32 %v1986_v16, %v7218_v13  ;;  %v8809_v16 = vld [vmem:[#allocation32_spill] sm:$0xff] }
 0x1ed   :  { %v2252_v52 = vadd.f32 %v2251_v26, %v2163_v19  ;;  %v5674_v26 = vld [vmem:[#allocation5 + $0x268] sm:$0xf]  ;;  %v6335_v19 = vld [vmem:[#allocation5 + $0x274] sm:$0xf0] }
 0x1ee   :  { %v2076_v59 = vadd.f32 %v2075_v60, %v1987_v33  ;;  %v5675_v60 = vor.u32 %v6335_v19, %v5674_v26  ;;  %v5802_v33 = vld [vmem:[#allocation5 + $0x368] sm:$0xf]  ;;  %v6303_v19 = vld [vmem:[#allocation5 + $0x174] sm:$0xf0] }
 0x1ef   :  { %v3438_v37 = vmax.f32 %v2252_v52, 0.0  ;;  %v5546_v26 = vld [vmem:[#allocation5 + $0x168] sm:$0xf] }
 0x1f0   :  { %2804 = vmatpush.bf16.msra.mxu2 %v5675_v60 }
 0x1f2   :  { %v2164_v32 = vpop.f32.mrf.mxu2 }
 0x1f3   :  { %v2253_v12 = vpop.f32.mrf.mxu3  ;;  %v2165_v54 = vadd.f32 %v2164_v32, %v2076_v59  ;;  %v1989_v25 = vpop.f32.mrf.mxu0  ;;  %v6367_v59 = vld [vmem:[#allocation5 + $0x374] sm:$0xf0] }
 0x1f4   :  { %v2078_v31 = vpop.f32.mrf.mxu1  ;;  %v1990_v49 = vadd.f32 %v1989_v25, %v7218_v13  ;;  %v5803_v32 = vor.u32 %v6367_v59, %v5802_v33 }
 0x1f5   :  { %v2254_v1 = vadd.f32 %v2253_v12, %v2165_v54 }
 0x1f6   :  { %v2079_v30 = vadd.f32 %v2078_v31, %v1990_v49  ;;  %2304 = vmatmul.bf16.gmra.mxu0 %v8806_v21  ;;  %2893 = vmatpush.bf16.msra.mxu3 %v5803_v32 }
 0x1f7   :  { %2393 = vmatmul.bf16.gmra.mxu1 %v8807_v50  ;;  %v3442_v24 = vmax.f32 %v2254_v1, 0.0  ;;  %2482 = vmatmul.bf16.gmra.mxu2 %v8808_v28  ;;  %v5547_v50 = vor.u32 %v6303_v19, %v5546_v26 }
 0x1f8   :  { %2571 = vmatmul.bf16.gmra.mxu3 %v8809_v16  ;;  %v6271_v16 = vld [vmem:[#allocation5 + $0x74] sm:$0xf0] }
 0x1f9   :  { %v7615_v22 = vpack.c.bf16 %v3442_v24, %v3438_v37  ;;  %v5419_v28 = vor.u32 %v6271_v16, %v5418_v17  ;;  %2715 = vmatpush.bf16.msra.mxu1 %v5547_v50  ;;  %v8813_v16 = vld [vmem:[#allocation35_spill] sm:$0xff] }
 0x1fa   :  { %v2167_v12 = vpop.f32.mrf.mxu2 }
 0x1fb   :  { %8810 = vst [vmem:[#allocation17_spill] sm:$0xff] %v7615_v22  ;;  %v2256_v49 = vpop.f32.mrf.mxu3  ;;  %v2168_v54 = vadd.f32 %v2167_v12, %v2079_v30  ;;  %v1991_v25 = vpop.f32.mrf.mxu0  ;;  %2626 = vmatpush.bf16.msra.mxu0 %v5419_v28 }
 0x1fc   :  { %v2080_v31 = vpop.f32.mrf.mxu1  ;;  %v1992_v1 = vadd.f32 %v1991_v25, %v7218_v13  ;;  %v8811_v25 = vld [vmem:[#allocation33_spill] sm:$0xff] }
 0x1fd   :  { %v2257_v52 = vadd.f32 %v2256_v49, %v2168_v54  ;;  %v8812_v49 = vld [vmem:[#allocation34_spill] sm:$0xff] }
 0x1fe   :  { %v2081_v55 = vadd.f32 %v2080_v31, %v1992_v1  ;;  %v8814_v31 = vld [vmem:[#allocation36_spill] sm:$0xff] }
 0x1ff   :  { %v3446_v54 = vmax.f32 %v2257_v52, 0.0 }
 0x202   :  { %v2169_v33 = vpop.f32.mrf.mxu2 }
 0x203   :  { %v2258_v37 = vpop.f32.mrf.mxu3  ;;  %v2170_v24 = vadd.f32 %v2169_v33, %v2081_v55  ;;  %v1994_v59 = vpop.f32.mrf.mxu0 }
 0x204   :  { %v2083_v60 = vpop.f32.mrf.mxu1  ;;  %v1995_v30 = vadd.f32 %v1994_v59, %v7218_v13  ;;  %v7626_v59 = vld [vmem:[#allocation2 + $0x4] sm:$0xf] }
 0x205   :  { %v2259_v32 = vadd.f32 %v2258_v37, %v2170_v24  ;;  %8816 = vst [vmem:[#allocation19_spill] sm:$0xff] %v7626_v59  ;;  %v7629_v52 = vperm.slane %v7626_v59, 1 }
 0x206   :  { %v2084_v12 = vadd.f32 %v2083_v60, %v1995_v30  ;;  %2309 = vmatmul.bf16.gmra.mxu0 %v8811_v25 }
 0x207   :  { %2398 = vmatmul.bf16.gmra.mxu1 %v8812_v49  ;;  %v3450_v17 = vmax.f32 %v2259_v32, 0.0  ;;  %2487 = vmatmul.bf16.gmra.mxu2 %v8813_v16 }
 0x208   :  { %2576 = vmatmul.bf16.gmra.mxu3 %v8814_v31  ;;  %v8818_v31 = vld [vmem:[#allocation38_spill] sm:$0xff] }
 0x209   :  { %v7623_v1 = vpack.c.bf16 %v3450_v17, %v3446_v54 }
 0x20a   :  { %v2172_v55 = vpop.f32.mrf.mxu2 }
 0x20b   :  { %8815 = vst [vmem:[#allocation18_spill] sm:$0xff] %v7623_v1  ;;  %v2261_v28 = vpop.f32.mrf.mxu3  ;;  %v2173_v26 = vadd.f32 %v2172_v55, %v2084_v12  ;;  %v1996_v50 = vpop.f32.mrf.mxu0  ;;  %v8817_v55 = vld [vmem:[#allocation37_spill] sm:$0xff] }
 0x20c   :  { %v2085_v19 = vpop.f32.mrf.mxu1  ;;  %v1997_v33 = vadd.f32 %v1996_v50, %v7218_v13  ;;  %v8820_v50 = vld [vmem:[#allocation40_spill] sm:$0xff] }
 0x20d   :  { %v2262_v37 = vadd.f32 %v2261_v28, %v2173_v26  ;;  %v8819_v26 = vld [vmem:[#allocation39_spill] sm:$0xff] }
 0x20e   :  { %v2086_v24 = vadd.f32 %v2085_v19, %v1997_v33  ;;  %v5658_v19 = vld [vmem:[#allocation5 + $0x248] sm:$0xf]  ;;  %v6331_v33 = vld [vmem:[#allocation5 + $0x254] sm:$0xf0] }
 0x20f   :  { %v3454_v13 = vmax.f32 %v2262_v37, 0.0  ;;  %v5659_v59 = vor.u32 %v6331_v33, %v5658_v19  ;;  %v5530_v19 = vld [vmem:[#allocation5 + $0x148] sm:$0xf]  ;;  %v6299_v33 = vld [vmem:[#allocation5 + $0x154] sm:$0xf0] }
 0x210   :  { %v5531_v25 = vor.u32 %v6299_v33, %v5530_v19 }
 0x211   :  { %2805 = vmatpush.bf16.msra.mxu2 %v5659_v59 }
 0x212   :  { %v2174_v60 = vpop.f32.mrf.mxu2  ;;  %2716 = vmatpush.bf16.msra.mxu1 %v5531_v25 }
 0x213   :  { %v2263_v30 = vpop.f32.mrf.mxu3  ;;  %v2175_v32 = vadd.f32 %v2174_v60, %v2086_v24  ;;  %v2275_v22 = vpop.f32.mrf.mxu0  ;;  %v5786_v24 = vld [vmem:[#allocation5 + $0x348] sm:$0xf]  ;;  %v6363_v60 = vld [vmem:[#allocation5 + $0x354] sm:$0xf0] }
 0x214   :  { %v2364_v54 = vpop.f32.mrf.mxu1  ;;  %v2276_v17 = vadd.f32 %v2275_v22, %v7629_v52  ;;  %v5787_v16 = vor.u32 %v6363_v60, %v5786_v24 }
 0x215   :  { %v2264_v1 = vadd.f32 %v2263_v30, %v2175_v32 }
 0x216   :  { %v2365_v12 = vadd.f32 %v2364_v54, %v2276_v17  ;;  %2314 = vmatmul.bf16.gmra.mxu0 %v8817_v55  ;;  %2894 = vmatpush.bf16.msra.mxu3 %v5787_v16 }
 0x217   :  { %2403 = vmatmul.bf16.gmra.mxu1 %v8818_v31  ;;  %v3458_v28 = vmax.f32 %v2264_v1, 0.0  ;;  %2492 = vmatmul.bf16.gmra.mxu2 %v8819_v26  ;;  %v6267_v31 = vld [vmem:[#allocation5 + $0x54] sm:$0xf0] }
 0x218   :  { %2581 = vmatmul.bf16.gmra.mxu3 %v8820_v50  ;;  %v5402_v50 = vld [vmem:[#allocation5 + $0x48] sm:$0xf] }
 0x219   :  { %v7636_v49 = vpack.c.bf16 %v3458_v28, %v3454_v13  ;;  %v5403_v55 = vor.u32 %v6267_v31, %v5402_v50  ;;  %v8824_v50 = vld [vmem:[#allocation43_spill] sm:$0xff] }
 0x21a   :  { %v2453_v22 = vpop.f32.mrf.mxu2 }
 0x21b   :  { %8821 = vst [vmem:[#allocation20_spill] sm:$0xff] %v7636_v49  ;;  %v2542_v30 = vpop.f32.mrf.mxu3  ;;  %v2454_v32 = vadd.f32 %v2453_v22, %v2365_v12  ;;  %v2277_v54 = vpop.f32.mrf.mxu0  ;;  %2627 = vmatpush.bf16.msra.mxu0 %v5403_v55 }
 0x21c   :  { %v2366_v17 = vpop.f32.mrf.mxu1  ;;  %v2278_v1 = vadd.f32 %v2277_v54, %v7629_v52  ;;  %v8822_v54 = vld [vmem:[#allocation41_spill] sm:$0xff] }
 0x21d   :  { %v2543_v37 = vadd.f32 %v2542_v30, %v2454_v32  ;;  %v8823_v30 = vld [vmem:[#allocation42_spill] sm:$0xff] }
 0x21e   :  { %v2367_v26 = vadd.f32 %v2366_v17, %v2278_v1  ;;  %v8825_v17 = vld [vmem:[#allocation44_spill] sm:$0xff] }
 0x21f   :  { %v3335_v32 = vmax.f32 %v2543_v37, 0.0 }
 0x222   :  { %v2455_v24 = vpop.f32.mrf.mxu2 }
 0x223   :  { %v2544_v13 = vpop.f32.mrf.mxu3  ;;  %v2456_v28 = vadd.f32 %v2455_v24, %v2367_v26  ;;  %v2280_v60 = vpop.f32.mrf.mxu0 }
 0x224   :  { %v2369_v59 = vpop.f32.mrf.mxu1  ;;  %v2281_v12 = vadd.f32 %v2280_v60, %v7629_v52 }
 0x225   :  { %v2545_v16 = vadd.f32 %v2544_v13, %v2456_v28 }
 0x226   :  { %v2370_v22 = vadd.f32 %v2369_v59, %v2281_v12  ;;  %2319 = vmatmul.bf16.gmra.mxu0 %v8822_v54 }
 0x227   :  { %2408 = vmatmul.bf16.gmra.mxu1 %v8823_v30  ;;  %v3339_v31 = vmax.f32 %v2545_v16, 0.0  ;;  %2497 = vmatmul.bf16.gmra.mxu2 %v8824_v50 }
 0x228   :  { %2586 = vmatmul.bf16.gmra.mxu3 %v8825_v17 }
 0x229   :  { %v7644_v1 = vpack.c.bf16 %v3339_v31, %v3335_v32  ;;  %v8827_v32 = vld [vmem:[#allocation46_spill] sm:$0xff]  ;;  %v8828_v31 = vld [vmem:[#allocation47_spill] sm:$0xff] }
 0x22a   :  { %v2458_v55 = vpop.f32.mrf.mxu2 }
 0x22b   :  { %8826 = vst [vmem:[#allocation21_spill] sm:$0xff] %v7644_v1  ;;  %v2547_v26 = vpop.f32.mrf.mxu3  ;;  %v2459_v19 = vadd.f32 %v2458_v55, %v2370_v22  ;;  %v2282_v25 = vpop.f32.mrf.mxu0  ;;  %v8829_v1 = vld [vmem:[#allocation48_spill] sm:$0xff] }
 0x22c   :  { %v2371_v33 = vpop.f32.mrf.mxu1  ;;  %v2283_v24 = vadd.f32 %v2282_v25, %v7629_v52  ;;  %v8830_v25 = vld [vmem:[#allocation49_spill] sm:$0xff] }
 0x22d   :  { %v2548_v13 = vadd.f32 %v2547_v26, %v2459_v19  ;;  %v5642_v26 = vld [vmem:[#allocation5 + $0x228] sm:$0xf]  ;;  %v6327_v19 = vld [vmem:[#allocation5 + $0x234] sm:$0xf0] }
 0x22e   :  { %v2372_v28 = vadd.f32 %v2371_v33, %v2283_v24  ;;  %v5643_v33 = vor.u32 %v6327_v19, %v5642_v26  ;;  %v5770_v24 = vld [vmem:[#allocation5 + $0x328] sm:$0xf]  ;;  %v6295_v19 = vld [vmem:[#allocation5 + $0x134] sm:$0xf0] }
 0x22f   :  { %v3343_v22 = vmax.f32 %v2548_v13, 0.0  ;;  %v5514_v26 = vld [vmem:[#allocation5 + $0x128] sm:$0xf] }
 0x230   :  { %2806 = vmatpush.bf16.msra.mxu2 %v5643_v33  ;;  %v5515_v54 = vor.u32 %v6295_v19, %v5514_v26 }
 0x232   :  { %v2460_v60 = vpop.f32.mrf.mxu2  ;;  %2717 = vmatpush.bf16.msra.mxu1 %v5515_v54 }
 0x233   :  { %v2549_v59 = vpop.f32.mrf.mxu3  ;;  %v2461_v12 = vadd.f32 %v2460_v60, %v2372_v28  ;;  %v2285_v37 = vpop.f32.mrf.mxu0  ;;  %v6359_v28 = vld [vmem:[#allocation5 + $0x334] sm:$0xf0] }
 0x234   :  { %v2374_v16 = vpop.f32.mrf.mxu1  ;;  %v2286_v49 = vadd.f32 %v2285_v37, %v7629_v52  ;;  %v5771_v60 = vor.u32 %v6359_v28, %v5770_v24 }
 0x235   :  { %v2550_v50 = vadd.f32 %v2549_v59, %v2461_v12 }
 0x236   :  { %v2375_v17 = vadd.f32 %v2374_v16, %v2286_v49  ;;  %2324 = vmatmul.bf16.gmra.mxu0 %v8827_v32  ;;  %2895 = vmatpush.bf16.msra.mxu3 %v5771_v60 }
 0x237   :  { %2413 = vmatmul.bf16.gmra.mxu1 %v8828_v31  ;;  %v3347_v55 = vmax.f32 %v2550_v50, 0.0  ;;  %2502 = vmatmul.bf16.gmra.mxu2 %v8829_v1  ;;  %v6263_v31 = vld [vmem:[#allocation5 + $0x34] sm:$0xf0] }
 0x238   :  { %2591 = vmatmul.bf16.gmra.mxu3 %v8830_v25  ;;  %v5386_v25 = vld [vmem:[#allocation5 + $0x28] sm:$0xf] }
 0x239   :  { %v7652_v30 = vpack.c.bf16 %v3347_v55, %v3343_v22  ;;  %v5387_v32 = vor.u32 %v6263_v31, %v5386_v25  ;;  %v8832_v25 = vld [vmem:[#allocation50_spill] sm:$0xff] }
 0x23a   :  { %v2463_v59 = vpop.f32.mrf.mxu2 }
 0x23b   :  { %8831 = vst [vmem:[#allocation22_spill] sm:$0xff] %v7652_v30  ;;  %v2552_v49 = vpop.f32.mrf.mxu3  ;;  %v2464_v12 = vadd.f32 %v2463_v59, %v2375_v17  ;;  %v2287_v37 = vpop.f32.mrf.mxu0  ;;  %2628 = vmatpush.bf16.msra.mxu0 %v5387_v32 }
 0x23c   :  { %v2376_v16 = vpop.f32.mrf.mxu1  ;;  %v2288_v50 = vadd.f32 %v2287_v37, %v7629_v52 }
 0x23d   :  { %v2553_v13 = vadd.f32 %v2552_v49, %v2464_v12 }
 0x23e   :  { %v2377_v1 = vadd.f32 %v2376_v16, %v2288_v50 }
 0x23f   :  { %v3351_v49 = vmax.f32 %v2553_v13, 0.0 }
 0x242   :  { %v2465_v24 = vpop.f32.mrf.mxu2 }
 0x243   :  { %v2554_v22 = vpop.f32.mrf.mxu3  ;;  %v2466_v55 = vadd.f32 %v2465_v24, %v2377_v1  ;;  %v2290_v28 = vpop.f32.mrf.mxu0 }
 0x244   :  { %v2379_v33 = vpop.f32.mrf.mxu1  ;;  %v2291_v17 = vadd.f32 %v2290_v28, %v7629_v52 }
 0x245   :  { %v2555_v60 = vadd.f32 %v2554_v22, %v2466_v55 }
 0x246   :  { %v2380_v59 = vadd.f32 %v2379_v33, %v2291_v17  ;;  %2329 = vmatmul.bf16.gmra.mxu0 %v7382_v47 }
 0x247   :  { %2418 = vmatmul.bf16.gmra.mxu1 %v7388_v4  ;;  %v3355_v31 = vmax.f32 %v2555_v60, 0.0  ;;  %2507 = vmatmul.bf16.gmra.mxu2 %v7390_v5 }
 0x248   :  { %2596 = vmatmul.bf16.gmra.mxu3 %v8832_v25 }
 0x249   :  { %v7660_v12 = vpack.c.bf16 %v3355_v31, %v3351_v49  ;;  %v8834_v49 = vld [vmem:[#allocation52_spill] sm:$0xff] }
 0x24a   :  { %v2468_v1 = vpop.f32.mrf.mxu2 }
 0x24b   :  { %8833 = vst [vmem:[#allocation23_spill] sm:$0xff] %v7660_v12  ;;  %v2557_v32 = vpop.f32.mrf.mxu3  ;;  %v2469_v37 = vadd.f32 %v2468_v1, %v2380_v59  ;;  %v2292_v54 = vpop.f32.mrf.mxu0  ;;  %v8835_v1 = vld [vmem:[#allocation53_spill] sm:$0xff] }
 0x24c   :  { %v2381_v16 = vpop.f32.mrf.mxu1  ;;  %v2293_v50 = vadd.f32 %v2292_v54, %v7629_v52  ;;  %v8836_v54 = vld [vmem:[#allocation56_spill] sm:$0xff] }
 0x24d   :  { %v2558_v26 = vadd.f32 %v2557_v32, %v2469_v37  ;;  %v5626_v32 = vld [vmem:[#allocation5 + $0x208] sm:$0xf]  ;;  %v6323_v37 = vld [vmem:[#allocation5 + $0x214] sm:$0xf0] }
 0x24e   :  { %v2382_v19 = vadd.f32 %v2381_v16, %v2293_v50  ;;  %v5627_v16 = vor.u32 %v6323_v37, %v5626_v32  ;;  %v5754_v50 = vld [vmem:[#allocation5 + $0x308] sm:$0xf]  ;;  %v6291_v37 = vld [vmem:[#allocation5 + $0x114] sm:$0xf0] }
 0x24f   :  { %v3359_v59 = vmax.f32 %v2558_v26, 0.0  ;;  %v5498_v32 = vld [vmem:[#allocation5 + $0x108] sm:$0xf] }
 0x250   :  { %2807 = vmatpush.bf16.msra.mxu2 %v5627_v16 }
 0x252   :  { %v2470_v24 = vpop.f32.mrf.mxu2 }
 0x253   :  { %v2559_v22 = vpop.f32.mrf.mxu3  ;;  %v2471_v55 = vadd.f32 %v2470_v24, %v2382_v19  ;;  %v2295_v13 = vpop.f32.mrf.mxu0  ;;  %v6355_v19 = vld [vmem:[#allocation5 + $0x314] sm:$0xf0] }
 0x254   :  { %v2384_v28 = vpop.f32.mrf.mxu1  ;;  %v2296_v33 = vadd.f32 %v2295_v13, %v7629_v52  ;;  %v5755_v24 = vor.u32 %v6355_v19, %v5754_v50 }
 0x255   :  { %v2560_v17 = vadd.f32 %v2559_v22, %v2471_v55 }
 0x256   :  { %v2385_v60 = vadd.f32 %v2384_v28, %v2296_v33  ;;  %2334 = vmatmul.bf16.gmra.mxu0 %v7419_v10  ;;  %2896 = vmatpush.bf16.msra.mxu3 %v5755_v24  ;;  %v5499_v10 = vor.u32 %v6291_v37, %v5498_v32 }
 0x257   :  { %2423 = vmatmul.bf16.gmra.mxu1 %v8834_v49  ;;  %v3363_v31 = vmax.f32 %v2560_v17, 0.0  ;;  %2512 = vmatmul.bf16.gmra.mxu2 %v8835_v1  ;;  %v6259_v1 = vld [vmem:[#allocation5 + $0x14] sm:$0xf0] }
 0x258   :  { %2601 = vmatmul.bf16.gmra.mxu3 %v8836_v54  ;;  %v5370_v54 = vld [vmem:[#allocation5 + $0x8] sm:$0xf]  ;;  %2718 = vmatpush.bf16.msra.mxu1 %v5499_v10 }
 0x259   :  { %v7668_v12 = vpack.c.bf16 %v3363_v31, %v3359_v59  ;;  %v5371_v49 = vor.u32 %v6259_v1, %v5370_v54 }
 0x25a   :  { %v2473_v22 = vpop.f32.mrf.mxu2 }
 0x25b   :  { %8837 = vst [vmem:[#allocation24_spill] sm:$0xff] %v7668_v12  ;;  %v2562_v55 = vpop.f32.mrf.mxu3  ;;  %v2474_v13 = vadd.f32 %v2473_v22, %v2385_v60  ;;  %v2297_v28 = vpop.f32.mrf.mxu0  ;;  %2629 = vmatpush.bf16.msra.mxu0 %v5371_v49 }
 0x25c   :  { %v2386_v33 = vpop.f32.mrf.mxu1  ;;  %v2298_v26 = vadd.f32 %v2297_v28, %v7629_v52 }
 0x25d   :  { %v2563_v17 = vadd.f32 %v2562_v55, %v2474_v13 }
 0x25e   :  { %v2387_v30 = vadd.f32 %v2386_v33, %v2298_v26 }
 0x25f   :  { %v3367_v55 = vmax.f32 %v2563_v17, 0.0 }
 0x262   :  { %v2475_v50 = vpop.f32.mrf.mxu2 }
 0x263   :  { %v2564_v59 = vpop.f32.mrf.mxu3  ;;  %v2476_v31 = vadd.f32 %v2475_v50, %v2387_v30  ;;  %v2300_v19 = vpop.f32.mrf.mxu0 }
 0x264   :  { %v2389_v16 = vpop.f32.mrf.mxu1  ;;  %v2301_v60 = vadd.f32 %v2300_v19, %v7629_v52 }
 0x265   :  { %v2565_v24 = vadd.f32 %v2564_v59, %v2476_v31 }
 0x266   :  { %v2390_v22 = vadd.f32 %v2389_v16, %v2301_v60  ;;  %2339 = vmatmul.bf16.gmra.mxu0 %v7481_v34 }
 0x267   :  { %2428 = vmatmul.bf16.gmra.mxu1 %v7483_v46  ;;  %v3371_v1 = vmax.f32 %v2565_v24, 0.0  ;;  %2517 = vmatmul.bf16.gmra.mxu2 %v7486_v14 }
 0x268   :  { %2606 = vmatmul.bf16.gmra.mxu3 %v7488_v8 }
 0x269   :  { %v7676_v54 = vpack.c.bf16 %v3371_v1, %v3367_v55  ;;  %v6349_v55 = vld [vmem:[#allocation5 + $0x2ec] sm:$0xf]  ;;  %v5740_v1 = vld [vmem:[#allocation5 + $0x2f8] sm:$0xf0] }
 0x26a   :  { %v2478_v30 = vpop.f32.mrf.mxu2 }
 0x26b   :  { %8838 = vst [vmem:[#allocation25_spill] sm:$0xff] %v7676_v54  ;;  %v2567_v49 = vpop.f32.mrf.mxu3  ;;  %v2479_v13 = vadd.f32 %v2478_v30, %v2390_v22  ;;  %v2302_v10 = vpop.f32.mrf.mxu0  ;;  %v5743_v30 = vor.u32 %v6349_v55, %v5740_v1  ;;  %v6317_v55 = vld [vmem:[#allocation5 + $0x1ec] sm:$0xf]  ;;  %v5612_v1 = vld [vmem:[#allocation5 + $0x1f8] sm:$0xf0] }
 0x26c   :  { %v2391_v28 = vpop.f32.mrf.mxu1  ;;  %v2303_v33 = vadd.f32 %v2302_v10, %v7629_v52  ;;  %v5615_v12 = vor.u32 %v6317_v55, %v5612_v1 }
 0x26d   :  { %v2568_v26 = vadd.f32 %v2567_v49, %v2479_v13  ;;  %v6381_v49 = vld [vmem:[#allocation5 + $0x3ec] sm:$0xf]  ;;  %v5868_v13 = vld [vmem:[#allocation5 + $0x3f8] sm:$0xf0]  ;;  %3156 = vmatpush.bf16.msrb.mxu2 %v5743_v30 }
 0x26e   :  { %v2392_v32 = vadd.f32 %v2391_v28, %v2303_v33  ;;  %v5871_v10 = vor.u32 %v6381_v49, %v5868_v13  ;;  %3067 = vmatpush.bf16.msrb.mxu1 %v5615_v12 }
 0x26f   :  { %v3375_v24 = vmax.f32 %v2568_v26, 0.0 }
 0x270   :  { %3245 = vmatpush.bf16.msrb.mxu3 %v5871_v10 }
 0x272   :  { %v2480_v37 = vpop.f32.mrf.mxu2 }
 0x273   :  { %v2569_v50 = vpop.f32.mrf.mxu3  ;;  %v2481_v59 = vadd.f32 %v2480_v37, %v2392_v32  ;;  %v2305_v17 = vpop.f32.mrf.mxu0 }
 0x274   :  { %v2394_v31 = vpop.f32.mrf.mxu1  ;;  %v2306_v19 = vadd.f32 %v2305_v17, %v7629_v52 }
 0x275   :  { %v2570_v16 = vadd.f32 %v2569_v50, %v2481_v59 }
 0x276   :  { %v2395_v60 = vadd.f32 %v2394_v31, %v2306_v19  ;;  %2344 = vmatmul.bf16.gmra.mxu0 %v7522_v43  ;;  %v6285_v19 = vld [vmem:[#allocation5 + $0xec] sm:$0xf] }
 0x277   :  { %2433 = vmatmul.bf16.gmra.mxu1 %v7524_v3  ;;  %v3379_v22 = vmax.f32 %v2570_v16, 0.0  ;;  %2522 = vmatmul.bf16.gmra.mxu2 %v7527_v11  ;;  %v5484_v16 = vld [vmem:[#allocation5 + $0xf8] sm:$0xf0] }
 0x278   :  { %2611 = vmatmul.bf16.gmra.mxu3 %v7529_v20  ;;  %v5487_v54 = vor.u32 %v6285_v19, %v5484_v16 }
 0x279   :  { %v7684_v28 = vpack.c.bf16 %v3379_v22, %v3375_v24 }
 0x27a   :  { %v2483_v33 = vpop.f32.mrf.mxu2  ;;  %2978 = vmatpush.bf16.msrb.mxu0 %v5487_v54 }
 0x27b   :  { %8839 = vst [vmem:[#allocation26_spill] sm:$0xff] %v7684_v28  ;;  %v2572_v32 = vpop.f32.mrf.mxu3  ;;  %v2484_v37 = vadd.f32 %v2483_v33, %v2395_v60  ;;  %v2307_v50 = vpop.f32.mrf.mxu0 }
 0x27c   :  { %v2396_v59 = vpop.f32.mrf.mxu1  ;;  %v2308_v26 = vadd.f32 %v2307_v50, %v7629_v52 }
 0x27d   :  { %v2573_v17 = vadd.f32 %v2572_v32, %v2484_v37 }
 0x27e   :  { %v2397_v31 = vadd.f32 %v2396_v59, %v2308_v26 }
 0x27f   :  { %v3383_v32 = vmax.f32 %v2573_v17, 0.0 }
 0x282   :  { %v2485_v49 = vpop.f32.mrf.mxu2 }
 0x283   :  { %v2574_v24 = vpop.f32.mrf.mxu3  ;;  %v2486_v22 = vadd.f32 %v2485_v49, %v2397_v31  ;;  %v2310_v13 = vpop.f32.mrf.mxu0 }
 0x284   :  { %v2399_v30 = vpop.f32.mrf.mxu1  ;;  %v2311_v60 = vadd.f32 %v2310_v13, %v7629_v52 }
 0x285   :  { %v2575_v10 = vadd.f32 %v2574_v24, %v2486_v22 }
 0x286   :  { %v2400_v33 = vadd.f32 %v2399_v30, %v2311_v60  ;;  %2349 = vmatmul.bf16.gmra.mxu0 %v7547_v23 }
 0x287   :  { %2438 = vmatmul.bf16.gmra.mxu1 %v7549_v15  ;;  %v3387_v37 = vmax.f32 %v2575_v10, 0.0  ;;  %2527 = vmatmul.bf16.gmra.mxu2 %v7551_v42 }
 0x288   :  { %2616 = vmatmul.bf16.gmra.mxu3 %v7553_v62 }
 0x289   :  { %v7692_v50 = vpack.c.bf16 %v3387_v37, %v3383_v32  ;;  %v6345_v32 = vld [vmem:[#allocation5 + $0x2cc] sm:$0xf]  ;;  %v5724_v37 = vld [vmem:[#allocation5 + $0x2d8] sm:$0xf0] }
 0x28a   :  { %v2488_v54 = vpop.f32.mrf.mxu2 }
 0x28b   :  { %8840 = vst [vmem:[#allocation27_spill] sm:$0xff] %v7692_v50  ;;  %v2577_v59 = vpop.f32.mrf.mxu3  ;;  %v2489_v26 = vadd.f32 %v2488_v54, %v2400_v33  ;;  %v2312_v12 = vpop.f32.mrf.mxu0  ;;  %v5727_v54 = vor.u32 %v6345_v32, %v5724_v37  ;;  %v6313_v32 = vld [vmem:[#allocation5 + $0x1cc] sm:$0xf]  ;;  %v5596_v37 = vld [vmem:[#allocation5 + $0x1d8] sm:$0xf0] }
 0x28c   :  { %v2401_v31 = vpop.f32.mrf.mxu1  ;;  %v2313_v19 = vadd.f32 %v2312_v12, %v7629_v52  ;;  %v5599_v28 = vor.u32 %v6313_v32, %v5596_v37 }
 0x28d   :  { %v2578_v16 = vadd.f32 %v2577_v59, %v2489_v26  ;;  %v6377_v59 = vld [vmem:[#allocation5 + $0x3cc] sm:$0xf]  ;;  %v5852_v26 = vld [vmem:[#allocation5 + $0x3d8] sm:$0xf0]  ;;  %3157 = vmatpush.bf16.msrb.mxu2 %v5727_v54 }
 0x28e   :  { %v2402_v55 = vadd.f32 %v2401_v31, %v2313_v19  ;;  %v5855_v12 = vor.u32 %v6377_v59, %v5852_v26  ;;  %3068 = vmatpush.bf16.msrb.mxu1 %v5599_v28 }
 0x28f   :  { %v3391_v10 = vmax.f32 %v2578_v16, 0.0 }
 0x290   :  { %3246 = vmatpush.bf16.msrb.mxu3 %v5855_v12 }
 0x292   :  { %v2490_v1 = vpop.f32.mrf.mxu2 }
 0x293   :  { %v2579_v49 = vpop.f32.mrf.mxu3  ;;  %v2491_v24 = vadd.f32 %v2490_v1, %v2402_v55  ;;  %v2315_v17 = vpop.f32.mrf.mxu0 }
 0x294   :  { %v2404_v22 = vpop.f32.mrf.mxu1  ;;  %v2316_v13 = vadd.f32 %v2315_v17, %v7629_v52 }
 0x295   :  { %v2580_v30 = vadd.f32 %v2579_v49, %v2491_v24 }
 0x296   :  { %v2405_v60 = vadd.f32 %v2404_v22, %v2316_v13  ;;  %2630 = vmatmul.bf16.vlgmr.msra.gmra.mxu0 %v6866_v38  ;;  %v6281_v13 = vld [vmem:[#allocation5 + $0xcc] sm:$0xf] }
 0x297   :  { %2719 = vmatmul.bf16.vlgmr.msra.gmra.mxu1 %v6868_v39  ;;  %v3395_v33 = vmax.f32 %v2580_v30, 0.0  ;;  %2808 = vmatmul.bf16.vlgmr.msra.gmra.mxu2 %v6870_v40  ;;  %v5468_v30 = vld [vmem:[#allocation5 + $0xd8] sm:$0xf0] }
 0x298   :  { %2897 = vmatmul.bf16.vlgmr.msra.gmra.mxu3 %v6872_v41  ;;  %v5471_v50 = vor.u32 %v6281_v13, %v5468_v30 }
 0x299   :  { %v7700_v31 = vpack.c.bf16 %v3395_v33, %v3391_v10 }
 0x29a   :  { %v2493_v19 = vpop.f32.mrf.mxu2  ;;  %2979 = vmatpush.bf16.msrb.mxu0 %v5471_v50 }
 0x29b   :  { %8841 = vst [vmem:[#allocation28_spill] sm:$0xff] %v7700_v31  ;;  %v2582_v55 = vpop.f32.mrf.mxu3  ;;  %v2494_v1 = vadd.f32 %v2493_v19, %v2405_v60  ;;  %v2317_v49 = vpop.f32.mrf.mxu0 }
 0x29c   :  { %v2406_v24 = vpop.f32.mrf.mxu1  ;;  %v2318_v16 = vadd.f32 %v2317_v49, %v7629_v52 }
 0x29d   :  { %v2583_v17 = vadd.f32 %v2582_v55, %v2494_v1 }
 0x29e   :  { %v2407_v22 = vadd.f32 %v2406_v24, %v2318_v16 }
 0x29f   :  { %v3399_v55 = vmax.f32 %v2583_v17, 0.0 }
 0x2a2   :  { %v2495_v59 = vpop.f32.mrf.mxu2 }
 0x2a3   :  { %v2584_v10 = vpop.f32.mrf.mxu3  ;;  %v2496_v33 = vadd.f32 %v2495_v59, %v2407_v22  ;;  %v2320_v26 = vpop.f32.mrf.mxu0 }
 0x2a4   :  { %v2409_v54 = vpop.f32.mrf.mxu1  ;;  %v2321_v60 = vadd.f32 %v2320_v26, %v7629_v52 }
 0x2a5   :  { %v2585_v12 = vadd.f32 %v2584_v10, %v2496_v33 }
 0x2a6   :  { %v2410_v19 = vadd.f32 %v2409_v54, %v2321_v60  ;;  %2635 = vmatmul.bf16.gmra.mxu0 %v6922_v56 }
 0x2a7   :  { %2724 = vmatmul.bf16.gmra.mxu1 %v6924_v57  ;;  %v3403_v1 = vmax.f32 %v2585_v12, 0.0  ;;  %2813 = vmatmul.bf16.gmra.mxu2 %v6926_v61 }
 0x2a8   :  { %2902 = vmatmul.bf16.gmra.mxu3 %v8784_v35 }
 0x2a9   :  { %v7708_v49 = vpack.c.bf16 %v3403_v1, %v3399_v55  ;;  %v6341_v55 = vld [vmem:[#allocation5 + $0x2ac] sm:$0xf]  ;;  %v5708_v1 = vld [vmem:[#allocation5 + $0x2b8] sm:$0xf0] }
 0x2aa   :  { %v2498_v50 = vpop.f32.mrf.mxu2 }
 0x2ab   :  { %8842 = vst [vmem:[#allocation29_spill] sm:$0xff] %v7708_v49  ;;  %v2587_v24 = vpop.f32.mrf.mxu3  ;;  %v2499_v16 = vadd.f32 %v2498_v50, %v2410_v19  ;;  %v2322_v28 = vpop.f32.mrf.mxu0  ;;  %v5711_v50 = vor.u32 %v6341_v55, %v5708_v1  ;;  %v6309_v55 = vld [vmem:[#allocation5 + $0x1ac] sm:$0xf]  ;;  %v5580_v1 = vld [vmem:[#allocation5 + $0x1b8] sm:$0xf0] }
 0x2ac   :  { %v2411_v22 = vpop.f32.mrf.mxu1  ;;  %v2323_v13 = vadd.f32 %v2322_v28, %v7629_v52  ;;  %v5583_v31 = vor.u32 %v6309_v55, %v5580_v1 }
 0x2ad   :  { %v2588_v30 = vadd.f32 %v2587_v24, %v2499_v16  ;;  %v6373_v24 = vld [vmem:[#allocation5 + $0x3ac] sm:$0xf]  ;;  %v5836_v16 = vld [vmem:[#allocation5 + $0x3b8] sm:$0xf0]  ;;  %3158 = vmatpush.bf16.msrb.mxu2 %v5711_v50 }
 0x2ae   :  { %v2412_v32 = vadd.f32 %v2411_v22, %v2323_v13  ;;  %v5839_v28 = vor.u32 %v6373_v24, %v5836_v16  ;;  %3069 = vmatpush.bf16.msrb.mxu1 %v5583_v31 }
 0x2af   :  { %v3407_v12 = vmax.f32 %v2588_v30, 0.0 }
 0x2b0   :  { %3247 = vmatpush.bf16.msrb.mxu3 %v5839_v28 }
 0x2b2   :  { %v2500_v37 = vpop.f32.mrf.mxu2 }
 0x2b3   :  { %v2589_v59 = vpop.f32.mrf.mxu3  ;;  %v2501_v10 = vadd.f32 %v2500_v37, %v2412_v32  ;;  %v2325_v17 = vpop.f32.mrf.mxu0 }
 0x2b4   :  { %v2414_v33 = vpop.f32.mrf.mxu1  ;;  %v2326_v26 = vadd.f32 %v2325_v17, %v7629_v52 }
 0x2b5   :  { %v2590_v54 = vadd.f32 %v2589_v59, %v2501_v10 }
 0x2b6   :  { %v2415_v60 = vadd.f32 %v2414_v33, %v2326_v26  ;;  %2640 = vmatmul.bf16.gmra.mxu0 %v8786_v9  ;;  %v6277_v26 = vld [vmem:[#allocation5 + $0xac] sm:$0xf] }
 0x2b7   :  { %2729 = vmatmul.bf16.gmra.mxu1 %v8787_v29  ;;  %v3411_v19 = vmax.f32 %v2590_v54, 0.0  ;;  %2818 = vmatmul.bf16.gmra.mxu2 %v8788_v48  ;;  %v5452_v54 = vld [vmem:[#allocation5 + $0xb8] sm:$0xf0] }
 0x2b8   :  { %2907 = vmatmul.bf16.gmra.mxu3 %v8789_v45  ;;  %v5455_v49 = vor.u32 %v6277_v26, %v5452_v54 }
 0x2b9   :  { %v7716_v22 = vpack.c.bf16 %v3411_v19, %v3407_v12 }
 0x2ba   :  { %v2503_v13 = vpop.f32.mrf.mxu2  ;;  %2980 = vmatpush.bf16.msrb.mxu0 %v5455_v49 }
 0x2bb   :  { %8843 = vst [vmem:[#allocation50_spill] sm:$0xff] %v7716_v22  ;;  %v2592_v32 = vpop.f32.mrf.mxu3  ;;  %v2504_v37 = vadd.f32 %v2503_v13, %v2415_v60  ;;  %v2327_v59 = vpop.f32.mrf.mxu0 }
 0x2bc   :  { %v2416_v10 = vpop.f32.mrf.mxu1  ;;  %v2328_v30 = vadd.f32 %v2327_v59, %v7629_v52 }
 0x2bd   :  { %v2593_v17 = vadd.f32 %v2592_v32, %v2504_v37 }
 0x2be   :  { %v2417_v33 = vadd.f32 %v2416_v10, %v2328_v30 }
 0x2bf   :  { %v3415_v32 = vmax.f32 %v2593_v17, 0.0 }
 0x2c2   :  { %v2505_v24 = vpop.f32.mrf.mxu2 }
 0x2c3   :  { %v2594_v12 = vpop.f32.mrf.mxu3  ;;  %v2506_v19 = vadd.f32 %v2505_v24, %v2417_v33  ;;  %v2330_v16 = vpop.f32.mrf.mxu0 }
 0x2c4   :  { %v2419_v50 = vpop.f32.mrf.mxu1  ;;  %v2331_v60 = vadd.f32 %v2330_v16, %v7629_v52 }
 0x2c5   :  { %v2595_v28 = vadd.f32 %v2594_v12, %v2506_v19 }
 0x2c6   :  { %v2420_v13 = vadd.f32 %v2419_v50, %v2331_v60  ;;  %2645 = vmatmul.bf16.gmra.mxu0 %v8791_v6 }
 0x2c7   :  { %2734 = vmatmul.bf16.gmra.mxu1 %v8792_v18  ;;  %v3419_v37 = vmax.f32 %v2595_v28, 0.0  ;;  %2823 = vmatmul.bf16.gmra.mxu2 %v8793_v36 }
 0x2c8   :  { %2912 = vmatmul.bf16.gmra.mxu3 %v8794_v2 }
 0x2c9   :  { %v7724_v59 = vpack.c.bf16 %v3419_v37, %v3415_v32  ;;  %v6337_v32 = vld [vmem:[#allocation5 + $0x28c] sm:$0xf]  ;;  %v5692_v37 = vld [vmem:[#allocation5 + $0x298] sm:$0xf0] }
 0x2ca   :  { %v2508_v49 = vpop.f32.mrf.mxu2 }
 0x2cb   :  { %8844 = vst [vmem:[#allocation62_spill] sm:$0xff] %v7724_v59  ;;  %v2597_v10 = vpop.f32.mrf.mxu3  ;;  %v2509_v30 = vadd.f32 %v2508_v49, %v2420_v13  ;;  %v2332_v31 = vpop.f32.mrf.mxu0  ;;  %v5695_v49 = vor.u32 %v6337_v32, %v5692_v37  ;;  %v6305_v32 = vld [vmem:[#allocation5 + $0x18c] sm:$0xf]  ;;  %v5564_v37 = vld [vmem:[#allocation5 + $0x198] sm:$0xf0] }
 0x2cc   :  { %v2421_v33 = vpop.f32.mrf.mxu1  ;;  %v2333_v26 = vadd.f32 %v2332_v31, %v7629_v52  ;;  %v5567_v22 = vor.u32 %v6305_v32, %v5564_v37 }
 0x2cd   :  { %v2598_v54 = vadd.f32 %v2597_v10, %v2509_v30  ;;  %v6369_v10 = vld [vmem:[#allocation5 + $0x38c] sm:$0xf]  ;;  %v5820_v30 = vld [vmem:[#allocation5 + $0x398] sm:$0xf0]  ;;  %3159 = vmatpush.bf16.msrb.mxu2 %v5695_v49 }
 0x2ce   :  { %v2422_v55 = vadd.f32 %v2421_v33, %v2333_v26  ;;  %v5823_v31 = vor.u32 %v6369_v10, %v5820_v30  ;;  %3070 = vmatpush.bf16.msrb.mxu1 %v5567_v22 }
 0x2cf   :  { %v3423_v28 = vmax.f32 %v2598_v54, 0.0 }
 0x2d0   :  { %3248 = vmatpush.bf16.msrb.mxu3 %v5823_v31 }
 0x2d2   :  { %v2510_v1 = vpop.f32.mrf.mxu2 }
 0x2d3   :  { %v2599_v24 = vpop.f32.mrf.mxu3  ;;  %v2511_v12 = vadd.f32 %v2510_v1, %v2422_v55  ;;  %v2335_v17 = vpop.f32.mrf.mxu0 }
 0x2d4   :  { %v2424_v19 = vpop.f32.mrf.mxu1  ;;  %v2336_v16 = vadd.f32 %v2335_v17, %v7629_v52 }
 0x2d5   :  { %v2600_v50 = vadd.f32 %v2599_v24, %v2511_v12 }
 0x2d6   :  { %v2425_v60 = vadd.f32 %v2424_v19, %v2336_v16  ;;  %2650 = vmatmul.bf16.gmra.mxu0 %v8796_v58  ;;  %v6273_v16 = vld [vmem:[#allocation5 + $0x8c] sm:$0xf] }
 0x2d7   :  { %2739 = vmatmul.bf16.gmra.mxu1 %v8797_v27  ;;  %v3427_v13 = vmax.f32 %v2600_v50, 0.0  ;;  %2828 = vmatmul.bf16.gmra.mxu2 %v8798_v44  ;;  %v5436_v50 = vld [vmem:[#allocation5 + $0x98] sm:$0xf0] }
 0x2d8   :  { %2917 = vmatmul.bf16.gmra.mxu3 %v8799_v7  ;;  %v5439_v59 = vor.u32 %v6273_v16, %v5436_v50 }
 0x2d9   :  { %v7732_v33 = vpack.c.bf16 %v3427_v13, %v3423_v28 }
 0x2da   :  { %v2513_v26 = vpop.f32.mrf.mxu2  ;;  %2981 = vmatpush.bf16.msrb.mxu0 %v5439_v59 }
 0x2db   :  { %8845 = vst [vmem:[#allocation63_spill] sm:$0xff] %v7732_v33  ;;  %v2602_v55 = vpop.f32.mrf.mxu3  ;;  %v2514_v1 = vadd.f32 %v2513_v26, %v2425_v60  ;;  %v2337_v24 = vpop.f32.mrf.mxu0  ;;  %v6269_v33 = vld [vmem:[#allocation5 + $0x6c] sm:$0xf] }
 0x2dc   :  { %v2426_v12 = vpop.f32.mrf.mxu1  ;;  %v2338_v54 = vadd.f32 %v2337_v24, %v7629_v52 }
 0x2dd   :  { %v2603_v17 = vadd.f32 %v2602_v55, %v2514_v1 }
 0x2de   :  { %v2427_v19 = vadd.f32 %v2426_v12, %v2338_v54 }
 0x2df   :  { %v3431_v55 = vmax.f32 %v2603_v17, 0.0 }
 0x2e2   :  { %v2515_v10 = vpop.f32.mrf.mxu2 }
 0x2e3   :  { %v2604_v28 = vpop.f32.mrf.mxu3  ;;  %v2516_v13 = vadd.f32 %v2515_v10, %v2427_v19  ;;  %v2340_v30 = vpop.f32.mrf.mxu0 }
 0x2e4   :  { %v2429_v49 = vpop.f32.mrf.mxu1  ;;  %v2341_v60 = vadd.f32 %v2340_v30, %v7629_v52 }
 0x2e5   :  { %v2605_v31 = vadd.f32 %v2604_v28, %v2516_v13 }
 0x2e6   :  { %v2430_v26 = vadd.f32 %v2429_v49, %v2341_v60  ;;  %2655 = vmatmul.bf16.gmra.mxu0 %v8801_v63 }
 0x2e7   :  { %2744 = vmatmul.bf16.gmra.mxu1 %v8802_v53  ;;  %v3435_v1 = vmax.f32 %v2605_v31, 0.0  ;;  %2833 = vmatmul.bf16.gmra.mxu2 %v8803_v0  ;;  %v8847_v31 = vld [vmem:[#allocation30_spill] sm:$0xff] }
 0x2e8   :  { %2922 = vmatmul.bf16.gmra.mxu3 %v8804_v51 }
 0x2e9   :  { %v7740_v24 = vpack.c.bf16 %v3435_v1, %v3431_v55  ;;  %v8848_v1 = vld [vmem:[#allocation31_spill] sm:$0xff] }
 0x2ea   :  { %v2518_v59 = vpop.f32.mrf.mxu2 }
 0x2eb   :  { %8846 = vst [vmem:[#allocation64_spill] sm:$0xff] %v7740_v24  ;;  %v2607_v12 = vpop.f32.mrf.mxu3  ;;  %v2519_v54 = vadd.f32 %v2518_v59, %v2430_v26  ;;  %v2342_v22 = vpop.f32.mrf.mxu0  ;;  %v8849_v59 = vld [vmem:[#allocation32_spill] sm:$0xff] }
 0x2ec   :  { %v2431_v19 = vpop.f32.mrf.mxu1  ;;  %v2343_v16 = vadd.f32 %v2342_v22, %v7629_v52 }
 0x2ed   :  { %v2608_v50 = vadd.f32 %v2607_v12, %v2519_v54  ;;  %v6333_v12 = vld [vmem:[#allocation5 + $0x26c] sm:$0xf]  ;;  %v5676_v54 = vld [vmem:[#allocation5 + $0x278] sm:$0xf0] }
 0x2ee   :  { %v2432_v32 = vadd.f32 %v2431_v19, %v2343_v16  ;;  %v5679_v22 = vor.u32 %v6333_v12, %v5676_v54  ;;  %v6365_v19 = vld [vmem:[#allocation5 + $0x36c] sm:$0xf]  ;;  %v5804_v16 = vld [vmem:[#allocation5 + $0x378] sm:$0xf0] }
 0x2ef   :  { %v3439_v26 = vmax.f32 %v2608_v50, 0.0  ;;  %v6301_v12 = vld [vmem:[#allocation5 + $0x16c] sm:$0xf]  ;;  %v5548_v54 = vld [vmem:[#allocation5 + $0x178] sm:$0xf0] }
 0x2f0   :  { %3160 = vmatpush.bf16.msrb.mxu2 %v5679_v22 }
 0x2f2   :  { %v2520_v37 = vpop.f32.mrf.mxu2 }
 0x2f3   :  { %v2609_v10 = vpop.f32.mrf.mxu3  ;;  %v2521_v28 = vadd.f32 %v2520_v37, %v2432_v32  ;;  %v2345_v17 = vpop.f32.mrf.mxu0  ;;  %v5807_v32 = vor.u32 %v6365_v19, %v5804_v16 }
 0x2f4   :  { %v2434_v13 = vpop.f32.mrf.mxu1  ;;  %v2346_v30 = vadd.f32 %v2345_v17, %v7629_v52 }
 0x2f5   :  { %v2610_v49 = vadd.f32 %v2609_v10, %v2521_v28  ;;  %3249 = vmatpush.bf16.msrb.mxu3 %v5807_v32 }
 0x2f6   :  { %v2435_v60 = vadd.f32 %v2434_v13, %v2346_v30  ;;  %2660 = vmatmul.bf16.gmra.mxu0 %v8806_v21 }
 0x2f7   :  { %2749 = vmatmul.bf16.gmra.mxu1 %v8847_v31  ;;  %v3443_v55 = vmax.f32 %v2610_v49, 0.0  ;;  %2838 = vmatmul.bf16.gmra.mxu2 %v8848_v1  ;;  %v5551_v31 = vor.u32 %v6301_v12, %v5548_v54 }
 0x2f8   :  { %2927 = vmatmul.bf16.gmra.mxu3 %v8849_v59  ;;  %v5420_v59 = vld [vmem:[#allocation5 + $0x78] sm:$0xf0] }
 0x2f9   :  { %v7748_v37 = vpack.c.bf16 %v3443_v55, %v3439_v26  ;;  %v5423_v1 = vor.u32 %v6269_v33, %v5420_v59  ;;  %3071 = vmatpush.bf16.msrb.mxu1 %v5551_v31  ;;  %v8853_v59 = vld [vmem:[#allocation35_spill] sm:$0xff] }
 0x2fa   :  { %v2523_v10 = vpop.f32.mrf.mxu2 }
 0x2fb   :  { %8850 = vst [vmem:[#allocation65_spill] sm:$0xff] %v7748_v37  ;;  %v2612_v28 = vpop.f32.mrf.mxu3  ;;  %v2524_v17 = vadd.f32 %v2523_v10, %v2435_v60  ;;  %v2347_v13 = vpop.f32.mrf.mxu0  ;;  %2982 = vmatpush.bf16.msrb.mxu0 %v5423_v1 }
 0x2fc   :  { %v2436_v30 = vpop.f32.mrf.mxu1  ;;  %v2348_v50 = vadd.f32 %v2347_v13, %v7629_v52  ;;  %v8851_v13 = vld [vmem:[#allocation33_spill] sm:$0xff] }
 0x2fd   :  { %v2613_v49 = vadd.f32 %v2612_v28, %v2524_v17  ;;  %v8852_v28 = vld [vmem:[#allocation34_spill] sm:$0xff] }
 0x2fe   :  { %v2437_v24 = vadd.f32 %v2436_v30, %v2348_v50  ;;  %v8854_v30 = vld [vmem:[#allocation36_spill] sm:$0xff] }
 0x2ff   :  { %v3447_v17 = vmax.f32 %v2613_v49, 0.0 }
 0x302   :  { %v2525_v19 = vpop.f32.mrf.mxu2 }
 0x303   :  { %v2614_v26 = vpop.f32.mrf.mxu3  ;;  %v2526_v55 = vadd.f32 %v2525_v19, %v2437_v24  ;;  %v2350_v16 = vpop.f32.mrf.mxu0 }
 0x304   :  { %v2439_v22 = vpop.f32.mrf.mxu1  ;;  %v2351_v60 = vadd.f32 %v2350_v16, %v7629_v52  ;;  %v8856_v16 = vld [vmem:[#allocation19_spill] sm:$0xff] }
 0x305   :  { %v2615_v32 = vadd.f32 %v2614_v26, %v2526_v55 }
 0x306   :  { %v2440_v10 = vadd.f32 %v2439_v22, %v2351_v60  ;;  %2665 = vmatmul.bf16.gmra.mxu0 %v8851_v13  ;;  %v7760_v22 = vperm.slane %v8856_v16, 2  ;;  %v5788_v16 = vld [vmem:[#allocation5 + $0x358] sm:$0xf0] }
 0x307   :  { %2754 = vmatmul.bf16.gmra.mxu1 %v8852_v28  ;;  %v3451_v33 = vmax.f32 %v2615_v32, 0.0  ;;  %2843 = vmatmul.bf16.gmra.mxu2 %v8853_v59 }
 0x308   :  { %2932 = vmatmul.bf16.gmra.mxu3 %v8854_v30  ;;  %v8857_v30 = vld [vmem:[#allocation37_spill] sm:$0xff] }
 0x309   :  { %v7756_v50 = vpack.c.bf16 %v3451_v33, %v3447_v17 }
 0x30a   :  { %v2528_v24 = vpop.f32.mrf.mxu2 }
 0x30b   :  { %8855 = vst [vmem:[#allocation66_spill] sm:$0xff] %v7756_v50  ;;  %v2617_v1 = vpop.f32.mrf.mxu3  ;;  %v2529_v12 = vadd.f32 %v2528_v24, %v2440_v10  ;;  %v2352_v31 = vpop.f32.mrf.mxu0  ;;  %v8858_v10 = vld [vmem:[#allocation38_spill] sm:$0xff] }
 0x30c   :  { %v2441_v54 = vpop.f32.mrf.mxu1  ;;  %v2353_v19 = vadd.f32 %v2352_v31, %v7629_v52  ;;  %v6329_v31 = vld [vmem:[#allocation5 + $0x24c] sm:$0xf] }
 0x30d   :  { %v2618_v26 = vadd.f32 %v2617_v1, %v2529_v12  ;;  %v8859_v1 = vld [vmem:[#allocation39_spill] sm:$0xff]  ;;  %v8860_v12 = vld [vmem:[#allocation40_spill] sm:$0xff] }
 0x30e   :  { %v2442_v55 = vadd.f32 %v2441_v54, %v2353_v19  ;;  %v5660_v54 = vld [vmem:[#allocation5 + $0x258] sm:$0xf0] }
 0x30f   :  { %v3455_v24 = vmax.f32 %v2618_v26, 0.0  ;;  %v5663_v19 = vor.u32 %v6329_v31, %v5660_v54  ;;  %v6297_v31 = vld [vmem:[#allocation5 + $0x14c] sm:$0xf]  ;;  %v5532_v54 = vld [vmem:[#allocation5 + $0x158] sm:$0xf0] }
 0x310   :  { %v5535_v13 = vor.u32 %v6297_v31, %v5532_v54 }
 0x311   :  { %3161 = vmatpush.bf16.msrb.mxu2 %v5663_v19 }
 0x312   :  { %v2530_v49 = vpop.f32.mrf.mxu2  ;;  %3072 = vmatpush.bf16.msrb.mxu1 %v5535_v13 }
 0x313   :  { %v2619_v60 = vpop.f32.mrf.mxu3  ;;  %v2531_v32 = vadd.f32 %v2530_v49, %v2442_v55  ;;  %v2631_v37 = vpop.f32.mrf.mxu0  ;;  %v6361_v55 = vld [vmem:[#allocation5 + $0x34c] sm:$0xf] }
 0x314   :  { %v2720_v59 = vpop.f32.mrf.mxu1  ;;  %v2632_v17 = vadd.f32 %v2631_v37, %v7760_v22  ;;  %v5791_v49 = vor.u32 %v6361_v55, %v5788_v16 }
 0x315   :  { %v2620_v33 = vadd.f32 %v2619_v60, %v2531_v32 }
 0x316   :  { %v2721_v50 = vadd.f32 %v2720_v59, %v2632_v17  ;;  %2670 = vmatmul.bf16.gmra.mxu0 %v8857_v30  ;;  %3250 = vmatpush.bf16.msrb.mxu3 %v5791_v49 }
 0x317   :  { %2759 = vmatmul.bf16.gmra.mxu1 %v8858_v10  ;;  %v3459_v52 = vmax.f32 %v2620_v33, 0.0  ;;  %2848 = vmatmul.bf16.gmra.mxu2 %v8859_v1  ;;  %v5404_v10 = vld [vmem:[#allocation5 + $0x58] sm:$0xf0] }
 0x318   :  { %2937 = vmatmul.bf16.gmra.mxu3 %v8860_v12  ;;  %v6265_v12 = vld [vmem:[#allocation5 + $0x4c] sm:$0xf] }
 0x319   :  { %v7767_v28 = vpack.c.bf16 %v3459_v52, %v3455_v24  ;;  %v5407_v30 = vor.u32 %v6265_v12, %v5404_v10  ;;  %v8864_v12 = vld [vmem:[#allocation43_spill] sm:$0xff] }
 0x31a   :  { %v2809_v37 = vpop.f32.mrf.mxu2 }
 0x31b   :  { %8861 = vst [vmem:[#allocation19_spill] sm:$0xff] %v7767_v28  ;;  %v2898_v59 = vpop.f32.mrf.mxu3  ;;  %v2810_v60 = vadd.f32 %v2809_v37, %v2721_v50  ;;  %v2633_v32 = vpop.f32.mrf.mxu0  ;;  %2983 = vmatpush.bf16.msrb.mxu0 %v5407_v30 }
 0x31c   :  { %v2722_v17 = vpop.f32.mrf.mxu1  ;;  %v2634_v26 = vadd.f32 %v2633_v32, %v7760_v22  ;;  %v8862_v32 = vld [vmem:[#allocation41_spill] sm:$0xff] }
 0x31d   :  { %v2899_v33 = vadd.f32 %v2898_v59, %v2810_v60  ;;  %v8863_v59 = vld [vmem:[#allocation42_spill] sm:$0xff] }
 0x31e   :  { %v2723_v1 = vadd.f32 %v2722_v17, %v2634_v26  ;;  %v8865_v17 = vld [vmem:[#allocation44_spill] sm:$0xff] }
 0x31f   :  { %v3336_v60 = vmax.f32 %v2899_v33, 0.0 }
 0x322   :  { %v2811_v55 = vpop.f32.mrf.mxu2 }
 0x323   :  { %v2900_v24 = vpop.f32.mrf.mxu3  ;;  %v2812_v52 = vadd.f32 %v2811_v55, %v2723_v1  ;;  %v2636_v16 = vpop.f32.mrf.mxu0 }
 0x324   :  { %v2725_v19 = vpop.f32.mrf.mxu1  ;;  %v2637_v50 = vadd.f32 %v2636_v16, %v7760_v22 }
 0x325   :  { %v2901_v49 = vadd.f32 %v2900_v24, %v2812_v52 }
 0x326   :  { %v2726_v37 = vadd.f32 %v2725_v19, %v2637_v50  ;;  %2675 = vmatmul.bf16.gmra.mxu0 %v8862_v32 }
 0x327   :  { %2764 = vmatmul.bf16.gmra.mxu1 %v8863_v59  ;;  %v3340_v10 = vmax.f32 %v2901_v49, 0.0  ;;  %2853 = vmatmul.bf16.gmra.mxu2 %v8864_v12 }
 0x328   :  { %2942 = vmatmul.bf16.gmra.mxu3 %v8865_v17 }
 0x329   :  { %v7775_v26 = vpack.c.bf16 %v3340_v10, %v3336_v60  ;;  %v8867_v60 = vld [vmem:[#allocation46_spill] sm:$0xff]  ;;  %v8868_v10 = vld [vmem:[#allocation47_spill] sm:$0xff] }
 0x32a   :  { %v2814_v30 = vpop.f32.mrf.mxu2 }
 0x32b   :  { %8866 = vst [vmem:[#allocation67_spill] sm:$0xff] %v7775_v26  ;;  %v2903_v1 = vpop.f32.mrf.mxu3  ;;  %v2815_v31 = vadd.f32 %v2814_v30, %v2726_v37  ;;  %v2638_v13 = vpop.f32.mrf.mxu0  ;;  %v8869_v26 = vld [vmem:[#allocation48_spill] sm:$0xff] }
 0x32c   :  { %v2727_v54 = vpop.f32.mrf.mxu1  ;;  %v2639_v55 = vadd.f32 %v2638_v13, %v7760_v22  ;;  %v8870_v13 = vld [vmem:[#allocation49_spill] sm:$0xff] }
 0x32d   :  { %v2904_v24 = vadd.f32 %v2903_v1, %v2815_v31  ;;  %v6325_v1 = vld [vmem:[#allocation5 + $0x22c] sm:$0xf]  ;;  %v5644_v31 = vld [vmem:[#allocation5 + $0x238] sm:$0xf0] }
 0x32e   :  { %v2728_v52 = vadd.f32 %v2727_v54, %v2639_v55  ;;  %v5647_v54 = vor.u32 %v6325_v1, %v5644_v31  ;;  %v6357_v55 = vld [vmem:[#allocation5 + $0x32c] sm:$0xf]  ;;  %v5516_v31 = vld [vmem:[#allocation5 + $0x138] sm:$0xf0] }
 0x32f   :  { %v3344_v37 = vmax.f32 %v2904_v24, 0.0  ;;  %v6293_v1 = vld [vmem:[#allocation5 + $0x12c] sm:$0xf] }
 0x330   :  { %3162 = vmatpush.bf16.msrb.mxu2 %v5647_v54  ;;  %v5519_v32 = vor.u32 %v6293_v1, %v5516_v31 }
 0x332   :  { %v2816_v16 = vpop.f32.mrf.mxu2  ;;  %3073 = vmatpush.bf16.msrb.mxu1 %v5519_v32 }
 0x333   :  { %v2905_v19 = vpop.f32.mrf.mxu3  ;;  %v2817_v50 = vadd.f32 %v2816_v16, %v2728_v52  ;;  %v2641_v33 = vpop.f32.mrf.mxu0  ;;  %v5772_v52 = vld [vmem:[#allocation5 + $0x338] sm:$0xf0] }
 0x334   :  { %v2730_v49 = vpop.f32.mrf.mxu1  ;;  %v2642_v28 = vadd.f32 %v2641_v33, %v7760_v22  ;;  %v5775_v16 = vor.u32 %v6357_v55, %v5772_v52 }
 0x335   :  { %v2906_v12 = vadd.f32 %v2905_v19, %v2817_v50 }
 0x336   :  { %v2731_v17 = vadd.f32 %v2730_v49, %v2642_v28  ;;  %2680 = vmatmul.bf16.gmra.mxu0 %v8867_v60  ;;  %3251 = vmatpush.bf16.msrb.mxu3 %v5775_v16 }
 0x337   :  { %2769 = vmatmul.bf16.gmra.mxu1 %v8868_v10  ;;  %v3348_v30 = vmax.f32 %v2906_v12, 0.0  ;;  %2858 = vmatmul.bf16.gmra.mxu2 %v8869_v26  ;;  %v5388_v10 = vld [vmem:[#allocation5 + $0x38] sm:$0xf0] }
 0x338   :  { %2947 = vmatmul.bf16.gmra.mxu3 %v8870_v13  ;;  %v6261_v13 = vld [vmem:[#allocation5 + $0x2c] sm:$0xf] }
 0x339   :  { %v7783_v59 = vpack.c.bf16 %v3348_v30, %v3344_v37  ;;  %v5391_v60 = vor.u32 %v6261_v13, %v5388_v10 }
 0x33a   :  { %v2819_v19 = vpop.f32.mrf.mxu2 }
 0x33b   :  { %8871 = vst [vmem:[#allocation68_spill] sm:$0xff] %v7783_v59  ;;  %v2908_v28 = vpop.f32.mrf.mxu3  ;;  %v2820_v50 = vadd.f32 %v2819_v19, %v2731_v17  ;;  %v2643_v33 = vpop.f32.mrf.mxu0  ;;  %2984 = vmatpush.bf16.msrb.mxu0 %v5391_v60 }
 0x33c   :  { %v2732_v49 = vpop.f32.mrf.mxu1  ;;  %v2644_v12 = vadd.f32 %v2643_v33, %v7760_v22 }
 0x33d   :  { %v2909_v24 = vadd.f32 %v2908_v28, %v2820_v50 }
 0x33e   :  { %v2733_v26 = vadd.f32 %v2732_v49, %v2644_v12 }
 0x33f   :  { %v3352_v28 = vmax.f32 %v2909_v24, 0.0 }
 0x342   :  { %v2821_v55 = vpop.f32.mrf.mxu2 }
 0x343   :  { %v2910_v37 = vpop.f32.mrf.mxu3  ;;  %v2822_v30 = vadd.f32 %v2821_v55, %v2733_v26  ;;  %v2646_v52 = vpop.f32.mrf.mxu0 }
 0x344   :  { %v2735_v54 = vpop.f32.mrf.mxu1  ;;  %v2647_v17 = vadd.f32 %v2646_v52, %v7760_v22 }
 0x345   :  { %v2911_v16 = vadd.f32 %v2910_v37, %v2822_v30 }
 0x346   :  { %v2736_v19 = vadd.f32 %v2735_v54, %v2647_v17  ;;  %2685 = vmatmul.bf16.gmra.mxu0 %v7382_v47 }
 0x347   :  { %2774 = vmatmul.bf16.gmra.mxu1 %v7388_v4  ;;  %v3356_v10 = vmax.f32 %v2911_v16, 0.0  ;;  %2863 = vmatmul.bf16.gmra.mxu2 %v7390_v5  ;;  %v8873_v16 = vld [vmem:[#allocation51_spill] sm:$0xff] }
 0x348   :  { %2952 = vmatmul.bf16.gmra.mxu3 %v8832_v25 }
 0x349   :  { %v7791_v13 = vpack.c.bf16 %v3356_v10, %v3352_v28  ;;  %v8874_v28 = vld [vmem:[#allocation52_spill] sm:$0xff] }
 0x34a   :  { %v2824_v26 = vpop.f32.mrf.mxu2 }
 0x34b   :  { %8872 = vst [vmem:[#allocation69_spill] sm:$0xff] %v7791_v13  ;;  %v2913_v60 = vpop.f32.mrf.mxu3  ;;  %v2825_v50 = vadd.f32 %v2824_v26, %v2736_v19  ;;  %v2648_v32 = vpop.f32.mrf.mxu0  ;;  %v8875_v26 = vld [vmem:[#allocation53_spill] sm:$0xff] }
 0x34c   :  { %v2737_v33 = vpop.f32.mrf.mxu1  ;;  %v2649_v49 = vadd.f32 %v2648_v32, %v7760_v22  ;;  %v8876_v32 = vld [vmem:[#allocation56_spill] sm:$0xff] }
 0x34d   :  { %v2914_v12 = vadd.f32 %v2913_v60, %v2825_v50  ;;  %v6321_v60 = vld [vmem:[#allocation5 + $0x20c] sm:$0xf]  ;;  %v5628_v50 = vld [vmem:[#allocation5 + $0x218] sm:$0xf0] }
 0x34e   :  { %v2738_v1 = vadd.f32 %v2737_v33, %v2649_v49  ;;  %v5631_v33 = vor.u32 %v6321_v60, %v5628_v50  ;;  %v6353_v49 = vld [vmem:[#allocation5 + $0x30c] sm:$0xf]  ;;  %v5500_v50 = vld [vmem:[#allocation5 + $0x118] sm:$0xf0] }
 0x34f   :  { %v3360_v19 = vmax.f32 %v2914_v12, 0.0  ;;  %v6289_v60 = vld [vmem:[#allocation5 + $0x10c] sm:$0xf] }
 0x350   :  { %3163 = vmatpush.bf16.msrb.mxu2 %v5631_v33 }
 0x352   :  { %v2826_v31 = vpop.f32.mrf.mxu2 }
 0x353   :  { %v2915_v55 = vpop.f32.mrf.mxu3  ;;  %v2827_v37 = vadd.f32 %v2826_v31, %v2738_v1  ;;  %v2651_v24 = vpop.f32.mrf.mxu0  ;;  %v5756_v1 = vld [vmem:[#allocation5 + $0x318] sm:$0xf0] }
 0x354   :  { %v2740_v30 = vpop.f32.mrf.mxu1  ;;  %v2652_v52 = vadd.f32 %v2651_v24, %v7760_v22  ;;  %v5759_v31 = vor.u32 %v6353_v49, %v5756_v1 }
 0x355   :  { %v2916_v54 = vadd.f32 %v2915_v55, %v2827_v37 }
 0x356   :  { %v2741_v17 = vadd.f32 %v2740_v30, %v2652_v52  ;;  %2690 = vmatmul.bf16.gmra.mxu0 %v8873_v16  ;;  %3252 = vmatpush.bf16.msrb.mxu3 %v5759_v31  ;;  %v5503_v16 = vor.u32 %v6289_v60, %v5500_v50 }
 0x357   :  { %2779 = vmatmul.bf16.gmra.mxu1 %v8874_v28  ;;  %v3364_v10 = vmax.f32 %v2916_v54, 0.0  ;;  %2868 = vmatmul.bf16.gmra.mxu2 %v8875_v26  ;;  %v5372_v26 = vld [vmem:[#allocation5 + $0x18] sm:$0xf0] }
 0x358   :  { %2957 = vmatmul.bf16.gmra.mxu3 %v8876_v32  ;;  %v6257_v32 = vld [vmem:[#allocation5 + $0xc] sm:$0xf]  ;;  %3074 = vmatpush.bf16.msrb.mxu1 %v5503_v16 }
 0x359   :  { %v7799_v13 = vpack.c.bf16 %v3364_v10, %v3360_v19  ;;  %v5375_v28 = vor.u32 %v6257_v32, %v5372_v26 }
 0x35a   :  { %v2829_v55 = vpop.f32.mrf.mxu2 }
 0x35b   :  { %8877 = vst [vmem:[#allocation70_spill] sm:$0xff] %v7799_v13  ;;  %v2918_v37 = vpop.f32.mrf.mxu3  ;;  %v2830_v24 = vadd.f32 %v2829_v55, %v2741_v17  ;;  %v2653_v30 = vpop.f32.mrf.mxu0  ;;  %2985 = vmatpush.bf16.msrb.mxu0 %v5375_v28 }
 0x35c   :  { %v2742_v52 = vpop.f32.mrf.mxu1  ;;  %v2654_v12 = vadd.f32 %v2653_v30, %v7760_v22 }
 0x35d   :  { %v2919_v54 = vadd.f32 %v2918_v37, %v2830_v24 }
 0x35e   :  { %v2743_v59 = vadd.f32 %v2742_v52, %v2654_v12 }
 0x35f   :  { %v3368_v37 = vmax.f32 %v2919_v54, 0.0 }
 0x362   :  { %v2831_v49 = vpop.f32.mrf.mxu2 }
 0x363   :  { %v2920_v19 = vpop.f32.mrf.mxu3  ;;  %v2832_v10 = vadd.f32 %v2831_v49, %v2743_v59  ;;  %v2656_v1 = vpop.f32.mrf.mxu0 }
 0x364   :  { %v2745_v33 = vpop.f32.mrf.mxu1  ;;  %v2657_v17 = vadd.f32 %v2656_v1, %v7760_v22 }
 0x365   :  { %v2921_v31 = vadd.f32 %v2920_v19, %v2832_v10 }
 0x366   :  { %v2746_v55 = vadd.f32 %v2745_v33, %v2657_v17  ;;  %2695 = vmatmul.bf16.gmra.mxu0 %v7481_v34 }
 0x367   :  { %2784 = vmatmul.bf16.gmra.mxu1 %v7483_v46  ;;  %v3372_v26 = vmax.f32 %v2921_v31, 0.0  ;;  %2873 = vmatmul.bf16.gmra.mxu2 %v7486_v14 }
 0x368   :  { %2962 = vmatmul.bf16.gmra.mxu3 %v7488_v8 }
 0x369   :  { %v7807_v32 = vpack.c.bf16 %v3372_v26, %v3368_v37  ;;  %v6058_v37 = vld [vmem:[#allocation7 + $0x170] sm:$0xf]  ;;  %v6431_v26 = vld [vmem:[#allocation7 + $0x174] sm:$0xf0] }
 0x36a   :  { %v2834_v59 = vpop.f32.mrf.mxu2 }
 0x36b   :  { %8878 = vst [vmem:[#allocation71_spill] sm:$0xff] %v7807_v32  ;;  %v2923_v28 = vpop.f32.mrf.mxu3  ;;  %v2835_v24 = vadd.f32 %v2834_v59, %v2746_v55  ;;  %v2658_v16 = vpop.f32.mrf.mxu0  ;;  %v6059_v59 = vor.u32 %v6431_v26, %v6058_v37  ;;  %v5994_v37 = vld [vmem:[#allocation7 + $0xf0] sm:$0xf]  ;;  %v6415_v26 = vld [vmem:[#allocation7 + $0xf4] sm:$0xf0] }
 0x36c   :  { %v2747_v30 = vpop.f32.mrf.mxu1  ;;  %v2659_v52 = vadd.f32 %v2658_v16, %v7760_v22  ;;  %v5995_v13 = vor.u32 %v6415_v26, %v5994_v37 }
 0x36d   :  { %v2924_v12 = vadd.f32 %v2923_v28, %v2835_v24  ;;  %v6122_v28 = vld [vmem:[#allocation7 + $0x1f0] sm:$0xf]  ;;  %v6447_v24 = vld [vmem:[#allocation7 + $0x1f4] sm:$0xf0]  ;;  %4093 = vmatpush.bf16.msra.mxu2 %v6059_v59 }
 0x36e   :  { %v2748_v60 = vadd.f32 %v2747_v30, %v2659_v52  ;;  %v6123_v16 = vor.u32 %v6447_v24, %v6122_v28  ;;  %4004 = vmatpush.bf16.msra.mxu1 %v5995_v13 }
 0x36f   :  { %v3376_v31 = vmax.f32 %v2924_v12, 0.0 }
 0x370   :  { %4182 = vmatpush.bf16.msra.mxu3 %v6123_v16 }
 0x372   :  { %v2836_v50 = vpop.f32.mrf.mxu2 }
 0x373   :  { %v2925_v49 = vpop.f32.mrf.mxu3  ;;  %v2837_v19 = vadd.f32 %v2836_v50, %v2748_v60  ;;  %v2661_v54 = vpop.f32.mrf.mxu0 }
 0x374   :  { %v2750_v10 = vpop.f32.mrf.mxu1  ;;  %v2662_v1 = vadd.f32 %v2661_v54, %v7760_v22 }
 0x375   :  { %v2926_v33 = vadd.f32 %v2925_v49, %v2837_v19 }
 0x376   :  { %v2751_v17 = vadd.f32 %v2750_v10, %v2662_v1  ;;  %2700 = vmatmul.bf16.gmra.mxu0 %v7522_v43  ;;  %v5930_v1 = vld [vmem:[#allocation7 + $0x70] sm:$0xf] }
 0x377   :  { %2789 = vmatmul.bf16.gmra.mxu1 %v7524_v3  ;;  %v3380_v55 = vmax.f32 %v2926_v33, 0.0  ;;  %2878 = vmatmul.bf16.gmra.mxu2 %v7527_v11  ;;  %v6399_v33 = vld [vmem:[#allocation7 + $0x74] sm:$0xf0] }
 0x378   :  { %2967 = vmatmul.bf16.gmra.mxu3 %v7529_v20  ;;  %v5931_v32 = vor.u32 %v6399_v33, %v5930_v1 }
 0x379   :  { %v7815_v30 = vpack.c.bf16 %v3380_v55, %v3376_v31 }
 0x37a   :  { %v2839_v52 = vpop.f32.mrf.mxu2  ;;  %3915 = vmatpush.bf16.msra.mxu0 %v5931_v32 }
 0x37b   :  { %v2928_v60 = vpop.f32.mrf.mxu3  ;;  %v2840_v50 = vadd.f32 %v2839_v52, %v2751_v17  ;;  %v2663_v49 = vpop.f32.mrf.mxu0 }
 0x37c   :  { %v2752_v19 = vpop.f32.mrf.mxu1  ;;  %v2664_v12 = vadd.f32 %v2663_v49, %v7760_v22 }
 0x37d   :  { %v2929_v54 = vadd.f32 %v2928_v60, %v2840_v50 }
 0x37e   :  { %v2753_v10 = vadd.f32 %v2752_v19, %v2664_v12 }
 0x37f   :  { %v3384_v60 = vmax.f32 %v2929_v54, 0.0 }
 0x382   :  { %v2841_v28 = vpop.f32.mrf.mxu2 }
 0x383   :  { %v2930_v31 = vpop.f32.mrf.mxu3  ;;  %v2842_v55 = vadd.f32 %v2841_v28, %v2753_v10  ;;  %v2666_v24 = vpop.f32.mrf.mxu0 }
 0x384   :  { %v2755_v59 = vpop.f32.mrf.mxu1  ;;  %v2667_v17 = vadd.f32 %v2666_v24, %v7760_v22 }
 0x385   :  { %v2931_v16 = vadd.f32 %v2930_v31, %v2842_v55 }
 0x386   :  { %v2756_v52 = vadd.f32 %v2755_v59, %v2667_v17  ;;  %2705 = vmatmul.bf16.gmra.mxu0 %v7547_v23 }
 0x387   :  { %2794 = vmatmul.bf16.gmra.mxu1 %v7549_v15  ;;  %v3388_v50 = vmax.f32 %v2931_v16, 0.0  ;;  %2883 = vmatmul.bf16.gmra.mxu2 %v7551_v42 }
 0x388   :  { %2972 = vmatmul.bf16.gmra.mxu3 %v7553_v62 }
 0x389   :  { %v7823_v49 = vpack.c.bf16 %v3388_v50, %v3384_v60  ;;  %v6050_v60 = vld [vmem:[#allocation7 + $0x160] sm:$0xf]  ;;  %v6429_v50 = vld [vmem:[#allocation7 + $0x164] sm:$0xf0] }
 0x38a   :  { %v2844_v32 = vpop.f32.mrf.mxu2 }
 0x38b   :  { %8879 = vst [vmem:[#allocation72_spill] sm:$0xff] %v7823_v49  ;;  %v2933_v19 = vpop.f32.mrf.mxu3  ;;  %v2845_v12 = vadd.f32 %v2844_v32, %v2756_v52  ;;  %v2668_v13 = vpop.f32.mrf.mxu0  ;;  %v6051_v32 = vor.u32 %v6429_v50, %v6050_v60 }
 0x38c   :  { %v2757_v10 = vpop.f32.mrf.mxu1  ;;  %v2669_v1 = vadd.f32 %v2668_v13, %v7760_v22 }
 0x38d   :  { %v2934_v33 = vadd.f32 %v2933_v19, %v2845_v12  ;;  %v6114_v19 = vld [vmem:[#allocation7 + $0x1e0] sm:$0xf]  ;;  %v6445_v12 = vld [vmem:[#allocation7 + $0x1e4] sm:$0xf0]  ;;  %4094 = vmatpush.bf16.msra.mxu2 %v6051_v32 }
 0x38e   :  { %v2758_v37 = vadd.f32 %v2757_v10, %v2669_v1  ;;  %v6115_v13 = vor.u32 %v6445_v12, %v6114_v19 }
 0x38f   :  { %v3392_v16 = vmax.f32 %v2934_v33, 0.0 }
 0x390   :  { %4183 = vmatpush.bf16.msra.mxu3 %v6115_v13 }
 0x392   :  { %v2846_v26 = vpop.f32.mrf.mxu2 }
 0x393   :  { %v2935_v28 = vpop.f32.mrf.mxu3  ;;  %v2847_v31 = vadd.f32 %v2846_v26, %v2758_v37  ;;  %v2671_v54 = vpop.f32.mrf.mxu0 }
 0x394   :  { %v2760_v55 = vpop.f32.mrf.mxu1  ;;  %v2672_v24 = vadd.f32 %v2671_v54, %v7760_v22 }
 0x395   :  { %v2936_v59 = vadd.f32 %v2935_v28, %v2847_v31  ;;  %v6397_v31 = vld [vmem:[#allocation7 + $0x64] sm:$0xf0] }
 0x396   :  { %v2761_v17 = vadd.f32 %v2760_v55, %v2672_v24  ;;  %2986 = vmatmul.bf16.vlgmr.msrb.gmra.mxu0 %v6866_v38  ;;  %v5986_v55 = vld [vmem:[#allocation7 + $0xe0] sm:$0xf]  ;;  %v6413_v24 = vld [vmem:[#allocation7 + $0xe4] sm:$0xf0] }
 0x397   :  { %3075 = vmatmul.bf16.vlgmr.msrb.gmra.mxu1 %v6868_v39  ;;  %v3396_v52 = vmax.f32 %v2936_v59, 0.0  ;;  %3164 = vmatmul.bf16.vlgmr.msrb.gmra.mxu2 %v6870_v40  ;;  %v5987_v59 = vor.u32 %v6413_v24, %v5986_v55 }
 0x398   :  { %3253 = vmatmul.bf16.vlgmr.msrb.gmra.mxu3 %v6872_v41  ;;  %v5922_v41 = vld [vmem:[#allocation7 + $0x60] sm:$0xf] }
 0x399   :  { %v7831_v10 = vpack.c.bf16 %v3396_v52, %v3392_v16  ;;  %v5923_v54 = vor.u32 %v6397_v31, %v5922_v41  ;;  %4005 = vmatpush.bf16.msra.mxu1 %v5987_v59 }
 0x39a   :  { %v2849_v1 = vpop.f32.mrf.mxu2 }
 0x39b   :  { %v2938_v37 = vpop.f32.mrf.mxu3  ;;  %v2850_v38 = vadd.f32 %v2849_v1, %v2761_v17  ;;  %v2673_v26 = vpop.f32.mrf.mxu0  ;;  %3916 = vmatpush.bf16.msra.mxu0 %v5923_v54 }
 0x39c   :  { %v2762_v39 = vpop.f32.mrf.mxu1  ;;  %v2674_v33 = vadd.f32 %v2673_v26, %v7760_v22 }
 0x39d   :  { %v2939_v40 = vadd.f32 %v2938_v37, %v2850_v38 }
 0x39e   :  { %v2763_v28 = vadd.f32 %v2762_v39, %v2674_v33 }
 0x39f   :  { %v3400_v13 = vmax.f32 %v2939_v40, 0.0 }
 0x3a2   :  { %v2851_v60 = vpop.f32.mrf.mxu2 }
 0x3a3   :  { %v2940_v16 = vpop.f32.mrf.mxu3  ;;  %v2852_v52 = vadd.f32 %v2851_v60, %v2763_v28  ;;  %v2676_v50 = vpop.f32.mrf.mxu0 }
 0x3a4   :  { %v2765_v32 = vpop.f32.mrf.mxu1  ;;  %v2677_v17 = vadd.f32 %v2676_v50, %v7760_v22  ;;  %v6427_v50 = vld [vmem:[#allocation7 + $0x154] sm:$0xf0] }
 0x3a5   :  { %v2941_v19 = vadd.f32 %v2940_v16, %v2852_v52  ;;  %v6042_v52 = vld [vmem:[#allocation7 + $0x150] sm:$0xf] }
 0x3a6   :  { %v2766_v12 = vadd.f32 %v2765_v32, %v2677_v17  ;;  %2991 = vmatmul.bf16.gmra.mxu0 %v6922_v56  ;;  %v6043_v32 = vor.u32 %v6427_v50, %v6042_v52  ;;  %v6106_v17 = vld [vmem:[#allocation7 + $0x1d0] sm:$0xf] }
 0x3a7   :  { %3080 = vmatmul.bf16.gmra.mxu1 %v6924_v57  ;;  %v3404_v1 = vmax.f32 %v2941_v19, 0.0  ;;  %3169 = vmatmul.bf16.gmra.mxu2 %v6926_v61  ;;  %v6443_v19 = vld [vmem:[#allocation7 + $0x1d4] sm:$0xf0] }
 0x3a8   :  { %3258 = vmatmul.bf16.gmra.mxu3 %v8784_v35  ;;  %4095 = vmatpush.bf16.msra.mxu2 %v6043_v32 }
 0x3a9   :  { %v7839_v37 = vpack.c.bf16 %v3404_v1, %v3400_v13 }
 0x3aa   :  { %v2854_v38 = vpop.f32.mrf.mxu2 }
 0x3ab   :  { %8880 = vst [vmem:[#allocation73_spill] sm:$0xff] %v7839_v37  ;;  %v2943_v26 = vpop.f32.mrf.mxu3  ;;  %v2855_v39 = vadd.f32 %v2854_v38, %v2766_v12  ;;  %v2678_v33 = vpop.f32.mrf.mxu0  ;;  %v6107_v12 = vor.u32 %v6443_v19, %v6106_v17 }
 0x3ac   :  { %v2767_v28 = vpop.f32.mrf.mxu1  ;;  %v2679_v41 = vadd.f32 %v2678_v33, %v7760_v22 }
 0x3ad   :  { %v2944_v31 = vadd.f32 %v2943_v26, %v2855_v39  ;;  %4184 = vmatpush.bf16.msra.mxu3 %v6107_v12 }
 0x3ae   :  { %v2768_v54 = vadd.f32 %v2767_v28, %v2679_v41  ;;  %v6395_v28 = vld [vmem:[#allocation7 + $0x54] sm:$0xf0] }
 0x3af   :  { %v3408_v60 = vmax.f32 %v2944_v31, 0.0  ;;  %v5978_v31 = vld [vmem:[#allocation7 + $0xd0] sm:$0xf] }
 0x3b2   :  { %v2856_v56 = vpop.f32.mrf.mxu2 }
 0x3b3   :  { %v2945_v55 = vpop.f32.mrf.mxu3  ;;  %v2857_v57 = vadd.f32 %v2856_v56, %v2768_v54  ;;  %v2681_v40 = vpop.f32.mrf.mxu0  ;;  %v6411_v54 = vld [vmem:[#allocation7 + $0xd4] sm:$0xf0] }
 0x3b4   :  { %v2770_v24 = vpop.f32.mrf.mxu1  ;;  %v2682_v61 = vadd.f32 %v2681_v40, %v7760_v22  ;;  %v5979_v56 = vor.u32 %v6411_v54, %v5978_v31  ;;  %v6425_v31 = vld [vmem:[#allocation7 + $0x144] sm:$0xf0] }
 0x3b5   :  { %v2946_v59 = vadd.f32 %v2945_v55, %v2857_v57 }
 0x3b6   :  { %v2771_v35 = vadd.f32 %v2770_v24, %v2682_v61  ;;  %2996 = vmatmul.bf16.gmra.mxu0 %v8786_v9  ;;  %4006 = vmatpush.bf16.msra.mxu1 %v5979_v56  ;;  %v6098_v56 = vld [vmem:[#allocation7 + $0x1c0] sm:$0xf] }
 0x3b7   :  { %3085 = vmatmul.bf16.gmra.mxu1 %v8787_v29  ;;  %v3412_v16 = vmax.f32 %v2946_v59, 0.0  ;;  %3174 = vmatmul.bf16.gmra.mxu2 %v8788_v48 }
 0x3b8   :  { %3263 = vmatmul.bf16.gmra.mxu3 %v8789_v45  ;;  %v5914_v45 = vld [vmem:[#allocation7 + $0x50] sm:$0xf] }
 0x3b9   :  { %v7847_v13 = vpack.c.bf16 %v3412_v16, %v3408_v60  ;;  %v5915_v41 = vor.u32 %v6395_v28, %v5914_v45 }
 0x3ba   :  { %v2859_v1 = vpop.f32.mrf.mxu2 }
 0x3bb   :  { %v2948_v38 = vpop.f32.mrf.mxu3  ;;  %v2860_v9 = vadd.f32 %v2859_v1, %v2771_v35  ;;  %v2683_v26 = vpop.f32.mrf.mxu0  ;;  %3917 = vmatpush.bf16.msra.mxu0 %v5915_v41  ;;  %v6034_v41 = vld [vmem:[#allocation7 + $0x140] sm:$0xf] }
 0x3bc   :  { %v2772_v29 = vpop.f32.mrf.mxu1  ;;  %v2684_v39 = vadd.f32 %v2683_v26, %v7760_v22  ;;  %v6035_v54 = vor.u32 %v6425_v31, %v6034_v41 }
 0x3bd   :  { %v2949_v48 = vadd.f32 %v2948_v38, %v2860_v9 }
 0x3be   :  { %v2773_v33 = vadd.f32 %v2772_v29, %v2684_v39  ;;  %4096 = vmatpush.bf16.msra.mxu2 %v6035_v54 }
 0x3bf   :  { %v3416_v16 = vmax.f32 %v2949_v48, 0.0 }
 0x3c2   :  { %v2861_v55 = vpop.f32.mrf.mxu2 }
 0x3c3   :  { %v2950_v57 = vpop.f32.mrf.mxu3  ;;  %v2862_v40 = vadd.f32 %v2861_v55, %v2773_v33  ;;  %v2686_v24 = vpop.f32.mrf.mxu0  ;;  %v6441_v55 = vld [vmem:[#allocation7 + $0x1c4] sm:$0xf0] }
 0x3c4   :  { %v2775_v61 = vpop.f32.mrf.mxu1  ;;  %v2687_v59 = vadd.f32 %v2686_v24, %v7760_v22 }
 0x3c5   :  { %v2951_v35 = vadd.f32 %v2950_v57, %v2862_v40  ;;  %v6099_v57 = vor.u32 %v6441_v55, %v6098_v56 }
 0x3c6   :  { %v2776_v60 = vadd.f32 %v2775_v61, %v2687_v59  ;;  %3001 = vmatmul.bf16.gmra.mxu0 %v8791_v6 }
 0x3c7   :  { %3090 = vmatmul.bf16.gmra.mxu1 %v8792_v18  ;;  %v3420_v52 = vmax.f32 %v2951_v35, 0.0  ;;  %3179 = vmatmul.bf16.gmra.mxu2 %v8793_v36 }
 0x3c8   :  { %3268 = vmatmul.bf16.gmra.mxu3 %v8794_v2 }
 0x3c9   :  { %v7855_v50 = vpack.c.bf16 %v3420_v52, %v3416_v16  ;;  %4185 = vmatpush.bf16.msra.mxu3 %v6099_v57  ;;  %v6393_v16 = vld [vmem:[#allocation7 + $0x44] sm:$0xf0] }
 0x3ca   :  { %v2864_v32 = vpop.f32.mrf.mxu2 }
 0x3cb   :  { %8881 = vst [vmem:[#allocation74_spill] sm:$0xff] %v7855_v50  ;;  %v2953_v17 = vpop.f32.mrf.mxu3  ;;  %v2865_v19 = vadd.f32 %v2864_v32, %v2776_v60  ;;  %v2688_v12 = vpop.f32.mrf.mxu0  ;;  %v5970_v32 = vld [vmem:[#allocation7 + $0xc0] sm:$0xf] }
 0x3cc   :  { %v2777_v1 = vpop.f32.mrf.mxu1  ;;  %v2689_v38 = vadd.f32 %v2688_v12, %v7760_v22 }
 0x3cd   :  { %v2954_v9 = vadd.f32 %v2953_v17, %v2865_v19  ;;  %v6409_v17 = vld [vmem:[#allocation7 + $0xc4] sm:$0xf0] }
 0x3ce   :  { %v2778_v26 = vadd.f32 %v2777_v1, %v2689_v38  ;;  %v5971_v19 = vor.u32 %v6409_v17, %v5970_v32  ;;  %v6439_v32 = vld [vmem:[#allocation7 + $0x1b4] sm:$0xf0] }
 0x3cf   :  { %v3424_v45 = vmax.f32 %v2954_v9, 0.0 }
 0x3d0   :  { %4007 = vmatpush.bf16.msra.mxu1 %v5971_v19 }
 0x3d2   :  { %v2866_v6 = vpop.f32.mrf.mxu2 }
 0x3d3   :  { %v2955_v29 = vpop.f32.mrf.mxu3  ;;  %v2867_v18 = vadd.f32 %v2866_v6, %v2778_v26  ;;  %v2691_v39 = vpop.f32.mrf.mxu0 }
 0x3d4   :  { %v2780_v48 = vpop.f32.mrf.mxu1  ;;  %v2692_v36 = vadd.f32 %v2691_v39, %v7760_v22 }
 0x3d5   :  { %v2956_v33 = vadd.f32 %v2955_v29, %v2867_v18 }
 0x3d6   :  { %v2781_v2 = vadd.f32 %v2780_v48, %v2692_v36  ;;  %3006 = vmatmul.bf16.gmra.mxu0 %v8796_v58 }
 0x3d7   :  { %3095 = vmatmul.bf16.gmra.mxu1 %v8797_v27  ;;  %v3428_v28 = vmax.f32 %v2956_v33, 0.0  ;;  %3184 = vmatmul.bf16.gmra.mxu2 %v8798_v44 }
 0x3d8   :  { %3273 = vmatmul.bf16.gmra.mxu3 %v8799_v7  ;;  %v5906_v7 = vld [vmem:[#allocation7 + $0x40] sm:$0xf] }
 0x3d9   :  { %v7863_v40 = vpack.c.bf16 %v3428_v28, %v3424_v45  ;;  %v5907_v52 = vor.u32 %v6393_v16, %v5906_v7  ;;  %v6423_v7 = vld [vmem:[#allocation7 + $0x134] sm:$0xf0] }
 0x3da   :  { %v2869_v24 = vpop.f32.mrf.mxu2 }
 0x3db   :  { %v2958_v61 = vpop.f32.mrf.mxu3  ;;  %v2870_v58 = vadd.f32 %v2869_v24, %v2781_v2  ;;  %v2693_v59 = vpop.f32.mrf.mxu0  ;;  %3918 = vmatpush.bf16.msra.mxu0 %v5907_v52  ;;  %v6090_v52 = vld [vmem:[#allocation7 + $0x1b0] sm:$0xf] }
 0x3dc   :  { %v2782_v27 = vpop.f32.mrf.mxu1  ;;  %v2694_v35 = vadd.f32 %v2693_v59, %v7760_v22  ;;  %v6091_v17 = vor.u32 %v6439_v32, %v6090_v52 }
 0x3dd   :  { %v2959_v44 = vadd.f32 %v2958_v61, %v2870_v58  ;;  %v8883_v58 = vld [vmem:[#allocation30_spill] sm:$0xff] }
 0x3de   :  { %v2783_v60 = vadd.f32 %v2782_v27, %v2694_v35  ;;  %v8884_v35 = vld [vmem:[#allocation31_spill] sm:$0xff]  ;;  %4186 = vmatpush.bf16.msra.mxu3 %v6091_v17 }
 0x3df   :  { %v3432_v39 = vmax.f32 %v2959_v44, 0.0  ;;  %v8885_v44 = vld [vmem:[#allocation32_spill] sm:$0xff]  ;;  %v6529_v17 = vld [vmem:[#allocation2 + $0x4] sm:$0xf] }
 0x3e2   :  { %v2871_v12 = vpop.f32.mrf.mxu2 }
 0x3e3   :  { %v2960_v1 = vpop.f32.mrf.mxu3  ;;  %v2872_v38 = vadd.f32 %v2871_v12, %v2783_v60  ;;  %v2696_v9 = vpop.f32.mrf.mxu0  ;;  %v6026_v60 = vld [vmem:[#allocation7 + $0x130] sm:$0xf] }
 0x3e4   :  { %v2785_v26 = vpop.f32.mrf.mxu1  ;;  %v2697_v6 = vadd.f32 %v2696_v9, %v7760_v22  ;;  %v6027_v16 = vor.u32 %v6423_v7, %v6026_v60 }
 0x3e5   :  { %v2961_v29 = vadd.f32 %v2960_v1, %v2872_v38 }
 0x3e6   :  { %v2786_v18 = vadd.f32 %v2785_v26, %v2697_v6  ;;  %3011 = vmatmul.bf16.gmra.mxu0 %v8801_v63  ;;  %4097 = vmatpush.bf16.msra.mxu2 %v6027_v16 }
 0x3e7   :  { %3100 = vmatmul.bf16.gmra.mxu1 %v8802_v53  ;;  %v3436_v48 = vmax.f32 %v2961_v29, 0.0  ;;  %3189 = vmatmul.bf16.gmra.mxu2 %v8803_v0 }
 0x3e8   :  { %3278 = vmatmul.bf16.gmra.mxu3 %v8804_v51 }
 0x3e9   :  { %v7871_v36 = vpack.c.bf16 %v3436_v48, %v3432_v39  ;;  %v6391_v39 = vld [vmem:[#allocation7 + $0x34] sm:$0xf0] }
 0x3ea   :  { %v2874_v33 = vpop.f32.mrf.mxu2 }
 0x3eb   :  { %8882 = vst [vmem:[#allocation75_spill] sm:$0xff] %v7871_v36  ;;  %v2963_v2 = vpop.f32.mrf.mxu3  ;;  %v2875_v45 = vadd.f32 %v2874_v33, %v2786_v18  ;;  %v2698_v28 = vpop.f32.mrf.mxu0  ;;  %v5898_v18 = vld [vmem:[#allocation7 + $0x30] sm:$0xf] }
 0x3ec   :  { %v2787_v41 = vpop.f32.mrf.mxu1  ;;  %v2699_v31 = vadd.f32 %v2698_v28, %v7760_v22  ;;  %v5899_v48 = vor.u32 %v6391_v39, %v5898_v18  ;;  %v5962_v33 = vld [vmem:[#allocation7 + $0xb0] sm:$0xf]  ;;  %v8890_v39 = vld [vmem:[#allocation37_spill] sm:$0xff] }
 0x3ed   :  { %v2964_v54 = vadd.f32 %v2963_v2, %v2875_v45  ;;  %v6407_v2 = vld [vmem:[#allocation7 + $0xb4] sm:$0xf0] }
 0x3ee   :  { %v2788_v56 = vadd.f32 %v2787_v41, %v2699_v31  ;;  %v5963_v45 = vor.u32 %v6407_v2, %v5962_v33  ;;  %3919 = vmatpush.bf16.msra.mxu0 %v5899_v48  ;;  %v8891_v48 = vld [vmem:[#allocation38_spill] sm:$0xff]  ;;  %v8892_v2 = vld [vmem:[#allocation39_spill] sm:$0xff] }
 0x3ef   :  { %v3440_v59 = vmax.f32 %v2964_v54, 0.0 }
 0x3f0   :  { %4008 = vmatpush.bf16.msra.mxu1 %v5963_v45  ;;  %v8893_v45 = vld [vmem:[#allocation40_spill] sm:$0xff] }
 0x3f2   :  { %v2876_v63 = vpop.f32.mrf.mxu2 }
 0x3f3   :  { %v2965_v55 = vpop.f32.mrf.mxu3  ;;  %v2877_v53 = vadd.f32 %v2876_v63, %v2788_v56  ;;  %v2701_v57 = vpop.f32.mrf.mxu0 }
 0x3f4   :  { %v2790_v24 = vpop.f32.mrf.mxu1  ;;  %v2702_v0 = vadd.f32 %v2701_v57, %v7760_v22  ;;  %v8886_v57 = vld [vmem:[#allocation33_spill] sm:$0xff] }
 0x3f5   :  { %v2966_v61 = vadd.f32 %v2965_v55, %v2877_v53 }
 0x3f6   :  { %v2791_v51 = vadd.f32 %v2790_v24, %v2702_v0  ;;  %3016 = vmatmul.bf16.gmra.mxu0 %v8806_v21  ;;  %v8887_v24 = vld [vmem:[#allocation34_spill] sm:$0xff] }
 0x3f7   :  { %3105 = vmatmul.bf16.gmra.mxu1 %v8883_v58  ;;  %v3444_v27 = vmax.f32 %v2966_v61, 0.0  ;;  %3194 = vmatmul.bf16.gmra.mxu2 %v8884_v35  ;;  %v8889_v58 = vld [vmem:[#allocation36_spill] sm:$0xff] }
 0x3f8   :  { %3283 = vmatmul.bf16.gmra.mxu3 %v8885_v44 }
 0x3f9   :  { %v7879_v19 = vpack.c.bf16 %v3444_v27, %v3440_v59 }
 0x3fa   :  { %v2879_v12 = vpop.f32.mrf.mxu2 }
 0x3fb   :  { %v2968_v1 = vpop.f32.mrf.mxu3  ;;  %v2880_v21 = vadd.f32 %v2879_v12, %v2791_v51  ;;  %v2703_v38 = vpop.f32.mrf.mxu0  ;;  %v8888_v51 = vld [vmem:[#allocation35_spill] sm:$0xff]  ;;  %v7890_v12 = vperm.slane %v6529_v17, 3 }
 0x3fc   :  { %v2792_v9 = vpop.f32.mrf.mxu1  ;;  %v2704_v26 = vadd.f32 %v2703_v38, %v7760_v22 }
 0x3fd   :  { %v2969_v6 = vadd.f32 %v2968_v1, %v2880_v21 }
 0x3fe   :  { %v2793_v29 = vadd.f32 %v2792_v9, %v2704_v26 }
 0x3ff   :  { %v3448_v0 = vmax.f32 %v2969_v6, 0.0 }
 0x402   :  { %v2881_v28 = vpop.f32.mrf.mxu2 }
 0x403   :  { %v2970_v41 = vpop.f32.mrf.mxu3  ;;  %v2882_v31 = vadd.f32 %v2881_v28, %v2793_v29  ;;  %v2706_v54 = vpop.f32.mrf.mxu0  ;;  %v6018_v28 = vld [vmem:[#allocation7 + $0x120] sm:$0xf] }
 0x404   :  { %v2795_v56 = vpop.f32.mrf.mxu1  ;;  %v2707_v63 = vadd.f32 %v2706_v54, %v7760_v22  ;;  %v6082_v54 = vld [vmem:[#allocation7 + $0x1a0] sm:$0xf] }
 0x405   :  { %v2971_v55 = vadd.f32 %v2970_v41, %v2882_v31  ;;  %v6421_v41 = vld [vmem:[#allocation7 + $0x124] sm:$0xf0] }
 0x406   :  { %v2796_v53 = vadd.f32 %v2795_v56, %v2707_v63  ;;  %3021 = vmatmul.bf16.gmra.mxu0 %v8886_v57  ;;  %v6019_v31 = vor.u32 %v6421_v41, %v6018_v28  ;;  %v6437_v56 = vld [vmem:[#allocation7 + $0x1a4] sm:$0xf0] }
 0x407   :  { %3110 = vmatmul.bf16.gmra.mxu1 %v8887_v24  ;;  %v3452_v61 = vmax.f32 %v2971_v55, 0.0  ;;  %3199 = vmatmul.bf16.gmra.mxu2 %v8888_v51  ;;  %v6083_v63 = vor.u32 %v6437_v56, %v6082_v54 }
 0x408   :  { %3288 = vmatmul.bf16.gmra.mxu3 %v8889_v58  ;;  %4098 = vmatpush.bf16.msra.mxu2 %v6019_v31 }
 0x409   :  { %v7887_v59 = vpack.c.bf16 %v3452_v61, %v3448_v0  ;;  %4187 = vmatpush.bf16.msra.mxu3 %v6083_v63 }
 0x40a   :  { %v2884_v27 = vpop.f32.mrf.mxu2 }
 0x40b   :  { %v2973_v35 = vpop.f32.mrf.mxu3  ;;  %v2885_v44 = vadd.f32 %v2884_v27, %v2796_v53  ;;  %v2708_v60 = vpop.f32.mrf.mxu0 }
 0x40c   :  { %v2797_v7 = vpop.f32.mrf.mxu1  ;;  %v2709_v16 = vadd.f32 %v2708_v60, %v7760_v22 }
 0x40d   :  { %v2974_v52 = vadd.f32 %v2973_v35, %v2885_v44  ;;  %v5890_v35 = vld [vmem:[#allocation7 + $0x20] sm:$0xf]  ;;  %v6389_v44 = vld [vmem:[#allocation7 + $0x24] sm:$0xf0] }
 0x40e   :  { %v2798_v32 = vadd.f32 %v2797_v7, %v2709_v16  ;;  %v5891_v60 = vor.u32 %v6389_v44, %v5890_v35  ;;  %v5954_v7 = vld [vmem:[#allocation7 + $0xa0] sm:$0xf]  ;;  %v6405_v16 = vld [vmem:[#allocation7 + $0xa4] sm:$0xf0]  ;;  %v8899_v44 = vld [vmem:[#allocation46_spill] sm:$0xff] }
 0x40f   :  { %v3456_v33 = vmax.f32 %v2974_v52, 0.0  ;;  %v5955_v52 = vor.u32 %v6405_v16, %v5954_v7 }
 0x410   :  { %3920 = vmatpush.bf16.msra.mxu0 %v5891_v60  ;;  %v8900_v60 = vld [vmem:[#allocation47_spill] sm:$0xff] }
 0x411   :  { %4009 = vmatpush.bf16.msra.mxu1 %v5955_v52  ;;  %v8901_v52 = vld [vmem:[#allocation48_spill] sm:$0xff] }
 0x412   :  { %v2886_v1 = vpop.f32.mrf.mxu2 }
 0x413   :  { %v2975_v21 = vpop.f32.mrf.mxu3  ;;  %v2887_v38 = vadd.f32 %v2886_v1, %v2798_v32  ;;  %v2987_v9 = vpop.f32.mrf.mxu0 }
 0x414   :  { %v3076_v26 = vpop.f32.mrf.mxu1  ;;  %v2988_v6 = vadd.f32 %v2987_v9, %v7890_v12 }
 0x415   :  { %v2976_v29 = vadd.f32 %v2975_v21, %v2887_v38 }
 0x416   :  { %v3077_v18 = vadd.f32 %v3076_v26, %v2988_v6  ;;  %3026 = vmatmul.bf16.gmra.mxu0 %v8890_v39 }
 0x417   :  { %3115 = vmatmul.bf16.gmra.mxu1 %v8891_v48  ;;  %v3460_v22 = vmax.f32 %v2976_v29, 0.0  ;;  %3204 = vmatmul.bf16.gmra.mxu2 %v8892_v2  ;;  %v8895_v29 = vld [vmem:[#allocation41_spill] sm:$0xff] }
 0x418   :  { %3293 = vmatmul.bf16.gmra.mxu3 %v8893_v45 }
 0x419   :  { %v7897_v55 = vpack.c.bf16 %v3460_v22, %v3456_v33  ;;  %v8897_v33 = vld [vmem:[#allocation43_spill] sm:$0xff]  ;;  %v8898_v22 = vld [vmem:[#allocation44_spill] sm:$0xff] }
 0x41a   :  { %v3165_v53 = vpop.f32.mrf.mxu2 }
 0x41b   :  { %8894 = vst [vmem:[#allocation30_spill] sm:$0xff] %v7897_v55  ;;  %v3254_v57 = vpop.f32.mrf.mxu3  ;;  %v3166_v24 = vadd.f32 %v3165_v53, %v3077_v18  ;;  %v2989_v0 = vpop.f32.mrf.mxu0  ;;  %v8896_v18 = vld [vmem:[#allocation42_spill] sm:$0xff] }
 0x41c   :  { %v3078_v61 = vpop.f32.mrf.mxu1  ;;  %v2990_v51 = vadd.f32 %v2989_v0, %v7890_v12 }
 0x41d   :  { %v3255_v58 = vadd.f32 %v3254_v57, %v3166_v24 }
 0x41e   :  { %v3079_v27 = vadd.f32 %v3078_v61, %v2990_v51 }
 0x41f   :  { %v3337_v39 = vmax.f32 %v3255_v58, 0.0 }
 0x422   :  { %v3167_v32 = vpop.f32.mrf.mxu2 }
 0x423   :  { %v3256_v17 = vpop.f32.mrf.mxu3  ;;  %v3168_v1 = vadd.f32 %v3167_v32, %v3079_v27  ;;  %v2992_v21 = vpop.f32.mrf.mxu0  ;;  %v8902_v32 = vld [vmem:[#allocation49_spill] sm:$0xff] }
 0x424   :  { %v3081_v38 = vpop.f32.mrf.mxu1  ;;  %v2993_v9 = vadd.f32 %v2992_v21, %v7890_v12 }
 0x425   :  { %v3257_v26 = vadd.f32 %v3256_v17, %v3168_v1  ;;  %v6010_v17 = vld [vmem:[#allocation7 + $0x110] sm:$0xf]  ;;  %v6419_v1 = vld [vmem:[#allocation7 + $0x114] sm:$0xf0] }
 0x426   :  { %v3082_v6 = vadd.f32 %v3081_v38, %v2993_v9  ;;  %3031 = vmatmul.bf16.gmra.mxu0 %v8895_v29  ;;  %v6011_v21 = vor.u32 %v6419_v1, %v6010_v17  ;;  %v6074_v38 = vld [vmem:[#allocation7 + $0x190] sm:$0xf]  ;;  %v6435_v9 = vld [vmem:[#allocation7 + $0x194] sm:$0xf0] }
 0x427   :  { %3120 = vmatmul.bf16.gmra.mxu1 %v8896_v18  ;;  %v3341_v48 = vmax.f32 %v3257_v26, 0.0  ;;  %3209 = vmatmul.bf16.gmra.mxu2 %v8897_v33  ;;  %v6075_v26 = vor.u32 %v6435_v9, %v6074_v38 }
 0x428   :  { %3298 = vmatmul.bf16.gmra.mxu3 %v8898_v22  ;;  %4099 = vmatpush.bf16.msra.mxu2 %v6011_v21 }
 0x429   :  { %v7905_v2 = vpack.c.bf16 %v3341_v48, %v3337_v39  ;;  %4188 = vmatpush.bf16.msra.mxu3 %v6075_v26 }
 0x42a   :  { %v3170_v45 = vpop.f32.mrf.mxu2 }
 0x42b   :  { %v3259_v28 = vpop.f32.mrf.mxu3  ;;  %v3171_v41 = vadd.f32 %v3170_v45, %v3082_v6  ;;  %v2994_v31 = vpop.f32.mrf.mxu0 }
 0x42c   :  { %v3083_v54 = vpop.f32.mrf.mxu1  ;;  %v2995_v56 = vadd.f32 %v2994_v31, %v7890_v12  ;;  %v6387_v31 = vld [vmem:[#allocation7 + $0x14] sm:$0xf0] }
 0x42d   :  { %v3260_v63 = vadd.f32 %v3259_v28, %v3171_v41  ;;  %v5882_v41 = vld [vmem:[#allocation7 + $0x10] sm:$0xf] }
 0x42e   :  { %v3084_v53 = vadd.f32 %v3083_v54, %v2995_v56  ;;  %v5883_v54 = vor.u32 %v6387_v31, %v5882_v41  ;;  %v5946_v56 = vld [vmem:[#allocation7 + $0x90] sm:$0xf]  ;;  %v8906_v41 = vld [vmem:[#allocation56_spill] sm:$0xff] }
 0x42f   :  { %v3345_v7 = vmax.f32 %v3260_v63, 0.0  ;;  %v6403_v63 = vld [vmem:[#allocation7 + $0x94] sm:$0xf0]  ;;  %v6002_v31 = vld [vmem:[#allocation7 + $0x100] sm:$0xf] }
 0x430   :  { %3921 = vmatpush.bf16.msra.mxu0 %v5883_v54  ;;  %v6417_v54 = vld [vmem:[#allocation7 + $0x104] sm:$0xf0] }
 0x432   :  { %v3172_v57 = vpop.f32.mrf.mxu2 }
 0x433   :  { %v3261_v24 = vpop.f32.mrf.mxu3  ;;  %v3173_v0 = vadd.f32 %v3172_v57, %v3084_v53  ;;  %v2997_v61 = vpop.f32.mrf.mxu0  ;;  %v5947_v53 = vor.u32 %v6403_v63, %v5946_v56  ;;  %v6003_v56 = vor.u32 %v6417_v54, %v6002_v31  ;;  %v6066_v63 = vld [vmem:[#allocation7 + $0x180] sm:$0xf] }
 0x434   :  { %v3086_v51 = vpop.f32.mrf.mxu1  ;;  %v2998_v58 = vadd.f32 %v2997_v61, %v7890_v12 }
 0x435   :  { %v3262_v27 = vadd.f32 %v3261_v24, %v3173_v0  ;;  %4010 = vmatpush.bf16.msra.mxu1 %v5947_v53  ;;  %v6433_v53 = vld [vmem:[#allocation7 + $0x184] sm:$0xf0]  ;;  %4100 = vmatpush.bf16.msra.mxu2 %v6003_v56 }
 0x436   :  { %v3087_v35 = vadd.f32 %v3086_v51, %v2998_v58  ;;  %3036 = vmatmul.bf16.gmra.mxu0 %v8899_v44 }
 0x437   :  { %3125 = vmatmul.bf16.gmra.mxu1 %v8900_v60  ;;  %v3349_v16 = vmax.f32 %v3262_v27, 0.0  ;;  %3214 = vmatmul.bf16.gmra.mxu2 %v8901_v52 }
 0x438   :  { %3303 = vmatmul.bf16.gmra.mxu3 %v8902_v32 }
 0x439   :  { %v7913_v6 = vpack.c.bf16 %v3349_v16, %v3345_v7 }
 0x43a   :  { %v3175_v29 = vpop.f32.mrf.mxu2 }
 0x43b   :  { %v3264_v18 = vpop.f32.mrf.mxu3  ;;  %v3176_v39 = vadd.f32 %v3175_v29, %v3087_v35  ;;  %v2999_v48 = vpop.f32.mrf.mxu0 }
 0x43c   :  { %v3088_v33 = vpop.f32.mrf.mxu1  ;;  %v3000_v22 = vadd.f32 %v2999_v48, %v7890_v12  ;;  %v8903_v48 = vld [vmem:[#allocation51_spill] sm:$0xff] }
 0x43d   :  { %v3265_v45 = vadd.f32 %v3264_v18, %v3176_v39 }
 0x43e   :  { %v3089_v28 = vadd.f32 %v3088_v33, %v3000_v22  ;;  %v8904_v33 = vld [vmem:[#allocation52_spill] sm:$0xff] }
 0x43f   :  { %v3353_v44 = vmax.f32 %v3265_v45, 0.0 }
 0x442   :  { %v3177_v57 = vpop.f32.mrf.mxu2 }
 0x443   :  { %v3266_v24 = vpop.f32.mrf.mxu3  ;;  %v3178_v0 = vadd.f32 %v3177_v57, %v3089_v28  ;;  %v3002_v61 = vpop.f32.mrf.mxu0  ;;  %v8905_v28 = vld [vmem:[#allocation53_spill] sm:$0xff]  ;;  %v6067_v57 = vor.u32 %v6433_v53, %v6066_v63 }
 0x444   :  { %v3091_v51 = vpop.f32.mrf.mxu1  ;;  %v3003_v58 = vadd.f32 %v3002_v61, %v7890_v12 }
 0x445   :  { %v3267_v27 = vadd.f32 %v3266_v24, %v3178_v0  ;;  %4189 = vmatpush.bf16.msra.mxu3 %v6067_v57 }
 0x446   :  { %v3092_v35 = vadd.f32 %v3091_v51, %v3003_v58  ;;  %3041 = vmatmul.bf16.gmra.mxu0 %v7382_v47 }
 0x447   :  { %3130 = vmatmul.bf16.gmra.mxu1 %v7388_v4  ;;  %v3357_v60 = vmax.f32 %v3267_v27, 0.0  ;;  %3219 = vmatmul.bf16.gmra.mxu2 %v7390_v5 }
 0x448   :  { %3308 = vmatmul.bf16.gmra.mxu3 %v8832_v25 }
 0x449   :  { %v7921_v7 = vpack.c.bf16 %v3357_v60, %v3353_v44 }
 0x44a   :  { %v3180_v16 = vpop.f32.mrf.mxu2 }
 0x44b   :  { %v3269_v52 = vpop.f32.mrf.mxu3  ;;  %v3181_v32 = vadd.f32 %v3180_v16, %v3092_v35  ;;  %v3004_v17 = vpop.f32.mrf.mxu0  ;;  %v5874_v16 = vld [vmem:[#allocation7] sm:$0xf] }
 0x44c   :  { %v3093_v1 = vpop.f32.mrf.mxu1  ;;  %v3005_v21 = vadd.f32 %v3004_v17, %v7890_v12  ;;  %v5938_v17 = vld [vmem:[#allocation7 + $0x80] sm:$0xf] }
 0x44d   :  { %v3270_v38 = vadd.f32 %v3269_v52, %v3181_v32  ;;  %v6385_v52 = vld [vmem:[#allocation7 + $0x4] sm:$0xf0] }
 0x44e   :  { %v3094_v9 = vadd.f32 %v3093_v1, %v3005_v21  ;;  %v5875_v32 = vor.u32 %v6385_v52, %v5874_v16  ;;  %v6401_v1 = vld [vmem:[#allocation7 + $0x84] sm:$0xf0] }
 0x44f   :  { %v3361_v22 = vmax.f32 %v3270_v38, 0.0  ;;  %v5939_v21 = vor.u32 %v6401_v1, %v5938_v17 }
 0x450   :  { %3922 = vmatpush.bf16.msra.mxu0 %v5875_v32 }
 0x451   :  { %4011 = vmatpush.bf16.msra.mxu1 %v5939_v21 }
 0x452   :  { %v3182_v47 = vpop.f32.mrf.mxu2 }
 0x453   :  { %v3271_v26 = vpop.f32.mrf.mxu3  ;;  %v3183_v4 = vadd.f32 %v3182_v47, %v3094_v9  ;;  %v3007_v29 = vpop.f32.mrf.mxu0 }
 0x454   :  { %v3096_v18 = vpop.f32.mrf.mxu1  ;;  %v3008_v5 = vadd.f32 %v3007_v29, %v7890_v12 }
 0x455   :  { %v3272_v39 = vadd.f32 %v3271_v26, %v3183_v4 }
 0x456   :  { %v3097_v25 = vadd.f32 %v3096_v18, %v3008_v5  ;;  %3046 = vmatmul.bf16.gmra.mxu0 %v8903_v48 }
 0x457   :  { %3135 = vmatmul.bf16.gmra.mxu1 %v8904_v33  ;;  %v3365_v45 = vmax.f32 %v3272_v39, 0.0  ;;  %3224 = vmatmul.bf16.gmra.mxu2 %v8905_v28 }
 0x458   :  { %3313 = vmatmul.bf16.gmra.mxu3 %v8906_v41 }
 0x459   :  { %v7929_v24 = vpack.c.bf16 %v3365_v45, %v3361_v22 }
 0x45a   :  { %v3185_v0 = vpop.f32.mrf.mxu2 }
 0x45b   :  { %v3274_v61 = vpop.f32.mrf.mxu3  ;;  %v3186_v51 = vadd.f32 %v3185_v0, %v3097_v25  ;;  %v3009_v58 = vpop.f32.mrf.mxu0 }
 0x45c   :  { %v3098_v27 = vpop.f32.mrf.mxu1  ;;  %v3010_v35 = vadd.f32 %v3009_v58, %v7890_v12  ;;  %v6430_v58 = vld [vmem:[#allocation7 + $0x174] sm:$0xf] }
 0x45d   :  { %v3275_v44 = vadd.f32 %v3274_v61, %v3186_v51 }
 0x45e   :  { %v3099_v60 = vadd.f32 %v3098_v27, %v3010_v35  ;;  %v6060_v27 = vld [vmem:[#allocation7 + $0x178] sm:$0xf0] }
 0x45f   :  { %v3369_v39 = vmax.f32 %v3275_v44, 0.0  ;;  %v6063_v35 = vor.u32 %v6430_v58, %v6060_v27  ;;  %v6446_v44 = vld [vmem:[#allocation7 + $0x1f4] sm:$0xf]  ;;  %v8908_v27 = vld [vmem:[#allocation45_spill] sm:$0xff] }
 0x461   :  { %4449 = vmatpush.bf16.msrb.mxu2 %v6063_v35  ;;  %v8909_v35 = vld [vmem:[#allocation21_spill] sm:$0xff] }
 0x462   :  { %v3187_v38 = vpop.f32.mrf.mxu2 }
 0x463   :  { %v3276_v9 = vpop.f32.mrf.mxu3  ;;  %v3188_v47 = vadd.f32 %v3187_v38, %v3099_v60  ;;  %v3012_v26 = vpop.f32.mrf.mxu0  ;;  %v6124_v60 = vld [vmem:[#allocation7 + $0x1f8] sm:$0xf0] }
 0x464   :  { %v3101_v4 = vpop.f32.mrf.mxu1  ;;  %v3013_v29 = vadd.f32 %v3012_v26, %v7890_v12  ;;  %v6127_v16 = vor.u32 %v6446_v44, %v6124_v60  ;;  %v6414_v26 = vld [vmem:[#allocation7 + $0xf4] sm:$0xf] }
 0x465   :  { %v3277_v18 = vadd.f32 %v3276_v9, %v3188_v47  ;;  %v5932_v9 = vld [vmem:[#allocation7 + $0x78] sm:$0xf0] }
 0x466   :  { %v3102_v5 = vadd.f32 %v3101_v4, %v3013_v29  ;;  %3051 = vmatmul.bf16.gmra.mxu0 %v7481_v34  ;;  %4538 = vmatpush.bf16.msrb.mxu3 %v6127_v16  ;;  %v5996_v4 = vld [vmem:[#allocation7 + $0xf8] sm:$0xf0] }
 0x467   :  { %3140 = vmatmul.bf16.gmra.mxu1 %v7483_v46  ;;  %v3373_v25 = vmax.f32 %v3277_v18, 0.0  ;;  %3229 = vmatmul.bf16.gmra.mxu2 %v7486_v14  ;;  %v5999_v29 = vor.u32 %v6414_v26, %v5996_v4  ;;  %v8910_v16 = vld [vmem:[#allocation67_spill] sm:$0xff] }
 0x468   :  { %3318 = vmatmul.bf16.gmra.mxu3 %v7488_v8 }
 0x469   :  { %v7937_v48 = vpack.c.bf16 %v3373_v25, %v3369_v39  ;;  %4360 = vmatpush.bf16.msrb.mxu1 %v5999_v29 }
 0x46a   :  { %v3190_v33 = vpop.f32.mrf.mxu2 }
 0x46b   :  { %v3279_v22 = vpop.f32.mrf.mxu3  ;;  %v3191_v45 = vadd.f32 %v3190_v33, %v3102_v5  ;;  %v3014_v28 = vpop.f32.mrf.mxu0 }
 0x46c   :  { %v3103_v41 = vpop.f32.mrf.mxu1  ;;  %v3015_v31 = vadd.f32 %v3014_v28, %v7890_v12 }
 0x46d   :  { %v3280_v54 = vadd.f32 %v3279_v22, %v3191_v45 }
 0x46e   :  { %v3104_v56 = vadd.f32 %v3103_v41, %v3015_v31 }
 0x46f   :  { %v3377_v61 = vmax.f32 %v3280_v54, 0.0 }
 0x472   :  { %v3192_v34 = vpop.f32.mrf.mxu2 }
 0x473   :  { %v3281_v63 = vpop.f32.mrf.mxu3  ;;  %v3193_v46 = vadd.f32 %v3192_v34, %v3104_v56  ;;  %v3017_v53 = vpop.f32.mrf.mxu0 }
 0x474   :  { %v3106_v57 = vpop.f32.mrf.mxu1  ;;  %v3018_v14 = vadd.f32 %v3017_v53, %v7890_v12 }
 0x475   :  { %v3282_v0 = vadd.f32 %v3281_v63, %v3193_v46 }
 0x476   :  { %v3107_v8 = vadd.f32 %v3106_v57, %v3018_v14  ;;  %3056 = vmatmul.bf16.gmra.mxu0 %v7522_v43 }
 0x477   :  { %3145 = vmatmul.bf16.gmra.mxu1 %v7524_v3  ;;  %v3381_v51 = vmax.f32 %v3282_v0, 0.0  ;;  %3234 = vmatmul.bf16.gmra.mxu2 %v7527_v11 }
 0x478   :  { %3323 = vmatmul.bf16.gmra.mxu3 %v7529_v20  ;;  %v6398_v20 = vld [vmem:[#allocation7 + $0x74] sm:$0xf] }
 0x479   :  { %v7945_v52 = vpack.c.bf16 %v3381_v51, %v3377_v61  ;;  %v5935_v47 = vor.u32 %v6398_v20, %v5932_v9 }
 0x47a   :  { %v3195_v32 = vpop.f32.mrf.mxu2 }
 0x47b   :  { %v3284_v17 = vpop.f32.mrf.mxu3  ;;  %v3196_v43 = vadd.f32 %v3195_v32, %v3107_v8  ;;  %v3019_v1 = vpop.f32.mrf.mxu0  ;;  %4271 = vmatpush.bf16.msrb.mxu0 %v5935_v47  ;;  %v6428_v32 = vld [vmem:[#allocation7 + $0x164] sm:$0xf] }
 0x47c   :  { %v3108_v3 = vpop.f32.mrf.mxu1  ;;  %v3020_v21 = vadd.f32 %v3019_v1, %v7890_v12  ;;  %v6444_v1 = vld [vmem:[#allocation7 + $0x1e4] sm:$0xf] }
 0x47d   :  { %v3285_v11 = vadd.f32 %v3284_v17, %v3196_v43  ;;  %v6052_v17 = vld [vmem:[#allocation7 + $0x168] sm:$0xf0] }
 0x47e   :  { %v3109_v38 = vadd.f32 %v3108_v3, %v3020_v21  ;;  %v6055_v43 = vor.u32 %v6428_v32, %v6052_v17  ;;  %v6116_v3 = vld [vmem:[#allocation7 + $0x1e8] sm:$0xf0] }
 0x47f   :  { %v3385_v41 = vmax.f32 %v3285_v11, 0.0  ;;  %v6119_v21 = vor.u32 %v6444_v1, %v6116_v3 }
 0x480   :  { %4450 = vmatpush.bf16.msrb.mxu2 %v6055_v43 }
 0x481   :  { %4539 = vmatpush.bf16.msrb.mxu3 %v6119_v21 }
 0x482   :  { %v3197_v18 = vpop.f32.mrf.mxu2 }
 0x483   :  { %v3286_v5 = vpop.f32.mrf.mxu3  ;;  %v3198_v39 = vadd.f32 %v3197_v18, %v3109_v38  ;;  %v3022_v25 = vpop.f32.mrf.mxu0 }
 0x484   :  { %v3111_v33 = vpop.f32.mrf.mxu1  ;;  %v3023_v22 = vadd.f32 %v3022_v25, %v7890_v12 }
 0x485   :  { %v3287_v45 = vadd.f32 %v3286_v5, %v3198_v39  ;;  %v6396_v5 = vld [vmem:[#allocation7 + $0x64] sm:$0xf]  ;;  %v5924_v39 = vld [vmem:[#allocation7 + $0x68] sm:$0xf0] }
 0x486   :  { %v3112_v28 = vadd.f32 %v3111_v33, %v3023_v22  ;;  %3061 = vmatmul.bf16.gmra.mxu0 %v7547_v23  ;;  %v5927_v25 = vor.u32 %v6396_v5, %v5924_v39  ;;  %v6412_v33 = vld [vmem:[#allocation7 + $0xe4] sm:$0xf]  ;;  %v5988_v22 = vld [vmem:[#allocation7 + $0xe8] sm:$0xf0]  ;;  %v6426_v5 = vld [vmem:[#allocation7 + $0x154] sm:$0xf] }
 0x487   :  { %3150 = vmatmul.bf16.gmra.mxu1 %v7549_v15  ;;  %v3389_v31 = vmax.f32 %v3287_v45, 0.0  ;;  %3239 = vmatmul.bf16.gmra.mxu2 %v7551_v42  ;;  %v5991_v45 = vor.u32 %v6412_v33, %v5988_v22  ;;  %v6044_v39 = vld [vmem:[#allocation7 + $0x158] sm:$0xf0]  ;;  %v6442_v33 = vld [vmem:[#allocation7 + $0x1d4] sm:$0xf] }
 0x488   :  { %3328 = vmatmul.bf16.gmra.mxu3 %v7553_v62  ;;  %4272 = vmatpush.bf16.msrb.mxu0 %v5927_v25  ;;  %v6047_v25 = vor.u32 %v6426_v5, %v6044_v39  ;;  %v6108_v22 = vld [vmem:[#allocation7 + $0x1d8] sm:$0xf0] }
 0x489   :  { %v7953_v54 = vpack.c.bf16 %v3389_v31, %v3385_v41  ;;  %4361 = vmatpush.bf16.msrb.mxu1 %v5991_v45  ;;  %v6111_v45 = vor.u32 %v6442_v33, %v6108_v22 }
 0x48a   :  { %v3200_v56 = vpop.f32.mrf.mxu2  ;;  %4451 = vmatpush.bf16.msrb.mxu2 %v6047_v25 }
 0x48b   :  { %8907 = vst [vmem:[#allocation31_spill] sm:$0xff] %v7953_v54  ;;  %v3289_v34 = vpop.f32.mrf.mxu3  ;;  %v3201_v63 = vadd.f32 %v3200_v56, %v3112_v28  ;;  %v3024_v46 = vpop.f32.mrf.mxu0  ;;  %4540 = vmatpush.bf16.msrb.mxu3 %v6111_v45 }
 0x48c   :  { %v3113_v53 = vpop.f32.mrf.mxu1  ;;  %v3025_v57 = vadd.f32 %v3024_v46, %v7890_v12 }
 0x48d   :  { %v3290_v14 = vadd.f32 %v3289_v34, %v3201_v63 }
 0x48e   :  { %v3114_v0 = vadd.f32 %v3113_v53, %v3025_v57  ;;  %v8912_v57 = vld [vmem:[#allocation54_spill] sm:$0xff] }
 0x48f   :  { %v3393_v44 = vmax.f32 %v3290_v14, 0.0  ;;  %v8913_v14 = vld [vmem:[#allocation22_spill] sm:$0xff] }
 0x492   :  { %v3202_v23 = vpop.f32.mrf.mxu2 }
 0x493   :  { %v3291_v8 = vpop.f32.mrf.mxu3  ;;  %v3203_v15 = vadd.f32 %v3202_v23, %v3114_v0  ;;  %v3027_v61 = vpop.f32.mrf.mxu0 }
 0x494   :  { %v3116_v51 = vpop.f32.mrf.mxu1  ;;  %v3028_v42 = vadd.f32 %v3027_v61, %v7890_v12 }
 0x495   :  { %v3292_v58 = vadd.f32 %v3291_v8, %v3203_v15  ;;  %v8914_v8 = vld [vmem:[#allocation68_spill] sm:$0xff] }
 0x496   :  { %v3117_v62 = vadd.f32 %v3116_v51, %v3028_v42  ;;  %3923 = vmatmul.bf16.vlgmr.msra.gmra.mxu0 %v8908_v27 }
 0x497   :  { %4012 = vmatmul.bf16.vlgmr.msra.gmra.mxu1 %v8909_v35  ;;  %v3397_v60 = vmax.f32 %v3292_v58, 0.0  ;;  %4101 = vmatmul.bf16.vlgmr.msra.gmra.mxu2 %v8910_v16 }
 0x498   :  { %4190 = vmatmul.bf16.vlgmr.msra.gmra.mxu3 %v7905_v2 }
 0x499   :  { %v7961_v11 = vpack.c.bf16 %v3397_v60, %v3393_v44 }
 0x49a   :  { %v3205_v38 = vpop.f32.mrf.mxu2 }
 0x49b   :  { %8911 = vst [vmem:[#allocation32_spill] sm:$0xff] %v7961_v11  ;;  %v3294_v20 = vpop.f32.mrf.mxu3  ;;  %v3206_v9 = vadd.f32 %v3205_v38, %v3117_v62  ;;  %v3029_v47 = vpop.f32.mrf.mxu0 }
 0x49c   :  { %v3118_v26 = vpop.f32.mrf.mxu1  ;;  %v3030_v4 = vadd.f32 %v3029_v47, %v7890_v12  ;;  %v8916_v47 = vld [vmem:[#allocation55_spill] sm:$0xff] }
 0x49d   :  { %v3295_v29 = vadd.f32 %v3294_v20, %v3206_v9 }
 0x49e   :  { %v3119_v18 = vadd.f32 %v3118_v26, %v3030_v4  ;;  %v8917_v26 = vld [vmem:[#allocation23_spill] sm:$0xff] }
 0x49f   :  { %v3401_v0 = vmax.f32 %v3295_v29, 0.0 }
 0x4a2   :  { %v3207_v28 = vpop.f32.mrf.mxu2 }
 0x4a3   :  { %v3296_v41 = vpop.f32.mrf.mxu3  ;;  %v3208_v31 = vadd.f32 %v3207_v28, %v3119_v18  ;;  %v3032_v56 = vpop.f32.mrf.mxu0  ;;  %v8918_v18 = vld [vmem:[#allocation69_spill] sm:$0xff] }
 0x4a4   :  { %v3121_v34 = vpop.f32.mrf.mxu1  ;;  %v3033_v63 = vadd.f32 %v3032_v56, %v7890_v12 }
 0x4a5   :  { %v3297_v46 = vadd.f32 %v3296_v41, %v3208_v31 }
 0x4a6   :  { %v3122_v53 = vadd.f32 %v3121_v34, %v3033_v63  ;;  %3928 = vmatmul.bf16.gmra.mxu0 %v8912_v57 }
 0x4a7   :  { %4017 = vmatmul.bf16.gmra.mxu1 %v8913_v14  ;;  %v3405_v23 = vmax.f32 %v3297_v46, 0.0  ;;  %4106 = vmatmul.bf16.gmra.mxu2 %v8914_v8 }
 0x4a8   :  { %4195 = vmatmul.bf16.gmra.mxu3 %v7913_v6 }
 0x4a9   :  { %v7969_v15 = vpack.c.bf16 %v3405_v23, %v3401_v0  ;;  %v6394_v23 = vld [vmem:[#allocation7 + $0x54] sm:$0xf] }
 0x4aa   :  { %v3210_v61 = vpop.f32.mrf.mxu2 }
 0x4ab   :  { %8915 = vst [vmem:[#allocation33_spill] sm:$0xff] %v7969_v15  ;;  %v3299_v51 = vpop.f32.mrf.mxu3  ;;  %v3211_v42 = vadd.f32 %v3210_v61, %v3122_v53  ;;  %v3034_v58 = vpop.f32.mrf.mxu0  ;;  %v5916_v61 = vld [vmem:[#allocation7 + $0x58] sm:$0xf0] }
 0x4ac   :  { %v3123_v62 = vpop.f32.mrf.mxu1  ;;  %v3035_v44 = vadd.f32 %v3034_v58, %v7890_v12  ;;  %v5980_v58 = vld [vmem:[#allocation7 + $0xd8] sm:$0xf0] }
 0x4ad   :  { %v3300_v60 = vadd.f32 %v3299_v51, %v3211_v42  ;;  %v5919_v51 = vor.u32 %v6394_v23, %v5916_v61  ;;  %v6410_v42 = vld [vmem:[#allocation7 + $0xd4] sm:$0xf] }
 0x4ae   :  { %v3124_v32 = vadd.f32 %v3123_v62, %v3035_v44  ;;  %v5983_v62 = vor.u32 %v6410_v42, %v5980_v58  ;;  %v8924_v42 = vld [vmem:[#allocation58_spill] sm:$0xff]  ;;  %v8925_v58 = vld [vmem:[#allocation25_spill] sm:$0xff] }
 0x4af   :  { %v3409_v4 = vmax.f32 %v3300_v60, 0.0  ;;  %4273 = vmatpush.bf16.msrb.mxu0 %v5919_v51 }
 0x4b0   :  { %4362 = vmatpush.bf16.msrb.mxu1 %v5983_v62 }
 0x4b2   :  { %v3212_v17 = vpop.f32.mrf.mxu2 }
 0x4b3   :  { %v3301_v43 = vpop.f32.mrf.mxu3  ;;  %v3213_v1 = vadd.f32 %v3212_v17, %v3124_v32  ;;  %v3037_v3 = vpop.f32.mrf.mxu0 }
 0x4b4   :  { %v3126_v21 = vpop.f32.mrf.mxu1  ;;  %v3038_v38 = vadd.f32 %v3037_v3, %v7890_v12 }
 0x4b5   :  { %v3302_v20 = vadd.f32 %v3301_v43, %v3213_v1 }
 0x4b6   :  { %v3127_v9 = vadd.f32 %v3126_v21, %v3038_v38  ;;  %3933 = vmatmul.bf16.gmra.mxu0 %v8916_v47  ;;  %v8920_v38 = vld [vmem:[#allocation57_spill] sm:$0xff] }
 0x4b7   :  { %4022 = vmatmul.bf16.gmra.mxu1 %v8917_v26  ;;  %v3413_v29 = vmax.f32 %v3302_v20, 0.0  ;;  %4111 = vmatmul.bf16.gmra.mxu2 %v8918_v18  ;;  %v8921_v20 = vld [vmem:[#allocation24_spill] sm:$0xff] }
 0x4b8   :  { %4200 = vmatmul.bf16.gmra.mxu3 %v7921_v7 }
 0x4b9   :  { %v7977_v28 = vpack.c.bf16 %v3413_v29, %v3409_v4  ;;  %v8922_v29 = vld [vmem:[#allocation70_spill] sm:$0xff] }
 0x4ba   :  { %v3215_v41 = vpop.f32.mrf.mxu2 }
 0x4bb   :  { %8919 = vst [vmem:[#allocation34_spill] sm:$0xff] %v7977_v28  ;;  %v3304_v31 = vpop.f32.mrf.mxu3  ;;  %v3216_v56 = vadd.f32 %v3215_v41, %v3127_v9  ;;  %v3039_v34 = vpop.f32.mrf.mxu0 }
 0x4bc   :  { %v3128_v63 = vpop.f32.mrf.mxu1  ;;  %v3040_v46 = vadd.f32 %v3039_v34, %v7890_v12 }
 0x4bd   :  { %v3305_v53 = vadd.f32 %v3304_v31, %v3216_v56 }
 0x4be   :  { %v3129_v0 = vadd.f32 %v3128_v63, %v3040_v46 }
 0x4bf   :  { %v3417_v9 = vmax.f32 %v3305_v53, 0.0 }
 0x4c2   :  { %v3217_v44 = vpop.f32.mrf.mxu2 }
 0x4c3   :  { %v3306_v60 = vpop.f32.mrf.mxu3  ;;  %v3218_v32 = vadd.f32 %v3217_v44, %v3129_v0  ;;  %v3042_v17 = vpop.f32.mrf.mxu0 }
 0x4c4   :  { %v3131_v43 = vpop.f32.mrf.mxu1  ;;  %v3043_v1 = vadd.f32 %v3042_v17, %v7890_v12  ;;  %v6036_v17 = vld [vmem:[#allocation7 + $0x148] sm:$0xf0] }
 0x4c5   :  { %v3307_v3 = vadd.f32 %v3306_v60, %v3218_v32  ;;  %v8926_v60 = vld [vmem:[#allocation71_spill] sm:$0xff]  ;;  %v6424_v32 = vld [vmem:[#allocation7 + $0x144] sm:$0xf] }
 0x4c6   :  { %v3132_v21 = vadd.f32 %v3131_v43, %v3043_v1  ;;  %3938 = vmatmul.bf16.gmra.mxu0 %v8920_v38  ;;  %v6039_v43 = vor.u32 %v6424_v32, %v6036_v17  ;;  %v6440_v1 = vld [vmem:[#allocation7 + $0x1c4] sm:$0xf] }
 0x4c7   :  { %4027 = vmatmul.bf16.gmra.mxu1 %v8921_v20  ;;  %v3421_v4 = vmax.f32 %v3307_v3, 0.0  ;;  %4116 = vmatmul.bf16.gmra.mxu2 %v8922_v29  ;;  %v6100_v3 = vld [vmem:[#allocation7 + $0x1c8] sm:$0xf0] }
 0x4c8   :  { %4205 = vmatmul.bf16.gmra.mxu3 %v7929_v24  ;;  %4452 = vmatpush.bf16.msrb.mxu2 %v6039_v43 }
 0x4c9   :  { %v7985_v5 = vpack.c.bf16 %v3421_v4, %v3417_v9 }
 0x4ca   :  { %v3220_v39 = vpop.f32.mrf.mxu2 }
 0x4cb   :  { %8923 = vst [vmem:[#allocation35_spill] sm:$0xff] %v7985_v5  ;;  %v3309_v25 = vpop.f32.mrf.mxu3  ;;  %v3221_v33 = vadd.f32 %v3220_v39, %v3132_v21  ;;  %v3044_v22 = vpop.f32.mrf.mxu0  ;;  %v6103_v21 = vor.u32 %v6440_v1, %v6100_v3  ;;  %v8927_v1 = vld [vmem:[#allocation59_spill] sm:$0xff]  ;;  %v8928_v3 = vld [vmem:[#allocation26_spill] sm:$0xff] }
 0x4cc   :  { %v3133_v45 = vpop.f32.mrf.mxu1  ;;  %v3045_v41 = vadd.f32 %v3044_v22, %v7890_v12 }
 0x4cd   :  { %v3310_v31 = vadd.f32 %v3309_v25, %v3221_v33  ;;  %4541 = vmatpush.bf16.msrb.mxu3 %v6103_v21 }
 0x4ce   :  { %v3134_v56 = vadd.f32 %v3133_v45, %v3045_v41 }
 0x4cf   :  { %v3425_v62 = vmax.f32 %v3310_v31, 0.0 }
 0x4d2   :  { %v3222_v34 = vpop.f32.mrf.mxu2 }
 0x4d3   :  { %v3311_v63 = vpop.f32.mrf.mxu3  ;;  %v3223_v46 = vadd.f32 %v3222_v34, %v3134_v56  ;;  %v3047_v53 = vpop.f32.mrf.mxu0  ;;  %v6392_v56 = vld [vmem:[#allocation7 + $0x44] sm:$0xf]  ;;  %v5908_v34 = vld [vmem:[#allocation7 + $0x48] sm:$0xf0] }
 0x4d4   :  { %v3136_v0 = vpop.f32.mrf.mxu1  ;;  %v3048_v23 = vadd.f32 %v3047_v53, %v7890_v12  ;;  %v5972_v53 = vld [vmem:[#allocation7 + $0xc8] sm:$0xf0] }
 0x4d5   :  { %v3312_v61 = vadd.f32 %v3311_v63, %v3223_v46  ;;  %v5911_v63 = vor.u32 %v6392_v56, %v5908_v34  ;;  %v6408_v46 = vld [vmem:[#allocation7 + $0xc4] sm:$0xf] }
 0x4d6   :  { %v3137_v51 = vadd.f32 %v3136_v0, %v3048_v23  ;;  %3943 = vmatmul.bf16.gmra.mxu0 %v8924_v42  ;;  %v5975_v0 = vor.u32 %v6408_v46, %v5972_v53 }
 0x4d7   :  { %4032 = vmatmul.bf16.gmra.mxu1 %v8925_v58  ;;  %v3429_v44 = vmax.f32 %v3312_v61, 0.0  ;;  %4121 = vmatmul.bf16.gmra.mxu2 %v8926_v60 }
 0x4d8   :  { %4210 = vmatmul.bf16.gmra.mxu3 %v7937_v48  ;;  %4274 = vmatpush.bf16.msrb.mxu0 %v5911_v63 }
 0x4d9   :  { %v7993_v9 = vpack.c.bf16 %v3429_v44, %v3425_v62  ;;  %4363 = vmatpush.bf16.msrb.mxu1 %v5975_v0 }
 0x4da   :  { %v3225_v4 = vpop.f32.mrf.mxu2 }
 0x4db   :  { %v3314_v39 = vpop.f32.mrf.mxu3  ;;  %v3226_v25 = vadd.f32 %v3225_v4, %v3137_v51  ;;  %v3049_v33 = vpop.f32.mrf.mxu0 }
 0x4dc   :  { %v3138_v22 = vpop.f32.mrf.mxu1  ;;  %v3050_v45 = vadd.f32 %v3049_v33, %v7890_v12 }
 0x4dd   :  { %v3315_v41 = vadd.f32 %v3314_v39, %v3226_v25 }
 0x4de   :  { %v3139_v31 = vadd.f32 %v3138_v22, %v3050_v45 }
 0x4df   :  { %v3433_v21 = vmax.f32 %v3315_v41, 0.0 }
 0x4e2   :  { %v3227_v23 = vpop.f32.mrf.mxu2 }
 0x4e3   :  { %v3316_v61 = vpop.f32.mrf.mxu3  ;;  %v3228_v62 = vadd.f32 %v3227_v23, %v3139_v31  ;;  %v3052_v44 = vpop.f32.mrf.mxu0 }
 0x4e4   :  { %v3141_v32 = vpop.f32.mrf.mxu1  ;;  %v3053_v51 = vadd.f32 %v3052_v44, %v7890_v12 }
 0x4e5   :  { %v3317_v17 = vadd.f32 %v3316_v61, %v3228_v62 }
 0x4e6   :  { %v3142_v43 = vadd.f32 %v3141_v32, %v3053_v51  ;;  %3948 = vmatmul.bf16.gmra.mxu0 %v8927_v1  ;;  %v8930_v32 = vld [vmem:[#allocation60_spill] sm:$0xff]  ;;  %v8931_v51 = vld [vmem:[#allocation27_spill] sm:$0xff] }
 0x4e7   :  { %4037 = vmatmul.bf16.gmra.mxu1 %v8928_v3  ;;  %v3437_v4 = vmax.f32 %v3317_v17, 0.0  ;;  %4126 = vmatmul.bf16.gmra.mxu2 %v7815_v30 }
 0x4e8   :  { %4215 = vmatmul.bf16.gmra.mxu3 %v7945_v52 }
 0x4e9   :  { %v8001_v39 = vpack.c.bf16 %v3437_v4, %v3433_v21  ;;  %v6422_v21 = vld [vmem:[#allocation7 + $0x134] sm:$0xf]  ;;  %v6028_v4 = vld [vmem:[#allocation7 + $0x138] sm:$0xf0] }
 0x4ea   :  { %v3230_v25 = vpop.f32.mrf.mxu2 }
 0x4eb   :  { %8929 = vst [vmem:[#allocation36_spill] sm:$0xff] %v8001_v39  ;;  %v3319_v33 = vpop.f32.mrf.mxu3  ;;  %v3231_v22 = vadd.f32 %v3230_v25, %v3142_v43  ;;  %v3054_v45 = vpop.f32.mrf.mxu0  ;;  %v6438_v25 = vld [vmem:[#allocation7 + $0x1b4] sm:$0xf] }
 0x4ec   :  { %v3143_v31 = vpop.f32.mrf.mxu1  ;;  %v3055_v56 = vadd.f32 %v3054_v45, %v7890_v12 }
 0x4ed   :  { %v3320_v34 = vadd.f32 %v3319_v33, %v3231_v22  ;;  %v6031_v33 = vor.u32 %v6422_v21, %v6028_v4  ;;  %v6092_v22 = vld [vmem:[#allocation7 + $0x1b8] sm:$0xf0] }
 0x4ee   :  { %v3144_v63 = vadd.f32 %v3143_v31, %v3055_v56  ;;  %v5964_v21 = vld [vmem:[#allocation7 + $0xb8] sm:$0xf0] }
 0x4ef   :  { %v3441_v17 = vmax.f32 %v3320_v34, 0.0  ;;  %4453 = vmatpush.bf16.msrb.mxu2 %v6031_v33 }
 0x4f2   :  { %v3232_v46 = vpop.f32.mrf.mxu2 }
 0x4f3   :  { %v3321_v53 = vpop.f32.mrf.mxu3  ;;  %v3233_v0 = vadd.f32 %v3232_v46, %v3144_v63  ;;  %v3057_v41 = vpop.f32.mrf.mxu0  ;;  %v6095_v63 = vor.u32 %v6438_v25, %v6092_v22 }
 0x4f4   :  { %v3146_v23 = vpop.f32.mrf.mxu1  ;;  %v3058_v61 = vadd.f32 %v3057_v41, %v7890_v12 }
 0x4f5   :  { %v3322_v62 = vadd.f32 %v3321_v53, %v3233_v0  ;;  %4542 = vmatpush.bf16.msrb.mxu3 %v6095_v63  ;;  %v8932_v63 = vld [vmem:[#allocation61_spill] sm:$0xff] }
 0x4f6   :  { %v3147_v44 = vadd.f32 %v3146_v23, %v3058_v61  ;;  %3953 = vmatmul.bf16.gmra.mxu0 %v8930_v32  ;;  %v6390_v61 = vld [vmem:[#allocation7 + $0x34] sm:$0xf] }
 0x4f7   :  { %4042 = vmatmul.bf16.gmra.mxu1 %v8931_v51  ;;  %v3445_v43 = vmax.f32 %v3322_v62, 0.0  ;;  %4131 = vmatmul.bf16.gmra.mxu2 %v7823_v49  ;;  %v5900_v62 = vld [vmem:[#allocation7 + $0x38] sm:$0xf0]  ;;  %v6406_v49 = vld [vmem:[#allocation7 + $0xb4] sm:$0xf] }
 0x4f8   :  { %4220 = vmatmul.bf16.gmra.mxu3 %v7953_v54  ;;  %v5903_v54 = vor.u32 %v6390_v61, %v5900_v62  ;;  %v5967_v4 = vor.u32 %v6406_v49, %v5964_v21  ;;  %v8020_v21 = vld [vmem:[#allocation2 + $0x8] sm:$0x3] }
 0x4f9   :  { %v8009_v45 = vpack.c.bf16 %v3445_v43, %v3441_v17  ;;  %8934 = vst [vmem:[#allocation37_spill] sm:$0xff] %v8020_v21 }
 0x4fa   :  { %v3235_v31 = vpop.f32.mrf.mxu2  ;;  %4275 = vmatpush.bf16.msrb.mxu0 %v5903_v54  ;;  %4364 = vmatpush.bf16.msrb.mxu1 %v5967_v4 }
 0x4fb   :  { %v3324_v56 = vpop.f32.mrf.mxu3  ;;  %v3236_v46 = vadd.f32 %v3235_v31, %v3147_v44  ;;  %v3059_v53 = vpop.f32.mrf.mxu0 }
 0x4fc   :  { %v3148_v0 = vpop.f32.mrf.mxu1  ;;  %v3060_v34 = vadd.f32 %v3059_v53, %v7890_v12 }
 0x4fd   :  { %v3325_v41 = vadd.f32 %v3324_v56, %v3236_v46  ;;  %v8933_v56 = vld [vmem:[#allocation28_spill] sm:$0xff] }
 0x4fe   :  { %v3149_v23 = vadd.f32 %v3148_v0, %v3060_v34 }
 0x4ff   :  { %v3449_v46 = vmax.f32 %v3325_v41, 0.0  ;;  %v8023_v41 = vperm.slane %v8020_v21, 0 }
 0x502   :  { %v3237_v17 = vpop.f32.mrf.mxu2 }
 0x503   :  { %v3326_v43 = vpop.f32.mrf.mxu3  ;;  %v3238_v51 = vadd.f32 %v3237_v17, %v3149_v23  ;;  %v3062_v25 = vpop.f32.mrf.mxu0 }
 0x504   :  { %v3151_v44 = vpop.f32.mrf.mxu1  ;;  %v3063_v33 = vadd.f32 %v3062_v25, %v7890_v12 }
 0x505   :  { %v3327_v22 = vadd.f32 %v3326_v43, %v3238_v51 }
 0x506   :  { %v3152_v31 = vadd.f32 %v3151_v44, %v3063_v33  ;;  %3958 = vmatmul.bf16.gmra.mxu0 %v8932_v63 }
 0x507   :  { %4047 = vmatmul.bf16.gmra.mxu1 %v8933_v56  ;;  %v3453_v53 = vmax.f32 %v3327_v22, 0.0  ;;  %4136 = vmatmul.bf16.gmra.mxu2 %v7831_v10 }
 0x508   :  { %4225 = vmatmul.bf16.gmra.mxu3 %v7961_v11 }
 0x509   :  { %v8017_v49 = vpack.c.bf16 %v3453_v53, %v3449_v46  ;;  %v8935_v53 = vld [vmem:[#allocation12_spill] sm:$0xff] }
 0x50a   :  { %v3240_v54 = vpop.f32.mrf.mxu2 }
 0x50b   :  { %v3329_v0 = vpop.f32.mrf.mxu3  ;;  %v3241_v34 = vadd.f32 %v3240_v54, %v3152_v31  ;;  %v3064_v23 = vpop.f32.mrf.mxu0  ;;  %v8936_v54 = vld [vmem:[#allocation29_spill] sm:$0xff] }
 0x50c   :  { %v3153_v61 = vpop.f32.mrf.mxu1  ;;  %v3065_v51 = vadd.f32 %v3064_v23, %v7890_v12  ;;  %v6020_v23 = vld [vmem:[#allocation7 + $0x128] sm:$0xf0] }
 0x50d   :  { %v3330_v62 = vadd.f32 %v3329_v0, %v3241_v34  ;;  %v6420_v34 = vld [vmem:[#allocation7 + $0x124] sm:$0xf] }
 0x50e   :  { %v3154_v4 = vadd.f32 %v3153_v61, %v3065_v51  ;;  %v6023_v61 = vor.u32 %v6420_v34, %v6020_v23  ;;  %v6436_v51 = vld [vmem:[#allocation7 + $0x1a4] sm:$0xf]  ;;  %v5956_v23 = vld [vmem:[#allocation7 + $0xa8] sm:$0xf0] }
 0x50f   :  { %v3457_v12 = vmax.f32 %v3330_v62, 0.0  ;;  %v6404_v34 = vld [vmem:[#allocation7 + $0xa4] sm:$0xf] }
 0x510   :  { %4454 = vmatpush.bf16.msrb.mxu2 %v6023_v61  ;;  %v5959_v11 = vor.u32 %v6404_v34, %v5956_v23 }
 0x512   :  { %v3242_v17 = vpop.f32.mrf.mxu2  ;;  %4365 = vmatpush.bf16.msrb.mxu1 %v5959_v11 }
 0x513   :  { %v3331_v43 = vpop.f32.mrf.mxu3  ;;  %v3243_v25 = vadd.f32 %v3242_v17, %v3154_v4  ;;  %v3924_v44 = vpop.f32.mrf.mxu0  ;;  %v6084_v4 = vld [vmem:[#allocation7 + $0x1a8] sm:$0xf0] }
 0x514   :  { %v4013_v33 = vpop.f32.mrf.mxu1  ;;  %v3925_v22 = vadd.f32 %v3924_v44, %v8023_v41  ;;  %v6087_v17 = vor.u32 %v6436_v51, %v6084_v4 }
 0x515   :  { %v3332_v46 = vadd.f32 %v3331_v43, %v3243_v25 }
 0x516   :  { %v4014_v31 = vadd.f32 %v4013_v33, %v3925_v22  ;;  %3963 = vmatmul.bf16.gmra.mxu0 %v8935_v53  ;;  %4543 = vmatpush.bf16.msrb.mxu3 %v6087_v17 }
 0x517   :  { %4052 = vmatmul.bf16.gmra.mxu1 %v8936_v54  ;;  %v3461_v0 = vmax.f32 %v3332_v46, 0.0  ;;  %4141 = vmatmul.bf16.gmra.mxu2 %v7839_v37  ;;  %v5892_v54 = vld [vmem:[#allocation7 + $0x28] sm:$0xf0] }
 0x518   :  { %4230 = vmatmul.bf16.gmra.mxu3 %v7969_v15  ;;  %v6388_v15 = vld [vmem:[#allocation7 + $0x24] sm:$0xf] }
 0x519   :  { %v8030_v21 = vpack.c.bf16 %v3461_v0, %v3457_v12  ;;  %v5895_v53 = vor.u32 %v6388_v15, %v5892_v54 }
 0x51a   :  { %v4102_v43 = vpop.f32.mrf.mxu2 }
 0x51b   :  { %8937 = vst [vmem:[#allocation38_spill] sm:$0xff] %v8030_v21  ;;  %v4191_v25 = vpop.f32.mrf.mxu3  ;;  %v4103_v44 = vadd.f32 %v4102_v43, %v4014_v31  ;;  %v3926_v33 = vpop.f32.mrf.mxu0  ;;  %4276 = vmatpush.bf16.msrb.mxu0 %v5895_v53 }
 0x51c   :  { %v4015_v22 = vpop.f32.mrf.mxu1  ;;  %v3927_v62 = vadd.f32 %v3926_v33, %v8023_v41  ;;  %v8938_v33 = vld [vmem:[#allocation13_spill] sm:$0xff] }
 0x51d   :  { %v4192_v46 = vadd.f32 %v4191_v25, %v4103_v44  ;;  %v8939_v25 = vld [vmem:[#allocation50_spill] sm:$0xff] }
 0x51e   :  { %v4016_v37 = vadd.f32 %v4015_v22, %v3927_v62 }
 0x51f   :  { %v4627_v44 = vmax.f32 %v4192_v46, 0.0 }
 0x522   :  { %v4104_v51 = vpop.f32.mrf.mxu2 }
 0x523   :  { %v4193_v12 = vpop.f32.mrf.mxu3  ;;  %v4105_v0 = vadd.f32 %v4104_v51, %v4016_v37  ;;  %v3929_v4 = vpop.f32.mrf.mxu0 }
 0x524   :  { %v4018_v61 = vpop.f32.mrf.mxu1  ;;  %v3930_v31 = vadd.f32 %v3929_v4, %v8023_v41 }
 0x525   :  { %v4194_v17 = vadd.f32 %v4193_v12, %v4105_v0 }
 0x526   :  { %v4019_v43 = vadd.f32 %v4018_v61, %v3930_v31  ;;  %3968 = vmatmul.bf16.gmra.mxu0 %v8938_v33 }
 0x527   :  { %4057 = vmatmul.bf16.gmra.mxu1 %v8939_v25  ;;  %v4629_v15 = vmax.f32 %v4194_v17, 0.0  ;;  %4146 = vmatmul.bf16.gmra.mxu2 %v7847_v13 }
 0x528   :  { %4235 = vmatmul.bf16.gmra.mxu3 %v7977_v28 }
 0x529   :  { %v8038_v54 = vpack.c.bf16 %v4629_v15, %v4627_v44  ;;  %v8941_v44 = vld [vmem:[#allocation14_spill] sm:$0xff] }
 0x52a   :  { %v4107_v37 = vpop.f32.mrf.mxu2  ;;  %v8942_v15 = vld [vmem:[#allocation62_spill] sm:$0xff] }
 0x52b   :  { %8940 = vst [vmem:[#allocation39_spill] sm:$0xff] %v8038_v54  ;;  %v4196_v53 = vpop.f32.mrf.mxu3  ;;  %v4108_v22 = vadd.f32 %v4107_v37, %v4019_v43  ;;  %v3931_v11 = vpop.f32.mrf.mxu0 }
 0x52c   :  { %v4020_v62 = vpop.f32.mrf.mxu1  ;;  %v3932_v34 = vadd.f32 %v3931_v11, %v8023_v41 }
 0x52d   :  { %v4197_v23 = vadd.f32 %v4196_v53, %v4108_v22  ;;  %v6418_v53 = vld [vmem:[#allocation7 + $0x114] sm:$0xf]  ;;  %v6012_v22 = vld [vmem:[#allocation7 + $0x118] sm:$0xf0] }
 0x52e   :  { %v4021_v51 = vadd.f32 %v4020_v62, %v3932_v34  ;;  %v6015_v11 = vor.u32 %v6418_v53, %v6012_v22  ;;  %v6434_v62 = vld [vmem:[#allocation7 + $0x194] sm:$0xf]  ;;  %v6076_v34 = vld [vmem:[#allocation7 + $0x198] sm:$0xf0] }
 0x52f   :  { %v4631_v43 = vmax.f32 %v4197_v23, 0.0  ;;  %v6402_v53 = vld [vmem:[#allocation7 + $0x94] sm:$0xf]  ;;  %v5948_v22 = vld [vmem:[#allocation7 + $0x98] sm:$0xf0] }
 0x530   :  { %4455 = vmatpush.bf16.msrb.mxu2 %v6015_v11 }
 0x532   :  { %v4109_v12 = vpop.f32.mrf.mxu2 }
 0x533   :  { %v4198_v0 = vpop.f32.mrf.mxu3  ;;  %v4110_v4 = vadd.f32 %v4109_v12, %v4021_v51  ;;  %v3934_v46 = vpop.f32.mrf.mxu0  ;;  %v6079_v51 = vor.u32 %v6434_v62, %v6076_v34 }
 0x534   :  { %v4023_v61 = vpop.f32.mrf.mxu1  ;;  %v3935_v31 = vadd.f32 %v3934_v46, %v8023_v41 }
 0x535   :  { %v4199_v17 = vadd.f32 %v4198_v0, %v4110_v4  ;;  %4544 = vmatpush.bf16.msrb.mxu3 %v6079_v51 }
 0x536   :  { %v4024_v28 = vadd.f32 %v4023_v61, %v3935_v31  ;;  %3973 = vmatmul.bf16.gmra.mxu0 %v8941_v44  ;;  %v5951_v44 = vor.u32 %v6402_v53, %v5948_v22 }
 0x537   :  { %4062 = vmatmul.bf16.gmra.mxu1 %v8942_v15  ;;  %v4633_v37 = vmax.f32 %v4199_v17, 0.0  ;;  %4151 = vmatmul.bf16.gmra.mxu2 %v7855_v50  ;;  %v5884_v50 = vld [vmem:[#allocation7 + $0x18] sm:$0xf0] }
 0x538   :  { %4240 = vmatmul.bf16.gmra.mxu3 %v7985_v5  ;;  %v6386_v5 = vld [vmem:[#allocation7 + $0x14] sm:$0xf]  ;;  %4366 = vmatpush.bf16.msrb.mxu1 %v5951_v44 }
 0x539   :  { %v8046_v12 = vpack.c.bf16 %v4633_v37, %v4631_v43  ;;  %v5887_v15 = vor.u32 %v6386_v5, %v5884_v50 }
 0x53a   :  { %v4112_v0 = vpop.f32.mrf.mxu2 }
 0x53b   :  { %8943 = vst [vmem:[#allocation40_spill] sm:$0xff] %v8046_v12  ;;  %v4201_v4 = vpop.f32.mrf.mxu3  ;;  %v4113_v46 = vadd.f32 %v4112_v0, %v4024_v28  ;;  %v3936_v61 = vpop.f32.mrf.mxu0  ;;  %4277 = vmatpush.bf16.msrb.mxu0 %v5887_v15 }
 0x53c   :  { %v4025_v31 = vpop.f32.mrf.mxu1  ;;  %v3937_v23 = vadd.f32 %v3936_v61, %v8023_v41  ;;  %v8944_v61 = vld [vmem:[#allocation15_spill] sm:$0xff] }
 0x53d   :  { %v4202_v17 = vadd.f32 %v4201_v4, %v4113_v46  ;;  %v8945_v4 = vld [vmem:[#allocation63_spill] sm:$0xff] }
 0x53e   :  { %v4026_v54 = vadd.f32 %v4025_v31, %v3937_v23 }
 0x53f   :  { %v4635_v46 = vmax.f32 %v4202_v17, 0.0 }
 0x542   :  { %v4114_v62 = vpop.f32.mrf.mxu2 }
 0x543   :  { %v4203_v43 = vpop.f32.mrf.mxu3  ;;  %v4115_v37 = vadd.f32 %v4114_v62, %v4026_v54  ;;  %v3939_v34 = vpop.f32.mrf.mxu0 }
 0x544   :  { %v4028_v11 = vpop.f32.mrf.mxu1  ;;  %v3940_v28 = vadd.f32 %v3939_v34, %v8023_v41 }
 0x545   :  { %v4204_v51 = vadd.f32 %v4203_v43, %v4115_v37 }
 0x546   :  { %v4029_v0 = vadd.f32 %v4028_v11, %v3940_v28  ;;  %3978 = vmatmul.bf16.gmra.mxu0 %v8944_v61 }
 0x547   :  { %4067 = vmatmul.bf16.gmra.mxu1 %v8945_v4  ;;  %v4637_v50 = vmax.f32 %v4204_v51, 0.0  ;;  %4156 = vmatmul.bf16.gmra.mxu2 %v7863_v40 }
 0x548   :  { %4245 = vmatmul.bf16.gmra.mxu3 %v7993_v9 }
 0x549   :  { %v8054_v5 = vpack.c.bf16 %v4637_v50, %v4635_v46  ;;  %v8947_v46 = vld [vmem:[#allocation16_spill] sm:$0xff] }
 0x54a   :  { %v4117_v54 = vpop.f32.mrf.mxu2  ;;  %v8948_v50 = vld [vmem:[#allocation64_spill] sm:$0xff] }
 0x54b   :  { %8946 = vst [vmem:[#allocation41_spill] sm:$0xff] %v8054_v5  ;;  %v4206_v15 = vpop.f32.mrf.mxu3  ;;  %v4118_v31 = vadd.f32 %v4117_v54, %v4029_v0  ;;  %v3941_v44 = vpop.f32.mrf.mxu0 }
 0x54c   :  { %v4030_v23 = vpop.f32.mrf.mxu1  ;;  %v3942_v53 = vadd.f32 %v3941_v44, %v8023_v41 }
 0x54d   :  { %v4207_v22 = vadd.f32 %v4206_v15, %v4118_v31  ;;  %v6416_v15 = vld [vmem:[#allocation7 + $0x104] sm:$0xf]  ;;  %v6004_v31 = vld [vmem:[#allocation7 + $0x108] sm:$0xf0] }
 0x54e   :  { %v4031_v62 = vadd.f32 %v4030_v23, %v3942_v53  ;;  %v6007_v44 = vor.u32 %v6416_v15, %v6004_v31  ;;  %v6432_v23 = vld [vmem:[#allocation7 + $0x184] sm:$0xf]  ;;  %v6068_v53 = vld [vmem:[#allocation7 + $0x188] sm:$0xf0] }
 0x54f   :  { %v4639_v0 = vmax.f32 %v4207_v22, 0.0  ;;  %v6400_v15 = vld [vmem:[#allocation7 + $0x84] sm:$0xf]  ;;  %v5940_v31 = vld [vmem:[#allocation7 + $0x88] sm:$0xf0] }
 0x550   :  { %4456 = vmatpush.bf16.msrb.mxu2 %v6007_v44 }
 0x552   :  { %v4119_v43 = vpop.f32.mrf.mxu2 }
 0x553   :  { %v4208_v37 = vpop.f32.mrf.mxu3  ;;  %v4120_v34 = vadd.f32 %v4119_v43, %v4031_v62  ;;  %v3944_v17 = vpop.f32.mrf.mxu0  ;;  %v6071_v62 = vor.u32 %v6432_v23, %v6068_v53 }
 0x554   :  { %v4033_v11 = vpop.f32.mrf.mxu1  ;;  %v3945_v28 = vadd.f32 %v3944_v17, %v8023_v41 }
 0x555   :  { %v4209_v51 = vadd.f32 %v4208_v37, %v4120_v34  ;;  %4545 = vmatpush.bf16.msrb.mxu3 %v6071_v62 }
 0x556   :  { %v4034_v12 = vadd.f32 %v4033_v11, %v3945_v28  ;;  %3983 = vmatmul.bf16.gmra.mxu0 %v8947_v46  ;;  %v5943_v46 = vor.u32 %v6400_v15, %v5940_v31 }
 0x557   :  { %4072 = vmatmul.bf16.gmra.mxu1 %v8948_v50  ;;  %v4641_v54 = vmax.f32 %v4209_v51, 0.0  ;;  %4161 = vmatmul.bf16.gmra.mxu2 %v7871_v36  ;;  %v5876_v36 = vld [vmem:[#allocation7 + $0x8] sm:$0xf0] }
 0x558   :  { %4250 = vmatmul.bf16.gmra.mxu3 %v8001_v39  ;;  %v6384_v39 = vld [vmem:[#allocation7 + $0x4] sm:$0xf]  ;;  %4367 = vmatpush.bf16.msrb.mxu1 %v5943_v46 }
 0x559   :  { %v8062_v43 = vpack.c.bf16 %v4641_v54, %v4639_v0  ;;  %v5879_v50 = vor.u32 %v6384_v39, %v5876_v36 }
 0x55a   :  { %v4122_v37 = vpop.f32.mrf.mxu2 }
 0x55b   :  { %8949 = vst [vmem:[#allocation42_spill] sm:$0xff] %v8062_v43  ;;  %v4211_v34 = vpop.f32.mrf.mxu3  ;;  %v4123_v17 = vadd.f32 %v4122_v37, %v4034_v12  ;;  %v3946_v11 = vpop.f32.mrf.mxu0  ;;  %4278 = vmatpush.bf16.msrb.mxu0 %v5879_v50 }
 0x55c   :  { %v4035_v28 = vpop.f32.mrf.mxu1  ;;  %v3947_v22 = vadd.f32 %v3946_v11, %v8023_v41  ;;  %v8950_v11 = vld [vmem:[#allocation17_spill] sm:$0xff] }
 0x55d   :  { %v4212_v51 = vadd.f32 %v4211_v34, %v4123_v17  ;;  %v8951_v34 = vld [vmem:[#allocation65_spill] sm:$0xff] }
 0x55e   :  { %v4036_v5 = vadd.f32 %v4035_v28, %v3947_v22 }
 0x55f   :  { %v4643_v17 = vmax.f32 %v4212_v51, 0.0 }
 0x562   :  { %v4124_v23 = vpop.f32.mrf.mxu2 }
 0x563   :  { %v4213_v0 = vpop.f32.mrf.mxu3  ;;  %v4125_v54 = vadd.f32 %v4124_v23, %v4036_v5  ;;  %v3949_v53 = vpop.f32.mrf.mxu0 }
 0x564   :  { %v4038_v44 = vpop.f32.mrf.mxu1  ;;  %v3950_v12 = vadd.f32 %v3949_v53, %v8023_v41 }
 0x565   :  { %v4214_v62 = vadd.f32 %v4213_v0, %v4125_v54 }
 0x566   :  { %v4039_v37 = vadd.f32 %v4038_v44, %v3950_v12  ;;  %3988 = vmatmul.bf16.gmra.mxu0 %v8950_v11 }
 0x567   :  { %4077 = vmatmul.bf16.gmra.mxu1 %v8951_v34  ;;  %v4645_v36 = vmax.f32 %v4214_v62, 0.0  ;;  %4166 = vmatmul.bf16.gmra.mxu2 %v7879_v19 }
 0x568   :  { %4255 = vmatmul.bf16.gmra.mxu3 %v8009_v45 }
 0x569   :  { %v8070_v39 = vpack.c.bf16 %v4645_v36, %v4643_v17  ;;  %v8953_v17 = vld [vmem:[#allocation18_spill] sm:$0xff] }
 0x56a   :  { %v4127_v5 = vpop.f32.mrf.mxu2  ;;  %v8954_v36 = vld [vmem:[#allocation66_spill] sm:$0xff] }
 0x56b   :  { %8952 = vst [vmem:[#allocation43_spill] sm:$0xff] %v8070_v39  ;;  %v4216_v50 = vpop.f32.mrf.mxu3  ;;  %v4128_v28 = vadd.f32 %v4127_v5, %v4039_v37  ;;  %v3951_v46 = vpop.f32.mrf.mxu0 }
 0x56c   :  { %v4040_v22 = vpop.f32.mrf.mxu1  ;;  %v3952_v15 = vadd.f32 %v3951_v46, %v8023_v41 }
 0x56d   :  { %v4217_v31 = vadd.f32 %v4216_v50, %v4128_v28  ;;  %v6462_v50 = vld [vmem:[%s8589_s5 + $0x74] sm:$0xf]  ;;  %v6188_v28 = vld [vmem:[%s8589_s5 + $0x78] sm:$0xf0] }
 0x56e   :  { %v4041_v23 = vadd.f32 %v4040_v22, %v3952_v15  ;;  %v6191_v46 = vor.u32 %v6462_v50, %v6188_v28  ;;  %v6478_v22 = vld [vmem:[%s8589_s5 + $0xf4] sm:$0xf]  ;;  %v6252_v15 = vld [vmem:[%s8589_s5 + $0xf8] sm:$0xf0]  ;;  %v6186_v28 = vld [vmem:[%s8589_s5 + $0x70] sm:$0xf] }
 0x56f   :  { %v4647_v37 = vmax.f32 %v4217_v31, 0.0  ;;  %v6255_v31 = vor.u32 %v6478_v22, %v6252_v15 }
 0x570   :  { %5098 = vmatpush.bf16.msra.mxu2 %v6191_v46  ;;  %v6479_v46 = vld [vmem:[%s8589_s5 + $0xf4] sm:$0xf0] }
 0x571   :  { %5187 = vmatpush.bf16.msra.mxu3 %v6255_v31 }
 0x572   :  { %v4129_v0 = vpop.f32.mrf.mxu2 }
 0x573   :  { %v4218_v54 = vpop.f32.mrf.mxu3  ;;  %v4130_v53 = vadd.f32 %v4129_v0, %v4041_v23  ;;  %v3954_v51 = vpop.f32.mrf.mxu0 }
 0x574   :  { %v4043_v44 = vpop.f32.mrf.mxu1  ;;  %v3955_v12 = vadd.f32 %v3954_v51, %v8023_v41 }
 0x575   :  { %v4219_v62 = vadd.f32 %v4218_v54, %v4130_v53 }
 0x576   :  { %v4044_v43 = vadd.f32 %v4043_v44, %v3955_v12  ;;  %3993 = vmatmul.bf16.gmra.mxu0 %v8953_v17 }
 0x577   :  { %4082 = vmatmul.bf16.gmra.mxu1 %v8954_v36  ;;  %v4649_v5 = vmax.f32 %v4219_v62, 0.0  ;;  %4171 = vmatmul.bf16.gmra.mxu2 %v7887_v59 }
 0x578   :  { %4260 = vmatmul.bf16.gmra.mxu3 %v8017_v49 }
 0x579   :  { %v8090_v23 = vpack.c.bf16 %v4649_v5, %v4647_v37  ;;  %v6463_v37 = vld [vmem:[%s8589_s5 + $0x74] sm:$0xf0] }
 0x57a   :  { %v4132_v0 = vpop.f32.mrf.mxu2  ;;  %v6187_v5 = vor.u32 %v6463_v37, %v6186_v28  ;;  %v8956_v28 = vld [vmem:[#allocation20_spill] sm:$0xff]  ;;  %v8957_v37 = vld [vmem:[#allocation19_spill] sm:$0xff] }
 0x57b   :  { %8955 = vst [vmem:[#allocation44_spill] sm:$0xff] %v8090_v23  ;;  %v4221_v54 = vpop.f32.mrf.mxu3  ;;  %v4133_v53 = vadd.f32 %v4132_v0, %v4044_v43  ;;  %v3956_v51 = vpop.f32.mrf.mxu0  ;;  %v6250_v43 = vld [vmem:[%s8589_s5 + $0xf0] sm:$0xf] }
 0x57c   :  { %v4045_v44 = vpop.f32.mrf.mxu1  ;;  %v3957_v12 = vadd.f32 %v3956_v51, %v8023_v41  ;;  %v6251_v22 = vor.u32 %v6479_v46, %v6250_v43  ;;  %4920 = vmatpush.bf16.msra.mxu0 %v6187_v5 }
 0x57d   :  { %v4222_v62 = vadd.f32 %v4221_v54, %v4133_v53 }
 0x57e   :  { %v4046_v50 = vadd.f32 %v4045_v44, %v3957_v12  ;;  %5009 = vmatpush.bf16.msra.mxu1 %v6251_v22 }
 0x57f   :  { %v4651_v23 = vmax.f32 %v4222_v62, 0.0 }
 0x582   :  { %v4134_v15 = vpop.f32.mrf.mxu2 }
 0x583   :  { %v4223_v31 = vpop.f32.mrf.mxu3  ;;  %v4135_v0 = vadd.f32 %v4134_v15, %v4046_v50  ;;  %v3959_v54 = vpop.f32.mrf.mxu0 }
 0x584   :  { %v4048_v53 = vpop.f32.mrf.mxu1  ;;  %v3960_v51 = vadd.f32 %v3959_v54, %v8023_v41 }
 0x585   :  { %v4224_v44 = vadd.f32 %v4223_v31, %v4135_v0 }
 0x586   :  { %v4049_v12 = vadd.f32 %v4048_v53, %v3960_v51  ;;  %3998 = vmatmul.bf16.gmra.mxu0 %v8956_v28 }
 0x587   :  { %4087 = vmatmul.bf16.gmra.mxu1 %v8957_v37  ;;  %v4653_v39 = vmax.f32 %v4224_v44, 0.0  ;;  %4176 = vmatmul.bf16.gmra.mxu2 %v7897_v55 }
 0x588   :  { %4265 = vmatmul.bf16.gmra.mxu3 %v8030_v21 }
 0x589   :  { %v8110_v43 = vpack.c.bf16 %v4653_v39, %v4651_v23 }
 0x58a   :  { %v4137_v50 = vpop.f32.mrf.mxu2 }
 0x58b   :  { %v4226_v5 = vpop.f32.mrf.mxu3  ;;  %v4138_v46 = vadd.f32 %v4137_v50, %v4049_v12  ;;  %v3961_v22 = vpop.f32.mrf.mxu0  ;;  %v6460_v12 = vld [vmem:[%s8589_s5 + $0x64] sm:$0xf]  ;;  %v6180_v50 = vld [vmem:[%s8589_s5 + $0x68] sm:$0xf0] }
 0x58c   :  { %v4050_v15 = vpop.f32.mrf.mxu1  ;;  %v3962_v31 = vadd.f32 %v3961_v22, %v8023_v41 }
 0x58d   :  { %v4227_v0 = vadd.f32 %v4226_v5, %v4138_v46 }
 0x58e   :  { %v4051_v54 = vadd.f32 %v4050_v15, %v3962_v31 }
 0x58f   :  { %v4655_v39 = vmax.f32 %v4227_v0, 0.0 }
 0x592   :  { %v4139_v53 = vpop.f32.mrf.mxu2 }
 0x593   :  { %v4228_v51 = vpop.f32.mrf.mxu3  ;;  %v4140_v37 = vadd.f32 %v4139_v53, %v4051_v54  ;;  %v3964_v62 = vpop.f32.mrf.mxu0  ;;  %v6178_v54 = vld [vmem:[%s8589_s5 + $0x60] sm:$0xf]  ;;  %v6461_v53 = vld [vmem:[%s8589_s5 + $0x64] sm:$0xf0] }
 0x594   :  { %v4053_v44 = vpop.f32.mrf.mxu1  ;;  %v3965_v55 = vadd.f32 %v3964_v62, %v8023_v41  ;;  %v6477_v62 = vld [vmem:[%s8589_s5 + $0xe4] sm:$0xf0] }
 0x595   :  { %v4229_v28 = vadd.f32 %v4228_v51, %v4140_v37  ;;  %v6183_v37 = vor.u32 %v6460_v12, %v6180_v50  ;;  %v6179_v51 = vor.u32 %v6461_v53, %v6178_v54 }
 0x596   :  { %v4054_v21 = vadd.f32 %v4053_v44, %v3965_v55  ;;  %4279 = vmatmul.bf16.vlgmr.msrb.gmra.mxu0 %v8908_v27  ;;  %v6476_v55 = vld [vmem:[%s8589_s5 + $0xe4] sm:$0xf]  ;;  %v6244_v27 = vld [vmem:[%s8589_s5 + $0xe8] sm:$0xf0] }
 0x597   :  { %4368 = vmatmul.bf16.vlgmr.msrb.gmra.mxu1 %v8909_v35  ;;  %v4657_v23 = vmax.f32 %v4229_v28, 0.0  ;;  %4457 = vmatmul.bf16.vlgmr.msrb.gmra.mxu2 %v8910_v16  ;;  %v6247_v35 = vor.u32 %v6476_v55, %v6244_v27 }
 0x598   :  { %4546 = vmatmul.bf16.vlgmr.msrb.gmra.mxu3 %v7905_v2  ;;  %5099 = vmatpush.bf16.msra.mxu2 %v6183_v37 }
 0x599   :  { %v8130_v16 = vpack.c.bf16 %v4657_v23, %v4655_v39  ;;  %5188 = vmatpush.bf16.msra.mxu3 %v6247_v35  ;;  %4921 = vmatpush.bf16.msra.mxu0 %v6179_v51 }
 0x59a   :  { %v4142_v2 = vpop.f32.mrf.mxu2 }
 0x59b   :  { %v4231_v28 = vpop.f32.mrf.mxu3  ;;  %v4143_v5 = vadd.f32 %v4142_v2, %v4054_v21  ;;  %v3966_v46 = vpop.f32.mrf.mxu0  ;;  %v6242_v21 = vld [vmem:[%s8589_s5 + $0xe0] sm:$0xf] }
 0x59c   :  { %v4055_v22 = vpop.f32.mrf.mxu1  ;;  %v3967_v15 = vadd.f32 %v3966_v46, %v8023_v41  ;;  %v6243_v44 = vor.u32 %v6477_v62, %v6242_v21 }
 0x59d   :  { %v4232_v31 = vadd.f32 %v4231_v28, %v4143_v5 }
 0x59e   :  { %v4056_v0 = vadd.f32 %v4055_v22, %v3967_v15  ;;  %5010 = vmatpush.bf16.msra.mxu1 %v6243_v44 }
 0x59f   :  { %v4659_v2 = vmax.f32 %v4232_v31, 0.0 }
 0x5a2   :  { %v4144_v39 = vpop.f32.mrf.mxu2 }
 0x5a3   :  { %v4233_v23 = vpop.f32.mrf.mxu3  ;;  %v4145_v12 = vadd.f32 %v4144_v39, %v4056_v0  ;;  %v3969_v50 = vpop.f32.mrf.mxu0 }
 0x5a4   :  { %v4058_v37 = vpop.f32.mrf.mxu1  ;;  %v3970_v55 = vadd.f32 %v3969_v50, %v8023_v41  ;;  %v6458_v50 = vld [vmem:[%s8589_s5 + $0x54] sm:$0xf] }
 0x5a5   :  { %v4234_v27 = vadd.f32 %v4233_v23, %v4145_v12 }
 0x5a6   :  { %v4059_v35 = vadd.f32 %v4058_v37, %v3970_v55  ;;  %4284 = vmatmul.bf16.gmra.mxu0 %v8912_v57  ;;  %v6172_v37 = vld [vmem:[%s8589_s5 + $0x58] sm:$0xf0] }
 0x5a7   :  { %4373 = vmatmul.bf16.gmra.mxu1 %v8913_v14  ;;  %v4661_v28 = vmax.f32 %v4234_v27, 0.0  ;;  %4462 = vmatmul.bf16.gmra.mxu2 %v8914_v8  ;;  %v6175_v55 = vor.u32 %v6458_v50, %v6172_v37 }
 0x5a8   :  { %4551 = vmatmul.bf16.gmra.mxu3 %v7913_v6 }
 0x5a9   :  { %v8150_v5 = vpack.c.bf16 %v4661_v28, %v4659_v2  ;;  %5100 = vmatpush.bf16.msra.mxu2 %v6175_v55 }
 0x5aa   :  { %v4147_v46 = vpop.f32.mrf.mxu2 }
 0x5ab   :  { %v4236_v22 = vpop.f32.mrf.mxu3  ;;  %v4148_v15 = vadd.f32 %v4147_v46, %v4059_v35  ;;  %v3971_v0 = vpop.f32.mrf.mxu0 }
 0x5ac   :  { %v4060_v54 = vpop.f32.mrf.mxu1  ;;  %v3972_v53 = vadd.f32 %v3971_v0, %v8023_v41 }
 0x5ad   :  { %v4237_v51 = vadd.f32 %v4236_v22, %v4148_v15 }
 0x5ae   :  { %v4061_v21 = vadd.f32 %v4060_v54, %v3972_v53  ;;  %v6170_v54 = vld [vmem:[%s8589_s5 + $0x50] sm:$0xf]  ;;  %v6459_v53 = vld [vmem:[%s8589_s5 + $0x54] sm:$0xf0] }
 0x5af   :  { %v4663_v23 = vmax.f32 %v4237_v51, 0.0  ;;  %v6171_v51 = vor.u32 %v6459_v53, %v6170_v54 }
 0x5b1   :  { %4922 = vmatpush.bf16.msra.mxu0 %v6171_v51 }
 0x5b2   :  { %v4149_v57 = vpop.f32.mrf.mxu2 }
 0x5b3   :  { %v4238_v62 = vpop.f32.mrf.mxu3  ;;  %v4150_v14 = vadd.f32 %v4149_v57, %v4061_v21  ;;  %v3974_v31 = vpop.f32.mrf.mxu0  ;;  %v6234_v21 = vld [vmem:[%s8589_s5 + $0xd0] sm:$0xf]  ;;  %v6475_v57 = vld [vmem:[%s8589_s5 + $0xd4] sm:$0xf0] }
 0x5b4   :  { %v4063_v44 = vpop.f32.mrf.mxu1  ;;  %v3975_v8 = vadd.f32 %v3974_v31, %v8023_v41 }
 0x5b5   :  { %v4239_v39 = vadd.f32 %v4238_v62, %v4150_v14  ;;  %v6235_v62 = vor.u32 %v6475_v57, %v6234_v21  ;;  %v6456_v21 = vld [vmem:[%s8589_s5 + $0x44] sm:$0xf]  ;;  %v6164_v57 = vld [vmem:[%s8589_s5 + $0x48] sm:$0xf0] }
 0x5b6   :  { %v4064_v6 = vadd.f32 %v4063_v44, %v3975_v8  ;;  %4289 = vmatmul.bf16.gmra.mxu0 %v8916_v47  ;;  %v6474_v47 = vld [vmem:[%s8589_s5 + $0xd4] sm:$0xf] }
 0x5b7   :  { %4378 = vmatmul.bf16.gmra.mxu1 %v8917_v26  ;;  %v4665_v12 = vmax.f32 %v4239_v39, 0.0  ;;  %4467 = vmatmul.bf16.gmra.mxu2 %v8918_v18  ;;  %v6236_v26 = vld [vmem:[%s8589_s5 + $0xd8] sm:$0xf0] }
 0x5b8   :  { %4556 = vmatmul.bf16.gmra.mxu3 %v7921_v7  ;;  %v6239_v18 = vor.u32 %v6474_v47, %v6236_v26  ;;  %5011 = vmatpush.bf16.msra.mxu1 %v6235_v62  ;;  %v6167_v62 = vor.u32 %v6456_v21, %v6164_v57 }
 0x5b9   :  { %v8170_v27 = vpack.c.bf16 %v4665_v12, %v4663_v23 }
 0x5ba   :  { %v4152_v7 = vpop.f32.mrf.mxu2  ;;  %5189 = vmatpush.bf16.msra.mxu3 %v6239_v18  ;;  %5101 = vmatpush.bf16.msra.mxu2 %v6167_v62 }
 0x5bb   :  { %v4241_v35 = vpop.f32.mrf.mxu3  ;;  %v4153_v2 = vadd.f32 %v4152_v7, %v4064_v6  ;;  %v3976_v28 = vpop.f32.mrf.mxu0 }
 0x5bc   :  { %v4065_v46 = vpop.f32.mrf.mxu1  ;;  %v3977_v22 = vadd.f32 %v3976_v28, %v8023_v41 }
 0x5bd   :  { %v4242_v15 = vadd.f32 %v4241_v35, %v4153_v2 }
 0x5be   :  { %v4066_v0 = vadd.f32 %v4065_v46, %v3977_v22 }
 0x5bf   :  { %v4667_v50 = vmax.f32 %v4242_v15, 0.0 }
 0x5c2   :  { %v4154_v14 = vpop.f32.mrf.mxu2 }
 0x5c3   :  { %v4243_v31 = vpop.f32.mrf.mxu3  ;;  %v4155_v44 = vadd.f32 %v4154_v14, %v4066_v0  ;;  %v3979_v8 = vpop.f32.mrf.mxu0 }
 0x5c4   :  { %v4068_v39 = vpop.f32.mrf.mxu1  ;;  %v3980_v6 = vadd.f32 %v3979_v8, %v8023_v41 }
 0x5c5   :  { %v4244_v23 = vadd.f32 %v4243_v31, %v4155_v44 }
 0x5c6   :  { %v4069_v12 = vadd.f32 %v4068_v39, %v3980_v6  ;;  %4294 = vmatmul.bf16.gmra.mxu0 %v8920_v38 }
 0x5c7   :  { %4383 = vmatmul.bf16.gmra.mxu1 %v8921_v20  ;;  %v4669_v37 = vmax.f32 %v4244_v23, 0.0  ;;  %4472 = vmatmul.bf16.gmra.mxu2 %v8922_v29 }
 0x5c8   :  { %4561 = vmatmul.bf16.gmra.mxu3 %v7929_v24 }
 0x5c9   :  { %v8190_v55 = vpack.c.bf16 %v4669_v37, %v4667_v50  ;;  %v6162_v50 = vld [vmem:[%s8589_s5 + $0x40] sm:$0xf]  ;;  %v6457_v37 = vld [vmem:[%s8589_s5 + $0x44] sm:$0xf0] }
 0x5ca   :  { %v4157_v47 = vpop.f32.mrf.mxu2 }
 0x5cb   :  { %v4246_v26 = vpop.f32.mrf.mxu3  ;;  %v4158_v18 = vadd.f32 %v4157_v47, %v4069_v12  ;;  %v3981_v7 = vpop.f32.mrf.mxu0  ;;  %v6163_v47 = vor.u32 %v6457_v37, %v6162_v50  ;;  %v6454_v50 = vld [vmem:[%s8589_s5 + $0x34] sm:$0xf]  ;;  %v6156_v37 = vld [vmem:[%s8589_s5 + $0x38] sm:$0xf0] }
 0x5cc   :  { %v4070_v35 = vpop.f32.mrf.mxu1  ;;  %v3982_v2 = vadd.f32 %v3981_v7, %v8023_v41 }
 0x5cd   :  { %v4247_v28 = vadd.f32 %v4246_v26, %v4158_v18  ;;  %v6226_v26 = vld [vmem:[%s8589_s5 + $0xc0] sm:$0xf]  ;;  %v6473_v18 = vld [vmem:[%s8589_s5 + $0xc4] sm:$0xf0]  ;;  %4923 = vmatpush.bf16.msra.mxu0 %v6163_v47  ;;  %v6159_v47 = vor.u32 %v6454_v50, %v6156_v37 }
 0x5ce   :  { %v4071_v46 = vadd.f32 %v4070_v35, %v3982_v2  ;;  %v6227_v7 = vor.u32 %v6473_v18, %v6226_v26  ;;  %v6220_v26 = vld [vmem:[%s8589_s5 + $0xb8] sm:$0xf0] }
 0x5cf   :  { %v4671_v53 = vmax.f32 %v4247_v28, 0.0  ;;  %5102 = vmatpush.bf16.msra.mxu2 %v6159_v47 }
 0x5d0   :  { %5012 = vmatpush.bf16.msra.mxu1 %v6227_v7 }
 0x5d2   :  { %v4159_v38 = vpop.f32.mrf.mxu2 }
 0x5d3   :  { %v4248_v22 = vpop.f32.mrf.mxu3  ;;  %v4160_v20 = vadd.f32 %v4159_v38, %v4071_v46  ;;  %v3984_v15 = vpop.f32.mrf.mxu0 }
 0x5d4   :  { %v4073_v0 = vpop.f32.mrf.mxu1  ;;  %v3985_v29 = vadd.f32 %v3984_v15, %v8023_v41 }
 0x5d5   :  { %v4249_v54 = vadd.f32 %v4248_v22, %v4160_v20 }
 0x5d6   :  { %v4074_v24 = vadd.f32 %v4073_v0, %v3985_v29  ;;  %4299 = vmatmul.bf16.gmra.mxu0 %v8924_v42  ;;  %v6472_v42 = vld [vmem:[%s8589_s5 + $0xc4] sm:$0xf] }
 0x5d7   :  { %4388 = vmatmul.bf16.gmra.mxu1 %v8925_v58  ;;  %v4673_v51 = vmax.f32 %v4249_v54, 0.0  ;;  %4477 = vmatmul.bf16.gmra.mxu2 %v8926_v60  ;;  %v6228_v58 = vld [vmem:[%s8589_s5 + $0xc8] sm:$0xf0] }
 0x5d8   :  { %4566 = vmatmul.bf16.gmra.mxu3 %v7937_v48  ;;  %v6231_v60 = vor.u32 %v6472_v42, %v6228_v58 }
 0x5d9   :  { %v8210_v14 = vpack.c.bf16 %v4673_v51, %v4671_v53 }
 0x5da   :  { %v4162_v48 = vpop.f32.mrf.mxu2  ;;  %5190 = vmatpush.bf16.msra.mxu3 %v6231_v60 }
 0x5db   :  { %v4251_v31 = vpop.f32.mrf.mxu3  ;;  %v4163_v44 = vadd.f32 %v4162_v48, %v4074_v24  ;;  %v3986_v8 = vpop.f32.mrf.mxu0 }
 0x5dc   :  { %v4075_v39 = vpop.f32.mrf.mxu1  ;;  %v3987_v6 = vadd.f32 %v3986_v8, %v8023_v41  ;;  %v8958_v8 = vld [vmem:[#allocation27_spill] sm:$0xff] }
 0x5dd   :  { %v4252_v23 = vadd.f32 %v4251_v31, %v4163_v44 }
 0x5de   :  { %v4076_v12 = vadd.f32 %v4075_v39, %v3987_v6 }
 0x5df   :  { %v4675_v0 = vmax.f32 %v4252_v23, 0.0  ;;  %v8959_v23 = vld [vmem:[#allocation72_spill] sm:$0xff] }
 0x5e2   :  { %v4164_v35 = vpop.f32.mrf.mxu2 }
 0x5e3   :  { %v4253_v2 = vpop.f32.mrf.mxu3  ;;  %v4165_v28 = vadd.f32 %v4164_v35, %v4076_v12  ;;  %v3989_v46 = vpop.f32.mrf.mxu0  ;;  %v8960_v12 = vld [vmem:[#allocation31_spill] sm:$0xff] }
 0x5e4   :  { %v4078_v38 = vpop.f32.mrf.mxu1  ;;  %v3990_v22 = vadd.f32 %v3989_v46, %v8023_v41 }
 0x5e5   :  { %v4254_v20 = vadd.f32 %v4253_v2, %v4165_v28 }
 0x5e6   :  { %v4079_v15 = vadd.f32 %v4078_v38, %v3990_v22  ;;  %4304 = vmatmul.bf16.gmra.mxu0 %v8927_v1 }
 0x5e7   :  { %4393 = vmatmul.bf16.gmra.mxu1 %v8928_v3  ;;  %v4677_v29 = vmax.f32 %v4254_v20, 0.0  ;;  %4482 = vmatmul.bf16.gmra.mxu2 %v7815_v30 }
 0x5e8   :  { %4571 = vmatmul.bf16.gmra.mxu3 %v7945_v52 }
 0x5e9   :  { %v8230_v54 = vpack.c.bf16 %v4677_v29, %v4675_v0  ;;  %v6154_v0 = vld [vmem:[%s8589_s5 + $0x30] sm:$0xf]  ;;  %v6455_v29 = vld [vmem:[%s8589_s5 + $0x34] sm:$0xf0] }
 0x5ea   :  { %v4167_v24 = vpop.f32.mrf.mxu2 }
 0x5eb   :  { %v4256_v53 = vpop.f32.mrf.mxu3  ;;  %v4168_v51 = vadd.f32 %v4167_v24, %v4079_v15  ;;  %v3991_v21 = vpop.f32.mrf.mxu0  ;;  %v6155_v24 = vor.u32 %v6455_v29, %v6154_v0  ;;  %v8966_v0 = vld [vmem:[#allocation33_spill] sm:$0xff]  ;;  %v6452_v29 = vld [vmem:[%s8589_s5 + $0x24] sm:$0xf] }
 0x5ec   :  { %v4080_v57 = vpop.f32.mrf.mxu1  ;;  %v3992_v62 = vadd.f32 %v3991_v21, %v8023_v41 }
 0x5ed   :  { %v4257_v42 = vadd.f32 %v4256_v53, %v4168_v51  ;;  %v6218_v53 = vld [vmem:[%s8589_s5 + $0xb0] sm:$0xf]  ;;  %v6471_v51 = vld [vmem:[%s8589_s5 + $0xb4] sm:$0xf0]  ;;  %4924 = vmatpush.bf16.msra.mxu0 %v6155_v24  ;;  %v6148_v24 = vld [vmem:[%s8589_s5 + $0x28] sm:$0xf0] }
 0x5ee   :  { %v4081_v58 = vadd.f32 %v4080_v57, %v3992_v62  ;;  %v6219_v21 = vor.u32 %v6471_v51, %v6218_v53  ;;  %v6151_v53 = vor.u32 %v6452_v29, %v6148_v24  ;;  %v6468_v51 = vld [vmem:[%s8589_s5 + $0xa4] sm:$0xf] }
 0x5ef   :  { %v4679_v39 = vmax.f32 %v4257_v42, 0.0 }
 0x5f0   :  { %5013 = vmatpush.bf16.msra.mxu1 %v6219_v21  ;;  %v6212_v21 = vld [vmem:[%s8589_s5 + $0xa8] sm:$0xf0]  ;;  %5103 = vmatpush.bf16.msra.mxu2 %v6151_v53 }
 0x5f2   :  { %v4169_v1 = vpop.f32.mrf.mxu2 }
 0x5f3   :  { %v4258_v60 = vpop.f32.mrf.mxu3  ;;  %v4170_v3 = vadd.f32 %v4169_v1, %v4081_v58  ;;  %v3994_v48 = vpop.f32.mrf.mxu0 }
 0x5f4   :  { %v4083_v31 = vpop.f32.mrf.mxu1  ;;  %v3995_v30 = vadd.f32 %v3994_v48, %v8023_v41 }
 0x5f5   :  { %v4259_v44 = vadd.f32 %v4258_v60, %v4170_v3 }
 0x5f6   :  { %v4084_v52 = vadd.f32 %v4083_v31, %v3995_v30  ;;  %4309 = vmatmul.bf16.gmra.mxu0 %v8930_v32  ;;  %v6470_v32 = vld [vmem:[%s8589_s5 + $0xb4] sm:$0xf] }
 0x5f7   :  { %4398 = vmatmul.bf16.gmra.mxu1 %v8958_v8  ;;  %v4681_v6 = vmax.f32 %v4259_v44, 0.0  ;;  %4487 = vmatmul.bf16.gmra.mxu2 %v8959_v23  ;;  %v6223_v18 = vor.u32 %v6470_v32, %v6220_v26  ;;  %v8961_v44 = vld [vmem:[#allocation32_spill] sm:$0xff] }
 0x5f8   :  { %4576 = vmatmul.bf16.gmra.mxu3 %v8960_v12 }
 0x5f9   :  { %v8250_v7 = vpack.c.bf16 %v4681_v6, %v4679_v39  ;;  %5191 = vmatpush.bf16.msra.mxu3 %v6223_v18 }
 0x5fa   :  { %v4172_v35 = vpop.f32.mrf.mxu2 }
 0x5fb   :  { %v4261_v2 = vpop.f32.mrf.mxu3  ;;  %v4173_v28 = vadd.f32 %v4172_v35, %v4084_v52  ;;  %v3996_v46 = vpop.f32.mrf.mxu0 }
 0x5fc   :  { %v4085_v38 = vpop.f32.mrf.mxu1  ;;  %v3997_v22 = vadd.f32 %v3996_v46, %v8023_v41 }
 0x5fd   :  { %v4262_v20 = vadd.f32 %v4261_v2, %v4173_v28 }
 0x5fe   :  { %v4086_v15 = vadd.f32 %v4085_v38, %v3997_v22  ;;  %v8963_v38 = vld [vmem:[#allocation12_spill] sm:$0xff]  ;;  %v8964_v22 = vld [vmem:[#allocation29_spill] sm:$0xff] }
 0x5ff   :  { %v4683_v31 = vmax.f32 %v4262_v20, 0.0 }
 0x602   :  { %v4174_v57 = vpop.f32.mrf.mxu2 }
 0x603   :  { %v4263_v62 = vpop.f32.mrf.mxu3  ;;  %v4175_v42 = vadd.f32 %v4174_v57, %v4086_v15  ;;  %v3999_v58 = vpop.f32.mrf.mxu0  ;;  %v8965_v15 = vld [vmem:[#allocation73_spill] sm:$0xff]  ;;  %v6215_v57 = vor.u32 %v6468_v51, %v6212_v21 }
 0x604   :  { %v4088_v1 = vpop.f32.mrf.mxu1  ;;  %v4000_v60 = vadd.f32 %v3999_v58, %v8023_v41 }
 0x605   :  { %v4264_v3 = vadd.f32 %v4263_v62, %v4175_v42  ;;  %5192 = vmatpush.bf16.msra.mxu3 %v6215_v57 }
 0x606   :  { %v4089_v48 = vadd.f32 %v4088_v1, %v4000_v60  ;;  %4314 = vmatmul.bf16.gmra.mxu0 %v8932_v63  ;;  %v8962_v63 = vld [vmem:[#allocation37_spill] sm:$0xff] }
 0x607   :  { %4403 = vmatmul.bf16.gmra.mxu1 %v8933_v56  ;;  %v4685_v30 = vmax.f32 %v4264_v3, 0.0  ;;  %4492 = vmatmul.bf16.gmra.mxu2 %v7831_v10  ;;  %v8274_v32 = vperm.slane %v8962_v63, 1 }
 0x608   :  { %4581 = vmatmul.bf16.gmra.mxu3 %v8961_v44  ;;  %v6146_v44 = vld [vmem:[%s8589_s5 + $0x20] sm:$0xf] }
 0x609   :  { %v8270_v52 = vpack.c.bf16 %v4685_v30, %v4683_v31 }
 0x60a   :  { %v4177_v8 = vpop.f32.mrf.mxu2 }
 0x60b   :  { %v4266_v39 = vpop.f32.mrf.mxu3  ;;  %v4178_v6 = vadd.f32 %v4177_v8, %v4089_v48  ;;  %v4001_v23 = vpop.f32.mrf.mxu0  ;;  %v6453_v8 = vld [vmem:[%s8589_s5 + $0x24] sm:$0xf0] }
 0x60c   :  { %v4090_v12 = vpop.f32.mrf.mxu1  ;;  %v4002_v50 = vadd.f32 %v4001_v23, %v8023_v41  ;;  %v6469_v23 = vld [vmem:[%s8589_s5 + $0xa4] sm:$0xf0] }
 0x60d   :  { %v4267_v37 = vadd.f32 %v4266_v39, %v4178_v6  ;;  %v6147_v39 = vor.u32 %v6453_v8, %v6146_v44  ;;  %v6210_v6 = vld [vmem:[%s8589_s5 + $0xa0] sm:$0xf]  ;;  %v6140_v44 = vld [vmem:[%s8589_s5 + $0x18] sm:$0xf0] }
 0x60e   :  { %v4091_v47 = vadd.f32 %v4090_v12, %v4002_v50  ;;  %v6211_v12 = vor.u32 %v6469_v23, %v6210_v6  ;;  %v6204_v6 = vld [vmem:[%s8589_s5 + $0x98] sm:$0xf0] }
 0x60f   :  { %v4687_v20 = vmax.f32 %v4267_v37, 0.0  ;;  %4925 = vmatpush.bf16.msra.mxu0 %v6147_v39  ;;  %v6466_v39 = vld [vmem:[%s8589_s5 + $0x94] sm:$0xf] }
 0x610   :  { %5014 = vmatpush.bf16.msra.mxu1 %v6211_v12  ;;  %v6207_v23 = vor.u32 %v6466_v39, %v6204_v6  ;;  %v8972_v6 = vld [vmem:[#allocation16_spill] sm:$0xff] }
 0x612   :  { %v4179_v56 = vpop.f32.mrf.mxu2  ;;  %5193 = vmatpush.bf16.msra.mxu3 %v6207_v23  ;;  %v8973_v23 = vld [vmem:[#allocation64_spill] sm:$0xff] }
 0x613   :  { %v4268_v26 = vpop.f32.mrf.mxu3  ;;  %v4180_v18 = vadd.f32 %v4179_v56, %v4091_v47  ;;  %v4280_v10 = vpop.f32.mrf.mxu0 }
 0x614   :  { %v4369_v35 = vpop.f32.mrf.mxu1  ;;  %v4281_v2 = vadd.f32 %v4280_v10, %v8274_v32 }
 0x615   :  { %v4269_v28 = vadd.f32 %v4268_v26, %v4180_v18 }
 0x616   :  { %v4370_v46 = vadd.f32 %v4369_v35, %v4281_v2  ;;  %4319 = vmatmul.bf16.gmra.mxu0 %v8963_v38 }
 0x617   :  { %4408 = vmatmul.bf16.gmra.mxu1 %v8964_v22  ;;  %v4689_v41 = vmax.f32 %v4269_v28, 0.0  ;;  %4497 = vmatmul.bf16.gmra.mxu2 %v8965_v15  ;;  %v8967_v28 = vld [vmem:[#allocation34_spill] sm:$0xff] }
 0x618   :  { %4586 = vmatmul.bf16.gmra.mxu3 %v8966_v0 }
 0x619   :  { %v8293_v62 = vpack.c.bf16 %v4689_v41, %v4687_v20 }
 0x61a   :  { %v4458_v42 = vpop.f32.mrf.mxu2 }
 0x61b   :  { %v4547_v58 = vpop.f32.mrf.mxu3  ;;  %v4459_v1 = vadd.f32 %v4458_v42, %v4370_v46  ;;  %v4282_v60 = vpop.f32.mrf.mxu0 }
 0x61c   :  { %v4371_v3 = vpop.f32.mrf.mxu1  ;;  %v4283_v48 = vadd.f32 %v4282_v60, %v8274_v32 }
 0x61d   :  { %v4548_v31 = vadd.f32 %v4547_v58, %v4459_v1  ;;  %v8968_v58 = vld [vmem:[#allocation14_spill] sm:$0xff] }
 0x61e   :  { %v4372_v30 = vadd.f32 %v4371_v3, %v4283_v48  ;;  %v8969_v1 = vld [vmem:[#allocation62_spill] sm:$0xff] }
 0x61f   :  { %v4628_v35 = vmax.f32 %v4548_v31, 0.0  ;;  %v8970_v48 = vld [vmem:[#allocation74_spill] sm:$0xff]  ;;  %v8971_v31 = vld [vmem:[#allocation35_spill] sm:$0xff] }
 0x622   :  { %v4460_v50 = vpop.f32.mrf.mxu2 }
 0x623   :  { %v4549_v37 = vpop.f32.mrf.mxu3  ;;  %v4461_v47 = vadd.f32 %v4460_v50, %v4372_v30  ;;  %v4285_v63 = vpop.f32.mrf.mxu0  ;;  %v6450_v30 = vld [vmem:[%s8589_s5 + $0x14] sm:$0xf] }
 0x624   :  { %v4374_v56 = vpop.f32.mrf.mxu1  ;;  %v4286_v26 = vadd.f32 %v4285_v63, %v8274_v32  ;;  %v6143_v8 = vor.u32 %v6450_v30, %v6140_v44 }
 0x625   :  { %v4550_v18 = vadd.f32 %v4549_v37, %v4461_v47 }
 0x626   :  { %v4375_v10 = vadd.f32 %v4374_v56, %v4286_v26  ;;  %4324 = vmatmul.bf16.gmra.mxu0 %v8938_v33  ;;  %5104 = vmatpush.bf16.msra.mxu2 %v6143_v8 }
 0x627   :  { %4413 = vmatmul.bf16.gmra.mxu1 %v8939_v25  ;;  %v4630_v2 = vmax.f32 %v4550_v18, 0.0  ;;  %4502 = vmatmul.bf16.gmra.mxu2 %v7847_v13 }
 0x628   :  { %4591 = vmatmul.bf16.gmra.mxu3 %v8967_v28 }
 0x629   :  { %v8313_v46 = vpack.c.bf16 %v4630_v2, %v4628_v35  ;;  %v6138_v35 = vld [vmem:[%s8589_s5 + $0x10] sm:$0xf]  ;;  %v6451_v2 = vld [vmem:[%s8589_s5 + $0x14] sm:$0xf0] }
 0x62a   :  { %v4463_v38 = vpop.f32.mrf.mxu2  ;;  %v6139_v28 = vor.u32 %v6451_v2, %v6138_v35  ;;  %v6196_v35 = vld [vmem:[%s8589_s5 + $0x88] sm:$0xf0] }
 0x62b   :  { %v4552_v22 = vpop.f32.mrf.mxu3  ;;  %v4464_v20 = vadd.f32 %v4463_v38, %v4375_v10  ;;  %v4287_v41 = vpop.f32.mrf.mxu0  ;;  %v6202_v38 = vld [vmem:[%s8589_s5 + $0x90] sm:$0xf] }
 0x62c   :  { %v4376_v15 = vpop.f32.mrf.mxu1  ;;  %v4288_v0 = vadd.f32 %v4287_v41, %v8274_v32  ;;  %4926 = vmatpush.bf16.msra.mxu0 %v6139_v28 }
 0x62d   :  { %v4553_v29 = vadd.f32 %v4552_v22, %v4464_v20  ;;  %v6467_v22 = vld [vmem:[%s8589_s5 + $0x94] sm:$0xf0] }
 0x62e   :  { %v4377_v24 = vadd.f32 %v4376_v15, %v4288_v0  ;;  %v6203_v20 = vor.u32 %v6467_v22, %v6202_v38 }
 0x62f   :  { %v4632_v60 = vmax.f32 %v4553_v29, 0.0 }
 0x630   :  { %5015 = vmatpush.bf16.msra.mxu1 %v6203_v20 }
 0x632   :  { %v4465_v33 = vpop.f32.mrf.mxu2 }
 0x633   :  { %v4554_v53 = vpop.f32.mrf.mxu3  ;;  %v4466_v25 = vadd.f32 %v4465_v33, %v4377_v24  ;;  %v4290_v51 = vpop.f32.mrf.mxu0 }
 0x634   :  { %v4379_v21 = vpop.f32.mrf.mxu1  ;;  %v4291_v13 = vadd.f32 %v4290_v51, %v8274_v32 }
 0x635   :  { %v4555_v57 = vadd.f32 %v4554_v53, %v4466_v25 }
 0x636   :  { %v4380_v42 = vadd.f32 %v4379_v21, %v4291_v13  ;;  %4329 = vmatmul.bf16.gmra.mxu0 %v8968_v58 }
 0x637   :  { %4418 = vmatmul.bf16.gmra.mxu1 %v8969_v1  ;;  %v4634_v3 = vmax.f32 %v4555_v57, 0.0  ;;  %4507 = vmatmul.bf16.gmra.mxu2 %v8970_v48 }
 0x638   :  { %4596 = vmatmul.bf16.gmra.mxu3 %v8971_v31 }
 0x639   :  { %v8333_v12 = vpack.c.bf16 %v4634_v3, %v4632_v60 }
 0x63a   :  { %v4468_v50 = vpop.f32.mrf.mxu2 }
 0x63b   :  { %v4557_v37 = vpop.f32.mrf.mxu3  ;;  %v4469_v47 = vadd.f32 %v4468_v50, %v4380_v42  ;;  %v4292_v63 = vpop.f32.mrf.mxu0 }
 0x63c   :  { %v4381_v56 = vpop.f32.mrf.mxu1  ;;  %v4293_v26 = vadd.f32 %v4292_v63, %v8274_v32  ;;  %v8975_v63 = vld [vmem:[#allocation36_spill] sm:$0xff] }
 0x63d   :  { %v4558_v18 = vadd.f32 %v4557_v37, %v4469_v47  ;;  %v8974_v47 = vld [vmem:[#allocation75_spill] sm:$0xff] }
 0x63e   :  { %v4382_v10 = vadd.f32 %v4381_v56, %v4293_v26  ;;  %v6448_v56 = vld [vmem:[%s8589_s5 + $0x4] sm:$0xf]  ;;  %v6132_v26 = vld [vmem:[%s8589_s5 + $0x8] sm:$0xf0] }
 0x63f   :  { %v4636_v51 = vmax.f32 %v4558_v18, 0.0  ;;  %v6135_v18 = vor.u32 %v6448_v56, %v6132_v26 }
 0x641   :  { %5105 = vmatpush.bf16.msra.mxu2 %v6135_v18 }
 0x642   :  { %v4470_v41 = vpop.f32.mrf.mxu2 }
 0x643   :  { %v4559_v15 = vpop.f32.mrf.mxu3  ;;  %v4471_v0 = vadd.f32 %v4470_v41, %v4382_v10  ;;  %v4295_v29 = vpop.f32.mrf.mxu0  ;;  %v6464_v10 = vld [vmem:[%s8589_s5 + $0x84] sm:$0xf] }
 0x644   :  { %v4384_v24 = vpop.f32.mrf.mxu1  ;;  %v4296_v33 = vadd.f32 %v4295_v29, %v8274_v32  ;;  %v6199_v2 = vor.u32 %v6464_v10, %v6196_v35 }
 0x645   :  { %v4560_v53 = vadd.f32 %v4559_v15, %v4471_v0 }
 0x646   :  { %v4385_v25 = vadd.f32 %v4384_v24, %v4296_v33  ;;  %4334 = vmatmul.bf16.gmra.mxu0 %v8944_v61  ;;  %5194 = vmatpush.bf16.msra.mxu3 %v6199_v2  ;;  %v6130_v33 = vld [vmem:[%s8589_s5] sm:$0xf] }
 0x647   :  { %4423 = vmatmul.bf16.gmra.mxu1 %v8945_v4  ;;  %v4638_v21 = vmax.f32 %v4560_v53, 0.0  ;;  %4512 = vmatmul.bf16.gmra.mxu2 %v7863_v40  ;;  %v6449_v53 = vld [vmem:[%s8589_s5 + $0x4] sm:$0xf0] }
 0x648   :  { %4601 = vmatmul.bf16.gmra.mxu3 %v7993_v9 }
 0x649   :  { %v8353_v13 = vpack.c.bf16 %v4638_v21, %v4636_v51  ;;  %v6194_v51 = vld [vmem:[%s8589_s5 + $0x80] sm:$0xf]  ;;  %v6465_v21 = vld [vmem:[%s8589_s5 + $0x84] sm:$0xf0]  ;;  %s6641_s5 = smov [#allocation8]  }
 0x64a   :  { %v4473_v57 = vpop.f32.mrf.mxu2  ;;  %s5344_s21 = sshll.u32 %s6641_s5, 4  ;;  %s5345_s21 = int_to_ptr.vmem [resolvable:$true] %s5344_s21 }
 0x64b   :  { %v4562_v42 = vpop.f32.mrf.mxu3  ;;  %v4474_v58 = vadd.f32 %v4473_v57, %v4385_v25  ;;  %v4297_v1 = vpop.f32.mrf.mxu0  ;;  %v6131_v25 = vor.u32 %v6449_v53, %v6130_v33  ;;  %v6195_v57 = vor.u32 %v6465_v21, %v6194_v51  ;;  %v8976_v51 = vld [vmem:[#allocation20_spill] sm:$0xff]  ;;  %v8977_v21 = vld [vmem:[#allocation19_spill] sm:$0xff] }
 0x64c   :  { %v4386_v60 = vpop.f32.mrf.mxu1  ;;  %v4298_v3 = vadd.f32 %v4297_v1, %v8274_v32 }
 0x64d   :  { %v4563_v48 = vadd.f32 %v4562_v42, %v4474_v58  ;;  %4927 = vmatpush.bf16.msra.mxu0 %v6131_v25  ;;  %5016 = vmatpush.bf16.msra.mxu1 %v6195_v57 }
 0x64e   :  { %v4387_v31 = vadd.f32 %v4386_v60, %v4298_v3 }
 0x64f   :  { %v4640_v50 = vmax.f32 %v4563_v48, 0.0 }
 0x652   :  { %v4475_v61 = vpop.f32.mrf.mxu2 }
 0x653   :  { %v4564_v30 = vpop.f32.mrf.mxu3  ;;  %v4476_v4 = vadd.f32 %v4475_v61, %v4387_v31  ;;  %v4300_v44 = vpop.f32.mrf.mxu0 }
 0x654   :  { %v4389_v8 = vpop.f32.mrf.mxu1  ;;  %v4301_v40 = vadd.f32 %v4300_v44, %v8274_v32 }
 0x655   :  { %v4565_v39 = vadd.f32 %v4564_v30, %v4476_v4 }
 0x656   :  { %v4390_v9 = vadd.f32 %v4389_v8, %v4301_v40  ;;  %4339 = vmatmul.bf16.gmra.mxu0 %v8972_v6 }
 0x657   :  { %4428 = vmatmul.bf16.gmra.mxu1 %v8973_v23  ;;  %v4642_v37 = vmax.f32 %v4565_v39, 0.0  ;;  %4517 = vmatmul.bf16.gmra.mxu2 %v8974_v47 }
 0x658   :  { %4606 = vmatmul.bf16.gmra.mxu3 %v8975_v63 }
 0x659   :  { %v8373_v28 = vpack.c.bf16 %v4642_v37, %v4640_v50 }
 0x65a   :  { %v4478_v38 = vpop.f32.mrf.mxu2 }
 0x65b   :  { %v4567_v22 = vpop.f32.mrf.mxu3  ;;  %v4479_v20 = vadd.f32 %v4478_v38, %v4390_v9  ;;  %v4302_v41 = vpop.f32.mrf.mxu0 }
 0x65c   :  { %v4391_v15 = vpop.f32.mrf.mxu1  ;;  %v4303_v0 = vadd.f32 %v4302_v41, %v8274_v32 }
 0x65d   :  { %v4568_v29 = vadd.f32 %v4567_v22, %v4479_v20 }
 0x65e   :  { %v4392_v24 = vadd.f32 %v4391_v15, %v4303_v0 }
 0x65f   :  { %v4644_v30 = vmax.f32 %v4568_v29, 0.0 }
 0x662   :  { %v4480_v42 = vpop.f32.mrf.mxu2 }
 0x663   :  { %v4569_v58 = vpop.f32.mrf.mxu3  ;;  %v4481_v1 = vadd.f32 %v4480_v42, %v4392_v24  ;;  %v4305_v60 = vpop.f32.mrf.mxu0 }
 0x664   :  { %v4394_v3 = vpop.f32.mrf.mxu1  ;;  %v4306_v48 = vadd.f32 %v4305_v60, %v8274_v32 }
 0x665   :  { %v4570_v31 = vadd.f32 %v4569_v58, %v4481_v1  ;;  %v8978_v58 = vld [vmem:[#allocation30_spill] sm:$0xff] }
 0x666   :  { %v4395_v61 = vadd.f32 %v4394_v3, %v4306_v48  ;;  %4344 = vmatmul.bf16.gmra.mxu0 %v8950_v11  ;;  %v8979_v1 = vld [vmem:[#allocation38_spill] sm:$0xff] }
 0x667   :  { %4433 = vmatmul.bf16.gmra.mxu1 %v8951_v34  ;;  %v4646_v4 = vmax.f32 %v4570_v31, 0.0  ;;  %4522 = vmatmul.bf16.gmra.mxu2 %v7879_v19 }
 0x668   :  { %4611 = vmatmul.bf16.gmra.mxu3 %v8009_v45 }
 0x669   :  { %v8393_v44 = vpack.c.bf16 %v4646_v4, %v4644_v30 }
 0x66a   :  { %v4483_v8 = vpop.f32.mrf.mxu2 }
 0x66b   :  { %v4572_v40 = vpop.f32.mrf.mxu3  ;;  %v4484_v39 = vadd.f32 %v4483_v8, %v4395_v61  ;;  %v4307_v9 = vpop.f32.mrf.mxu0 }
 0x66c   :  { %v4396_v6 = vpop.f32.mrf.mxu1  ;;  %v4308_v23 = vadd.f32 %v4307_v9, %v8274_v32 }
 0x66d   :  { %v4573_v50 = vadd.f32 %v4572_v40, %v4484_v39 }
 0x66e   :  { %v4397_v37 = vadd.f32 %v4396_v6, %v4308_v23 }
 0x66f   :  { %v4648_v18 = vmax.f32 %v4573_v50, 0.0 }
 0x672   :  { %v4485_v11 = vpop.f32.mrf.mxu2 }
 0x673   :  { %v4574_v47 = vpop.f32.mrf.mxu3  ;;  %v4486_v34 = vadd.f32 %v4485_v11, %v4397_v37  ;;  %v4310_v63 = vpop.f32.mrf.mxu0 }
 0x674   :  { %v4399_v56 = vpop.f32.mrf.mxu1  ;;  %v4311_v19 = vadd.f32 %v4310_v63, %v8274_v32 }
 0x675   :  { %v4575_v26 = vadd.f32 %v4574_v47, %v4486_v34  ;;  %v8980_v34 = vld [vmem:[#allocation39_spill] sm:$0xff] }
 0x676   :  { %v4400_v45 = vadd.f32 %v4399_v56, %v4311_v19  ;;  %4349 = vmatmul.bf16.gmra.mxu0 %v8953_v17 }
 0x677   :  { %4438 = vmatmul.bf16.gmra.mxu1 %v8954_v36  ;;  %v4650_v10 = vmax.f32 %v4575_v26, 0.0  ;;  %4527 = vmatmul.bf16.gmra.mxu2 %v7887_v59 }
 0x678   :  { %4616 = vmatmul.bf16.gmra.mxu3 %v8017_v49 }
 0x679   :  { %v8401_v35 = vpack.c.bf16 %v4650_v10, %v4648_v18 }
 0x67a   :  { %v4488_v2 = vpop.f32.mrf.mxu2 }
 0x67b   :  { %v4577_v38 = vpop.f32.mrf.mxu3  ;;  %v4489_v22 = vadd.f32 %v4488_v2, %v4400_v45  ;;  %v4312_v20 = vpop.f32.mrf.mxu0 }
 0x67c   :  { %v4401_v41 = vpop.f32.mrf.mxu1  ;;  %v4313_v15 = vadd.f32 %v4312_v20, %v8274_v32 }
 0x67d   :  { %v4578_v0 = vadd.f32 %v4577_v38, %v4489_v22 }
 0x67e   :  { %v4402_v29 = vadd.f32 %v4401_v41, %v4313_v15 }
 0x67f   :  { %v4652_v57 = vmax.f32 %v4578_v0, 0.0 }
 0x682   :  { %v4490_v17 = vpop.f32.mrf.mxu2 }
 0x683   :  { %v4579_v24 = vpop.f32.mrf.mxu3  ;;  %v4491_v36 = vadd.f32 %v4490_v17, %v4402_v29  ;;  %v4315_v33 = vpop.f32.mrf.mxu0 }
 0x684   :  { %v4404_v53 = vpop.f32.mrf.mxu1  ;;  %v4316_v59 = vadd.f32 %v4315_v33, %v8274_v32  ;;  %v8981_v33 = vld [vmem:[#allocation40_spill] sm:$0xff] }
 0x685   :  { %v4580_v25 = vadd.f32 %v4579_v24, %v4491_v36 }
 0x686   :  { %v4405_v49 = vadd.f32 %v4404_v53, %v4316_v59  ;;  %4354 = vmatmul.bf16.gmra.mxu0 %v8976_v51 }
 0x687   :  { %4443 = vmatmul.bf16.gmra.mxu1 %v8977_v21  ;;  %v4654_v42 = vmax.f32 %v4580_v25, 0.0  ;;  %4532 = vmatmul.bf16.gmra.mxu2 %v8978_v58 }
 0x688   :  { %4621 = vmatmul.bf16.gmra.mxu3 %v8979_v1 }
 0x689   :  { %v8409_v60 = vpack.c.bf16 %v4654_v42, %v4652_v57 }
 0x68a   :  { %v4493_v3 = vpop.f32.mrf.mxu2 }
 0x68b   :  { %v4582_v48 = vpop.f32.mrf.mxu3  ;;  %v4494_v31 = vadd.f32 %v4493_v3, %v4405_v49  ;;  %v4317_v61 = vpop.f32.mrf.mxu0 }
 0x68c   :  { %v4406_v30 = vpop.f32.mrf.mxu1  ;;  %v4318_v4 = vadd.f32 %v4317_v61, %v8274_v32 }
 0x68d   :  { %v4583_v8 = vadd.f32 %v4582_v48, %v4494_v31 }
 0x68e   :  { %v4407_v40 = vadd.f32 %v4406_v30, %v4318_v4 }
 0x68f   :  { %v4656_v63 = vmax.f32 %v4583_v8, 0.0 }
 0x692   :  { %v4495_v39 = vpop.f32.mrf.mxu2 }
 0x693   :  { %v4584_v9 = vpop.f32.mrf.mxu3  ;;  %v4496_v6 = vadd.f32 %v4495_v39, %v4407_v40  ;;  %v4320_v23 = vpop.f32.mrf.mxu0  ;;  %v8982_v39 = vld [vmem:[#allocation41_spill] sm:$0xff] }
 0x694   :  { %v4409_v50 = vpop.f32.mrf.mxu1  ;;  %v4321_v37 = vadd.f32 %v4320_v23, %v8274_v32 }
 0x695   :  { %v4585_v11 = vadd.f32 %v4584_v9, %v4496_v6 }
 0x696   :  { %v4410_v47 = vadd.f32 %v4409_v50, %v4321_v37  ;;  %4928 = vmatmul.bf16.vlgmr.msra.gmra.mxu0 %v8980_v34 }
 0x697   :  { %5017 = vmatmul.bf16.vlgmr.msra.gmra.mxu1 %v8313_v46  ;;  %v4658_v56 = vmax.f32 %v4585_v11, 0.0  ;;  %5106 = vmatmul.bf16.vlgmr.msra.gmra.mxu2 %v8980_v34 }
 0x698   :  { %5195 = vmatmul.bf16.vlgmr.msra.gmra.mxu3 %v8313_v46 }
 0x699   :  { %v8417_v19 = vpack.c.bf16 %v4658_v56, %v4656_v63 }
 0x69a   :  { %v4498_v26 = vpop.f32.mrf.mxu2 }
 0x69b   :  { %v4587_v45 = vpop.f32.mrf.mxu3  ;;  %v4499_v18 = vadd.f32 %v4498_v26, %v4410_v47  ;;  %v4322_v10 = vpop.f32.mrf.mxu0 }
 0x69c   :  { %v4411_v2 = vpop.f32.mrf.mxu1  ;;  %v4323_v38 = vadd.f32 %v4322_v10, %v8274_v32 }
 0x69d   :  { %v4588_v22 = vadd.f32 %v4587_v45, %v4499_v18 }
 0x69e   :  { %v4412_v20 = vadd.f32 %v4411_v2, %v4323_v38 }
 0x69f   :  { %v4660_v53 = vmax.f32 %v4588_v22, 0.0 }
 0x6a2   :  { %v4500_v41 = vpop.f32.mrf.mxu2 }
 0x6a3   :  { %v4589_v15 = vpop.f32.mrf.mxu3  ;;  %v4501_v0 = vadd.f32 %v4500_v41, %v4412_v20  ;;  %v4325_v29 = vpop.f32.mrf.mxu0  ;;  %v8983_v41 = vld [vmem:[#allocation42_spill] sm:$0xff] }
 0x6a4   :  { %v4414_v17 = vpop.f32.mrf.mxu1  ;;  %v4326_v24 = vadd.f32 %v4325_v29, %v8274_v32 }
 0x6a5   :  { %v4590_v36 = vadd.f32 %v4589_v15, %v4501_v0 }
 0x6a6   :  { %v4415_v46 = vadd.f32 %v4414_v17, %v4326_v24  ;;  %4933 = vmatmul.bf16.gmra.mxu0 %v8981_v33 }
 0x6a7   :  { %5022 = vmatmul.bf16.gmra.mxu1 %v8333_v12  ;;  %v4662_v59 = vmax.f32 %v4590_v36, 0.0  ;;  %5111 = vmatmul.bf16.gmra.mxu2 %v8981_v33 }
 0x6a8   :  { %5200 = vmatmul.bf16.gmra.mxu3 %v8333_v12 }
 0x6a9   :  { %v8425_v25 = vpack.c.bf16 %v4662_v59, %v4660_v53 }
 0x6aa   :  { %v4503_v49 = vpop.f32.mrf.mxu2 }
 0x6ab   :  { %v4592_v51 = vpop.f32.mrf.mxu3  ;;  %v4504_v21 = vadd.f32 %v4503_v49, %v4415_v46  ;;  %v4327_v57 = vpop.f32.mrf.mxu0 }
 0x6ac   :  { %v4416_v42 = vpop.f32.mrf.mxu1  ;;  %v4328_v58 = vadd.f32 %v4327_v57, %v8274_v32 }
 0x6ad   :  { %v4593_v1 = vadd.f32 %v4592_v51, %v4504_v21 }
 0x6ae   :  { %v4417_v3 = vadd.f32 %v4416_v42, %v4328_v58 }
 0x6af   :  { %v4664_v9 = vmax.f32 %v4593_v1, 0.0 }
 0x6b2   :  { %v4505_v48 = vpop.f32.mrf.mxu2 }
 0x6b3   :  { %v4594_v31 = vpop.f32.mrf.mxu3  ;;  %v4506_v61 = vadd.f32 %v4505_v48, %v4417_v3  ;;  %v4330_v30 = vpop.f32.mrf.mxu0  ;;  %v8984_v48 = vld [vmem:[#allocation43_spill] sm:$0xff] }
 0x6b4   :  { %v4419_v4 = vpop.f32.mrf.mxu1  ;;  %v4331_v8 = vadd.f32 %v4330_v30, %v8274_v32 }
 0x6b5   :  { %v4595_v40 = vadd.f32 %v4594_v31, %v4506_v61 }
 0x6b6   :  { %v4420_v12 = vadd.f32 %v4419_v4, %v4331_v8  ;;  %4938 = vmatmul.bf16.gmra.mxu0 %v8982_v39 }
 0x6b7   :  { %5027 = vmatmul.bf16.gmra.mxu1 %v8353_v13  ;;  %v4666_v6 = vmax.f32 %v4595_v40, 0.0  ;;  %5116 = vmatmul.bf16.gmra.mxu2 %v8982_v39 }
 0x6b8   :  { %5205 = vmatmul.bf16.gmra.mxu3 %v8353_v13 }
 0x6b9   :  { %v8433_v23 = vpack.c.bf16 %v4666_v6, %v4664_v9 }
 0x6ba   :  { %v4508_v50 = vpop.f32.mrf.mxu2 }
 0x6bb   :  { %v4597_v37 = vpop.f32.mrf.mxu3  ;;  %v4509_v11 = vadd.f32 %v4508_v50, %v4420_v12  ;;  %v4332_v47 = vpop.f32.mrf.mxu0 }
 0x6bc   :  { %v4421_v34 = vpop.f32.mrf.mxu1  ;;  %v4333_v63 = vadd.f32 %v4332_v47, %v8274_v32 }
 0x6bd   :  { %v4598_v56 = vadd.f32 %v4597_v37, %v4509_v11 }
 0x6be   :  { %v4422_v26 = vadd.f32 %v4421_v34, %v4333_v63 }
 0x6bf   :  { %v4668_v15 = vmax.f32 %v4598_v56, 0.0 }
 0x6c2   :  { %v4510_v45 = vpop.f32.mrf.mxu2 }
 0x6c3   :  { %v4599_v18 = vpop.f32.mrf.mxu3  ;;  %v4511_v10 = vadd.f32 %v4510_v45, %v4422_v26  ;;  %v4335_v2 = vpop.f32.mrf.mxu0  ;;  %v8985_v45 = vld [vmem:[#allocation44_spill] sm:$0xff] }
 0x6c4   :  { %v4424_v38 = vpop.f32.mrf.mxu1  ;;  %v4336_v22 = vadd.f32 %v4335_v2, %v8274_v32 }
 0x6c5   :  { %v4600_v20 = vadd.f32 %v4599_v18, %v4511_v10 }
 0x6c6   :  { %v4425_v13 = vadd.f32 %v4424_v38, %v4336_v22  ;;  %4943 = vmatmul.bf16.gmra.mxu0 %v8983_v41 }
 0x6c7   :  { %5032 = vmatmul.bf16.gmra.mxu1 %v8373_v28  ;;  %v4670_v0 = vmax.f32 %v4600_v20, 0.0  ;;  %5121 = vmatmul.bf16.gmra.mxu2 %v8983_v41 }
 0x6c8   :  { %5210 = vmatmul.bf16.gmra.mxu3 %v8373_v28 }
 0x6c9   :  { %v8441_v29 = vpack.c.bf16 %v4670_v0, %v4668_v15 }
 0x6ca   :  { %v4513_v17 = vpop.f32.mrf.mxu2 }
 0x6cb   :  { %v4602_v24 = vpop.f32.mrf.mxu3  ;;  %v4514_v36 = vadd.f32 %v4513_v17, %v4425_v13  ;;  %v4337_v46 = vpop.f32.mrf.mxu0 }
 0x6cc   :  { %v4426_v33 = vpop.f32.mrf.mxu1  ;;  %v4338_v53 = vadd.f32 %v4337_v46, %v8274_v32 }
 0x6cd   :  { %v4603_v59 = vadd.f32 %v4602_v24, %v4514_v36 }
 0x6ce   :  { %v4427_v49 = vadd.f32 %v4426_v33, %v4338_v53 }
 0x6cf   :  { %v4672_v31 = vmax.f32 %v4603_v59, 0.0 }
 0x6d2   :  { %v4515_v51 = vpop.f32.mrf.mxu2 }
 0x6d3   :  { %v4604_v21 = vpop.f32.mrf.mxu3  ;;  %v4516_v57 = vadd.f32 %v4515_v51, %v4427_v49  ;;  %v4340_v42 = vpop.f32.mrf.mxu0 }
 0x6d4   :  { %v4429_v58 = vpop.f32.mrf.mxu1  ;;  %v4341_v1 = vadd.f32 %v4340_v42, %v8274_v32 }
 0x6d5   :  { %v4605_v3 = vadd.f32 %v4604_v21, %v4516_v57 }
 0x6d6   :  { %v4430_v28 = vadd.f32 %v4429_v58, %v4341_v1  ;;  %4948 = vmatmul.bf16.gmra.mxu0 %v8984_v48 }
 0x6d7   :  { %5037 = vmatmul.bf16.gmra.mxu1 %v8393_v44  ;;  %v4674_v61 = vmax.f32 %v4605_v3, 0.0  ;;  %5126 = vmatmul.bf16.gmra.mxu2 %v8984_v48 }
 0x6d8   :  { %5215 = vmatmul.bf16.gmra.mxu3 %v8393_v44 }
 0x6d9   :  { %v8449_v30 = vpack.c.bf16 %v4674_v61, %v4672_v31 }
 0x6da   :  { %v4518_v4 = vpop.f32.mrf.mxu2 }
 0x6db   :  { %v4607_v8 = vpop.f32.mrf.mxu3  ;;  %v4519_v40 = vadd.f32 %v4518_v4, %v4430_v28  ;;  %v4342_v12 = vpop.f32.mrf.mxu0 }
 0x6dc   :  { %v4431_v39 = vpop.f32.mrf.mxu1  ;;  %v4343_v9 = vadd.f32 %v4342_v12, %v8274_v32 }
 0x6dd   :  { %v4608_v6 = vadd.f32 %v4607_v8, %v4519_v40 }
 0x6de   :  { %v4432_v50 = vadd.f32 %v4431_v39, %v4343_v9 }
 0x6df   :  { %v4676_v18 = vmax.f32 %v4608_v6, 0.0 }
 0x6e2   :  { %v4520_v37 = vpop.f32.mrf.mxu2 }
 0x6e3   :  { %v4609_v11 = vpop.f32.mrf.mxu3  ;;  %v4521_v47 = vadd.f32 %v4520_v37, %v4432_v50  ;;  %v4345_v34 = vpop.f32.mrf.mxu0 }
 0x6e4   :  { %v4434_v63 = vpop.f32.mrf.mxu1  ;;  %v4346_v56 = vadd.f32 %v4345_v34, %v8274_v32 }
 0x6e5   :  { %v4610_v26 = vadd.f32 %v4609_v11, %v4521_v47 }
 0x6e6   :  { %v4435_v44 = vadd.f32 %v4434_v63, %v4346_v56  ;;  %4953 = vmatmul.bf16.gmra.mxu0 %v8985_v45 }
 0x6e7   :  { %5042 = vmatmul.bf16.gmra.mxu1 %v8401_v35  ;;  %v4678_v10 = vmax.f32 %v4610_v26, 0.0  ;;  %5131 = vmatmul.bf16.gmra.mxu2 %v8985_v45  ;;  %v72_v45 = vld [vmem:[#allocation2 + $0xa] sm:$0x3] }
 0x6e8   :  { %5220 = vmatmul.bf16.gmra.mxu3 %v8401_v35 }
 0x6e9   :  { %v8457_v2 = vpack.c.bf16 %v4678_v10, %v4676_v18  ;;  %v8476_v10 = vperm.slane %v72_v45, 0 }
 0x6ea   :  { %v4523_v38 = vpop.f32.mrf.mxu2 }
 0x6eb   :  { %v4612_v22 = vpop.f32.mrf.mxu3  ;;  %v4524_v20 = vadd.f32 %v4523_v38, %v4435_v44  ;;  %v4347_v13 = vpop.f32.mrf.mxu0 }
 0x6ec   :  { %v4436_v41 = vpop.f32.mrf.mxu1  ;;  %v4348_v15 = vadd.f32 %v4347_v13, %v8274_v32 }
 0x6ed   :  { %v4613_v0 = vadd.f32 %v4612_v22, %v4524_v20 }
 0x6ee   :  { %v4437_v17 = vadd.f32 %v4436_v41, %v4348_v15 }
 0x6ef   :  { %v4680_v51 = vmax.f32 %v4613_v0, 0.0 }
 0x6f2   :  { %v4525_v24 = vpop.f32.mrf.mxu2 }
 0x6f3   :  { %v4614_v36 = vpop.f32.mrf.mxu3  ;;  %v4526_v46 = vadd.f32 %v4525_v24, %v4437_v17  ;;  %v4350_v33 = vpop.f32.mrf.mxu0  ;;  %v8483_v17 = vperm.slane %v72_v45, 1 }
 0x6f4   :  { %v4439_v53 = vpop.f32.mrf.mxu1  ;;  %v4351_v59 = vadd.f32 %v4350_v33, %v8274_v32 }
 0x6f5   :  { %v4615_v49 = vadd.f32 %v4614_v36, %v4526_v46 }
 0x6f6   :  { %v4440_v35 = vadd.f32 %v4439_v53, %v4351_v59  ;;  %4958 = vmatmul.bf16.gmra.mxu0 %v8110_v43 }
 0x6f7   :  { %5047 = vmatmul.bf16.gmra.mxu1 %v8409_v60  ;;  %v4682_v21 = vmax.f32 %v4615_v49, 0.0  ;;  %5136 = vmatmul.bf16.gmra.mxu2 %v8110_v43 }
 0x6f8   :  { %5225 = vmatmul.bf16.gmra.mxu3 %v8409_v60 }
 0x6f9   :  { %v8465_v57 = vpack.c.bf16 %v4682_v21, %v4680_v51 }
 0x6fa   :  { %v4528_v42 = vpop.f32.mrf.mxu2 }
 0x6fb   :  { %v4617_v58 = vpop.f32.mrf.mxu3  ;;  %v4529_v1 = vadd.f32 %v4528_v42, %v4440_v35  ;;  %v4352_v3 = vpop.f32.mrf.mxu0 }
 0x6fc   :  { %v4441_v28 = vpop.f32.mrf.mxu1  ;;  %v4353_v48 = vadd.f32 %v4352_v3, %v8274_v32 }
 0x6fd   :  { %v4618_v31 = vadd.f32 %v4617_v58, %v4529_v1 }
 0x6fe   :  { %v4442_v61 = vadd.f32 %v4441_v28, %v4353_v48 }
 0x6ff   :  { %v4684_v6 = vmax.f32 %v4618_v31, 0.0 }
 0x702   :  { %v4530_v4 = vpop.f32.mrf.mxu2 }
 0x703   :  { %v4619_v8 = vpop.f32.mrf.mxu3  ;;  %v4531_v40 = vadd.f32 %v4530_v4, %v4442_v61  ;;  %v4355_v12 = vpop.f32.mrf.mxu0 }
 0x704   :  { %v4444_v39 = vpop.f32.mrf.mxu1  ;;  %v4356_v43 = vadd.f32 %v4355_v12, %v8274_v32 }
 0x705   :  { %v4620_v9 = vadd.f32 %v4619_v8, %v4531_v40 }
 0x706   :  { %v4445_v60 = vadd.f32 %v4444_v39, %v4356_v43  ;;  %4963 = vmatmul.bf16.gmra.mxu0 %v8130_v16 }
 0x707   :  { %5052 = vmatmul.bf16.gmra.mxu1 %v8417_v19  ;;  %v4686_v50 = vmax.f32 %v4620_v9, 0.0  ;;  %5141 = vmatmul.bf16.gmra.mxu2 %v8130_v16 }
 0x708   :  { %5230 = vmatmul.bf16.gmra.mxu3 %v8417_v19 }
 0x709   :  { %v8473_v37 = vpack.c.bf16 %v4686_v50, %v4684_v6 }
 0x70a   :  { %v4533_v11 = vpop.f32.mrf.mxu2 }
 0x70b   :  { %v4622_v47 = vpop.f32.mrf.mxu3  ;;  %v4534_v34 = vadd.f32 %v4533_v11, %v4445_v60  ;;  %v4357_v63 = vpop.f32.mrf.mxu0 }
 0x70c   :  { %v4446_v56 = vpop.f32.mrf.mxu1  ;;  %v4358_v26 = vadd.f32 %v4357_v63, %v8274_v32 }
 0x70d   :  { %v4623_v44 = vadd.f32 %v4622_v47, %v4534_v34 }
 0x70e   :  { %v4447_v18 = vadd.f32 %v4446_v56, %v4358_v26 }
 0x70f   :  { %v4688_v0 = vmax.f32 %v4623_v44, 0.0 }
 0x712   :  { %v4535_v38 = vpop.f32.mrf.mxu2 }
 0x713   :  { %v4624_v22 = vpop.f32.mrf.mxu3  ;;  %v4536_v20 = vadd.f32 %v4535_v38, %v4447_v18  ;;  %v4929_v16 = vpop.f32.mrf.mxu0 }
 0x714   :  { %v5018_v13 = vpop.f32.mrf.mxu1  ;;  %v4930_v19 = vadd.f32 %v4929_v16, %v8476_v10 }
 0x715   :  { %v4625_v41 = vadd.f32 %v4624_v22, %v4536_v20 }
 0x716   :  { %v5019_v15 = vadd.f32 %v5018_v13, %v4930_v19  ;;  %4968 = vmatmul.bf16.gmra.mxu0 %v8150_v5 }
 0x717   :  { %5057 = vmatmul.bf16.gmra.mxu1 %v8425_v25  ;;  %v4690_v32 = vmax.f32 %v4625_v41, 0.0  ;;  %5146 = vmatmul.bf16.gmra.mxu2 %v8150_v5 }
 0x718   :  { %5235 = vmatmul.bf16.gmra.mxu3 %v8425_v25  ;;  %5276 = vst [vmem:[#allocation8] sm:$0xff] %v5019_v15 }
 0x719   :  { %v8485_v24 = vpack.c.bf16 %v4690_v32, %v4688_v0 }
 0x71a   :  { %v5107_v36 = vpop.f32.mrf.mxu2 }
 0x71b   :  { %v5196_v46 = vpop.f32.mrf.mxu3  ;;  %v5108_v33 = vadd.f32 %v5107_v36, %v8483_v17  ;;  %v4931_v53 = vpop.f32.mrf.mxu0 }
 0x71c   :  { %v5020_v59 = vpop.f32.mrf.mxu1  ;;  %v4932_v49 = vadd.f32 %v4931_v53, %v8476_v10 }
 0x71d   :  { %v5197_v35 = vadd.f32 %v5196_v46, %v5108_v33 }
 0x71e   :  { %v5021_v51 = vadd.f32 %v5020_v59, %v4932_v49 }
 0x71f   :  { %5277 = vst [vmem:[#allocation8 + $0x8] sm:$0xff] %v5197_v35 }
 0x720   :  { %5278 = vst [vmem:[#allocation8 + $0x10] sm:$0xff] %v5021_v51 }
 0x722   :  { %v5109_v5 = vpop.f32.mrf.mxu2 }
 0x723   :  { %v5198_v21 = vpop.f32.mrf.mxu3  ;;  %v5110_v25 = vadd.f32 %v5109_v5, %v8483_v17  ;;  %v4934_v42 = vpop.f32.mrf.mxu0 }
 0x724   :  { %v5023_v58 = vpop.f32.mrf.mxu1  ;;  %v4935_v1 = vadd.f32 %v4934_v42, %v8476_v10 }
 0x725   :  { %v5199_v3 = vadd.f32 %v5198_v21, %v5110_v25 }
 0x726   :  { %v5024_v28 = vadd.f32 %v5023_v58, %v4935_v1  ;;  %4973 = vmatmul.bf16.gmra.mxu0 %v8170_v27 }
 0x727   :  { %5062 = vmatmul.bf16.gmra.mxu1 %v8433_v23  ;;  %5279 = vst [vmem:[#allocation8 + $0x18] sm:$0xff] %v5199_v3  ;;  %5151 = vmatmul.bf16.gmra.mxu2 %v8170_v27 }
 0x728   :  { %5240 = vmatmul.bf16.gmra.mxu3 %v8433_v23  ;;  %5280 = vst [vmem:[#allocation8 + $0x20] sm:$0xff] %v5024_v28 }
 0x72a   :  { %v5112_v48 = vpop.f32.mrf.mxu2 }
 0x72b   :  { %v5201_v31 = vpop.f32.mrf.mxu3  ;;  %v5113_v61 = vadd.f32 %v5112_v48, %v8483_v17  ;;  %v4936_v4 = vpop.f32.mrf.mxu0 }
 0x72c   :  { %v5025_v8 = vpop.f32.mrf.mxu1  ;;  %v4937_v40 = vadd.f32 %v4936_v4, %v8476_v10 }
 0x72d   :  { %v5202_v12 = vadd.f32 %v5201_v31, %v5113_v61 }
 0x72e   :  { %v5026_v39 = vadd.f32 %v5025_v8, %v4937_v40 }
 0x72f   :  { %5281 = vst [vmem:[#allocation8 + $0x28] sm:$0xff] %v5202_v12 }
 0x730   :  { %5282 = vst [vmem:[#allocation8 + $0x30] sm:$0xff] %v5026_v39 }
 0x732   :  { %v5114_v43 = vpop.f32.mrf.mxu2 }
 0x733   :  { %v5203_v9 = vpop.f32.mrf.mxu3  ;;  %v5115_v60 = vadd.f32 %v5114_v43, %v8483_v17  ;;  %v4939_v27 = vpop.f32.mrf.mxu0 }
 0x734   :  { %v5028_v6 = vpop.f32.mrf.mxu1  ;;  %v4940_v23 = vadd.f32 %v4939_v27, %v8476_v10 }
 0x735   :  { %v5204_v50 = vadd.f32 %v5203_v9, %v5115_v60 }
 0x736   :  { %v5029_v11 = vadd.f32 %v5028_v6, %v4940_v23  ;;  %4978 = vmatmul.bf16.gmra.mxu0 %v8190_v55 }
 0x737   :  { %5067 = vmatmul.bf16.gmra.mxu1 %v8441_v29  ;;  %5283 = vst [vmem:[#allocation8 + $0x38] sm:$0xff] %v5204_v50  ;;  %5156 = vmatmul.bf16.gmra.mxu2 %v8190_v55 }
 0x738   :  { %5245 = vmatmul.bf16.gmra.mxu3 %v8441_v29  ;;  %5284 = vst [vmem:[#allocation8 + $0x40] sm:$0xff] %v5029_v11 }
 0x73a   :  { %v5117_v47 = vpop.f32.mrf.mxu2 }
 0x73b   :  { %v5206_v34 = vpop.f32.mrf.mxu3  ;;  %v5118_v63 = vadd.f32 %v5117_v47, %v8483_v17  ;;  %v4941_v56 = vpop.f32.mrf.mxu0 }
 0x73c   :  { %v5030_v26 = vpop.f32.mrf.mxu1  ;;  %v4942_v44 = vadd.f32 %v4941_v56, %v8476_v10 }
 0x73d   :  { %v5207_v45 = vadd.f32 %v5206_v34, %v5118_v63 }
 0x73e   :  { %v5031_v18 = vadd.f32 %v5030_v26, %v4942_v44 }
 0x73f   :  { %5285 = vst [vmem:[#allocation8 + $0x48] sm:$0xff] %v5207_v45 }
 0x740   :  { %5286 = vst [vmem:[#allocation8 + $0x50] sm:$0xff] %v5031_v18 }
 0x742   :  { %v5119_v38 = vpop.f32.mrf.mxu2 }
 0x743   :  { %v5208_v22 = vpop.f32.mrf.mxu3  ;;  %v5120_v20 = vadd.f32 %v5119_v38, %v8483_v17  ;;  %v4944_v55 = vpop.f32.mrf.mxu0 }
 0x744   :  { %v5033_v16 = vpop.f32.mrf.mxu1  ;;  %v4945_v29 = vadd.f32 %v4944_v55, %v8476_v10 }
 0x745   :  { %v5209_v13 = vadd.f32 %v5208_v22, %v5120_v20 }
 0x746   :  { %v5034_v19 = vadd.f32 %v5033_v16, %v4945_v29  ;;  %4983 = vmatmul.bf16.gmra.mxu0 %v8210_v14 }
 0x747   :  { %5072 = vmatmul.bf16.gmra.mxu1 %v8449_v30  ;;  %5287 = vst [vmem:[#allocation8 + $0x58] sm:$0xff] %v5209_v13  ;;  %5161 = vmatmul.bf16.gmra.mxu2 %v8210_v14 }
 0x748   :  { %5250 = vmatmul.bf16.gmra.mxu3 %v8449_v30  ;;  %5288 = vst [vmem:[#allocation8 + $0x60] sm:$0xff] %v5034_v19 }
 0x74a   :  { %v5122_v41 = vpop.f32.mrf.mxu2 }
 0x74b   :  { %v5211_v15 = vpop.f32.mrf.mxu3  ;;  %v5123_v0 = vadd.f32 %v5122_v41, %v8483_v17  ;;  %v4946_v32 = vpop.f32.mrf.mxu0 }
 0x74c   :  { %v5035_v36 = vpop.f32.mrf.mxu1  ;;  %v4947_v46 = vadd.f32 %v4946_v32, %v8476_v10 }
 0x74d   :  { %v5212_v33 = vadd.f32 %v5211_v15, %v5123_v0 }
 0x74e   :  { %v5036_v53 = vadd.f32 %v5035_v36, %v4947_v46 }
 0x74f   :  { %5289 = vst [vmem:[#allocation8 + $0x68] sm:$0xff] %v5212_v33 }
 0x750   :  { %5290 = vst [vmem:[#allocation8 + $0x70] sm:$0xff] %v5036_v53 }
 0x752   :  { %v5124_v59 = vpop.f32.mrf.mxu2 }
 0x753   :  { %v5213_v49 = vpop.f32.mrf.mxu3  ;;  %v5125_v35 = vadd.f32 %v5124_v59, %v8483_v17  ;;  %v4949_v14 = vpop.f32.mrf.mxu0 }
 0x754   :  { %v5038_v51 = vpop.f32.mrf.mxu1  ;;  %v4950_v30 = vadd.f32 %v4949_v14, %v8476_v10 }
 0x755   :  { %v5214_v5 = vadd.f32 %v5213_v49, %v5125_v35 }
 0x756   :  { %v5039_v21 = vadd.f32 %v5038_v51, %v4950_v30  ;;  %4988 = vmatmul.bf16.gmra.mxu0 %v8230_v54 }
 0x757   :  { %5077 = vmatmul.bf16.gmra.mxu1 %v8457_v2  ;;  %5291 = vst [vmem:[#allocation8 + $0x78] sm:$0xff] %v5214_v5  ;;  %5166 = vmatmul.bf16.gmra.mxu2 %v8230_v54 }
 0x758   :  { %5255 = vmatmul.bf16.gmra.mxu3 %v8457_v2  ;;  %5292 = vst [vmem:[#allocation8 + $0x80] sm:$0xff] %v5039_v21 }
 0x75a   :  { %v5127_v25 = vpop.f32.mrf.mxu2 }
 0x75b   :  { %v5216_v42 = vpop.f32.mrf.mxu3  ;;  %v5128_v58 = vadd.f32 %v5127_v25, %v8483_v17  ;;  %v4951_v1 = vpop.f32.mrf.mxu0 }
 0x75c   :  { %v5040_v3 = vpop.f32.mrf.mxu1  ;;  %v4952_v28 = vadd.f32 %v4951_v1, %v8476_v10 }
 0x75d   :  { %v5217_v48 = vadd.f32 %v5216_v42, %v5128_v58 }
 0x75e   :  { %v5041_v31 = vadd.f32 %v5040_v3, %v4952_v28 }
 0x75f   :  { %5293 = vst [vmem:[#allocation8 + $0x88] sm:$0xff] %v5217_v48 }
 0x760   :  { %5294 = vst [vmem:[#allocation8 + $0x90] sm:$0xff] %v5041_v31 }
 0x762   :  { %v5129_v61 = vpop.f32.mrf.mxu2 }
 0x763   :  { %v5218_v4 = vpop.f32.mrf.mxu3  ;;  %v5130_v8 = vadd.f32 %v5129_v61, %v8483_v17  ;;  %v4954_v54 = vpop.f32.mrf.mxu0 }
 0x764   :  { %v5043_v40 = vpop.f32.mrf.mxu1  ;;  %v4955_v2 = vadd.f32 %v4954_v54, %v8476_v10 }
 0x765   :  { %v5219_v12 = vadd.f32 %v5218_v4, %v5130_v8 }
 0x766   :  { %v5044_v39 = vadd.f32 %v5043_v40, %v4955_v2  ;;  %4993 = vmatmul.bf16.gmra.mxu0 %v8250_v7 }
 0x767   :  { %5082 = vmatmul.bf16.gmra.mxu1 %v8465_v57  ;;  %5295 = vst [vmem:[#allocation8 + $0x98] sm:$0xff] %v5219_v12  ;;  %5171 = vmatmul.bf16.gmra.mxu2 %v8250_v7 }
 0x768   :  { %5260 = vmatmul.bf16.gmra.mxu3 %v8465_v57  ;;  %5296 = vst [vmem:[#allocation8 + $0xa0] sm:$0xff] %v5044_v39 }
 0x76a   :  { %v5132_v43 = vpop.f32.mrf.mxu2 }
 0x76b   :  { %v5221_v9 = vpop.f32.mrf.mxu3  ;;  %v5133_v60 = vadd.f32 %v5132_v43, %v8483_v17  ;;  %v4956_v27 = vpop.f32.mrf.mxu0 }
 0x76c   :  { %v5045_v6 = vpop.f32.mrf.mxu1  ;;  %v4957_v23 = vadd.f32 %v4956_v27, %v8476_v10 }
 0x76d   :  { %v5222_v50 = vadd.f32 %v5221_v9, %v5133_v60 }
 0x76e   :  { %v5046_v11 = vadd.f32 %v5045_v6, %v4957_v23 }
 0x76f   :  { %5297 = vst [vmem:[#allocation8 + $0xa8] sm:$0xff] %v5222_v50 }
 0x770   :  { %5298 = vst [vmem:[#allocation8 + $0xb0] sm:$0xff] %v5046_v11 }
 0x772   :  { %v5134_v47 = vpop.f32.mrf.mxu2 }
 0x773   :  { %v5223_v34 = vpop.f32.mrf.mxu3  ;;  %v5135_v63 = vadd.f32 %v5134_v47, %v8483_v17  ;;  %v4959_v7 = vpop.f32.mrf.mxu0 }
 0x774   :  { %v5048_v56 = vpop.f32.mrf.mxu1  ;;  %v4960_v57 = vadd.f32 %v4959_v7, %v8476_v10 }
 0x775   :  { %v5224_v26 = vadd.f32 %v5223_v34, %v5135_v63 }
 0x776   :  { %v5049_v44 = vadd.f32 %v5048_v56, %v4960_v57  ;;  %4998 = vmatmul.bf16.gmra.mxu0 %v8270_v52 }
 0x777   :  { %5087 = vmatmul.bf16.gmra.mxu1 %v8473_v37  ;;  %5299 = vst [vmem:[#allocation8 + $0xb8] sm:$0xff] %v5224_v26  ;;  %5176 = vmatmul.bf16.gmra.mxu2 %v8270_v52 }
 0x778   :  { %5265 = vmatmul.bf16.gmra.mxu3 %v8473_v37  ;;  %5300 = vst [vmem:[#allocation8 + $0xc0] sm:$0xff] %v5049_v44 }
 0x77a   :  { %v5137_v45 = vpop.f32.mrf.mxu2 }
 0x77b   :  { %v5226_v18 = vpop.f32.mrf.mxu3  ;;  %v5138_v38 = vadd.f32 %v5137_v45, %v8483_v17  ;;  %v4961_v22 = vpop.f32.mrf.mxu0 }
 0x77c   :  { %v5050_v20 = vpop.f32.mrf.mxu1  ;;  %v4962_v55 = vadd.f32 %v4961_v22, %v8476_v10 }
 0x77d   :  { %v5227_v16 = vadd.f32 %v5226_v18, %v5138_v38 }
 0x77e   :  { %v5051_v29 = vadd.f32 %v5050_v20, %v4962_v55 }
 0x77f   :  { %5301 = vst [vmem:[#allocation8 + $0xc8] sm:$0xff] %v5227_v16 }
 0x780   :  { %5302 = vst [vmem:[#allocation8 + $0xd0] sm:$0xff] %v5051_v29 }
 0x782   :  { %v5139_v13 = vpop.f32.mrf.mxu2 }
 0x783   :  { %v5228_v19 = vpop.f32.mrf.mxu3  ;;  %v5140_v41 = vadd.f32 %v5139_v13, %v8483_v17  ;;  %v4964_v52 = vpop.f32.mrf.mxu0 }
 0x784   :  { %v5053_v15 = vpop.f32.mrf.mxu1  ;;  %v4965_v37 = vadd.f32 %v4964_v52, %v8476_v10 }
 0x785   :  { %v5229_v0 = vadd.f32 %v5228_v19, %v5140_v41 }
 0x786   :  { %v5054_v32 = vadd.f32 %v5053_v15, %v4965_v37  ;;  %5003 = vmatmul.bf16.gmra.mxu0 %v8293_v62 }
 0x787   :  { %5092 = vmatmul.bf16.gmra.mxu1 %v8485_v24  ;;  %5303 = vst [vmem:[#allocation8 + $0xd8] sm:$0xff] %v5229_v0  ;;  %5181 = vmatmul.bf16.gmra.mxu2 %v8293_v62 }
 0x788   :  { %5270 = vmatmul.bf16.gmra.mxu3 %v8485_v24  ;;  %5304 = vst [vmem:[#allocation8 + $0xe0] sm:$0xff] %v5054_v32 }
 0x78a   :  { %v5142_v36 = vpop.f32.mrf.mxu2 }
 0x78b   :  { %v5231_v46 = vpop.f32.mrf.mxu3  ;;  %v5143_v33 = vadd.f32 %v5142_v36, %v8483_v17  ;;  %v4966_v53 = vpop.f32.mrf.mxu0 }
 0x78c   :  { %v5055_v59 = vpop.f32.mrf.mxu1  ;;  %v4967_v49 = vadd.f32 %v4966_v53, %v8476_v10 }
 0x78d   :  { %v5232_v35 = vadd.f32 %v5231_v46, %v5143_v33 }
 0x78e   :  { %v5056_v14 = vadd.f32 %v5055_v59, %v4967_v49 }
 0x78f   :  { %5305 = vst [vmem:[#allocation8 + $0xe8] sm:$0xff] %v5232_v35 }
 0x790   :  { %5306 = vst [vmem:[#allocation8 + $0xf0] sm:$0xff] %v5056_v14 }
 0x792   :  { %v5144_v51 = vpop.f32.mrf.mxu2 }
 0x793   :  { %v5233_v30 = vpop.f32.mrf.mxu3  ;;  %v5145_v5 = vadd.f32 %v5144_v51, %v8483_v17  ;;  %v4969_v62 = vpop.f32.mrf.mxu0 }
 0x794   :  { %v5058_v21 = vpop.f32.mrf.mxu1  ;;  %v4970_v24 = vadd.f32 %v4969_v62, %v8476_v10 }
 0x795   :  { %v5234_v25 = vadd.f32 %v5233_v30, %v5145_v5 }
 0x796   :  { %v5059_v42 = vadd.f32 %v5058_v21, %v4970_v24 }
 0x797   :  { %5307 = vst [vmem:[#allocation8 + $0xf8] sm:$0xff] %v5234_v25 }
 0x798   :  { %5308 = vst [vmem:[#allocation8 + $0x100] sm:$0xff] %v5059_v42 }
 0x79a   :  { %v5147_v58 = vpop.f32.mrf.mxu2 }
 0x79b   :  { %v5236_v1 = vpop.f32.mrf.mxu3  ;;  %v5148_v3 = vadd.f32 %v5147_v58, %v8483_v17  ;;  %v4971_v28 = vpop.f32.mrf.mxu0 }
 0x79c   :  { %v5060_v48 = vpop.f32.mrf.mxu1  ;;  %v4972_v31 = vadd.f32 %v4971_v28, %v8476_v10 }
 0x79d   :  { %v5237_v61 = vadd.f32 %v5236_v1, %v5148_v3 }
 0x79e   :  { %v5061_v4 = vadd.f32 %v5060_v48, %v4972_v31 }
 0x79f   :  { %5309 = vst [vmem:[#allocation8 + $0x108] sm:$0xff] %v5237_v61 }
 0x7a0   :  { %5310 = vst [vmem:[#allocation8 + $0x110] sm:$0xff] %v5061_v4 }
 0x7a2   :  { %v5149_v8 = vpop.f32.mrf.mxu2 }
 0x7a3   :  { %v5238_v54 = vpop.f32.mrf.mxu3  ;;  %v5150_v40 = vadd.f32 %v5149_v8, %v8483_v17  ;;  %v4974_v2 = vpop.f32.mrf.mxu0 }
 0x7a4   :  { %v5063_v12 = vpop.f32.mrf.mxu1  ;;  %v4975_v39 = vadd.f32 %v4974_v2, %v8476_v10 }
 0x7a5   :  { %v5239_v43 = vadd.f32 %v5238_v54, %v5150_v40 }
 0x7a6   :  { %v5064_v9 = vadd.f32 %v5063_v12, %v4975_v39 }
 0x7a7   :  { %5311 = vst [vmem:[#allocation8 + $0x118] sm:$0xff] %v5239_v43 }
 0x7a8   :  { %5312 = vst [vmem:[#allocation8 + $0x120] sm:$0xff] %v5064_v9 }
 0x7aa   :  { %v5152_v60 = vpop.f32.mrf.mxu2 }
 0x7ab   :  { %v5241_v27 = vpop.f32.mrf.mxu3  ;;  %v5153_v6 = vadd.f32 %v5152_v60, %v8483_v17  ;;  %v4976_v23 = vpop.f32.mrf.mxu0 }
 0x7ac   :  { %v5065_v50 = vpop.f32.mrf.mxu1  ;;  %v4977_v11 = vadd.f32 %v4976_v23, %v8476_v10 }
 0x7ad   :  { %v5242_v47 = vadd.f32 %v5241_v27, %v5153_v6 }
 0x7ae   :  { %v5066_v34 = vadd.f32 %v5065_v50, %v4977_v11 }
 0x7af   :  { %5313 = vst [vmem:[#allocation8 + $0x128] sm:$0xff] %v5242_v47 }
 0x7b0   :  { %5314 = vst [vmem:[#allocation8 + $0x130] sm:$0xff] %v5066_v34 }
 0x7b2   :  { %v5154_v63 = vpop.f32.mrf.mxu2 }
 0x7b3   :  { %v5243_v7 = vpop.f32.mrf.mxu3  ;;  %v5155_v56 = vadd.f32 %v5154_v63, %v8483_v17  ;;  %v4979_v57 = vpop.f32.mrf.mxu0 }
 0x7b4   :  { %v5068_v26 = vpop.f32.mrf.mxu1  ;;  %v4980_v44 = vadd.f32 %v4979_v57, %v8476_v10 }
 0x7b5   :  { %v5244_v45 = vadd.f32 %v5243_v7, %v5155_v56 }
 0x7b6   :  { %v5069_v18 = vadd.f32 %v5068_v26, %v4980_v44 }
 0x7b7   :  { %5315 = vst [vmem:[#allocation8 + $0x138] sm:$0xff] %v5244_v45 }
 0x7b8   :  { %5316 = vst [vmem:[#allocation8 + $0x140] sm:$0xff] %v5069_v18 }
 0x7ba   :  { %v5157_v38 = vpop.f32.mrf.mxu2 }
 0x7bb   :  { %v5246_v22 = vpop.f32.mrf.mxu3  ;;  %v5158_v20 = vadd.f32 %v5157_v38, %v8483_v17  ;;  %v4981_v55 = vpop.f32.mrf.mxu0 }
 0x7bc   :  { %v5070_v16 = vpop.f32.mrf.mxu1  ;;  %v4982_v29 = vadd.f32 %v4981_v55, %v8476_v10 }
 0x7bd   :  { %v5247_v13 = vadd.f32 %v5246_v22, %v5158_v20 }
 0x7be   :  { %v5071_v19 = vadd.f32 %v5070_v16, %v4982_v29 }
 0x7bf   :  { %5317 = vst [vmem:[#allocation8 + $0x148] sm:$0xff] %v5247_v13 }
 0x7c0   :  { %5318 = vst [vmem:[#allocation8 + $0x150] sm:$0xff] %v5071_v19 }
 0x7c2   :  { %v5159_v41 = vpop.f32.mrf.mxu2 }
 0x7c3   :  { %v5248_v52 = vpop.f32.mrf.mxu3  ;;  %v5160_v15 = vadd.f32 %v5159_v41, %v8483_v17  ;;  %v4984_v37 = vpop.f32.mrf.mxu0 }
 0x7c4   :  { %v5073_v0 = vpop.f32.mrf.mxu1  ;;  %v4985_v32 = vadd.f32 %v4984_v37, %v8476_v10 }
 0x7c5   :  { %v5249_v36 = vadd.f32 %v5248_v52, %v5160_v15 }
 0x7c6   :  { %v5074_v46 = vadd.f32 %v5073_v0, %v4985_v32 }
 0x7c7   :  { %5319 = vst [vmem:[#allocation8 + $0x158] sm:$0xff] %v5249_v36 }
 0x7c8   :  { %5320 = vst [vmem:[#allocation8 + $0x160] sm:$0xff] %v5074_v46 }
 0x7ca   :  { %v5162_v33 = vpop.f32.mrf.mxu2 }
 0x7cb   :  { %v5251_v53 = vpop.f32.mrf.mxu3  ;;  %v5163_v59 = vadd.f32 %v5162_v33, %v8483_v17  ;;  %v4986_v49 = vpop.f32.mrf.mxu0 }
 0x7cc   :  { %v5075_v35 = vpop.f32.mrf.mxu1  ;;  %v4987_v14 = vadd.f32 %v4986_v49, %v8476_v10 }
 0x7cd   :  { %v5252_v51 = vadd.f32 %v5251_v53, %v5163_v59 }
 0x7ce   :  { %v5076_v30 = vadd.f32 %v5075_v35, %v4987_v14 }
 0x7cf   :  { %5321 = vst [vmem:[#allocation8 + $0x168] sm:$0xff] %v5252_v51 }
 0x7d0   :  { %5322 = vst [vmem:[#allocation8 + $0x170] sm:$0xff] %v5076_v30 }
 0x7d2   :  { %v5164_v5 = vpop.f32.mrf.mxu2 }
 0x7d3   :  { %v5253_v62 = vpop.f32.mrf.mxu3  ;;  %v5165_v21 = vadd.f32 %v5164_v5, %v8483_v17  ;;  %v4989_v24 = vpop.f32.mrf.mxu0 }
 0x7d4   :  { %v5078_v25 = vpop.f32.mrf.mxu1  ;;  %v4990_v42 = vadd.f32 %v4989_v24, %v8476_v10 }
 0x7d5   :  { %v5254_v58 = vadd.f32 %v5253_v62, %v5165_v21 }
 0x7d6   :  { %v5079_v1 = vadd.f32 %v5078_v25, %v4990_v42 }
 0x7d7   :  { %5323 = vst [vmem:[#allocation8 + $0x178] sm:$0xff] %v5254_v58 }
 0x7d8   :  { %5324 = vst [vmem:[#allocation8 + $0x180] sm:$0xff] %v5079_v1 }
 0x7da   :  { %v5167_v3 = vpop.f32.mrf.mxu2 }
 0x7db   :  { %v5256_v28 = vpop.f32.mrf.mxu3  ;;  %v5168_v48 = vadd.f32 %v5167_v3, %v8483_v17  ;;  %v4991_v31 = vpop.f32.mrf.mxu0 }
 0x7dc   :  { %v5080_v61 = vpop.f32.mrf.mxu1  ;;  %v4992_v4 = vadd.f32 %v4991_v31, %v8476_v10 }
 0x7dd   :  { %v5257_v8 = vadd.f32 %v5256_v28, %v5168_v48 }
 0x7de   :  { %v5081_v54 = vadd.f32 %v5080_v61, %v4992_v4 }
 0x7df   :  { %5325 = vst [vmem:[#allocation8 + $0x188] sm:$0xff] %v5257_v8 }
 0x7e0   :  { %5326 = vst [vmem:[#allocation8 + $0x190] sm:$0xff] %v5081_v54 }
 0x7e2   :  { %v5169_v40 = vpop.f32.mrf.mxu2 }
 0x7e3   :  { %v5258_v2 = vpop.f32.mrf.mxu3  ;;  %v5170_v12 = vadd.f32 %v5169_v40, %v8483_v17  ;;  %v4994_v39 = vpop.f32.mrf.mxu0 }
 0x7e4   :  { %v5083_v43 = vpop.f32.mrf.mxu1  ;;  %v4995_v9 = vadd.f32 %v4994_v39, %v8476_v10 }
 0x7e5   :  { %v5259_v60 = vadd.f32 %v5258_v2, %v5170_v12 }
 0x7e6   :  { %v5084_v27 = vadd.f32 %v5083_v43, %v4995_v9 }
 0x7e7   :  { %5327 = vst [vmem:[#allocation8 + $0x198] sm:$0xff] %v5259_v60 }
 0x7e8   :  { %5328 = vst [vmem:[#allocation8 + $0x1a0] sm:$0xff] %v5084_v27 }
 0x7ea   :  { %v5172_v6 = vpop.f32.mrf.mxu2 }
 0x7eb   :  { %v5261_v23 = vpop.f32.mrf.mxu3  ;;  %v5173_v50 = vadd.f32 %v5172_v6, %v8483_v17  ;;  %v4996_v11 = vpop.f32.mrf.mxu0 }
 0x7ec   :  { %v5085_v47 = vpop.f32.mrf.mxu1  ;;  %v4997_v34 = vadd.f32 %v4996_v11, %v8476_v10 }
 0x7ed   :  { %v5262_v63 = vadd.f32 %v5261_v23, %v5173_v50 }
 0x7ee   :  { %v5086_v7 = vadd.f32 %v5085_v47, %v4997_v34 }
 0x7ef   :  { %5329 = vst [vmem:[#allocation8 + $0x1a8] sm:$0xff] %v5262_v63 }
 0x7f0   :  { %5330 = vst [vmem:[#allocation8 + $0x1b0] sm:$0xff] %v5086_v7 }
 0x7f2   :  { %v5174_v56 = vpop.f32.mrf.mxu2 }
 0x7f3   :  { %v5263_v57 = vpop.f32.mrf.mxu3  ;;  %v5175_v26 = vadd.f32 %v5174_v56, %v8483_v17  ;;  %v4999_v44 = vpop.f32.mrf.mxu0 }
 0x7f4   :  { %v5088_v45 = vpop.f32.mrf.mxu1  ;;  %v5000_v18 = vadd.f32 %v4999_v44, %v8476_v10 }
 0x7f5   :  { %v5264_v38 = vadd.f32 %v5263_v57, %v5175_v26 }
 0x7f6   :  { %v5089_v22 = vadd.f32 %v5088_v45, %v5000_v18 }
 0x7f7   :  { %5331 = vst [vmem:[#allocation8 + $0x1b8] sm:$0xff] %v5264_v38 }
 0x7f8   :  { %5332 = vst [vmem:[#allocation8 + $0x1c0] sm:$0xff] %v5089_v22 }
 0x7fa   :  { %v5177_v20 = vpop.f32.mrf.mxu2 }
 0x7fb   :  { %v5266_v55 = vpop.f32.mrf.mxu3  ;;  %v5178_v16 = vadd.f32 %v5177_v20, %v8483_v17  ;;  %v5001_v29 = vpop.f32.mrf.mxu0 }
 0x7fc   :  { %v5090_v13 = vpop.f32.mrf.mxu1  ;;  %v5002_v19 = vadd.f32 %v5001_v29, %v8476_v10 }
 0x7fd   :  { %v5267_v41 = vadd.f32 %v5266_v55, %v5178_v16 }
 0x7fe   :  { %v5091_v52 = vadd.f32 %v5090_v13, %v5002_v19 }
 0x7ff   :  { %5333 = vst [vmem:[#allocation8 + $0x1c8] sm:$0xff] %v5267_v41 }
 0x800   :  { %5334 = vst [vmem:[#allocation8 + $0x1d0] sm:$0xff] %v5091_v52 }
 0x802   :  { %v5179_v15 = vpop.f32.mrf.mxu2 }
 0x803   :  { %v5268_v37 = vpop.f32.mrf.mxu3  ;;  %v5180_v0 = vadd.f32 %v5179_v15, %v8483_v17  ;;  %v5004_v32 = vpop.f32.mrf.mxu0 }
 0x804   :  { %v5093_v36 = vpop.f32.mrf.mxu1  ;;  %v5005_v46 = vadd.f32 %v5004_v32, %v8476_v10 }
 0x805   :  { %v5269_v33 = vadd.f32 %v5268_v37, %v5180_v0 }
 0x806   :  { %v5094_v53 = vadd.f32 %v5093_v36, %v5005_v46 }
 0x807   :  { %5335 = vst [vmem:[#allocation8 + $0x1d8] sm:$0xff] %v5269_v33 }
 0x808   :  { %5336 = vst [vmem:[#allocation8 + $0x1e0] sm:$0xff] %v5094_v53 }
 0x80a   :  { %v5182_v59 = vpop.f32.mrf.mxu2 }
 0x80b   :  { %v5271_v49 = vpop.f32.mrf.mxu3  ;;  %v5183_v35 = vadd.f32 %v5182_v59, %v8483_v17  ;;  %v5006_v14 = vpop.f32.mrf.mxu0 }
 0x80c   :  { %v5007_v51 = vadd.f32 %v5006_v14, %v8476_v10  ;;  %v5095_v5 = vpop.f32.mrf.mxu1 }
 0x80d   :  { %v5272_v30 = vadd.f32 %v5271_v49, %v5183_v35 }
 0x80e   :  { %v5096_v62 = vadd.f32 %v5095_v5, %v5007_v51 }
 0x80f   :  { %5337 = vst [vmem:[#allocation8 + $0x1e8] sm:$0xff] %v5272_v30 }
 0x810   :  { %5338 = vst [vmem:[#allocation8 + $0x1f0] sm:$0xff] %v5096_v62 }
 0x812   :  { %v5184_v21 = vpop.f32.mrf.mxu2 }
 0x813   :  { %v5185_v24 = vadd.f32 %v5184_v21, %v8483_v17  ;;  %v5273_v25 = vpop.f32.mrf.mxu3 }
 0x815   :  { %v5274_v42 = vadd.f32 %v5273_v25, %v5185_v24 }
 0x817   :  { %5339 = vst [vmem:[#allocation8 + $0x1f8] sm:$0xff] %v5274_v42 }
 0x818   :  { %5352 = dma.vmem_to_hbm [thread:$0]  %s5345_s21, 8192, %s5347_s24, [#allocation4], %s6633_s29, %s6633_s29, %s6634_s30  }
 0x819   :  { %6630 = dma.done.wait [#allocation4], 8192  }
 0x81a   :  { %6631 = vsyncadd [#allocation4], 4294959104 }
 0x81b   :  { %5357 = vsyncpa [#allocation3], 1 }
 0x81c   :  { %5358 = vsyncpa [#allocation6], 1 }
 0x81d   :  { %5359 = vsyncpa [#allocation4], 1 }

</bundles_post_ra>
